<compile_context>
chip_gen: v7x
topology: tpu7x:2x2x1
jax: 0.10.0
libtpu: 0.0.40
codegen_flags: <defaults>
</compile_context>

<pallas_src>
import math

import jax
import jax.numpy as jnp
from jax import lax
from jax.experimental import pallas as pl
from jax.experimental.pallas import tpu as pltpu

# ---------------- problem sizes (consistent with the module) -----------------
N = 8                    # nodes per graph (power of two -> cheap graph-id mask)
IN_DIM = 32              # in_dim
OUT_DIM = 32             # out_dim (== in_dim so residual_heads is active)
NUM_HEADS = 4
HEAD_DIM = OUT_DIM // NUM_HEADS       # 8
FFN_DIM = OUT_DIM * 2                 # 64
LN_EPS = 1e-5
L1_EPS = 1e-12

GPB = 16                 # graphs per grid step
BLOCK_ROWS = GPB * N     # 128 rows of nodes per grid step

# -------- packed parameter slab layout (row offsets, lane width SLAB_W) ------
SLAB_W = 64                                   # widest matrix (FFN_DIM) fits
Q_OFF = 0                                     # per-head Wq, rows h*IN_DIM..+31, cols 0:8
K_OFF = Q_OFF + NUM_HEADS * IN_DIM            # 128
V_OFF = K_OFF + NUM_HEADS * IN_DIM            # 256
WO_OFF = V_OFF + NUM_HEADS * IN_DIM           # 384  Wo rows h*HEAD_DIM..+7, cols 0:32
W1_OFF = WO_OFF + OUT_DIM                     # 416  W1 [32,64]
W2_OFF = W1_OFF + OUT_DIM                     # 448  W2 [64,32]
W_ROWS = W2_OFF + FFN_DIM                     # 512

BO_ROW, B1_ROW, B2_ROW = 0, 1, 2              # bias / LN vector slab rows (f32)
G1_ROW, BE1_ROW, G2_ROW, BE2_ROW = 3, 4, 5, 6
QKV_BIAS_OFF = 8                              # rows 8..11: [bq_h | bk_h | bv_h]
V_ROWS = 16

assert (N & (N - 1)) == 0, "N must be a power of two for the xor graph mask"


# ---------------------------- Pallas kernel ----------------------------------
def gta3_kernel(alpha_ref, w_ref, vec_ref, h_ref, a_ref, vrow_ref, vcol_ref,
                out_ref):
    R = BLOCK_ROWS
    alpha = alpha_ref[0]                       # f32 scalar (SMEM)

    h32 = h_ref[...]                           # [R, IN_DIM] f32
    hbf = h32.astype(jnp.bfloat16)             # MXU operand

    valid_r = vrow_ref[...]                    # [R, 1]  1.0 = real node (query side)
    valid_c = vcol_ref[...]                    # [1, R]  1.0 = real node (key side)

    # same-graph (block-diagonal) mask: r//N == c//N  <=>  (r ^ c) < N
    row_i = lax.broadcasted_iota(jnp.int32, (R, R), 0)
    col_i = lax.broadcasted_iota(jnp.int32, (R, R), 1)
    same_graph = jnp.bitwise_xor(row_i, col_i) < N
    key_ok = same_graph & (valid_c > 0.5)      # usable key columns

    # transposed shortest-path rows, lane-tiled: a_t[r, c] = A^T[g(r), n(r), n(c)]
    # (only the same-graph columns are ever used; cross-graph attn is exactly 0)
    a_row = a_ref[...]                                       # [R, N]
    a_t = jnp.concatenate([a_row] * (R // N), axis=1)        # [R, R]
    phi_w = jnp.exp(a_t * alpha)
    a_zero = a_t == 0.0

    inv_sqrt_d = jnp.float32(1.0 / math.sqrt(HEAD_DIM))
    neg_big = jnp.float32(-1e30)

    o_acc = jnp.zeros((R, OUT_DIM), jnp.float32)
    for hd in range(NUM_HEADS):                # static unroll (4 heads)
        # static, sublane-aligned row slices of the packed weight slab
        wq = w_ref[Q_OFF + hd * IN_DIM:Q_OFF + (hd + 1) * IN_DIM, 0:HEAD_DIM]
        wk = w_ref[K_OFF + hd * IN_DIM:K_OFF + (hd + 1) * IN_DIM, 0:HEAD_DIM]
        wv = w_ref[V_OFF + hd * IN_DIM:V_OFF + (hd + 1) * IN_DIM, 0:HEAD_DIM]
        b = vec_ref[QKV_BIAS_OFF + hd:QKV_BIAS_OFF + hd + 1, :]    # [1, SLAB_W] f32
        bq = b[:, 0:HEAD_DIM]
        bk = b[:, HEAD_DIM:2 * HEAD_DIM]
        bv = b[:, 2 * HEAD_DIM:3 * HEAD_DIM]

        q = jnp.dot(hbf, wq, preferred_element_type=jnp.float32) + bq   # [R, D]
        k = jnp.dot(hbf, wk, preferred_element_type=jnp.float32) + bk
        v = jnp.dot(hbf, wv, preferred_element_type=jnp.float32) + bv

        # block-diagonal scores over the whole 16-graph tile at once
        s = lax.dot_general(q.astype(jnp.bfloat16), k.astype(jnp.bfloat16),
                            (((1,), (1,)), ((), ())),
                            preferred_element_type=jnp.float32) * inv_sqrt_d
        s = jnp.where(key_ok, s, neg_big)
        m = jnp.max(s, axis=-1, keepdims=True)
        p = jnp.exp(s - m)
        attn = p * pl.reciprocal(jnp.sum(p, axis=-1, keepdims=True), approx=True)
        attn = attn * valid_r                  # zero padded query rows (post-softmax)

        # phi_alpha_pow_dist_exp: attn * exp(A_t*alpha), 0 where A_t==0, L1-norm
        wph = attn * phi_w
        wph = jnp.where(a_zero, 0.0, wph)
        denom = jnp.maximum(jnp.sum(jnp.abs(wph), axis=-1, keepdims=True), L1_EPS)
        attn = wph * pl.reciprocal(denom, approx=True)

        head = jnp.dot(attn.astype(jnp.bfloat16), v.astype(jnp.bfloat16),
                       preferred_element_type=jnp.float32)               # [R, D]

        # accumulate straight into the O projection (no head concat)
        wo_h = w_ref[WO_OFF + hd * HEAD_DIM:WO_OFF + (hd + 1) * HEAD_DIM, 0:OUT_DIM]
        o_acc = o_acc + jnp.dot(head.astype(jnp.bfloat16), wo_h,
                                preferred_element_type=jnp.float32)

    o = o_acc + vec_ref[BO_ROW:BO_ROW + 1, 0:OUT_DIM]
    h1 = h32 + o                               # residual (in_dim == out_dim)

    # LayerNorm 1
    g1 = vec_ref[G1_ROW:G1_ROW + 1, 0:OUT_DIM]
    be1 = vec_ref[BE1_ROW:BE1_ROW + 1, 0:OUT_DIM]
    mu = jnp.mean(h1, axis=-1, keepdims=True)
    var = jnp.mean((h1 - mu) ** 2, axis=-1, keepdims=True)
    h1n = (h1 - mu) * lax.rsqrt(var + LN_EPS) * g1 + be1

    # FFN
    f = jnp.dot(h1n.astype(jnp.bfloat16),
                w_ref[W1_OFF:W1_OFF + OUT_DIM, 0:FFN_DIM],
                preferred_element_type=jnp.float32) + vec_ref[B1_ROW:B1_ROW + 1, 0:FFN_DIM]
    f = jnp.maximum(f, 0.0)
    f = jnp.dot(f.astype(jnp.bfloat16),
                w_ref[W2_OFF:W2_OFF + FFN_DIM, 0:OUT_DIM],
                preferred_element_type=jnp.float32) + vec_ref[B2_ROW:B2_ROW + 1, 0:OUT_DIM]

    # residual + LayerNorm 2
    h2 = h1n + f
    g2 = vec_ref[G2_ROW:G2_ROW + 1, 0:OUT_DIM]
    be2 = vec_ref[BE2_ROW:BE2_ROW + 1, 0:OUT_DIM]
    mu2 = jnp.mean(h2, axis=-1, keepdims=True)
    var2 = jnp.mean((h2 - mu2) ** 2, axis=-1, keepdims=True)
    out_ref[...] = (h2 - mu2) * lax.rsqrt(var2 + LN_EPS) * g2 + be2


# ------------------------------ wrappers --------------------------------------
def prepare_params(params):
    """One-time packing of all weights into a bf16 matrix slab + f32 vector slab."""
    (wq, bq, wk, bk, wv, bv, wo, bo, w1, b1, w2, b2, g1, be1, g2, be2) = params

    def head_rows(w):    # [IN_DIM, OUT_DIM] -> [NUM_HEADS*IN_DIM, HEAD_DIM] head-major
        return jnp.concatenate(
            [w[:, h * HEAD_DIM:(h + 1) * HEAD_DIM] for h in range(NUM_HEADS)], axis=0)

    wslab = jnp.zeros((W_ROWS, SLAB_W), jnp.float32)
    wslab = wslab.at[Q_OFF:Q_OFF + NUM_HEADS * IN_DIM, 0:HEAD_DIM].set(head_rows(wq))
    wslab = wslab.at[K_OFF:K_OFF + NUM_HEADS * IN_DIM, 0:HEAD_DIM].set(head_rows(wk))
    wslab = wslab.at[V_OFF:V_OFF + NUM_HEADS * IN_DIM, 0:HEAD_DIM].set(head_rows(wv))
    wslab = wslab.at[WO_OFF:WO_OFF + OUT_DIM, 0:OUT_DIM].set(wo)
    wslab = wslab.at[W1_OFF:W1_OFF + OUT_DIM, 0:FFN_DIM].set(w1)
    wslab = wslab.at[W2_OFF:W2_OFF + FFN_DIM, 0:OUT_DIM].set(w2)
    wslab = wslab.astype(jnp.bfloat16)          # MXU-native, halves weight DMA bytes

    vslab = jnp.zeros((V_ROWS, SLAB_W), jnp.float32)
    vslab = vslab.at[BO_ROW, 0:OUT_DIM].set(bo)
    vslab = vslab.at[B1_ROW, 0:FFN_DIM].set(b1)
    vslab = vslab.at[B2_ROW, 0:OUT_DIM].set(b2)
    vslab = vslab.at[G1_ROW, 0:OUT_DIM].set(g1)
    vslab = vslab.at[BE1_ROW, 0:OUT_DIM].set(be1)
    vslab = vslab.at[G2_ROW, 0:OUT_DIM].set(g2)
    vslab = vslab.at[BE2_ROW, 0:OUT_DIM].set(be2)
    qkv_bias = jnp.stack([jnp.concatenate(
        [bq[h * HEAD_DIM:(h + 1) * HEAD_DIM],
         bk[h * HEAD_DIM:(h + 1) * HEAD_DIM],
         bv[h * HEAD_DIM:(h + 1) * HEAD_DIM]]) for h in range(NUM_HEADS)])
    vslab = vslab.at[QKV_BIAS_OFF:QKV_BIAS_OFF + NUM_HEADS, 0:3 * HEAD_DIM].set(qkv_bias)
    return wslab, vslab


@jax.jit
def gta3_forward(h, A, lengths, alpha, wslab, vslab):
    Bsz, Nn, _ = h.shape
    assert Nn == N

    num_blocks = pl.cdiv(Bsz, GPB)
    Bp = num_blocks * GPB
    pad = Bp - Bsz
    if pad:   # pad to a whole tile of graphs; padded graphs have length 0
        h = jnp.pad(h, ((0, pad), (0, 0), (0, 0)))
        A = jnp.pad(A, ((0, pad), (0, 0), (0, 0)))
        lengths = jnp.pad(lengths, (0, pad))

    hf = h.reshape(Bp * N, IN_DIM).astype(jnp.float32)
    a_flat = jnp.transpose(A, (0, 2, 1)).reshape(Bp * N, N).astype(jnp.float32)
    valid = (jnp.arange(N)[None, :] < lengths[:, None]).astype(jnp.float32)   # [Bp, N]
    valid_row = valid.reshape(Bp * N, 1)
    valid_col = valid.reshape(1, Bp * N)
    alpha_s = jnp.asarray(alpha, jnp.float32).reshape(1)

    out = pl.pallas_call(
        gta3_kernel,
        out_shape=jax.ShapeDtypeStruct((Bp * N, OUT_DIM), jnp.float32),
        grid=(num_blocks,),
        in_specs=[
            pl.BlockSpec(memory_space=pltpu.MemorySpace.SMEM),          # alpha scalar
            pl.BlockSpec((W_ROWS, SLAB_W), lambda i: (0, 0)),           # bf16 weight slab (resident)
            pl.BlockSpec((V_ROWS, SLAB_W), lambda i: (0, 0)),           # f32 bias/LN slab (resident)
            pl.BlockSpec((BLOCK_ROWS, IN_DIM), lambda i: (i, 0)),       # node features
            pl.BlockSpec((BLOCK_ROWS, N), lambda i: (i, 0)),            # A^T rows
            pl.BlockSpec((BLOCK_ROWS, 1), lambda i: (i, 0)),            # query validity
            pl.BlockSpec((1, BLOCK_ROWS), lambda i: (0, i)),            # key validity
        ],
        out_specs=pl.BlockSpec((BLOCK_ROWS, OUT_DIM), lambda i: (i, 0)),
        compiler_params=pltpu.CompilerParams(
            dimension_semantics=("parallel",),          # megacore sharding on v7x
            vmem_limit_bytes=32 * 1024 * 1024),         # explicit v7x-safe budget
    )(alpha_s, wslab, vslab, hf, a_flat, valid_row, valid_col)

    return out[:Bsz * N].reshape(Bsz, N, OUT_DIM)


# --------------------------- pure-JAX reference --------------------------------
def gta3_reference(h, A, lengths, alpha, params):
    (wq, bq, wk, bk, wv, bv, wo, bo, w1, b1, w2, b2, g1, be1, g2, be2) = params
    alpha = alpha[0]
    Bsz = h.shape[0]

    def heads(x, w, bias):
        y = x @ w + bias
        return y.reshape(Bsz, N, NUM_HEADS, HEAD_DIM).transpose(0, 2, 1, 3)

    Qh, Kh, Vh = heads(h, wq, bq), heads(h, wk, bk), heads(h, wv, bv)
    attn = jnp.einsum("bknd,bkmd->bknm", Qh, Kh)
    key_mask = (jnp.arange(N)[None, :] >= lengths[:, None])[:, None, None, :]
    attn = jnp.where(key_mask, -jnp.inf, attn)
    attn = jax.nn.softmax(attn / jnp.sqrt(jnp.float32(HEAD_DIM)), axis=-1)
    qry_mask = jnp.swapaxes(key_mask, -1, -2)
    attn = jnp.where(qry_mask, 0.0, attn)

    A_t = jnp.transpose(A, (0, 2, 1))[:, None]            # [B,1,N,N]
    w = attn * jnp.exp(A_t * alpha)
    w = jnp.where(A_t == 0, 0.0, w)
    attn = w / jnp.maximum(jnp.sum(jnp.abs(w), -1, keepdims=True), L1_EPS)

    hh = jnp.einsum("bknm,bkmd->bknd", attn, Vh)
    hh = hh.transpose(0, 2, 1, 3).reshape(Bsz, N, OUT_DIM)
    o = hh @ wo + bo
    h1 = h + o

    def ln(x, g, bta):
        mu = jnp.mean(x, -1, keepdims=True)
        var = jnp.mean((x - mu) ** 2, -1, keepdims=True)
        return (x - mu) / jnp.sqrt(var + LN_EPS) * g + bta

    h1n = ln(h1, g1, be1)
    f = jnp.maximum(h1n @ w1 + b1, 0.0) @ w2 + b2
    return ln(h1n + f, g2, be2)


# ------------------------------- main ------------------------------------------
if __name__ == "__main__":
    key = jax.random.PRNGKey(0)
    keys = jax.random.split(key, 16)

    def lin(k, fan_in, fan_out):
        bound = 1.0 / jnp.sqrt(jnp.float32(fan_in))
        kw, kb = jax.random.split(k)
        w = jax.random.uniform(kw, (fan_in, fan_out), jnp.float32, -bound, bound)
        b = jax.random.uniform(kb, (fan_out,), jnp.float32, -bound, bound)
        return w, b

    wq, bq = lin(keys[0], IN_DIM, OUT_DIM)       # Q  (out_dim = H * head_dim)
    wk, bk = lin(keys[1], IN_DIM, OUT_DIM)       # K
    wv, bv = lin(keys[2], IN_DIM, OUT_DIM)       # V
    wo, bo = lin(keys[3], OUT_DIM, OUT_DIM)      # O
    w1, b1 = lin(keys[4], OUT_DIM, FFN_DIM)      # FFN_layer_1
    w2, b2 = lin(keys[5], FFN_DIM, OUT_DIM)      # FFN_layer_2
    g1 = jnp.ones((OUT_DIM,), jnp.float32)
    be1 = jnp.zeros((OUT_DIM,), jnp.float32)
    g2 = jnp.ones((OUT_DIM,), jnp.float32)
    be2 = jnp.zeros((OUT_DIM,), jnp.float32)
    params = (wq, bq, wk, bk, wv, bv, wo, bo, w1, b1, w2, b2, g1, be1, g2, be2)

    # 32 graphs of 8 nodes -> 2 grid steps of 16 graphs (128 node-rows) each
    Bsz = 32
    h = jax.random.normal(keys[6], (Bsz, N, IN_DIM), jnp.float32)
    # integer shortest-path-style matrix: symmetric, zero diagonal, hops in [1,3]
    Araw = jax.random.randint(keys[7], (Bsz, N, N), 1, 4)
    A = jnp.triu(Araw, 1)
    A = (A + jnp.transpose(A, (0, 2, 1))).astype(jnp.float32)
    lengths = jax.random.randint(keys[8], (Bsz,), 1, N + 1).astype(jnp.int32)
    alpha = jnp.array([-0.3], dtype=jnp.float32)

    wslab, vslab = prepare_params(params)        # one-time parameter packing

    out = gta3_forward(h, A, lengths, alpha, wslab, vslab)
    out = jax.block_until_ready(out)

    ref = gta3_reference(h, A, lengths, alpha, params)
    assert out.shape == (Bsz, N, OUT_DIM)
    max_diff = jnp.max(jnp.abs(out - ref))
    assert jnp.allclose(out, ref, atol=2e-2, rtol=2e-2), f"max abs diff {max_diff}"

    print("KERNEL_OK")
</pallas_src>

<mosaic_0001>
module attributes {stable_mosaic.version = 11 : i64} {
  func.func @gta3_kernel(%arg0: i32, %arg1: memref<1xf32, #tpu.memory_space<smem>>, %arg2: memref<512x64xbf16, #tpu.memory_space<vmem>>, %arg3: memref<16x64xf32, #tpu.memory_space<vmem>>, %arg4: memref<128x32xf32, #tpu.memory_space<vmem>>, %arg5: memref<128x8xf32, #tpu.memory_space<vmem>>, %arg6: memref<128x1xf32, #tpu.memory_space<vmem>>, %arg7: memref<1x128xf32, #tpu.memory_space<vmem>>, %arg8: memref<128x32xf32, #tpu.memory_space<vmem>>) attributes {dimension_semantics = [#tpu.dimension_semantics<parallel>], iteration_bounds = array<i64: 2>, scalar_prefetch = 0 : i64, scratch_operands = 0 : i64, tpu.core_type = #tpu.core_type<tc>, window_params = [{transform_indices = @transform_0, window_bounds = array<i64: 1>}, {pipeline_mode = #tpu.pipeline_mode<synchronous>, transform_indices = @transform_1, window_bounds = array<i64: 512, 64>}, {pipeline_mode = #tpu.pipeline_mode<synchronous>, transform_indices = @transform_2, window_bounds = array<i64: 16, 64>}, {transform_indices = @transform_3, window_bounds = array<i64: 128, 32>}, {transform_indices = @transform_4, window_bounds = array<i64: 128, 8>}, {transform_indices = @transform_5, window_bounds = array<i64: 128, 1>}, {transform_indices = @transform_6, window_bounds = array<i64: 1, 128>}, {transform_indices = @transform_7, window_bounds = array<i64: 128, 32>}]} {
    %c0 = arith.constant 0 : index
    %0 = memref.load %arg1[%c0] : memref<1xf32, #tpu.memory_space<smem>>
    %c0_0 = arith.constant 0 : index
    %c0_1 = arith.constant 0 : index
    %1 = vector.load %arg4[%c0_0, %c0_1] : memref<128x32xf32, #tpu.memory_space<vmem>>, vector<128x32xf32>
    %2 = arith.truncf %1 : vector<128x32xf32> to vector<128x32xbf16>
    %c0_2 = arith.constant 0 : index
    %c0_3 = arith.constant 0 : index
    %3 = vector.load %arg6[%c0_2, %c0_3] : memref<128x1xf32, #tpu.memory_space<vmem>>, vector<128x1xf32>
    %c0_4 = arith.constant 0 : index
    %c0_5 = arith.constant 0 : index
    %4 = vector.load %arg7[%c0_4, %c0_5] : memref<1x128xf32, #tpu.memory_space<vmem>>, vector<1x128xf32>
    %5 = tpu.iota {dimensions = array<i32: 0>} : vector<128x128xi32>
    %6 = tpu.iota {dimensions = array<i32: 1>} : vector<128x128xi32>
    %7 = arith.xori %5, %6 : vector<128x128xi32>
    %c8_i32 = arith.constant 8 : i32
    %8 = vector.broadcast %c8_i32 : i32 to vector<128x128xi32>
    %9 = arith.cmpi slt, %7, %8 : vector<128x128xi32>
    %cst = arith.constant 5.000000e-01 : f32
    %10 = vector.broadcast %cst : f32 to vector<1x128xf32>
    %11 = arith.cmpf ogt, %4, %10 : vector<1x128xf32>
    %12 = vector.broadcast %11 : vector<1x128xi1> to vector<128x128xi1>
    %13 = arith.andi %9, %12 : vector<128x128xi1>
    %c0_6 = arith.constant 0 : index
    %c0_7 = arith.constant 0 : index
    %14 = vector.load %arg5[%c0_6, %c0_7] : memref<128x8xf32, #tpu.memory_space<vmem>>, vector<128x8xf32>
    %15 = tpu.concatenate %14, %14, %14, %14, %14, %14, %14, %14, %14, %14, %14, %14, %14, %14, %14, %14 in 1 : vector<128x8xf32>, vector<128x8xf32>, vector<128x8xf32>, vector<128x8xf32>, vector<128x8xf32>, vector<128x8xf32>, vector<128x8xf32>, vector<128x8xf32>, vector<128x8xf32>, vector<128x8xf32>, vector<128x8xf32>, vector<128x8xf32>, vector<128x8xf32>, vector<128x8xf32>, vector<128x8xf32>, vector<128x8xf32> -> vector<128x128xf32>
    %16 = vector.broadcast %0 : f32 to vector<128x128xf32>
    %17 = arith.mulf %15, %16 : vector<128x128xf32>
    %18 = math.exp %17 : vector<128x128xf32>
    %cst_8 = arith.constant 0.000000e+00 : f32
    %19 = vector.broadcast %cst_8 : f32 to vector<128x128xf32>
    %20 = arith.cmpf oeq, %15, %19 : vector<128x128xf32>
    %cst_9 = arith.constant 0.000000e+00 : f32
    %21 = vector.broadcast %cst_9 : f32 to vector<128x32xf32>
    %c0_10 = arith.constant 0 : index
    %c0_11 = arith.constant 0 : index
    %22 = vector.load %arg2[%c0_10, %c0_11] : memref<512x64xbf16, #tpu.memory_space<vmem>>, vector<32x8xbf16>
    %c128 = arith.constant 128 : index
    %c0_12 = arith.constant 0 : index
    %23 = vector.load %arg2[%c128, %c0_12] : memref<512x64xbf16, #tpu.memory_space<vmem>>, vector<32x8xbf16>
    %c256 = arith.constant 256 : index
    %c0_13 = arith.constant 0 : index
    %24 = vector.load %arg2[%c256, %c0_13] : memref<512x64xbf16, #tpu.memory_space<vmem>>, vector<32x8xbf16>
    %c8 = arith.constant 8 : index
    %c0_14 = arith.constant 0 : index
    %25 = vector.load %arg3[%c8, %c0_14] : memref<16x64xf32, #tpu.memory_space<vmem>>, vector<1x64xf32>
    %26 = vector.extract_strided_slice %25 {offsets = [0, 0], sizes = [1, 8], strides = [1, 1]} : vector<1x64xf32> to vector<1x8xf32>
    %27 = vector.extract_strided_slice %25 {offsets = [0, 8], sizes = [1, 8], strides = [1, 1]} : vector<1x64xf32> to vector<1x8xf32>
    %28 = vector.extract_strided_slice %25 {offsets = [0, 16], sizes = [1, 8], strides = [1, 1]} : vector<1x64xf32> to vector<1x8xf32>
    %cst_15 = arith.constant dense<0.000000e+00> : vector<128x8xf32>
    %29 = tpu.matmul %2, %22, %cst_15 {dimension_numbers = #tpu.dot_dimension_numbers<[1], [0], [0], [1], [0, 0, 1, 1], [], []>} : vector<128x32xbf16>, vector<32x8xbf16>, vector<128x8xf32> -> vector<128x8xf32>
    %30 = vector.broadcast %26 : vector<1x8xf32> to vector<128x8xf32>
    %31 = arith.addf %29, %30 : vector<128x8xf32>
    %cst_16 = arith.constant dense<0.000000e+00> : vector<128x8xf32>
    %32 = tpu.matmul %2, %23, %cst_16 {dimension_numbers = #tpu.dot_dimension_numbers<[1], [0], [0], [1], [0, 0, 1, 1], [], []>} : vector<128x32xbf16>, vector<32x8xbf16>, vector<128x8xf32> -> vector<128x8xf32>
    %33 = vector.broadcast %27 : vector<1x8xf32> to vector<128x8xf32>
    %34 = arith.addf %32, %33 : vector<128x8xf32>
    %cst_17 = arith.constant dense<0.000000e+00> : vector<128x8xf32>
    %35 = tpu.matmul %2, %24, %cst_17 {dimension_numbers = #tpu.dot_dimension_numbers<[1], [0], [0], [1], [0, 0, 1, 1], [], []>} : vector<128x32xbf16>, vector<32x8xbf16>, vector<128x8xf32> -> vector<128x8xf32>
    %36 = vector.broadcast %28 : vector<1x8xf32> to vector<128x8xf32>
    %37 = arith.addf %35, %36 : vector<128x8xf32>
    %38 = arith.truncf %31 : vector<128x8xf32> to vector<128x8xbf16>
    %39 = arith.truncf %34 : vector<128x8xf32> to vector<128x8xbf16>
    %cst_18 = arith.constant dense<0.000000e+00> : vector<128x128xf32>
    %40 = tpu.matmul %38, %39, %cst_18 {dimension_numbers = #tpu.dot_dimension_numbers<[1], [1], [0], [0], [0, 0, 1, 0], [], []>} : vector<128x8xbf16>, vector<128x8xbf16>, vector<128x128xf32> -> vector<128x128xf32>
    %cst_19 = arith.constant 0.353553385 : f32
    %41 = vector.broadcast %cst_19 : f32 to vector<128x128xf32>
    %42 = arith.mulf %40, %41 : vector<128x128xf32>
    %cst_20 = arith.constant -1.000000e+30 : f32
    %43 = vector.broadcast %cst_20 : f32 to vector<128x128xf32>
    %44 = arith.select %13, %42, %43 : vector<128x128xi1>, vector<128x128xf32>
    %cst_21 = arith.constant dense<0xFF800000> : vector<128xf32>
    %45 = vector.multi_reduction <maximumf>, %44, %cst_21 [1] : vector<128x128xf32> to vector<128xf32>
    %46 = vector.shape_cast %45 : vector<128xf32> to vector<128x1xf32>
    %47 = vector.broadcast %46 : vector<128x1xf32> to vector<128x128xf32>
    %48 = arith.subf %44, %47 : vector<128x128xf32>
    %49 = math.exp %48 : vector<128x128xf32>
    %cst_22 = arith.constant dense<0.000000e+00> : vector<128xf32>
    %50 = vector.multi_reduction <add>, %49, %cst_22 [1] : vector<128x128xf32> to vector<128xf32>
    %51 = vector.shape_cast %50 : vector<128xf32> to vector<128x1xf32>
    %52 = tpu.reciprocal %51 {approx = true} : vector<128x1xf32> -> vector<128x1xf32>
    %53 = vector.broadcast %52 : vector<128x1xf32> to vector<128x128xf32>
    %54 = arith.mulf %49, %53 : vector<128x128xf32>
    %55 = vector.broadcast %3 : vector<128x1xf32> to vector<128x128xf32>
    %56 = arith.mulf %54, %55 : vector<128x128xf32>
    %57 = arith.mulf %56, %18 : vector<128x128xf32>
    %cst_23 = arith.constant 0.000000e+00 : f32
    %58 = vector.broadcast %cst_23 : f32 to vector<128x128xf32>
    %59 = arith.select %20, %58, %57 : vector<128x128xi1>, vector<128x128xf32>
    %60 = math.absf %59 : vector<128x128xf32>
    %cst_24 = arith.constant dense<0.000000e+00> : vector<128xf32>
    %61 = vector.multi_reduction <add>, %60, %cst_24 [1] : vector<128x128xf32> to vector<128xf32>
    %62 = vector.shape_cast %61 : vector<128xf32> to vector<128x1xf32>
    %cst_25 = arith.constant 9.99999996E-13 : f32
    %63 = vector.broadcast %cst_25 : f32 to vector<128x1xf32>
    %64 = arith.maximumf %62, %63 : vector<128x1xf32>
    %65 = tpu.reciprocal %64 {approx = true} : vector<128x1xf32> -> vector<128x1xf32>
    %66 = vector.broadcast %65 : vector<128x1xf32> to vector<128x128xf32>
    %67 = arith.mulf %59, %66 : vector<128x128xf32>
    %68 = arith.truncf %67 : vector<128x128xf32> to vector<128x128xbf16>
    %69 = arith.truncf %37 : vector<128x8xf32> to vector<128x8xbf16>
    %cst_26 = arith.constant dense<0.000000e+00> : vector<128x8xf32>
    %70 = tpu.matmul %68, %69, %cst_26 {dimension_numbers = #tpu.dot_dimension_numbers<[1], [0], [0], [1], [0, 0, 1, 1], [], []>} : vector<128x128xbf16>, vector<128x8xbf16>, vector<128x8xf32> -> vector<128x8xf32>
    %c384 = arith.constant 384 : index
    %c0_27 = arith.constant 0 : index
    %71 = vector.load %arg2[%c384, %c0_27] : memref<512x64xbf16, #tpu.memory_space<vmem>>, vector<8x32xbf16>
    %72 = arith.truncf %70 : vector<128x8xf32> to vector<128x8xbf16>
    %cst_28 = arith.constant dense<0.000000e+00> : vector<128x32xf32>
    %73 = tpu.matmul %72, %71, %cst_28 {dimension_numbers = #tpu.dot_dimension_numbers<[1], [0], [0], [1], [0, 0, 1, 1], [], []>} : vector<128x8xbf16>, vector<8x32xbf16>, vector<128x32xf32> -> vector<128x32xf32>
    %74 = arith.addf %21, %73 : vector<128x32xf32>
    %c32 = arith.constant 32 : index
    %c0_29 = arith.constant 0 : index
    %75 = vector.load %arg2[%c32, %c0_29] : memref<512x64xbf16, #tpu.memory_space<vmem>>, vector<32x8xbf16>
    %c160 = arith.constant 160 : index
    %c0_30 = arith.constant 0 : index
    %76 = vector.load %arg2[%c160, %c0_30] : memref<512x64xbf16, #tpu.memory_space<vmem>>, vector<32x8xbf16>
    %c288 = arith.constant 288 : index
    %c0_31 = arith.constant 0 : index
    %77 = vector.load %arg2[%c288, %c0_31] : memref<512x64xbf16, #tpu.memory_space<vmem>>, vector<32x8xbf16>
    %c9 = arith.constant 9 : index
    %c0_32 = arith.constant 0 : index
    %78 = vector.load %arg3[%c9, %c0_32] : memref<16x64xf32, #tpu.memory_space<vmem>>, vector<1x64xf32>
    %79 = vector.extract_strided_slice %78 {offsets = [0, 0], sizes = [1, 8], strides = [1, 1]} : vector<1x64xf32> to vector<1x8xf32>
    %80 = vector.extract_strided_slice %78 {offsets = [0, 8], sizes = [1, 8], strides = [1, 1]} : vector<1x64xf32> to vector<1x8xf32>
    %81 = vector.extract_strided_slice %78 {offsets = [0, 16], sizes = [1, 8], strides = [1, 1]} : vector<1x64xf32> to vector<1x8xf32>
    %cst_33 = arith.constant dense<0.000000e+00> : vector<128x8xf32>
    %82 = tpu.matmul %2, %75, %cst_33 {dimension_numbers = #tpu.dot_dimension_numbers<[1], [0], [0], [1], [0, 0, 1, 1], [], []>} : vector<128x32xbf16>, vector<32x8xbf16>, vector<128x8xf32> -> vector<128x8xf32>
    %83 = vector.broadcast %79 : vector<1x8xf32> to vector<128x8xf32>
    %84 = arith.addf %82, %83 : vector<128x8xf32>
    %cst_34 = arith.constant dense<0.000000e+00> : vector<128x8xf32>
    %85 = tpu.matmul %2, %76, %cst_34 {dimension_numbers = #tpu.dot_dimension_numbers<[1], [0], [0], [1], [0, 0, 1, 1], [], []>} : vector<128x32xbf16>, vector<32x8xbf16>, vector<128x8xf32> -> vector<128x8xf32>
    %86 = vector.broadcast %80 : vector<1x8xf32> to vector<128x8xf32>
    %87 = arith.addf %85, %86 : vector<128x8xf32>
    %cst_35 = arith.constant dense<0.000000e+00> : vector<128x8xf32>
    %88 = tpu.matmul %2, %77, %cst_35 {dimension_numbers = #tpu.dot_dimension_numbers<[1], [0], [0], [1], [0, 0, 1, 1], [], []>} : vector<128x32xbf16>, vector<32x8xbf16>, vector<128x8xf32> -> vector<128x8xf32>
    %89 = vector.broadcast %81 : vector<1x8xf32> to vector<128x8xf32>
    %90 = arith.addf %88, %89 : vector<128x8xf32>
    %91 = arith.truncf %84 : vector<128x8xf32> to vector<128x8xbf16>
    %92 = arith.truncf %87 : vector<128x8xf32> to vector<128x8xbf16>
    %cst_36 = arith.constant dense<0.000000e+00> : vector<128x128xf32>
    %93 = tpu.matmul %91, %92, %cst_36 {dimension_numbers = #tpu.dot_dimension_numbers<[1], [1], [0], [0], [0, 0, 1, 0], [], []>} : vector<128x8xbf16>, vector<128x8xbf16>, vector<128x128xf32> -> vector<128x128xf32>
    %cst_37 = arith.constant 0.353553385 : f32
    %94 = vector.broadcast %cst_37 : f32 to vector<128x128xf32>
    %95 = arith.mulf %93, %94 : vector<128x128xf32>
    %cst_38 = arith.constant -1.000000e+30 : f32
    %96 = vector.broadcast %cst_38 : f32 to vector<128x128xf32>
    %97 = arith.select %13, %95, %96 : vector<128x128xi1>, vector<128x128xf32>
    %cst_39 = arith.constant dense<0xFF800000> : vector<128xf32>
    %98 = vector.multi_reduction <maximumf>, %97, %cst_39 [1] : vector<128x128xf32> to vector<128xf32>
    %99 = vector.shape_cast %98 : vector<128xf32> to vector<128x1xf32>
    %100 = vector.broadcast %99 : vector<128x1xf32> to vector<128x128xf32>
    %101 = arith.subf %97, %100 : vector<128x128xf32>
    %102 = math.exp %101 : vector<128x128xf32>
    %cst_40 = arith.constant dense<0.000000e+00> : vector<128xf32>
    %103 = vector.multi_reduction <add>, %102, %cst_40 [1] : vector<128x128xf32> to vector<128xf32>
    %104 = vector.shape_cast %103 : vector<128xf32> to vector<128x1xf32>
    %105 = tpu.reciprocal %104 {approx = true} : vector<128x1xf32> -> vector<128x1xf32>
    %106 = vector.broadcast %105 : vector<128x1xf32> to vector<128x128xf32>
    %107 = arith.mulf %102, %106 : vector<128x128xf32>
    %108 = vector.broadcast %3 : vector<128x1xf32> to vector<128x128xf32>
    %109 = arith.mulf %107, %108 : vector<128x128xf32>
    %110 = arith.mulf %109, %18 : vector<128x128xf32>
    %cst_41 = arith.constant 0.000000e+00 : f32
    %111 = vector.broadcast %cst_41 : f32 to vector<128x128xf32>
    %112 = arith.select %20, %111, %110 : vector<128x128xi1>, vector<128x128xf32>
    %113 = math.absf %112 : vector<128x128xf32>
    %cst_42 = arith.constant dense<0.000000e+00> : vector<128xf32>
    %114 = vector.multi_reduction <add>, %113, %cst_42 [1] : vector<128x128xf32> to vector<128xf32>
    %115 = vector.shape_cast %114 : vector<128xf32> to vector<128x1xf32>
    %cst_43 = arith.constant 9.99999996E-13 : f32
    %116 = vector.broadcast %cst_43 : f32 to vector<128x1xf32>
    %117 = arith.maximumf %115, %116 : vector<128x1xf32>
    %118 = tpu.reciprocal %117 {approx = true} : vector<128x1xf32> -> vector<128x1xf32>
    %119 = vector.broadcast %118 : vector<128x1xf32> to vector<128x128xf32>
    %120 = arith.mulf %112, %119 : vector<128x128xf32>
    %121 = arith.truncf %120 : vector<128x128xf32> to vector<128x128xbf16>
    %122 = arith.truncf %90 : vector<128x8xf32> to vector<128x8xbf16>
    %cst_44 = arith.constant dense<0.000000e+00> : vector<128x8xf32>
    %123 = tpu.matmul %121, %122, %cst_44 {dimension_numbers = #tpu.dot_dimension_numbers<[1], [0], [0], [1], [0, 0, 1, 1], [], []>} : vector<128x128xbf16>, vector<128x8xbf16>, vector<128x8xf32> -> vector<128x8xf32>
    %c392 = arith.constant 392 : index
    %c0_45 = arith.constant 0 : index
    %124 = vector.load %arg2[%c392, %c0_45] : memref<512x64xbf16, #tpu.memory_space<vmem>>, vector<8x32xbf16>
    %125 = arith.truncf %123 : vector<128x8xf32> to vector<128x8xbf16>
    %cst_46 = arith.constant dense<0.000000e+00> : vector<128x32xf32>
    %126 = tpu.matmul %125, %124, %cst_46 {dimension_numbers = #tpu.dot_dimension_numbers<[1], [0], [0], [1], [0, 0, 1, 1], [], []>} : vector<128x8xbf16>, vector<8x32xbf16>, vector<128x32xf32> -> vector<128x32xf32>
    %127 = arith.addf %74, %126 : vector<128x32xf32>
    %c64 = arith.constant 64 : index
    %c0_47 = arith.constant 0 : index
    %128 = vector.load %arg2[%c64, %c0_47] : memref<512x64xbf16, #tpu.memory_space<vmem>>, vector<32x8xbf16>
    %c192 = arith.constant 192 : index
    %c0_48 = arith.constant 0 : index
    %129 = vector.load %arg2[%c192, %c0_48] : memref<512x64xbf16, #tpu.memory_space<vmem>>, vector<32x8xbf16>
    %c320 = arith.constant 320 : index
    %c0_49 = arith.constant 0 : index
    %130 = vector.load %arg2[%c320, %c0_49] : memref<512x64xbf16, #tpu.memory_space<vmem>>, vector<32x8xbf16>
    %c10 = arith.constant 10 : index
    %c0_50 = arith.constant 0 : index
    %131 = vector.load %arg3[%c10, %c0_50] : memref<16x64xf32, #tpu.memory_space<vmem>>, vector<1x64xf32>
    %132 = vector.extract_strided_slice %131 {offsets = [0, 0], sizes = [1, 8], strides = [1, 1]} : vector<1x64xf32> to vector<1x8xf32>
    %133 = vector.extract_strided_slice %131 {offsets = [0, 8], sizes = [1, 8], strides = [1, 1]} : vector<1x64xf32> to vector<1x8xf32>
    %134 = vector.extract_strided_slice %131 {offsets = [0, 16], sizes = [1, 8], strides = [1, 1]} : vector<1x64xf32> to vector<1x8xf32>
    %cst_51 = arith.constant dense<0.000000e+00> : vector<128x8xf32>
    %135 = tpu.matmul %2, %128, %cst_51 {dimension_numbers = #tpu.dot_dimension_numbers<[1], [0], [0], [1], [0, 0, 1, 1], [], []>} : vector<128x32xbf16>, vector<32x8xbf16>, vector<128x8xf32> -> vector<128x8xf32>
    %136 = vector.broadcast %132 : vector<1x8xf32> to vector<128x8xf32>
    %137 = arith.addf %135, %136 : vector<128x8xf32>
    %cst_52 = arith.constant dense<0.000000e+00> : vector<128x8xf32>
    %138 = tpu.matmul %2, %129, %cst_52 {dimension_numbers = #tpu.dot_dimension_numbers<[1], [0], [0], [1], [0, 0, 1, 1], [], []>} : vector<128x32xbf16>, vector<32x8xbf16>, vector<128x8xf32> -> vector<128x8xf32>
    %139 = vector.broadcast %133 : vector<1x8xf32> to vector<128x8xf32>
    %140 = arith.addf %138, %139 : vector<128x8xf32>
    %cst_53 = arith.constant dense<0.000000e+00> : vector<128x8xf32>
    %141 = tpu.matmul %2, %130, %cst_53 {dimension_numbers = #tpu.dot_dimension_numbers<[1], [0], [0], [1], [0, 0, 1, 1], [], []>} : vector<128x32xbf16>, vector<32x8xbf16>, vector<128x8xf32> -> vector<128x8xf32>
    %142 = vector.broadcast %134 : vector<1x8xf32> to vector<128x8xf32>
    %143 = arith.addf %141, %142 : vector<128x8xf32>
    %144 = arith.truncf %137 : vector<128x8xf32> to vector<128x8xbf16>
    %145 = arith.truncf %140 : vector<128x8xf32> to vector<128x8xbf16>
    %cst_54 = arith.constant dense<0.000000e+00> : vector<128x128xf32>
    %146 = tpu.matmul %144, %145, %cst_54 {dimension_numbers = #tpu.dot_dimension_numbers<[1], [1], [0], [0], [0, 0, 1, 0], [], []>} : vector<128x8xbf16>, vector<128x8xbf16>, vector<128x128xf32> -> vector<128x128xf32>
    %cst_55 = arith.constant 0.353553385 : f32
    %147 = vector.broadcast %cst_55 : f32 to vector<128x128xf32>
    %148 = arith.mulf %146, %147 : vector<128x128xf32>
    %cst_56 = arith.constant -1.000000e+30 : f32
    %149 = vector.broadcast %cst_56 : f32 to vector<128x128xf32>
    %150 = arith.select %13, %148, %149 : vector<128x128xi1>, vector<128x128xf32>
    %cst_57 = arith.constant dense<0xFF800000> : vector<128xf32>
    %151 = vector.multi_reduction <maximumf>, %150, %cst_57 [1] : vector<128x128xf32> to vector<128xf32>
    %152 = vector.shape_cast %151 : vector<128xf32> to vector<128x1xf32>
    %153 = vector.broadcast %152 : vector<128x1xf32> to vector<128x128xf32>
    %154 = arith.subf %150, %153 : vector<128x128xf32>
    %155 = math.exp %154 : vector<128x128xf32>
    %cst_58 = arith.constant dense<0.000000e+00> : vector<128xf32>
    %156 = vector.multi_reduction <add>, %155, %cst_58 [1] : vector<128x128xf32> to vector<128xf32>
    %157 = vector.shape_cast %156 : vector<128xf32> to vector<128x1xf32>
    %158 = tpu.reciprocal %157 {approx = true} : vector<128x1xf32> -> vector<128x1xf32>
    %159 = vector.broadcast %158 : vector<128x1xf32> to vector<128x128xf32>
    %160 = arith.mulf %155, %159 : vector<128x128xf32>
    %161 = vector.broadcast %3 : vector<128x1xf32> to vector<128x128xf32>
    %162 = arith.mulf %160, %161 : vector<128x128xf32>
    %163 = arith.mulf %162, %18 : vector<128x128xf32>
    %cst_59 = arith.constant 0.000000e+00 : f32
    %164 = vector.broadcast %cst_59 : f32 to vector<128x128xf32>
    %165 = arith.select %20, %164, %163 : vector<128x128xi1>, vector<128x128xf32>
    %166 = math.absf %165 : vector<128x128xf32>
    %cst_60 = arith.constant dense<0.000000e+00> : vector<128xf32>
    %167 = vector.multi_reduction <add>, %166, %cst_60 [1] : vector<128x128xf32> to vector<128xf32>
    %168 = vector.shape_cast %167 : vector<128xf32> to vector<128x1xf32>
    %cst_61 = arith.constant 9.99999996E-13 : f32
    %169 = vector.broadcast %cst_61 : f32 to vector<128x1xf32>
    %170 = arith.maximumf %168, %169 : vector<128x1xf32>
    %171 = tpu.reciprocal %170 {approx = true} : vector<128x1xf32> -> vector<128x1xf32>
    %172 = vector.broadcast %171 : vector<128x1xf32> to vector<128x128xf32>
    %173 = arith.mulf %165, %172 : vector<128x128xf32>
    %174 = arith.truncf %173 : vector<128x128xf32> to vector<128x128xbf16>
    %175 = arith.truncf %143 : vector<128x8xf32> to vector<128x8xbf16>
    %cst_62 = arith.constant dense<0.000000e+00> : vector<128x8xf32>
    %176 = tpu.matmul %174, %175, %cst_62 {dimension_numbers = #tpu.dot_dimension_numbers<[1], [0], [0], [1], [0, 0, 1, 1], [], []>} : vector<128x128xbf16>, vector<128x8xbf16>, vector<128x8xf32> -> vector<128x8xf32>
    %c400 = arith.constant 400 : index
    %c0_63 = arith.constant 0 : index
    %177 = vector.load %arg2[%c400, %c0_63] : memref<512x64xbf16, #tpu.memory_space<vmem>>, vector<8x32xbf16>
    %178 = arith.truncf %176 : vector<128x8xf32> to vector<128x8xbf16>
    %cst_64 = arith.constant dense<0.000000e+00> : vector<128x32xf32>
    %179 = tpu.matmul %178, %177, %cst_64 {dimension_numbers = #tpu.dot_dimension_numbers<[1], [0], [0], [1], [0, 0, 1, 1], [], []>} : vector<128x8xbf16>, vector<8x32xbf16>, vector<128x32xf32> -> vector<128x32xf32>
    %180 = arith.addf %127, %179 : vector<128x32xf32>
    %c96 = arith.constant 96 : index
    %c0_65 = arith.constant 0 : index
    %181 = vector.load %arg2[%c96, %c0_65] : memref<512x64xbf16, #tpu.memory_space<vmem>>, vector<32x8xbf16>
    %c224 = arith.constant 224 : index
    %c0_66 = arith.constant 0 : index
    %182 = vector.load %arg2[%c224, %c0_66] : memref<512x64xbf16, #tpu.memory_space<vmem>>, vector<32x8xbf16>
    %c352 = arith.constant 352 : index
    %c0_67 = arith.constant 0 : index
    %183 = vector.load %arg2[%c352, %c0_67] : memref<512x64xbf16, #tpu.memory_space<vmem>>, vector<32x8xbf16>
    %c11 = arith.constant 11 : index
    %c0_68 = arith.constant 0 : index
    %184 = vector.load %arg3[%c11, %c0_68] : memref<16x64xf32, #tpu.memory_space<vmem>>, vector<1x64xf32>
    %185 = vector.extract_strided_slice %184 {offsets = [0, 0], sizes = [1, 8], strides = [1, 1]} : vector<1x64xf32> to vector<1x8xf32>
    %186 = vector.extract_strided_slice %184 {offsets = [0, 8], sizes = [1, 8], strides = [1, 1]} : vector<1x64xf32> to vector<1x8xf32>
    %187 = vector.extract_strided_slice %184 {offsets = [0, 16], sizes = [1, 8], strides = [1, 1]} : vector<1x64xf32> to vector<1x8xf32>
    %cst_69 = arith.constant dense<0.000000e+00> : vector<128x8xf32>
    %188 = tpu.matmul %2, %181, %cst_69 {dimension_numbers = #tpu.dot_dimension_numbers<[1], [0], [0], [1], [0, 0, 1, 1], [], []>} : vector<128x32xbf16>, vector<32x8xbf16>, vector<128x8xf32> -> vector<128x8xf32>
    %189 = vector.broadcast %185 : vector<1x8xf32> to vector<128x8xf32>
    %190 = arith.addf %188, %189 : vector<128x8xf32>
    %cst_70 = arith.constant dense<0.000000e+00> : vector<128x8xf32>
    %191 = tpu.matmul %2, %182, %cst_70 {dimension_numbers = #tpu.dot_dimension_numbers<[1], [0], [0], [1], [0, 0, 1, 1], [], []>} : vector<128x32xbf16>, vector<32x8xbf16>, vector<128x8xf32> -> vector<128x8xf32>
    %192 = vector.broadcast %186 : vector<1x8xf32> to vector<128x8xf32>
    %193 = arith.addf %191, %192 : vector<128x8xf32>
    %cst_71 = arith.constant dense<0.000000e+00> : vector<128x8xf32>
    %194 = tpu.matmul %2, %183, %cst_71 {dimension_numbers = #tpu.dot_dimension_numbers<[1], [0], [0], [1], [0, 0, 1, 1], [], []>} : vector<128x32xbf16>, vector<32x8xbf16>, vector<128x8xf32> -> vector<128x8xf32>
    %195 = vector.broadcast %187 : vector<1x8xf32> to vector<128x8xf32>
    %196 = arith.addf %194, %195 : vector<128x8xf32>
    %197 = arith.truncf %190 : vector<128x8xf32> to vector<128x8xbf16>
    %198 = arith.truncf %193 : vector<128x8xf32> to vector<128x8xbf16>
    %cst_72 = arith.constant dense<0.000000e+00> : vector<128x128xf32>
    %199 = tpu.matmul %197, %198, %cst_72 {dimension_numbers = #tpu.dot_dimension_numbers<[1], [1], [0], [0], [0, 0, 1, 0], [], []>} : vector<128x8xbf16>, vector<128x8xbf16>, vector<128x128xf32> -> vector<128x128xf32>
    %cst_73 = arith.constant 0.353553385 : f32
    %200 = vector.broadcast %cst_73 : f32 to vector<128x128xf32>
    %201 = arith.mulf %199, %200 : vector<128x128xf32>
    %cst_74 = arith.constant -1.000000e+30 : f32
    %202 = vector.broadcast %cst_74 : f32 to vector<128x128xf32>
    %203 = arith.select %13, %201, %202 : vector<128x128xi1>, vector<128x128xf32>
    %cst_75 = arith.constant dense<0xFF800000> : vector<128xf32>
    %204 = vector.multi_reduction <maximumf>, %203, %cst_75 [1] : vector<128x128xf32> to vector<128xf32>
    %205 = vector.shape_cast %204 : vector<128xf32> to vector<128x1xf32>
    %206 = vector.broadcast %205 : vector<128x1xf32> to vector<128x128xf32>
    %207 = arith.subf %203, %206 : vector<128x128xf32>
    %208 = math.exp %207 : vector<128x128xf32>
    %cst_76 = arith.constant dense<0.000000e+00> : vector<128xf32>
    %209 = vector.multi_reduction <add>, %208, %cst_76 [1] : vector<128x128xf32> to vector<128xf32>
    %210 = vector.shape_cast %209 : vector<128xf32> to vector<128x1xf32>
    %211 = tpu.reciprocal %210 {approx = true} : vector<128x1xf32> -> vector<128x1xf32>
    %212 = vector.broadcast %211 : vector<128x1xf32> to vector<128x128xf32>
    %213 = arith.mulf %208, %212 : vector<128x128xf32>
    %214 = vector.broadcast %3 : vector<128x1xf32> to vector<128x128xf32>
    %215 = arith.mulf %213, %214 : vector<128x128xf32>
    %216 = arith.mulf %215, %18 : vector<128x128xf32>
    %cst_77 = arith.constant 0.000000e+00 : f32
    %217 = vector.broadcast %cst_77 : f32 to vector<128x128xf32>
    %218 = arith.select %20, %217, %216 : vector<128x128xi1>, vector<128x128xf32>
    %219 = math.absf %218 : vector<128x128xf32>
    %cst_78 = arith.constant dense<0.000000e+00> : vector<128xf32>
    %220 = vector.multi_reduction <add>, %219, %cst_78 [1] : vector<128x128xf32> to vector<128xf32>
    %221 = vector.shape_cast %220 : vector<128xf32> to vector<128x1xf32>
    %cst_79 = arith.constant 9.99999996E-13 : f32
    %222 = vector.broadcast %cst_79 : f32 to vector<128x1xf32>
    %223 = arith.maximumf %221, %222 : vector<128x1xf32>
    %224 = tpu.reciprocal %223 {approx = true} : vector<128x1xf32> -> vector<128x1xf32>
    %225 = vector.broadcast %224 : vector<128x1xf32> to vector<128x128xf32>
    %226 = arith.mulf %218, %225 : vector<128x128xf32>
    %227 = arith.truncf %226 : vector<128x128xf32> to vector<128x128xbf16>
    %228 = arith.truncf %196 : vector<128x8xf32> to vector<128x8xbf16>
    %cst_80 = arith.constant dense<0.000000e+00> : vector<128x8xf32>
    %229 = tpu.matmul %227, %228, %cst_80 {dimension_numbers = #tpu.dot_dimension_numbers<[1], [0], [0], [1], [0, 0, 1, 1], [], []>} : vector<128x128xbf16>, vector<128x8xbf16>, vector<128x8xf32> -> vector<128x8xf32>
    %c408 = arith.constant 408 : index
    %c0_81 = arith.constant 0 : index
    %230 = vector.load %arg2[%c408, %c0_81] : memref<512x64xbf16, #tpu.memory_space<vmem>>, vector<8x32xbf16>
    %231 = arith.truncf %229 : vector<128x8xf32> to vector<128x8xbf16>
    %cst_82 = arith.constant dense<0.000000e+00> : vector<128x32xf32>
    %232 = tpu.matmul %231, %230, %cst_82 {dimension_numbers = #tpu.dot_dimension_numbers<[1], [0], [0], [1], [0, 0, 1, 1], [], []>} : vector<128x8xbf16>, vector<8x32xbf16>, vector<128x32xf32> -> vector<128x32xf32>
    %233 = arith.addf %180, %232 : vector<128x32xf32>
    %c0_83 = arith.constant 0 : index
    %c0_84 = arith.constant 0 : index
    %234 = vector.load %arg3[%c0_83, %c0_84] : memref<16x64xf32, #tpu.memory_space<vmem>>, vector<1x32xf32>
    %235 = vector.broadcast %234 : vector<1x32xf32> to vector<128x32xf32>
    %236 = arith.addf %233, %235 : vector<128x32xf32>
    %237 = arith.addf %1, %236 : vector<128x32xf32>
    %c3 = arith.constant 3 : index
    %c0_85 = arith.constant 0 : index
    %238 = vector.load %arg3[%c3, %c0_85] : memref<16x64xf32, #tpu.memory_space<vmem>>, vector<1x32xf32>
    %c4 = arith.constant 4 : index
    %c0_86 = arith.constant 0 : index
    %239 = vector.load %arg3[%c4, %c0_86] : memref<16x64xf32, #tpu.memory_space<vmem>>, vector<1x32xf32>
    %cst_87 = arith.constant dense<0.000000e+00> : vector<128xf32>
    %240 = vector.multi_reduction <add>, %237, %cst_87 [1] : vector<128x32xf32> to vector<128xf32>
    %241 = vector.shape_cast %240 : vector<128xf32> to vector<128x1xf32>
    %cst_88 = arith.constant 3.200000e+01 : f32
    %242 = vector.broadcast %cst_88 : f32 to vector<128x1xf32>
    %243 = arith.divf %241, %242 : vector<128x1xf32>
    %244 = vector.broadcast %243 : vector<128x1xf32> to vector<128x32xf32>
    %245 = arith.subf %237, %244 : vector<128x32xf32>
    %246 = arith.mulf %245, %245 : vector<128x32xf32>
    %cst_89 = arith.constant dense<0.000000e+00> : vector<128xf32>
    %247 = vector.multi_reduction <add>, %246, %cst_89 [1] : vector<128x32xf32> to vector<128xf32>
    %248 = vector.shape_cast %247 : vector<128xf32> to vector<128x1xf32>
    %cst_90 = arith.constant 3.200000e+01 : f32
    %249 = vector.broadcast %cst_90 : f32 to vector<128x1xf32>
    %250 = arith.divf %248, %249 : vector<128x1xf32>
    %251 = vector.broadcast %243 : vector<128x1xf32> to vector<128x32xf32>
    %252 = arith.subf %237, %251 : vector<128x32xf32>
    %cst_91 = arith.constant 9.99999974E-6 : f32
    %253 = vector.broadcast %cst_91 : f32 to vector<128x1xf32>
    %254 = arith.addf %250, %253 : vector<128x1xf32>
    %255 = math.rsqrt %254 : vector<128x1xf32>
    %256 = vector.broadcast %255 : vector<128x1xf32> to vector<128x32xf32>
    %257 = arith.mulf %252, %256 : vector<128x32xf32>
    %258 = vector.broadcast %238 : vector<1x32xf32> to vector<128x32xf32>
    %259 = arith.mulf %257, %258 : vector<128x32xf32>
    %260 = vector.broadcast %239 : vector<1x32xf32> to vector<128x32xf32>
    %261 = arith.addf %259, %260 : vector<128x32xf32>
    %262 = arith.truncf %261 : vector<128x32xf32> to vector<128x32xbf16>
    %c416 = arith.constant 416 : index
    %c0_92 = arith.constant 0 : index
    %263 = vector.load %arg2[%c416, %c0_92] : memref<512x64xbf16, #tpu.memory_space<vmem>>, vector<32x64xbf16>
    %cst_93 = arith.constant dense<0.000000e+00> : vector<128x64xf32>
    %264 = tpu.matmul %262, %263, %cst_93 {dimension_numbers = #tpu.dot_dimension_numbers<[1], [0], [0], [1], [0, 0, 1, 1], [], []>} : vector<128x32xbf16>, vector<32x64xbf16>, vector<128x64xf32> -> vector<128x64xf32>
    %c1 = arith.constant 1 : index
    %c0_94 = arith.constant 0 : index
    %265 = vector.load %arg3[%c1, %c0_94] : memref<16x64xf32, #tpu.memory_space<vmem>>, vector<1x64xf32>
    %266 = vector.broadcast %265 : vector<1x64xf32> to vector<128x64xf32>
    %267 = arith.addf %264, %266 : vector<128x64xf32>
    %cst_95 = arith.constant 0.000000e+00 : f32
    %268 = vector.broadcast %cst_95 : f32 to vector<128x64xf32>
    %269 = arith.maximumf %267, %268 : vector<128x64xf32>
    %270 = arith.truncf %269 : vector<128x64xf32> to vector<128x64xbf16>
    %c448 = arith.constant 448 : index
    %c0_96 = arith.constant 0 : index
    %271 = vector.load %arg2[%c448, %c0_96] : memref<512x64xbf16, #tpu.memory_space<vmem>>, vector<64x32xbf16>
    %cst_97 = arith.constant dense<0.000000e+00> : vector<128x32xf32>
    %272 = tpu.matmul %270, %271, %cst_97 {dimension_numbers = #tpu.dot_dimension_numbers<[1], [0], [0], [1], [0, 0, 1, 1], [], []>} : vector<128x64xbf16>, vector<64x32xbf16>, vector<128x32xf32> -> vector<128x32xf32>
    %c2 = arith.constant 2 : index
    %c0_98 = arith.constant 0 : index
    %273 = vector.load %arg3[%c2, %c0_98] : memref<16x64xf32, #tpu.memory_space<vmem>>, vector<1x32xf32>
    %274 = vector.broadcast %273 : vector<1x32xf32> to vector<128x32xf32>
    %275 = arith.addf %272, %274 : vector<128x32xf32>
    %276 = arith.addf %261, %275 : vector<128x32xf32>
    %c5 = arith.constant 5 : index
    %c0_99 = arith.constant 0 : index
    %277 = vector.load %arg3[%c5, %c0_99] : memref<16x64xf32, #tpu.memory_space<vmem>>, vector<1x32xf32>
    %c6 = arith.constant 6 : index
    %c0_100 = arith.constant 0 : index
    %278 = vector.load %arg3[%c6, %c0_100] : memref<16x64xf32, #tpu.memory_space<vmem>>, vector<1x32xf32>
    %cst_101 = arith.constant dense<0.000000e+00> : vector<128xf32>
    %279 = vector.multi_reduction <add>, %276, %cst_101 [1] : vector<128x32xf32> to vector<128xf32>
    %280 = vector.shape_cast %279 : vector<128xf32> to vector<128x1xf32>
    %cst_102 = arith.constant 3.200000e+01 : f32
    %281 = vector.broadcast %cst_102 : f32 to vector<128x1xf32>
    %282 = arith.divf %280, %281 : vector<128x1xf32>
    %283 = vector.broadcast %282 : vector<128x1xf32> to vector<128x32xf32>
    %284 = arith.subf %276, %283 : vector<128x32xf32>
    %285 = arith.mulf %284, %284 : vector<128x32xf32>
    %cst_103 = arith.constant dense<0.000000e+00> : vector<128xf32>
    %286 = vector.multi_reduction <add>, %285, %cst_103 [1] : vector<128x32xf32> to vector<128xf32>
    %287 = vector.shape_cast %286 : vector<128xf32> to vector<128x1xf32>
    %cst_104 = arith.constant 3.200000e+01 : f32
    %288 = vector.broadcast %cst_104 : f32 to vector<128x1xf32>
    %289 = arith.divf %287, %288 : vector<128x1xf32>
    %290 = vector.broadcast %282 : vector<128x1xf32> to vector<128x32xf32>
    %291 = arith.subf %276, %290 : vector<128x32xf32>
    %cst_105 = arith.constant 9.99999974E-6 : f32
    %292 = vector.broadcast %cst_105 : f32 to vector<128x1xf32>
    %293 = arith.addf %289, %292 : vector<128x1xf32>
    %294 = math.rsqrt %293 : vector<128x1xf32>
    %295 = vector.broadcast %294 : vector<128x1xf32> to vector<128x32xf32>
    %296 = arith.mulf %291, %295 : vector<128x32xf32>
    %297 = vector.broadcast %277 : vector<1x32xf32> to vector<128x32xf32>
    %298 = arith.mulf %296, %297 : vector<128x32xf32>
    %299 = vector.broadcast %278 : vector<1x32xf32> to vector<128x32xf32>
    %300 = arith.addf %298, %299 : vector<128x32xf32>
    %c0_106 = arith.constant 0 : index
    %c0_107 = arith.constant 0 : index
    %301 = vector.load %arg8[%c0_106, %c0_107] : memref<128x32xf32, #tpu.memory_space<vmem>>, vector<128x32xf32>
    tpu.vector_store %arg8[%c0_106, %c0_107], %300 {strides = array<i32>} : memref<128x32xf32, #tpu.memory_space<vmem>>, vector<128x32xf32>,
    return
  }
  func.func @transform_0(%arg0: i32) -> i32 {
    %c0_i32 = arith.constant 0 : i32
    %c0_i32_0 = arith.constant 0 : i32
    return %c0_i32 : i32
  }
  func.func @transform_1(%arg0: i32) -> (i32, i32) {
    %c0_i32 = arith.constant 0 : i32
    %c0_i32_0 = arith.constant 0 : i32
    %c0_i32_1 = arith.constant 0 : i32
    return %c0_i32, %c0_i32_0 : i32, i32
  }
  func.func @transform_2(%arg0: i32) -> (i32, i32) {
    %c0_i32 = arith.constant 0 : i32
    %c0_i32_0 = arith.constant 0 : i32
    %c0_i32_1 = arith.constant 0 : i32
    return %c0_i32, %c0_i32_0 : i32, i32
  }
  func.func @transform_3(%arg0: i32) -> (i32, i32) {
    %c0_i32 = arith.constant 0 : i32
    %c0_i32_0 = arith.constant 0 : i32
    return %arg0, %c0_i32 : i32, i32
  }
  func.func @transform_4(%arg0: i32) -> (i32, i32) {
    %c0_i32 = arith.constant 0 : i32
    %c0_i32_0 = arith.constant 0 : i32
    return %arg0, %c0_i32 : i32, i32
  }
  func.func @transform_5(%arg0: i32) -> (i32, i32) {
    %c0_i32 = arith.constant 0 : i32
    %c0_i32_0 = arith.constant 0 : i32
    return %arg0, %c0_i32 : i32, i32
  }
  func.func @transform_6(%arg0: i32) -> (i32, i32) {
    %c0_i32 = arith.constant 0 : i32
    %c0_i32_0 = arith.constant 0 : i32
    return %c0_i32, %arg0 : i32, i32
  }
  func.func @transform_7(%arg0: i32) -> (i32, i32) {
    %c0_i32 = arith.constant 0 : i32
    %c0_i32_0 = arith.constant 0 : i32
    return %arg0, %c0_i32 : i32, i32
  }
}

</mosaic_0001>

<bundles_post_ra>
// kernel: gta3_forward.1
= control target key start
LH: loop header
LB: loop body
LE: loop exit
PB: predicated region body
PF: predicated region fallthrough
CT: control target
= control target key end

     0   :  { %s13800_s0 = inlined_call_operand.<no memory space> [shape: f32[1], index: 0, kind: input, shape index: {}]   ;;  %s13801_s1 = inlined_call_operand.vmem [shape: bf16[512,64], index: 1, kind: input, shape index: {}]   ;;  %s13802_s2 = inlined_call_operand.vmem [shape: f32[16,64], index: 2, kind: input, shape index: {}]   ;;  %s13803_s3 = inlined_call_operand.vmem [shape: f32[256,32], index: 3, kind: input, shape index: {}]   ;;  %s13804_s4 = inlined_call_operand.vmem [shape: f32[256,8], index: 4, kind: input, shape index: {}]   ;;  %s13805_s5 = inlined_call_operand.vmem [shape: f32[256,1], index: 5, kind: input, shape index: {}]   ;;  %s13806_s6 = inlined_call_operand.vmem [shape: f32[1,256], index: 6, kind: input, shape index: {}]   ;;  %s13807_s7 = inlined_call_operand.hbm [shape: f32[256,32], index: 7, kind: output, shape index: {}]  }
   0x1   :  { %12 = sst [smem:[#allocation2]] %s13800_s0 }
   0x2   :  { %13 = vsyncpa [#allocation4], 0 }
   0x3   :  { %15 = vsyncpa [#allocation4 + $0x1], 0  ;;  %s8951_s26 = smov 0   ;;  %s8953_s27 = smov 0  }
   0x4   :  { %s8955_s28 = smov 0   ;;  %s8957_s29 = smov 0  }
   0x5 LB: > { %s8972_s0 = sadd.s32 4294967295, %s8888_s29   ;;  %s6988_s30 = sadd.s32 4294967294, %s8888_s29   ;;  %s8888_s29 = sphi %s8957_s29, %s15353_s29   ;;  %s8884_s28 = sphi %s8955_s28, %s15352_s28   ;;  %s8880_s27 = sphi %s8953_s27, %s15351_s27   ;;  %s8876_s26 = sphi %s8951_s26, %s15350_s26  }
   0x6   : > { %s8976_s8 = sadd.s32 1, %s8888_s29   ;;  %s195_s9 = sadd.s32 1, %s8884_s28 }
   0x7   : > { %s192_s10 = ssub.s32 %s8888_s29, %s8976_s8  ;;  %p205_p0 = scmp.ne.s32.totalorder %s8884_s28, %s8880_s27 }
   0x8   : > { %p193_p1 = scmp.eq.s32.totalorder %s192_s10, 0  ;;  %p206_p2 = scmp.eq.s32.totalorder %s8972_s0, 1 }
   0x9   : > { %p211_p3 = scmp.ne.s32.totalorder %s8880_s27, %s8876_s26  ;;  %p212_p4 = scmp.eq.s32.totalorder %s6988_s30, 1 }
   0xa   : > { %s8987_s11 = scalar_select %p193_p1, %s8884_s28, %s195_s9  }
   0xb   : > { %p8989_p5 = por %p206_p2, %p205_p0  ;;  %p8993_p6 = por %p212_p4, %p211_p3 }
   0xc   : > { %p6991_p7 = scmp.ge.s32.totalorder %s8888_s29, 1  ;;  %p272_p8 = scmp.lt.s32.totalorder %s8888_s29, 3 }
   0xe   : > { %p273_p9 = pnand %p6991_p7, %p272_p8 }
  0x10   : > { %276 = sbr.rel (%p273_p9) target bundleno = 5831 (0x16c7), region = 48 }
  0x17   : > { %v8282_v0 = vld [vmem:[%s13801_s1 + $0x40] sm:$0xff]   ;;  %v9005_v1 = vld [vmem:[%s13802_s2 + $0x8] ss:$0 sm:$0xff]  ;;  %s13822_s18 = smov 120   ;;  %s6993_s21 = sshll.u32 %s8972_s0, 4  ;;  %vm13855_vm0 = vcmask 261120  }
  0x18   : > { %7548 = vmatprep.subr.bf16.mxu1 %v8282_v0  ;;  %1691 = vrot.lane.b32.xlu0 %v9005_v1, %s13822_s18  ;;  %v8283_v2 = vld [vmem:[%s13801_s1 + $0x48] sm:$0xff]   ;;  %p318_p10 = scmp.lt.s32.totalorder %s6993_s21, 31  ;;  %v8284_v3 = vld [vmem:[%s13801_s1] sm:$0xff]   ;;  %s13814_s19 = smov 8   ;;  %vm13850_vm1 = vcmask 64512  }
  0x19   : > { %7549 = vmatpush3.bf16.msra.mxu1 %v8282_v0  ;;  %v8285_v4 = vld [vmem:[%s13801_s1 + $0x8] sm:$0xff]   ;;  %7528 = vmatprep.subr.bf16.mxu0 %v8284_v3  ;;  %s13816_s20 = smov 16   ;;  %s13818_s22 = smov 32  }
  0x1a   : > { %7550 = vmatprep.subr.bf16.mxu1 %v8283_v2  ;;  %s15355_s21 = smov (!%p318_p10, %s6993_s21), 31  ;;  %7529 = vmatpush3.bf16.msra.mxu0 %v8284_v3  ;;  %s13812_s23 = smov 40  }
  0x1b   : > { %s9019_s30 = sshll.u32 %s15355_s21, 3  ;;  %7530 = vmatprep.subr.bf16.mxu0 %v8285_v4  ;;  %s8893_s21 = smov 24  }
  0x1c   : > { %s9025_s14 = scalar_lea.vmem %s13804_s4, %s9019_s30  ;;  %s9031_s17 = scalar_lea.vmem %s13803_s3, %s9019_s30 }
  0x1d   : > { %7551 = vmatpush3.bf16.msra.mxu1 %v8283_v2  ;;  %v9034_v5 = vld [vmem:[%s9025_s14 + $0x8] sm:$0xff]  ;;  %v9037_v6 = vld [vmem:[%s9025_s14] sm:$0xff]  ;;  %v343_v9 = vld [vmem:[%s9031_s17 + $0x10] sm:$0xff]  ;;  %s13832_s24 = smov 48   ;;  %s13820_s25 = smov 56  }
  0x1e   : > { %v341_v7 = vld [vmem:[%s9031_s17] sm:$0xff]  ;;  %490 = vrot.lane.b32.xlu1 %v9034_v5, %s13814_s19  ;;  %488 = vrot.lane.b32.xlu0 %v9037_v6, %s13814_s19  ;;  %v342_v8 = vld [vmem:[%s9031_s17 + $0x8] sm:$0xff]  ;;  %s13828_s9 = smov 64   ;;  %s13826_s10 = smov 72  }
  0x1f   : > { %v9046_v10 = vpack.c.bf16 %v342_v8, %v341_v7  ;;  %v344_v11 = vld [vmem:[%s9031_s17 + $0x18] sm:$0xff]  ;;  %v9050_v12 = vld [vmem:[%s9025_s14 + $0x10] sm:$0xff]  ;;  %7531 = vmatpush3.bf16.msra.mxu0 %v8285_v4  ;;  %v345_v15 = vld [vmem:[%s9031_s17 + $0x20] sm:$0xff]  ;;  %s13808_s15 = smov 80   ;;  %s13810_s16 = smov 88  }
  0x20   : > { %v9052_v13 = vpack.c.bf16 %v344_v11, %v343_v9  ;;  %v9055_v14 = vld [vmem:[%s9025_s14 + $0x18] sm:$0xff]  ;;  %v346_v16 = vld [vmem:[%s9031_s17 + $0x28] sm:$0xff]  ;;  %v347_v18 = vld [vmem:[%s9031_s17 + $0x30] sm:$0xff]  ;;  %p335_p11 = scmp.lt.s32.totalorder %s8972_s0, 1 }
  0x21   : > { %14072 = vst [vmem:[#allocation6_spill] sm:$0xff] %v9046_v10  ;;  %7552 = vmatprep.mubr.msk.bf16.mxu1 %vm13855_vm0, %v9046_v10  ;;  %v9061_v17 = vpack.c.bf16 %v346_v16, %v345_v15  ;;  %7532 = vmatprep.mubr.msk.bf16.mxu0 %vm13855_vm0, %v9046_v10  ;;  %v348_v19 = vld [vmem:[%s9031_s17 + $0x38] sm:$0xff]  ;;  %v349_v20 = vld [vmem:[%s9031_s17 + $0x40] sm:$0xff]  ;;  %v350_v21 = vld [vmem:[%s9031_s17 + $0x48] sm:$0xff] }
  0x22   : > { %14073 = vst [vmem:[#allocation7_spill] sm:$0xff] %v9052_v13  ;;  %7553 = vmatmul.mubr.msk.bf16.vlgmr.msra.gmra.mrb[0].mxu1 %vm13855_vm0, %v9052_v13  ;;  %492 = vrot.lane.b32.xlu1 %v9050_v12, %s13814_s19  ;;  %v9083_v22 = vpack.c.bf16 %v348_v19, %v347_v18  ;;  %v9087_v23 = vpack.c.bf16 %v350_v21, %v349_v20  ;;  %v351_v24 = vld [vmem:[%s9031_s17 + $0x50] sm:$0xff]  ;;  %v352_v25 = vld [vmem:[%s9031_s17 + $0x58] sm:$0xff]  ;;  %v353_v26 = vld [vmem:[%s9031_s17 + $0x60] sm:$0xff] }
  0x23   : > { %14074 = vst [vmem:[#allocation8_spill] sm:$0xff] %v9061_v17  ;;  %494 = vrot.lane.b32.xlu0 %v9055_v14, %s13814_s19  ;;  %7556 = vmatprep.mubr.msk.bf16.mxu1 %vm13855_vm0, %v9061_v17  ;;  %v354_v27 = vld [vmem:[%s9031_s17 + $0x68] sm:$0xff]  ;;  %v9107_v28 = vpack.c.bf16 %v352_v25, %v351_v24  ;;  %v355_v30 = vld [vmem:[%s9031_s17 + $0x70] sm:$0xff]  ;;  %v356_v31 = vld [vmem:[%s9031_s17 + $0x78] sm:$0xff] }
  0x24   : > { %7533 = vmatmul.mubr.msk.bf16.vlgmr.msra.gmra.mrb[0].mxu0 %vm13855_vm0, %v9052_v13  ;;  %14075 = vst [vmem:[#allocation9_spill] sm:$0xff] %v9083_v22  ;;  %14076 = vst [vmem:[#allocation10_spill] sm:$0xff] %v9087_v23  ;;  %v9111_v29 = vpack.c.bf16 %v354_v27, %v353_v26  ;;  %v9129_v32 = vpack.c.bf16 %v356_v31, %v355_v30  ;;  %v9172_v33 = vld [vmem:[%s9025_s14 + $0x20] sm:$0xff]  ;;  %v9175_v34 = vld [vmem:[%s9025_s14 + $0x28] sm:$0xff] }
  0x25   : > { %7536 = vmatprep.mubr.msk.bf16.mxu0 %vm13855_vm0, %v9061_v17  ;;  %14077 = vst [vmem:[#allocation11_spill] sm:$0xff] %v9107_v28  ;;  %v9190_v35 = vld [vmem:[%s9025_s14 + $0x30] sm:$0xff]  ;;  %v9193_v36 = vld [vmem:[%s9025_s14 + $0x38] sm:$0xff]  ;;  %v9338_v54 = vld [vmem:[%s9025_s14 + $0x40] sm:$0xff] }
  0x26   : > { %536 = vrot.lane.b32.xlu1 %v9037_v6, %s13816_s20  ;;  %14078 = vst [vmem:[#allocation12_spill] sm:$0xff] %v9111_v29  ;;  %14079 = vst [vmem:[#allocation13_spill] sm:$0xff] %v9129_v32  ;;  %v9343_v56 = vld [vmem:[%s9025_s14 + $0x48] sm:$0xff]  ;;  %v9364_v60 = vld [vmem:[%s9025_s14 + $0x50] sm:$0xff] }
  0x27   : > { %538 = vrot.lane.b32.xlu0 %v9034_v5, %s13816_s20  ;;  %v9369_v62 = vld [vmem:[%s9025_s14 + $0x58] sm:$0xff] }
  0x2a   : > { %7557 = vmatmul.mubr.msk.bf16.gmra.mrb[4].mxu1 %vm13855_vm0, %v9083_v22  ;;  %542 = vrot.lane.b32.xlu1 %v9055_v14, %s13816_s20 }
  0x2b   : > { %540 = vrot.lane.b32.xlu0 %v9050_v12, %s13816_s20  ;;  %7560 = vmatprep.mubr.msk.bf16.mxu1 %vm13855_vm0, %v9087_v23 }
  0x2c   : > { %7537 = vmatmul.mubr.msk.bf16.gmra.mrb[4].mxu0 %vm13855_vm0, %v9083_v22 }
  0x2d   : > { %7540 = vmatprep.mubr.msk.bf16.mxu0 %vm13855_vm0, %v9087_v23 }
  0x2e   : > { %584 = vrot.lane.b32.xlu1 %v9037_v6, %s8893_s21 }
  0x2f   : > { %586 = vrot.lane.b32.xlu0 %v9034_v5, %s8893_s21 }
  0x32   : > { %7561 = vmatmul.mubr.msk.bf16.gmra.mrb[8].mxu1 %vm13855_vm0, %v9107_v28  ;;  %590 = vrot.lane.b32.xlu1 %v9055_v14, %s8893_s21 }
  0x33   : > { %588 = vrot.lane.b32.xlu0 %v9050_v12, %s8893_s21  ;;  %7564 = vmatprep.mubr.msk.bf16.mxu1 %vm13855_vm0, %v9111_v29 }
  0x34   : > { %7541 = vmatmul.mubr.msk.bf16.gmra.mrb[8].mxu0 %vm13855_vm0, %v9107_v28 }
  0x35   : > { %7544 = vmatprep.mubr.msk.bf16.mxu0 %vm13855_vm0, %v9111_v29 }
  0x36   : > { %632 = vrot.lane.b32.xlu1 %v9037_v6, %s13818_s22 }
  0x37   : > { %634 = vrot.lane.b32.xlu0 %v9034_v5, %s13818_s22 }
  0x3a   : > { %7565 = vmatmul.mubr.msk.bf16.gmra.mrb[12].mxu1 %vm13855_vm0, %v9129_v32  ;;  %636 = vrot.lane.b32.xlu1 %v9050_v12, %s13818_s22 }
  0x3b   : > { %638 = vrot.lane.b32.xlu0 %v9055_v14, %s13818_s22 }
  0x3c   : > { %7545 = vmatmul.mubr.msk.bf16.gmra.mrb[12].mxu0 %vm13855_vm0, %v9129_v32 }
  0x3d   : > { %7572 = vmatprep.mubr.msk.bf16.mxu0 %vm13855_vm0, %v9046_v10 }
  0x3e   : > { %680 = vrot.lane.b32.xlu1 %v9037_v6, %s13812_s23 }
  0x3f   : > { %682 = vrot.lane.b32.xlu0 %v9034_v5, %s13812_s23 }
  0x42   : > { %684 = vrot.lane.b32.xlu1 %v9050_v12, %s13812_s23 }
  0x43   : > { %686 = vrot.lane.b32.xlu0 %v9055_v14, %s13812_s23 }
  0x46   : > { %728 = vrot.lane.b32.xlu1 %v9037_v6, %s13832_s24 }
  0x47   : > { %730 = vrot.lane.b32.xlu0 %v9034_v5, %s13832_s24 }
  0x4a   : > { %732 = vrot.lane.b32.xlu1 %v9050_v12, %s13832_s24 }
  0x4b   : > { %734 = vrot.lane.b32.xlu0 %v9055_v14, %s13832_s24 }
  0x4e   : > { %776 = vrot.lane.b32.xlu1 %v9037_v6, %s13820_s25 }
  0x4f   : > { %778 = vrot.lane.b32.xlu0 %v9034_v5, %s13820_s25 }
  0x52   : > { %780 = vrot.lane.b32.xlu1 %v9050_v12, %s13820_s25 }
  0x53   : > { %782 = vrot.lane.b32.xlu0 %v9055_v14, %s13820_s25 }
  0x56   : > { %824 = vrot.lane.b32.xlu1 %v9037_v6, %s13828_s9 }
  0x57   : > { %826 = vrot.lane.b32.xlu0 %v9034_v5, %s13828_s9 }
  0x5a   : > { %496 = vrot.lane.b32.xlu1 %v9172_v33, %s13814_s19 }
  0x5b   : > { %498 = vrot.lane.b32.xlu0 %v9175_v34, %s13814_s19 }
  0x5e   : > { %828 = vrot.lane.b32.xlu1 %v9050_v12, %s13828_s9 }
  0x5f   : > { %830 = vrot.lane.b32.xlu0 %v9055_v14, %s13828_s9 }
  0x62   : > { %872 = vrot.lane.b32.xlu1 %v9037_v6, %s13826_s10 }
  0x63   : > { %874 = vrot.lane.b32.xlu0 %v9034_v5, %s13826_s10 }
  0x66   : > { %500 = vrot.lane.b32.xlu1 %v9190_v35, %s13814_s19 }
  0x67   : > { %502 = vrot.lane.b32.xlu0 %v9193_v36, %s13814_s19 }
  0x6a   : > { %544 = vrot.lane.b32.xlu1 %v9172_v33, %s13816_s20 }
  0x6b   : > { %546 = vrot.lane.b32.xlu0 %v9175_v34, %s13816_s20 }
  0x6e   : > { %876 = vrot.lane.b32.xlu1 %v9050_v12, %s13826_s10 }
  0x6f   : > { %878 = vrot.lane.b32.xlu0 %v9055_v14, %s13826_s10 }
  0x72   : > { %920 = vrot.lane.b32.xlu1 %v9037_v6, %s13808_s15 }
  0x73   : > { %922 = vrot.lane.b32.xlu0 %v9034_v5, %s13808_s15 }
  0x76   : > { %550 = vrot.lane.b32.xlu1 %v9193_v36, %s13816_s20 }
  0x77   : > { %548 = vrot.lane.b32.xlu0 %v9190_v35, %s13816_s20 }
  0x7a   : > { %592 = vrot.lane.b32.xlu1 %v9172_v33, %s8893_s21 }
  0x7b   : > { %594 = vrot.lane.b32.xlu0 %v9175_v34, %s8893_s21 }
  0x7e   : > { %924 = vrot.lane.b32.xlu1 %v9050_v12, %s13808_s15 }
  0x7f   : > { %926 = vrot.lane.b32.xlu0 %v9055_v14, %s13808_s15  ;;  %s8902_s15 = smov 96  }
  0x82   : > { %968 = vrot.lane.b32.xlu1 %v9037_v6, %s13810_s16 }
  0x83   : > { %970 = vrot.lane.b32.xlu0 %v9034_v5, %s13810_s16 }
  0x86   : > { %598 = vrot.lane.b32.xlu1 %v9193_v36, %s8893_s21 }
  0x87   : > { %596 = vrot.lane.b32.xlu0 %v9190_v35, %s8893_s21 }
  0x8a   : > { %640 = vrot.lane.b32.xlu1 %v9172_v33, %s13818_s22  ;;  %v9251_v37 = vpop.permute.xlu0 %1691 }
  0x8b   : > { %642 = vrot.lane.b32.xlu0 %v9175_v34, %s13818_s22 }
  0x8e   : > { %972 = vrot.lane.b32.xlu1 %v9050_v12, %s13810_s16 }
  0x8f   : > { %974 = vrot.lane.b32.xlu0 %v9055_v14, %s13810_s16  ;;  %s8903_s16 = smov 104  }
  0x90   : > { %v9257_v38 = vpop.permute.xlu1 %490  ;;  %v9263_v39 = vpop.permute.xlu0 %488 }
  0x92   : > { %1016 = vrot.lane.b32.xlu1 %v9037_v6, %s8902_s15 }
  0x93   : > { %1018 = vrot.lane.b32.xlu0 %v9034_v5, %s8902_s15 }
  0x94   : > { %v9265_v40 = vpop.permute.xlu1 %492 }
  0x95   : > { %v9271_v41 = vpop.permute.xlu0 %494 }
  0x96   : > { %644 = vrot.lane.b32.xlu1 %v9190_v35, %s13818_s22 }
  0x97   : > { %646 = vrot.lane.b32.xlu0 %v9193_v36, %s13818_s22 }
  0x98   : > { %v9277_v42 = vpop.permute.xlu1 %536 }
  0x99   : > { %v9283_v43 = vpop.permute.xlu0 %538 }
  0x9a   : > { %688 = vrot.lane.b32.xlu1 %v9172_v33, %s13812_s23 }
  0x9b   : > { %690 = vrot.lane.b32.xlu0 %v9175_v34, %s13812_s23 }
  0x9c   : > { %v9285_v44 = vpop.permute.xlu1 %542 }
  0x9d   : > { %v9291_v45 = vpop.permute.xlu0 %540 }
  0x9e   : > { %1020 = vrot.lane.b32.xlu1 %v9050_v12, %s8902_s15 }
  0x9f   : > { %1022 = vrot.lane.b32.xlu0 %v9055_v14, %s8902_s15 }
  0xa0   : > { %v9297_v46 = vpop.permute.xlu1 %584 }
  0xa1   : > { %v9303_v47 = vpop.permute.xlu0 %586 }
  0xa2   : > { %1064 = vrot.lane.b32.xlu1 %v9037_v6, %s8903_s16 }
  0xa3   : > { %1066 = vrot.lane.b32.xlu0 %v9034_v5, %s8903_s16 }
  0xa4   : > { %v9305_v48 = vpop.permute.xlu1 %590 }
  0xa5   : > { %v9311_v49 = vpop.permute.xlu0 %588 }
  0xa6   : > { %692 = vrot.lane.b32.xlu1 %v9190_v35, %s13812_s23 }
  0xa7   : > { %694 = vrot.lane.b32.xlu0 %v9193_v36, %s13812_s23  ;;  %s13830_s23 = smov 112  }
  0xa8   : > { %v9317_v50 = vpop.permute.xlu1 %632 }
  0xa9   : > { %v9323_v51 = vpop.permute.xlu0 %634 }
  0xaa   : > { %736 = vrot.lane.b32.xlu1 %v9172_v33, %s13832_s24 }
  0xab   : > { %738 = vrot.lane.b32.xlu0 %v9175_v34, %s13832_s24 }
  0xac   : > { %v9325_v52 = vpop.permute.xlu1 %636 }
  0xad   : > { %v9331_v53 = vpop.permute.xlu0 %638 }
  0xae   : > { %1068 = vrot.lane.b32.xlu1 %v9050_v12, %s8903_s16 }
  0xaf   : > { %1070 = vrot.lane.b32.xlu0 %v9055_v14, %s8903_s16 }
  0xb0   : > { %v9340_v55 = vpop.permute.xlu1 %680 }
  0xb1   : > { %v9349_v57 = vpop.permute.xlu0 %682 }
  0xb2   : > { %1112 = vrot.lane.b32.xlu1 %v9037_v6, %s13830_s23 }
  0xb3   : > { %1114 = vrot.lane.b32.xlu0 %v9034_v5, %s13830_s23 }
  0xb4   : > { %v9351_v58 = vpop.permute.xlu1 %684 }
  0xb5   : > { %14080 = vst [vmem:[#allocation14_spill] sm:$0xff] %v9351_v58  ;;  %v9357_v59 = vpop.permute.xlu0 %686 }
  0xb6   : > { %740 = vrot.lane.b32.xlu1 %v9190_v35, %s13832_s24  ;;  %14081 = vst [vmem:[#allocation15_spill] sm:$0xff] %v9357_v59 }
  0xb7   : > { %742 = vrot.lane.b32.xlu0 %v9193_v36, %s13832_s24 }
  0xb8   : > { %v9366_v61 = vpop.permute.xlu1 %728 }
  0xb9   : > { %14082 = vst [vmem:[#allocation16_spill] sm:$0xff] %v9366_v61  ;;  %v9375_v63 = vpop.permute.xlu0 %730 }
  0xba   : > { %784 = vrot.lane.b32.xlu1 %v9172_v33, %s13820_s25  ;;  %14083 = vst [vmem:[#allocation17_spill] sm:$0xff] %v9375_v63 }
  0xbb   : > { %786 = vrot.lane.b32.xlu0 %v9175_v34, %s13820_s25 }
  0xbc   : > { %v9377_v0 = vpop.permute.xlu1 %732 }
  0xbd   : > { %14084 = vst [vmem:[#allocation18_spill] sm:$0xff] %v9377_v0  ;;  %v9383_v2 = vpop.permute.xlu0 %734 }
  0xbe   : > { %1116 = vrot.lane.b32.xlu1 %v9050_v12, %s13830_s23  ;;  %14085 = vst [vmem:[#allocation19_spill] sm:$0xff] %v9383_v2 }
  0xbf   : > { %1118 = vrot.lane.b32.xlu0 %v9055_v14, %s13830_s23 }
  0xc0   : > { %v9389_v3 = vpop.permute.xlu1 %776 }
  0xc1   : > { %14086 = vst [vmem:[#allocation20_spill] sm:$0xff] %v9389_v3  ;;  %v9395_v4 = vpop.permute.xlu0 %778 }
  0xc2   : > { %1160 = vrot.lane.b32.xlu1 %v9037_v6, %s13822_s18  ;;  %14088 = vst [vmem:[#allocation21_spill] sm:$0xff] %v9395_v4 }
  0xc3   : > { %1162 = vrot.lane.b32.xlu0 %v9034_v5, %s13822_s18 }
  0xc4   : > { %v9397_v5 = vpop.permute.xlu1 %780 }
  0xc5   : > { %14089 = vst [vmem:[#allocation22_spill] sm:$0xff] %v9397_v5  ;;  %v9403_v6 = vpop.permute.xlu0 %782 }
  0xc6   : > { %788 = vrot.lane.b32.xlu1 %v9190_v35, %s13820_s25  ;;  %14090 = vst [vmem:[#allocation23_spill] sm:$0xff] %v9403_v6 }
  0xc7   : > { %790 = vrot.lane.b32.xlu0 %v9193_v36, %s13820_s25 }
  0xc8   : > { %v9409_v7 = vpop.permute.xlu1 %824 }
  0xc9   : > { %14091 = vst [vmem:[#allocation24_spill] sm:$0xff] %v9409_v7 }
  0xca   : > { %832 = vrot.lane.b32.xlu1 %v9172_v33, %s13828_s9 }
  0xcb   : > { %834 = vrot.lane.b32.xlu0 %v9175_v34, %s13828_s9 }
  0xcc   : > { %v9424_v25 = vpop.permute.xlu1 %496 }
  0xcd   : > { %14093 = vst [vmem:[#allocation26_spill] sm:$0xff] %v9424_v25 }
  0xce   : > { %1164 = vrot.lane.b32.xlu1 %v9050_v12, %s13822_s18 }
  0xcf   : > { %1166 = vrot.lane.b32.xlu0 %v9055_v14, %s13822_s18  ;;  %v9415_v14 = vpop.permute.xlu0 %826 }
  0xd0   : > { %14092 = vst [vmem:[#allocation25_spill] sm:$0xff] %v9415_v14 }
  0xd2   : > { %504 = vrot.lane.b32.xlu1 %v9338_v54, %s13814_s19 }
  0xd3   : > { %506 = vrot.lane.b32.xlu0 %v9343_v56, %s13814_s19 }
  0xd6   : > { %836 = vrot.lane.b32.xlu1 %v9190_v35, %s13828_s9 }
  0xd7   : > { %838 = vrot.lane.b32.xlu0 %v9193_v36, %s13828_s9 }
  0xda   : > { %880 = vrot.lane.b32.xlu1 %v9172_v33, %s13826_s10 }
  0xdb   : > { %882 = vrot.lane.b32.xlu0 %v9175_v34, %s13826_s10 }
  0xde   : > { %508 = vrot.lane.b32.xlu1 %v9364_v60, %s13814_s19 }
  0xdf   : > { %510 = vrot.lane.b32.xlu0 %v9369_v62, %s13814_s19  ;;  %s14087_s19 = smov 80  }
  0xe2   : > { %552 = vrot.lane.b32.xlu1 %v9338_v54, %s13816_s20 }
  0xe3   : > { %554 = vrot.lane.b32.xlu0 %v9343_v56, %s13816_s20 }
  0xe6   : > { %884 = vrot.lane.b32.xlu1 %v9190_v35, %s13826_s10 }
  0xe7   : > { %886 = vrot.lane.b32.xlu0 %v9193_v36, %s13826_s10 }
  0xea   : > { %928 = vrot.lane.b32.xlu1 %v9172_v33, %s14087_s19 }
  0xeb   : > { %930 = vrot.lane.b32.xlu0 %v9175_v34, %s14087_s19 }
  0xee   : > { %558 = vrot.lane.b32.xlu1 %v9369_v62, %s13816_s20 }
  0xef   : > { %556 = vrot.lane.b32.xlu0 %v9364_v60, %s13816_s20  ;;  %s14094_s20 = smov 88  }
  0xf2   : > { %600 = vrot.lane.b32.xlu1 %v9338_v54, %s8893_s21 }
  0xf3   : > { %602 = vrot.lane.b32.xlu0 %v9343_v56, %s8893_s21 }
  0xf5   : > { %v7554_v8 = vpop.f32.mrb[0].mxu1 }
  0xf6   : > { %v1728_v9 = vpop.f32.mrb[1].mxu1  ;;  %932 = vrot.lane.b32.xlu1 %v9190_v35, %s14087_s19  ;;  %v1737_v15 = vadd.f32 %v7554_v8, %v9251_v37 }
  0xf7   : > { %934 = vrot.lane.b32.xlu0 %v9193_v36, %s14087_s19  ;;  %v7555_v11 = vpop.f32.mrb[2].mxu1  ;;  %v7534_v12 = vpop.f32.mrb[0].mxu0  ;;  %v1729_v19 = vadd.f32 %v1728_v9, %v9251_v37 }
  0xf8   : > { %v1740_v16 = vadd.f32 %v7555_v11, %v9251_v37  ;;  %v1731_v18 = vpop.f32.mrb[3].mxu1  ;;  %v9422_v21 = vadd.f32 %v7534_v12, %v9005_v1  ;;  %v1615_v24 = vpop.f32.mrb[1].mxu0 }
  0xf9   : > { %v1732_v20 = vadd.f32 %v1731_v18, %v9251_v37  ;;  %v1616_v27 = vadd.f32 %v9005_v1, %v1615_v24  ;;  %v7535_v30 = vpop.f32.mrb[2].mxu0  ;;  %v9439_v18 = vpop.permute.xlu0 %498 }
  0xfa   : > { %v1912_v26 = vpack.c.bf16 %v1740_v16, %v1737_v15  ;;  %976 = vrot.lane.b32.xlu1 %v9172_v33, %s14094_s20  ;;  %v9432_v8 = vadd.f32 %v7535_v30, %v9005_v1  ;;  %v1618_v9 = vpop.f32.mrb[3].mxu0  ;;  %14095 = vst [vmem:[#allocation27_spill] sm:$0xff] %v9439_v18 }
  0xfb   : > { %v1911_v31 = vpack.c.bf16 %v1732_v20, %v1729_v19  ;;  %978 = vrot.lane.b32.xlu0 %v9175_v34, %s14094_s20  ;;  %v1619_v11 = vadd.f32 %v9005_v1, %v1618_v9  ;;  %v9446_v9 = vpop.permute.xlu1 %828 }
  0xfc   : > { %14096 = vst [vmem:[#allocation28_spill] sm:$0xff] %v9446_v9 }
  0xfd   : > { %v7558_v12 = vpop.f32.mrb[4].mxu1  ;;  %8188 = vmatprep.subr.msk.bf16.mxu1 %vm13850_vm1, %v1911_v31  ;;  %v1944_v15 = vsel %vm13850_vm1, %v1911_v31, 0  ;;  %v1903_v20 = vpack.c.bf16 %v1619_v11, %v1616_v27 }
  0xfe   : > { %v1744_v19 = vpop.f32.mrb[5].mxu1  ;;  %7589 = vmatpush3.bf16.xpose.msra.mxu1 %v1944_v15  ;;  %606 = vrot.lane.b32.xlu1 %v9369_v62, %s8893_s21  ;;  %v1753_v31 = vadd.f32 %v7558_v12, %v9251_v37 }
  0xff   : > { %604 = vrot.lane.b32.xlu0 %v9364_v60, %s8893_s21  ;;  %v7559_v24 = vpop.f32.mrb[6].mxu1  ;;  %8189 = vmatprep.subr.msk.bf16.mxu1 %vm13850_vm1, %v1912_v26  ;;  %v7538_v30 = vpop.f32.mrb[4].mxu0  ;;  %v1745_v15 = vadd.f32 %v1744_v19, %v9251_v37 }
 0x100   : > { %v1756_v16 = vadd.f32 %v7559_v24, %v9251_v37  ;;  %v1747_v5 = vpop.f32.mrb[7].mxu1  ;;  %7604 = vmatprep.mubr.msk.bf16.mxu1 %vm13850_vm1, %v1903_v20  ;;  %v9454_v11 = vadd.f32 %v7538_v30, %v9005_v1  ;;  %v1631_v6 = vpop.f32.mrb[5].mxu0 }
 0x101   : > { %v1748_v27 = vadd.f32 %v1747_v5, %v9251_v37  ;;  %v9461_v12 = vadd.f32 %v9005_v1, %v1631_v6  ;;  %v7539_v24 = vpop.f32.mrb[6].mxu0  ;;  %v9476_v7 = vpop.permute.xlu1 %872 }
 0x102   : > { %v9456_v14 = vpack.c.bf16 %v1756_v16, %v1753_v31  ;;  %648 = vrot.lane.b32.xlu1 %v9338_v54, %s13818_s22  ;;  %v9466_v19 = vadd.f32 %v7539_v24, %v9005_v1  ;;  %v1634_v5 = vpop.f32.mrb[7].mxu0  ;;  %v9471_v16 = vpop.permute.xlu0 %830  ;;  %v1947_v31 = vsel %vm13850_vm1, %v1912_v26, 0  ;;  %14098 = vst [vmem:[#allocation30_spill] sm:$0xff] %v9476_v7 }
 0x103   : > { %v1913_v9 = vpack.c.bf16 %v1748_v27, %v1745_v15  ;;  %650 = vrot.lane.b32.xlu0 %v9343_v56, %s13818_s22  ;;  %v9469_v20 = vadd.f32 %v9005_v1, %v1634_v5  ;;  %14097 = vst [vmem:[#allocation29_spill] sm:$0xff] %v9471_v16 }
 0x105   : > { %v7562_v30 = vpop.f32.mrb[8].mxu1 }
 0x106   : > { %v1760_v15 = vpop.f32.mrb[9].mxu1  ;;  %7591 = vmatpush3.bf16.xpose.msra.mxu1 %v1947_v31  ;;  %980 = vrot.lane.b32.xlu1 %v9190_v35, %s14094_s20  ;;  %v1769_v5 = vadd.f32 %v7562_v30, %v9251_v37  ;;  %v9497_v30 = vpop.permute.xlu0 %874 }
 0x107   : > { %982 = vrot.lane.b32.xlu0 %v9193_v36, %s14094_s20  ;;  %v7563_v24 = vpop.f32.mrb[10].mxu1  ;;  %8190 = vmatprep.subr.msk.bf16.mxu1 %vm13850_vm1, %v1913_v9  ;;  %v7542_v26 = vpop.f32.mrb[8].mxu0  ;;  %v1761_v31 = vadd.f32 %v1760_v15, %v9251_v37  ;;  %14099 = vst [vmem:[#allocation31_spill] sm:$0xff] %v9497_v30 }
 0x108   : > { %v1772_v6 = vadd.f32 %v7563_v24, %v9251_v37  ;;  %v1763_v16 = vpop.f32.mrb[11].mxu1  ;;  %v9490_v0 = vadd.f32 %v7542_v26, %v9005_v1  ;;  %v1647_v27 = vpop.f32.mrb[9].mxu0 }
 0x109   : > { %v1764_v7 = vadd.f32 %v1763_v16, %v9251_v37  ;;  %v9495_v25 = vadd.f32 %v9005_v1, %v1647_v27  ;;  %v7543_v4 = vpop.f32.mrb[10].mxu0  ;;  %v9504_v26 = vpop.permute.xlu1 %500  ;;  %v1950_v27 = vsel %vm13850_vm1, %v1913_v9, 0 }
 0x10a   : > { %v1916_v2 = vpack.c.bf16 %v1772_v6, %v1769_v5  ;;  %1024 = vrot.lane.b32.xlu1 %v9172_v33, %s8902_s15  ;;  %v9502_v16 = vadd.f32 %v7543_v4, %v9005_v1  ;;  %v1650_v15 = vpop.f32.mrb[11].mxu0  ;;  %14100 = vst [vmem:[#allocation32_spill] sm:$0xff] %v9504_v26 }
 0x10b   : > { %v1915_v24 = vpack.c.bf16 %v1764_v7, %v1761_v31  ;;  %1026 = vrot.lane.b32.xlu0 %v9175_v34, %s8902_s15  ;;  %v9507_v6 = vadd.f32 %v9005_v1, %v1650_v15 }
 0x10d   : > { %v7566_v5 = vpop.f32.mrb[12].mxu1  ;;  %v9529_v18 = vpop.permute.xlu1 %544 }
 0x10e   : > { %v1776_v30 = vpop.f32.mrb[13].mxu1  ;;  %7593 = vmatpush3.bf16.xpose.msra.mxu1 %v1950_v27  ;;  %652 = vrot.lane.b32.xlu1 %v9364_v60, %s13818_s22  ;;  %v1785_v9 = vadd.f32 %v7566_v5, %v9251_v37  ;;  %v9522_v27 = vpop.permute.xlu0 %502 }
 0x10f   : > { %654 = vrot.lane.b32.xlu0 %v9369_v62, %s13818_s22  ;;  %v7567_v7 = vpop.f32.mrb[14].mxu1  ;;  %8191 = vmatprep.subr.msk.bf16.mxu1 %vm13850_vm1, %v9456_v14  ;;  %v7546_v31 = vpop.f32.mrb[12].mxu0  ;;  %14101 = vst [vmem:[#allocation33_spill] sm:$0xff] %v9522_v27  ;;  %v1777_v26 = vadd.f32 %v1776_v30, %v9251_v37  ;;  %s14102_s22 = smov 40  }
 0x110   : > { %v1788_v15 = vadd.f32 %v7567_v7, %v9251_v37  ;;  %v1779_v3 = vpop.f32.mrb[15].mxu1  ;;  %v9527_v4 = vadd.f32 %v7546_v31, %v9005_v1  ;;  %v1663_v59 = vpop.f32.mrb[13].mxu0  ;;  %v1953_v31 = vsel %vm13850_vm1, %v9456_v14, 0 }
 0x111   : > { %v1780_v58 = vadd.f32 %v1779_v3, %v9251_v37  ;;  %v9534_v5 = vadd.f32 %v9005_v1, %v1663_v59  ;;  %v7547_v7 = vpop.f32.mrb[14].mxu0 }
 0x112   : > { %v1918_v63 = vpack.c.bf16 %v1788_v15, %v1785_v9  ;;  %696 = vrot.lane.b32.xlu1 %v9338_v54, %s14102_s22  ;;  %v9539_v37 = vadd.f32 %v7547_v7, %v9005_v1  ;;  %v1666_v3 = vpop.f32.mrb[15].mxu0  ;;  %v9552_v59 = vpop.permute.xlu0 %546 }
 0x113   : > { %v1917_v61 = vpack.c.bf16 %v1780_v58, %v1777_v26  ;;  %698 = vrot.lane.b32.xlu0 %v9343_v56, %s14102_s22  ;;  %v9542_v30 = vadd.f32 %v9005_v1, %v1666_v3  ;;  %v9557_v1 = vpop.permute.xlu1 %876  ;;  %v1956_v26 = vsel %vm13850_vm1, %v1915_v24, 0  ;;  %v1959_v3 = vsel %vm13850_vm1, %v1916_v2, 0 }
 0x114   : > { %14103 = vst [vmem:[#allocation34_spill] sm:$0xff] %v9557_v1  ;;  %v14204_v1 = vmov 0 }
 0x116   : > { %7595 = vmatpush3.bf16.xpose.msra.mxu1 %v1953_v31  ;;  %1028 = vrot.lane.b32.xlu1 %v9190_v35, %s8902_s15  ;;  %v9563_v14 = vpop.permute.xlu0 %878 }
 0x117   : > { %1030 = vrot.lane.b32.xlu0 %v9193_v36, %s8902_s15  ;;  %8192 = vmatprep.subr.msk.bf16.mxu1 %vm13850_vm1, %v1915_v24  ;;  %14104 = vst [vmem:[#allocation35_spill] sm:$0xff] %v9563_v14  ;;  %v9566_v15 = vpop.permute.xlu1 %920 }
 0x118   : > { %14105 = vst [vmem:[#allocation36_spill] sm:$0xff] %v9566_v15  ;;  %v14223_v15 = vmov 0 }
 0x11a   : > { %1072 = vrot.lane.b32.xlu1 %v9172_v33, %s8903_s16  ;;  %v9575_v7 = vpop.permute.xlu0 %922 }
 0x11b   : > { %1074 = vrot.lane.b32.xlu0 %v9175_v34, %s8903_s16  ;;  %14106 = vst [vmem:[#allocation37_spill] sm:$0xff] %v9575_v7  ;;  %v9579_v24 = vpop.permute.xlu1 %550 }
 0x11c   : > { %14107 = vst [vmem:[#allocation38_spill] sm:$0xff] %v9579_v24 }
 0x11e   : > { %7597 = vmatpush3.bf16.xpose.msra.mxu1 %v1956_v26  ;;  %700 = vrot.lane.b32.xlu1 %v9364_v60, %s14102_s22  ;;  %v9587_v31 = vpop.permute.xlu0 %548 }
 0x11f   : > { %702 = vrot.lane.b32.xlu0 %v9369_v62, %s14102_s22  ;;  %8193 = vmatprep.subr.msk.bf16.mxu1 %vm13850_vm1, %v1916_v2  ;;  %14108 = vst [vmem:[#allocation39_spill] sm:$0xff] %v9587_v31  ;;  %v9589_v26 = vpop.permute.xlu1 %592  ;;  %v1962_v2 = vsel %vm13850_vm1, %v1917_v61, 0 }
 0x122   : > { %744 = vrot.lane.b32.xlu1 %v9338_v54, %s13832_s24 }
 0x123   : > { %746 = vrot.lane.b32.xlu0 %v9343_v56, %s13832_s24  ;;  %v9603_v9 = vpop.permute.xlu1 %924 }
 0x124   : > { %14109 = vst [vmem:[#allocation40_spill] sm:$0xff] %v9603_v9 }
 0x126   : > { %7599 = vmatpush3.bf16.xpose.msra.mxu1 %v1959_v3  ;;  %1076 = vrot.lane.b32.xlu1 %v9190_v35, %s8903_s16  ;;  %v9598_v3 = vpop.permute.xlu0 %594 }
 0x127   : > { %1078 = vrot.lane.b32.xlu0 %v9193_v36, %s8903_s16  ;;  %8194 = vmatprep.subr.msk.bf16.mxu1 %vm13850_vm1, %v1917_v61  ;;  %v9612_v58 = vpop.permute.xlu1 %968 }
 0x128   : > { %14111 = vst [vmem:[#allocation42_spill] sm:$0xff] %v9612_v58 }
 0x12a   : > { %1120 = vrot.lane.b32.xlu1 %v9172_v33, %s13830_s23  ;;  %v9609_v61 = vpop.permute.xlu0 %926 }
 0x12b   : > { %1122 = vrot.lane.b32.xlu0 %v9175_v34, %s13830_s23  ;;  %14110 = vst [vmem:[#allocation41_spill] sm:$0xff] %v9609_v61  ;;  %v9624_v61 = vpop.permute.xlu1 %598 }
 0x12c   : > { %14113 = vst [vmem:[#allocation44_spill] sm:$0xff] %v9624_v61 }
 0x12e   : > { %7601 = vmatpush3.bf16.xpose.msra.mxu1 %v1962_v2  ;;  %748 = vrot.lane.b32.xlu1 %v9364_v60, %s13832_s24  ;;  %v1965_v2 = vsel %vm13850_vm1, %v1918_v63, 0  ;;  %v9620_v9 = vpop.permute.xlu0 %970 }
 0x12f   : > { %792 = vrot.lane.b32.xlu0 %v9338_v54, %s13820_s25  ;;  %8195 = vmatprep.subr.msk.bf16.mxu1 %vm13850_vm1, %v1918_v63  ;;  %14112 = vst [vmem:[#allocation43_spill] sm:$0xff] %v9620_v9  ;;  %v14114_v63 = vpack.c.bf16 %v9432_v8, %v9422_v21  ;;  %v9640_v61 = vpop.permute.xlu1 %640  ;;  %v14118_v21 = vpack.c.bf16 %v9466_v19, %v9454_v11  ;;  %v9670_v11 = vld [vmem:[%s9025_s14 + $0x68] sm:$0xff] }
 0x130   : > { %14117 = vst [vmem:[#allocation46_spill] sm:$0xff] %v9640_v61  ;;  %v14119_v8 = vpack.c.bf16 %v9507_v6, %v9495_v25  ;;  %v14123_v25 = vpack.c.bf16 %v9502_v16, %v9490_v0  ;;  %v14125_v6 = vpack.c.bf16 %v9542_v30, %v9534_v5  ;;  %v14128_v5 = vpack.c.bf16 %v9539_v37, %v9527_v4  ;;  %v9710_v30 = vld [vmem:[%s9025_s14 + $0x78] sm:$0xff] }
 0x132   : > { %750 = vrot.lane.b32.xlu1 %v9369_v62, %s13832_s24 }
 0x133   : > { %1124 = vrot.lane.b32.xlu0 %v9190_v35, %s13830_s23 }
 0x136   : > { %7603 = vmatpush3.bf16.xpose.msra.mxu1 %v1965_v2  ;;  %794 = vrot.lane.b32.xlu1 %v9343_v56, %s13820_s25  ;;  %v9638_v2 = vpop.permute.xlu0 %596 }
 0x137   : > { %1168 = vrot.lane.b32.xlu0 %v9172_v33, %s13822_s18  ;;  %v14115_v33 = vpack.c.bf16 %v9469_v20, %v9461_v12  ;;  %14116 = vst [vmem:[#allocation45_spill] sm:$0xff] %v9638_v2 }
 0x13a   : > { %1126 = vrot.lane.b32.xlu1 %v9193_v36, %s13830_s23  ;;  %v9659_v12 = vpop.permute.xlu0 %642  ;;  %s10261_s23 = scalar_lea.vmem %s13805_s5, %s9019_s30  ;;  %s14295_s30 = smov 32  }
 0x13b   : > { %796 = vrot.lane.b32.xlu0 %v9364_v60, %s13820_s25 }
 0x13d   : > { %7605 = vmatmul.mubr.msk.bf16.vlgmr.msra.gmra.mrb[16].mxu1 %vm13850_vm1, %v14114_v63 }
 0x13e   : > { %1170 = vrot.lane.b32.xlu1 %v9175_v34, %s13822_s18  ;;  %7608 = vmatprep.mubr.msk.bf16.mxu1 %vm13850_vm1, %v14115_v33  ;;  %v9647_v34 = vld [vmem:[%s9025_s14 + $0x60] sm:$0xff]  ;;  %v9672_v19 = vpop.permute.xlu0 %974 }
 0x13f   : > { %840 = vrot.lane.b32.xlu0 %v9338_v54, %s13828_s9  ;;  %14122 = vst [vmem:[#allocation48_spill] sm:$0xff] %v9672_v19 }
 0x142   : > { %798 = vrot.lane.b32.xlu1 %v9369_v62, %s13820_s25  ;;  %s14120_s25 = smov 8   ;;  %v9693_v0 = vpop.permute.xlu0 %1018 }
 0x143   : > { %1172 = vrot.lane.b32.xlu0 %v9190_v35, %s13822_s18  ;;  %v9663_v35 = vpop.permute.xlu1 %972  ;;  %14126 = vst [vmem:[#allocation50_spill] sm:$0xff] %v9693_v0 }
 0x144   : > { %14121 = vst [vmem:[#allocation47_spill] sm:$0xff] %v9663_v35 }
 0x145   : > { %7609 = vmatmul.mubr.msk.bf16.gmra.mrb[20].mxu1 %vm13850_vm1, %v14118_v21 }
 0x146   : > { %842 = vrot.lane.b32.xlu1 %v9343_v56, %s13828_s9  ;;  %7612 = vmatprep.mubr.msk.bf16.mxu1 %vm13850_vm1, %v14119_v8  ;;  %v9712_v63 = vpop.permute.xlu0 %646 }
 0x147   : > { %512 = vrot.lane.b32.xlu0 %v9647_v34, %s14120_s25  ;;  %v9678_v20 = vpop.permute.xlu1 %1016  ;;  %14130 = vst [vmem:[#allocation52_spill] sm:$0xff] %v9712_v63 }
 0x148   : > { %14124 = vst [vmem:[#allocation49_spill] sm:$0xff] %v9678_v20 }
 0x14a   : > { %1174 = vrot.lane.b32.xlu1 %v9193_v36, %s13822_s18  ;;  %v9689_v36 = vld [vmem:[%s9025_s14 + $0x70] sm:$0xff]  ;;  %s14129_s18 = smov 16   ;;  %v9722_v4 = vpop.permute.xlu0 %690 }
 0x14b   : > { %844 = vrot.lane.b32.xlu0 %v9364_v60, %s13828_s9  ;;  %v9697_v16 = vpop.permute.xlu1 %644  ;;  %14132 = vst [vmem:[#allocation54_spill] sm:$0xff] %v9722_v4 }
 0x14c   : > { %14127 = vst [vmem:[#allocation51_spill] sm:$0xff] %v9697_v16 }
 0x14d   : > { %7613 = vmatmul.mubr.msk.bf16.gmra.mrb[24].mxu1 %vm13850_vm1, %v14123_v25 }
 0x14e   : > { %7616 = vmatprep.mubr.msk.bf16.mxu1 %vm13850_vm1, %v14125_v6  ;;  %514 = vrot.lane.b32.xlu1 %v9670_v11, %s14120_s25  ;;  %v9734_v8 = vpop.permute.xlu0 %1022 }
 0x14f   : > { %888 = vrot.lane.b32.xlu0 %v9338_v54, %s13826_s10  ;;  %v9714_v33 = vpop.permute.xlu1 %688  ;;  %14135 = vst [vmem:[#allocation57_spill] sm:$0xff] %v9734_v8 }
 0x150   : > { %14131 = vst [vmem:[#allocation53_spill] sm:$0xff] %v9714_v33 }
 0x152   : > { %846 = vrot.lane.b32.xlu1 %v9369_v62, %s13828_s9  ;;  %v9738_v25 = vpop.permute.xlu0 %1066  ;;  %s14299_s9 = smov 120  }
 0x153   : > { %516 = vrot.lane.b32.xlu0 %v9689_v36, %s14120_s25  ;;  %v9726_v37 = vpop.permute.xlu1 %1020  ;;  %14137 = vst [vmem:[#allocation59_spill] sm:$0xff] %v9738_v25 }
 0x154   : > { %14133 = vst [vmem:[#allocation55_spill] sm:$0xff] %v9726_v37 }
 0x155   : > { %7617 = vmatmul.mubr.msk.bf16.gmra.mrb[28].mxu1 %vm13850_vm1, %v14128_v5 }
 0x156   : > { %890 = vrot.lane.b32.xlu1 %v9343_v56, %s13826_s10  ;;  %7676 = vmatprep.mubr.msk.bf16.mxu1 %vm13855_vm0, %v9046_v10  ;;  %v9742_v5 = vpop.permute.xlu0 %694  ;;  %v8905_v10 = vmov 0  }
 0x157   : > { %560 = vrot.lane.b32.xlu0 %v9647_v34, %s14129_s18  ;;  %v9730_v21 = vpop.permute.xlu1 %1064  ;;  %14139 = vst [vmem:[#allocation61_spill] sm:$0xff] %v9742_v5  ;;  %8281 = vset.pattern.permute.xlu1 %v8905_v10 }
 0x158   : > { %14134 = vst [vmem:[#allocation56_spill] sm:$0xff] %v9730_v21  ;;  %8280 = vset.pattern.permute.xlu0 %v8905_v10 }
 0x15a   : > { %518 = vrot.lane.b32.xlu1 %v9710_v30, %s14120_s25 }
 0x15b   : > { %892 = vrot.lane.b32.xlu0 %v9364_v60, %s13826_s10  ;;  %v9736_v60 = vpop.permute.xlu1 %692 }
 0x15c   : > { %14136 = vst [vmem:[#allocation58_spill] sm:$0xff] %v9736_v60 }
 0x15e   : > { %562 = vrot.lane.b32.xlu1 %v9670_v11, %s14129_s18 }
 0x15f   : > { %936 = vrot.lane.b32.xlu0 %v9338_v54, %s14087_s19  ;;  %v9740_v6 = vpop.permute.xlu1 %736 }
 0x160   : > { %14138 = vst [vmem:[#allocation60_spill] sm:$0xff] %v9740_v6 }
 0x162   : > { %894 = vrot.lane.b32.xlu1 %v9369_v62, %s13826_s10  ;;  %v9746_v62 = vpop.permute.xlu0 %738  ;;  %s336_s10 = scalar_select %p335_p11, %s8972_s0, 1 }
 0x163   : > { %v9744_v54 = vpop.permute.xlu1 %1068  ;;  %14141 = vst [vmem:[#allocation63_spill] sm:$0xff] %v9746_v62 }
 0x164   : > { %14140 = vst [vmem:[#allocation62_spill] sm:$0xff] %v9744_v54  ;;  %s337_s24 = scalar_lea.vmem %s13806_s6, %s336_s10  ;;  %s14301_s10 = smov 64  }
 0x166   : > { %938 = vrot.lane.b32.xlu1 %v9343_v56, %s14087_s19  ;;  %v9750_v56 = vpop.permute.xlu0 %1070 }
 0x167   : > { %v9748_v37 = vpop.permute.xlu1 %1112  ;;  %14143 = vst [vmem:[#allocation65_spill] sm:$0xff] %v9750_v56 }
 0x168   : > { %14142 = vst [vmem:[#allocation64_spill] sm:$0xff] %v9748_v37 }
 0x16a   : > { %v9754_v60 = vpop.permute.xlu0 %1114 }
 0x16b   : > { %v9752_v8 = vpop.permute.xlu1 %740  ;;  %14145 = vst [vmem:[#allocation67_spill] sm:$0xff] %v9754_v60 }
 0x16c   : > { %14144 = vst [vmem:[#allocation66_spill] sm:$0xff] %v9752_v8 }
 0x16e   : > { %v9758_v21 = vpop.permute.xlu0 %742 }
 0x16f   : > { %v9756_v25 = vpop.permute.xlu1 %784  ;;  %14147 = vst [vmem:[#allocation69_spill] sm:$0xff] %v9758_v21 }
 0x170   : > { %14146 = vst [vmem:[#allocation68_spill] sm:$0xff] %v9756_v25 }
 0x172   : > { %v9762_v54 = vpop.permute.xlu0 %786 }
 0x173   : > { %v9760_v5 = vpop.permute.xlu1 %1116  ;;  %14149 = vst [vmem:[#allocation71_spill] sm:$0xff] %v9762_v54 }
 0x174   : > { %14148 = vst [vmem:[#allocation70_spill] sm:$0xff] %v9760_v5 }
 0x176   : > { %v9766_v63 = vpop.permute.xlu0 %1118 }
 0x177   : > { %v9764_v35 = vpop.permute.xlu1 %1160  ;;  %14151 = vst [vmem:[#allocation73_spill] sm:$0xff] %v9766_v63 }
 0x178   : > { %14150 = vst [vmem:[#allocation72_spill] sm:$0xff] %v9764_v35 }
 0x17a   : > { %v9770_v37 = vpop.permute.xlu0 %1162 }
 0x17b   : > { %v9768_v19 = vpop.permute.xlu1 %788  ;;  %14153 = vst [vmem:[#allocation75_spill] sm:$0xff] %v9770_v37 }
 0x17c   : > { %14152 = vst [vmem:[#allocation74_spill] sm:$0xff] %v9768_v19 }
 0x17e   : > { %v9774_v8 = vpop.permute.xlu0 %790 }
 0x17f   : > { %v9772_v56 = vpop.permute.xlu1 %832  ;;  %14155 = vst [vmem:[#allocation77_spill] sm:$0xff] %v9774_v8 }
 0x180   : > { %14154 = vst [vmem:[#allocation76_spill] sm:$0xff] %v9772_v56 }
 0x182   : > { %v9778_v25 = vpop.permute.xlu0 %834 }
 0x183   : > { %v9776_v60 = vpop.permute.xlu1 %1164  ;;  %14157 = vst [vmem:[#allocation79_spill] sm:$0xff] %v9778_v25 }
 0x184   : > { %14156 = vst [vmem:[#allocation78_spill] sm:$0xff] %v9776_v60 }
 0x186   : > { %v9782_v5 = vpop.permute.xlu0 %1166 }
 0x187   : > { %v9780_v21 = vpop.permute.xlu1 %504  ;;  %14159 = vst [vmem:[#allocation81_spill] sm:$0xff] %v9782_v5 }
 0x188   : > { %14158 = vst [vmem:[#allocation80_spill] sm:$0xff] %v9780_v21 }
 0x18a   : > { %v9786_v63 = vpop.permute.xlu0 %506 }
 0x18b   : > { %v9784_v35 = vpop.permute.xlu1 %836  ;;  %14161 = vst [vmem:[#allocation83_spill] sm:$0xff] %v9786_v63 }
 0x18c   : > { %14160 = vst [vmem:[#allocation82_spill] sm:$0xff] %v9784_v35 }
 0x18e   : > { %v9790_v37 = vpop.permute.xlu0 %838 }
 0x18f   : > { %v9788_v19 = vpop.permute.xlu1 %880  ;;  %14163 = vst [vmem:[#allocation85_spill] sm:$0xff] %v9790_v37 }
 0x190   : > { %14162 = vst [vmem:[#allocation84_spill] sm:$0xff] %v9788_v19 }
 0x192   : > { %v9794_v8 = vpop.permute.xlu0 %882 }
 0x193   : > { %v9792_v56 = vpop.permute.xlu1 %508  ;;  %14165 = vst [vmem:[#allocation87_spill] sm:$0xff] %v9794_v8 }
 0x194   : > { %14164 = vst [vmem:[#allocation86_spill] sm:$0xff] %v9792_v56 }
 0x196   : > { %v9798_v25 = vpop.permute.xlu0 %510 }
 0x197   : > { %v9796_v60 = vpop.permute.xlu1 %552  ;;  %14167 = vst [vmem:[#allocation89_spill] sm:$0xff] %v9798_v25  ;;  %v382_v25 = vlaneseq }
 0x198   : > { %14166 = vst [vmem:[#allocation88_spill] sm:$0xff] %v9796_v60 }
 0x19a   : > { %v9802_v5 = vpop.permute.xlu0 %554 }
 0x19b   : > { %v9800_v21 = vpop.permute.xlu1 %884  ;;  %14169 = vst [vmem:[#allocation91_spill] sm:$0xff] %v9802_v5 }
 0x19c   : > { %14168 = vst [vmem:[#allocation90_spill] sm:$0xff] %v9800_v21  ;;  %v9827_v21 = vshrl.u32 %v382_v25, 7 }
 0x19e   : > { %v9806_v63 = vpop.permute.xlu0 %886  ;;  %v391_v24 = vadd.s32 64, %v9827_v21 }
 0x19f   : > { %v9804_v35 = vpop.permute.xlu1 %928  ;;  %14171 = vst [vmem:[#allocation93_spill] sm:$0xff] %v9806_v63 }
 0x1a0   : > { %14170 = vst [vmem:[#allocation92_spill] sm:$0xff] %v9804_v35 }
 0x1a2   : > { %v9810_v54 = vpop.permute.xlu0 %930 }
 0x1a3   : > { %v9808_v19 = vpop.permute.xlu1 %558  ;;  %14173 = vst [vmem:[#allocation95_spill] sm:$0xff] %v9810_v54  ;;  %v437_v54 = vsub.s32 0, %v9827_v21 }
 0x1a4   : > { %14172 = vst [vmem:[#allocation94_spill] sm:$0xff] %v9808_v19  ;;  %v381_v19 = vld [vmem:[%s337_s24] sm:$0x1]  ;;  %s14297_s24 = smov 112  }
 0x1a5   : > { %vm433_vm2 = vcmp.gt.f32.partialorder %v381_v19, 0.5 }
 0x1a6   : > { %v9815_v56 = vpop.permute.xlu0 %556  ;;  %v434_v8 = vsel %vm433_vm2, 1, %v8905_v10  ;;  %v384_v10 = vadd.s32 8, %v9827_v21 }
 0x1a7   : > { %v9812_v37 = vpop.permute.xlu1 %600  ;;  %14175 = vst [vmem:[#allocation97_spill] sm:$0xff] %v9815_v56  ;;  %v385_v56 = vadd.s32 16, %v9827_v21 }
 0x1a8   : > { %14174 = vst [vmem:[#allocation96_spill] sm:$0xff] %v9812_v37 }
 0x1aa   : > { %v9823_v5 = vpop.permute.xlu0 %602 }
 0x1ab   : > { %v9817_v60 = vpop.permute.xlu1 %932  ;;  %14177 = vst [vmem:[#allocation99_spill] sm:$0xff] %v9823_v5  ;;  %v9838_v5 = vrot.slane %v434_v8, %v437_v54  ;;  %v14184_v54 = vmov 0 }
 0x1ac   : > { %14176 = vst [vmem:[#allocation98_spill] sm:$0xff] %v9817_v60  ;;  %v9834_v60 = vand.u32 127, %v382_v25 }
 0x1ad   : > { %vm439_vm4 = vcmp.eq.s32.totalorder %v9838_v5, 1 }
 0x1ae   : > { %v9829_v37 = vpop.permute.xlu0 %934  ;;  %v403_v6 = vxor.u32 %v9834_v60, %v385_v56  ;;  %v401_v19 = vxor.u32 %v9834_v60, %v9827_v21 }
 0x1af   : > { %v9825_v63 = vpop.permute.xlu1 %976  ;;  %14179 = vst [vmem:[#allocation101_spill] sm:$0xff] %v9829_v37 }
 0x1b0   : > { %14178 = vst [vmem:[#allocation100_spill] sm:$0xff] %v9825_v63  ;;  %v386_v63 = vadd.s32 24, %v9827_v21  ;;  %vm419_vm3 = vcmp.lt.s32.totalorder %v403_v6, 8  ;;  %vm417_vm5 = vcmp.lt.s32.totalorder %v401_v19, 8  ;;  %v402_v19 = vxor.u32 %v9834_v60, %v384_v10 }
 0x1b1   : > { %vm9854_vm6 = vmand %vm419_vm3, %vm439_vm4  ;;  %v387_v10 = vadd.s32 32, %v9827_v21 }
 0x1b2   : > { %v9841_v16 = vpop.permute.xlu0 %978  ;;  %v404_v25 = vxor.u32 %v9834_v60, %v386_v63  ;;  %v14185_v54 = vsel %vm9854_vm6, 4294967295, %v14184_v54  ;;  %vm9862_vm7 = vmand %vm417_vm5, %vm439_vm4  ;;  %v14188_v63 = vmov 0  ;;  %vm418_vm10 = vcmp.lt.s32.totalorder %v402_v19, 8 }
 0x1b3   : > { %v9831_v35 = vpop.permute.xlu1 %606  ;;  %14181 = vst [vmem:[#allocation103_spill] sm:$0xff] %v9841_v16  ;;  %14186 = vst [vmem:[#allocation106_spill] sm:$0xff] %v14185_v54  ;;  %v14189_v63 = vsel %vm9862_vm7, 4294967295, %v14188_v63  ;;  %v14196_v19 = vmov 0 }
 0x1b4   : > { %14180 = vst [vmem:[#allocation102_spill] sm:$0xff] %v9831_v35  ;;  %14190 = vst [vmem:[#allocation108_spill] sm:$0xff] %v14189_v63  ;;  %vm420_vm8 = vcmp.lt.s32.totalorder %v404_v25, 8  ;;  %v14191_v25 = vmov 0 }
 0x1b5   : > { %vm9879_vm9 = vmand %vm420_vm8, %vm439_vm4 }
 0x1b6   : > { %v9850_v56 = vpop.permute.xlu0 %604  ;;  %v14192_v25 = vsel %vm9879_vm9, 4294967295, %v14191_v25  ;;  %vm9898_vm11 = vmand %vm418_vm10, %vm439_vm4 }
 0x1b7   : > { %v9845_v37 = vpop.permute.xlu1 %648  ;;  %14183 = vst [vmem:[#allocation105_spill] sm:$0xff] %v9850_v56  ;;  %v389_v56 = vadd.s32 48, %v9827_v21  ;;  %14193 = vst [vmem:[#allocation109_spill] sm:$0xff] %v14192_v25  ;;  %v14197_v19 = vsel %vm9898_vm11, 4294967295, %v14196_v19 }
 0x1b8   : > { %14182 = vst [vmem:[#allocation104_spill] sm:$0xff] %v9845_v37  ;;  %14198 = vst [vmem:[#allocation112_spill] sm:$0xff] %v14197_v19 }
 0x1bb   : > { %v9858_v35 = vpop.permute.xlu1 %980 }
 0x1bc   : > { %14187 = vst [vmem:[#allocation107_spill] sm:$0xff] %v9858_v35 }
 0x1bf   : > { %v9889_v63 = vpop.permute.xlu1 %1024 }
 0x1c0   : > { %14195 = vst [vmem:[#allocation111_spill] sm:$0xff] %v9889_v63 }
 0x210   : > { %v7606_v8 = vpop.f32.mrb[16].mxu1 }
 0x211   : > { %v2066_v37 = vmul.f32 0.35355338, %v7606_v8  ;;  %v2001_v6 = vpop.f32.mrb[17].mxu1 }
 0x212   : > { %v2064_v16 = vmul.f32 0.35355338, %v2001_v6  ;;  %v7607_v0 = vpop.f32.mrb[18].mxu1  ;;  %v9887_v6 = vpop.permute.xlu0 %650 }
 0x213   : > { %v2067_v20 = vmul.f32 0.35355338, %v7607_v0  ;;  %v2004_v62 = vpop.f32.mrb[19].mxu1  ;;  %v9870_v35 = vsel %vm9854_vm6, %v2066_v37, -1e+30  ;;  %v407_v0 = vxor.u32 %v9834_v60, %v389_v56  ;;  %v393_v37 = vadd.s32 80, %v9827_v21 }
 0x214   : > { %2100 = vmax.xlane.f32.xlu1 %v9870_v35  ;;  %v9875_v8 = vsel %vm9862_vm7, %v2064_v16, -1e+30  ;;  %14194 = vst [vmem:[#allocation110_spill] sm:$0xff] %v9887_v6  ;;  %v2065_v16 = vmul.f32 0.35355338, %v2004_v62  ;;  %v405_v56 = vxor.u32 %v9834_v60, %v387_v10  ;;  %v390_v62 = vadd.s32 56, %v9827_v21 }
 0x215   : > { %2096 = vmax.xlane.f32.xlu0 %v9875_v8  ;;  %v9893_v54 = vsel %vm9879_vm9, %v2067_v20, -1e+30  ;;  %vm423_vm12 = vcmp.lt.s32.totalorder %v407_v0, 8  ;;  %v411_v6 = vxor.u32 %v9834_v60, %v393_v37  ;;  %v14200_v10 = vmov 0  ;;  %v9919_v37 = vpop.permute.xlu1 %652 }
 0x216   : > { %v9907_v9 = vsel %vm9898_vm11, %v2065_v16, -1e+30  ;;  %v9909_v58 = vpop.permute.xlu0 %982  ;;  %vm9914_vm13 = vmand %vm423_vm12, %vm439_vm4  ;;  %vm421_vm14 = vcmp.lt.s32.totalorder %v405_v56, 8  ;;  %v388_v0 = vadd.s32 40, %v9827_v21  ;;  %14203 = vst [vmem:[#allocation115_spill] sm:$0xff] %v9919_v37  ;;  %v397_v16 = vadd.s32 112, %v9827_v21 }
 0x217   : > { %14199 = vst [vmem:[#allocation113_spill] sm:$0xff] %v9909_v58  ;;  %v14201_v10 = vsel %vm9914_vm13, 4294967295, %v14200_v10  ;;  %vm427_vm15 = vcmp.lt.s32.totalorder %v411_v6, 8  ;;  %vm9929_vm2 = vmand %vm421_vm14, %vm439_vm4  ;;  %v395_v56 = vadd.s32 96, %v9827_v21 }
 0x218   : > { %2102 = vmax.xlane.f32.xlu1 %v9893_v54  ;;  %v7610_v33 = vpop.f32.mrb[20].mxu1  ;;  %14202 = vst [vmem:[#allocation114_spill] sm:$0xff] %v14201_v10  ;;  %v14205_v1 = vsel %vm9929_vm2, 4294967295, %v14204_v1  ;;  %vm9937_vm3 = vmand %vm427_vm15, %vm439_vm4  ;;  %v415_v37 = vxor.u32 %v9834_v60, %v397_v16  ;;  %v394_v16 = vadd.s32 88, %v9827_v21 }
 0x219   : > { %v2017_v2 = vpop.f32.mrb[21].mxu1  ;;  %v2070_v20 = vmul.f32 0.35355338, %v7610_v33  ;;  %v408_v33 = vxor.u32 %v9834_v60, %v390_v62  ;;  %14206 = vst [vmem:[#allocation116_spill] sm:$0xff] %v14205_v1  ;;  %v14207_v62 = vmov 0  ;;  %v9946_v31 = vpop.permute.xlu1 %696 }
 0x21a   : > { %v7611_v25 = vpop.f32.mrb[22].mxu1  ;;  %v2068_v19 = vmul.f32 0.35355338, %v2017_v2  ;;  %v14208_v62 = vsel %vm9937_vm3, 4294967295, %v14207_v62  ;;  %v406_v2 = vxor.u32 %v9834_v60, %v388_v0  ;;  %v9944_v14 = vpop.permute.xlu0 %1026  ;;  %14211 = vst [vmem:[#allocation119_spill] sm:$0xff] %v9946_v31  ;;  %vm431_vm12 = vcmp.lt.s32.totalorder %v415_v37, 8 }
 0x21b   : > { %v2020_v63 = vpop.f32.mrb[23].mxu1  ;;  %v9925_v58 = vsel %vm9914_vm13, %v2070_v20, -1e+30  ;;  %14209 = vst [vmem:[#allocation117_spill] sm:$0xff] %v14208_v62  ;;  %vm424_vm5 = vcmp.lt.s32.totalorder %v408_v33, 8  ;;  %14210 = vst [vmem:[#allocation118_spill] sm:$0xff] %v9944_v14  ;;  %v413_v33 = vxor.u32 %v9834_v60, %v395_v56 }
 0x21c   : > { %2098 = vmax.xlane.f32.xlu1 %v9907_v9  ;;  %v2071_v4 = vmul.f32 0.35355338, %v7611_v25  ;;  %v9950_v7 = vsel %vm9929_vm2, %v2068_v19, -1e+30  ;;  %vm9961_vm8 = vmand %vm424_vm5, %vm439_vm4  ;;  %v14212_v25 = vmov 0  ;;  %vm422_vm10 = vcmp.lt.s32.totalorder %v406_v2, 8 }
 0x21d   : > { %v14213_v25 = vsel %vm9961_vm8, 4294967295, %v14212_v25  ;;  %v409_v19 = vxor.u32 %v9834_v60, %v391_v24  ;;  %vm9973_vm14 = vmand %vm422_vm10, %vm439_vm4  ;;  %v14215_v62 = vmov 0  ;;  %vm429_vm15 = vcmp.lt.s32.totalorder %v413_v33, 8 }
 0x21e   : > { %14214 = vst [vmem:[#allocation120_spill] sm:$0xff] %v14213_v25  ;;  %v9969_v56 = vsel %vm9961_vm8, %v2071_v4, -1e+30  ;;  %v14216_v62 = vsel %vm9973_vm14, 4294967295, %v14215_v62  ;;  %v9977_v1 = vpop.permute.xlu0 %654  ;;  %vm9982_vm5 = vmand %vm431_vm12, %vm439_vm4  ;;  %v14219_v24 = vmov 0  ;;  %v9986_v4 = vpop.permute.xlu1 %1028  ;;  %v412_v25 = vxor.u32 %v9834_v60, %v394_v16 }
 0x21f   : > { %14217 = vst [vmem:[#allocation121_spill] sm:$0xff] %v14216_v62  ;;  %14218 = vst [vmem:[#allocation122_spill] sm:$0xff] %v9977_v1  ;;  %v14220_v24 = vsel %vm9982_vm5, 4294967295, %v14219_v24  ;;  %vm425_vm10 = vcmp.lt.s32.totalorder %v409_v19, 8  ;;  %v392_v33 = vadd.s32 72, %v9827_v21 }
 0x220   : > { %2108 = vmax.xlane.f32.xlu1 %v9925_v58  ;;  %v7614_v6 = vpop.f32.mrb[24].mxu1  ;;  %14221 = vst [vmem:[#allocation123_spill] sm:$0xff] %v14220_v24  ;;  %14222 = vst [vmem:[#allocation124_spill] sm:$0xff] %v9986_v4 }
 0x221   : > { %v2074_v20 = vmul.f32 0.35355338, %v7614_v6  ;;  %v2033_v10 = vpop.f32.mrb[25].mxu1  ;;  %vm9996_vm12 = vmand %vm429_vm15, %vm439_vm4  ;;  %vm428_vm15 = vcmp.lt.s32.totalorder %v412_v25, 8 }
 0x222   : > { %v7615_v61 = vpop.f32.mrb[26].mxu1  ;;  %v14224_v15 = vsel %vm9996_vm12, 4294967295, %v14223_v15  ;;  %v2072_v4 = vmul.f32 0.35355338, %v2033_v10  ;;  %vm10008_vm1 = vmand %vm425_vm10, %vm439_vm4  ;;  %v410_v10 = vxor.u32 %v9834_v60, %v392_v33  ;;  %v10020_v24 = vpop.permute.xlu1 %1072  ;;  %v396_v33 = vadd.s32 104, %v9827_v21 }
 0x223   : > { %v9954_v0 = vsel %vm9937_vm3, %v2074_v20, -1e+30  ;;  %v2036_v6 = vpop.f32.mrb[27].mxu1  ;;  %v2069_v20 = vmul.f32 0.35355338, %v2020_v63  ;;  %14225 = vst [vmem:[#allocation125_spill] sm:$0xff] %v14224_v15  ;;  %vm10030_vm10 = vmand %vm428_vm15, %vm439_vm4 }
 0x224   : > { %2104 = vmax.xlane.f32.xlu1 %v9950_v7  ;;  %2116 = vmax.xlane.f32.xlu0 %v9954_v0  ;;  %v2075_v62 = vmul.f32 0.35355338, %v7615_v61  ;;  %v10024_v27 = vsel %vm10008_vm1, %v2072_v4, -1e+30  ;;  %vm426_vm0 = vcmp.lt.s32.totalorder %v410_v10, 8 }
 0x225   : > { %v9992_v1 = vsel %vm9973_vm14, %v2069_v20, -1e+30  ;;  %v14226_v20 = vmov 0  ;;  %v2073_v61 = vmul.f32 0.35355338, %v2036_v6  ;;  %vm10045_vm15 = vmand %vm426_vm0, %vm439_vm4 }
 0x226   : > { %v14227_v20 = vsel %vm10008_vm1, 4294967295, %v14226_v20  ;;  %v10038_v4 = vsel %vm10030_vm10, %v2075_v62, -1e+30  ;;  %v10049_v10 = vpop.permute.xlu1 %700 }
 0x227   : > { %14228 = vst [vmem:[#allocation126_spill] sm:$0xff] %v14227_v20  ;;  %v14234_v20 = vmov 0  ;;  %14237 = vst [vmem:[#allocation131_spill] sm:$0xff] %v10049_v10  ;;  %v10054_v62 = vsel %vm10045_vm15, %v2073_v61, -1e+30 }
 0x228   : > { %2110 = vmax.xlane.f32.xlu1 %v9969_v56  ;;  %v7618_v37 = vpop.f32.mrb[28].mxu1  ;;  %v14235_v20 = vsel %vm10045_vm15, 4294967295, %v14234_v20 }
 0x229   : > { %v2078_v63 = vmul.f32 0.35355338, %v7618_v37  ;;  %v2049_v2 = vpop.f32.mrb[29].mxu1  ;;  %14236 = vst [vmem:[#allocation130_spill] sm:$0xff] %v14235_v20 }
 0x22a   : > { %v2076_v31 = vmul.f32 0.35355338, %v2049_v2  ;;  %v7619_v14 = vpop.f32.mrb[30].mxu1  ;;  %v10018_v2 = vpop.permute.xlu0 %698 }
 0x22b   : > { %v10002_v19 = vsel %vm9982_vm5, %v2078_v63, -1e+30  ;;  %v2052_v16 = vpop.f32.mrb[31].mxu1  ;;  %v398_v63 = vadd.s32 120, %v9827_v21  ;;  %14229 = vst [vmem:[#allocation127_spill] sm:$0xff] %v10018_v2  ;;  %v414_v21 = vxor.u32 %v9834_v60, %v396_v33  ;;  %v10065_v10 = vpop.permute.xlu1 %744  ;;  %vm14392_vm5 = vcmask 392192  }
 0x22c   : > { %2106 = vmax.xlane.f32.xlu1 %v9992_v1  ;;  %2124 = vmax.xlane.f32.xlu0 %v10002_v19  ;;  %v10014_v37 = vsel %vm9996_vm12, %v2076_v31, -1e+30  ;;  %v14230_v31 = vmov 0  ;;  %v2079_v6 = vmul.f32 0.35355338, %v7619_v14  ;;  %14242 = vst [vmem:[#allocation134_spill] sm:$0xff] %v10065_v10 }
 0x22d   : > { %v14231_v31 = vsel %vm10030_vm10, 4294967295, %v14230_v31  ;;  %v416_v25 = vxor.u32 %v9834_v60, %v398_v63  ;;  %v14238_v63 = vmov 0  ;;  %vm430_vm0 = vcmp.lt.s32.totalorder %v414_v21, 8 }
 0x22e   : > { %14232 = vst [vmem:[#allocation128_spill] sm:$0xff] %v14231_v31  ;;  %v10040_v15 = vpop.permute.xlu0 %1030  ;;  %vm10074_vm15 = vmand %vm430_vm0, %vm439_vm4  ;;  %v14243_v60 = vmov 0 }
 0x22f   : > { %14233 = vst [vmem:[#allocation129_spill] sm:$0xff] %v10040_v15  ;;  %vm432_vm12 = vcmp.lt.s32.totalorder %v416_v25, 8  ;;  %v2077_v25 = vmul.f32 0.35355338, %v2052_v16  ;;  %v14244_v60 = vsel %vm10074_vm15, 4294967295, %v14243_v60  ;;  %v10085_v16 = vpop.permute.xlu1 %1076 }
 0x230   : > { %2112 = vmax.xlane.f32.xlu1 %v10024_v27  ;;  %2120 = vmax.xlane.f32.xlu0 %v10014_v37  ;;  %vm10059_vm10 = vmand %vm432_vm12, %vm439_vm4  ;;  %14245 = vst [vmem:[#allocation135_spill] sm:$0xff] %v14244_v60  ;;  %vm14288_vm4 = vcmask 261120  }
 0x231   : > { %v14239_v63 = vsel %vm10059_vm10, 4294967295, %v14238_v63  ;;  %v10069_v14 = vsel %vm10059_vm10, %v2079_v6, -1e+30  ;;  %v10080_v33 = vsel %vm10074_vm15, %v2077_v25, -1e+30  ;;  %14247 = vst [vmem:[#allocation137_spill] sm:$0xff] %v10085_v16  ;;  %vm14289_vm12 = vmmov %vm14288_vm4 }
 0x232   : > { %14240 = vst [vmem:[#allocation132_spill] sm:$0xff] %v14239_v63  ;;  %v10063_v31 = vpop.permute.xlu0 %1074  ;;  %vm14290_vm0 = vmmov %vm14288_vm4  ;;  %vm14325_vm15 = vcmask 195584  }
 0x233   : > { %14241 = vst [vmem:[#allocation133_spill] sm:$0xff] %v10063_v31  ;;  %v10089_v6 = vpop.permute.xlu1 %1120  ;;  %vm14291_vm10 = vmmov %vm14290_vm0 }
 0x234   : > { %2118 = vmax.xlane.f32.xlu1 %v10038_v4  ;;  %14249 = vst [vmem:[#allocation139_spill] sm:$0xff] %v10089_v6  ;;  %vm14328_vm1 = vmmov %vm14325_vm15 }
 0x236   : > { %v10082_v61 = vpop.permute.xlu0 %702 }
 0x237   : > { %14246 = vst [vmem:[#allocation136_spill] sm:$0xff] %v10082_v61  ;;  %v10093_v5 = vpop.permute.xlu1 %748 }
 0x238   : > { %2114 = vmax.xlane.f32.xlu1 %v10054_v62  ;;  %14251 = vst [vmem:[#allocation141_spill] sm:$0xff] %v10093_v5 }
 0x23a   : > { %v10087_v21 = vpop.permute.xlu0 %746 }
 0x23b   : > { %14248 = vst [vmem:[#allocation138_spill] sm:$0xff] %v10087_v21  ;;  %v10097_v10 = vpop.permute.xlu1 %750 }
 0x23c   : > { %2126 = vmax.xlane.f32.xlu1 %v10069_v14  ;;  %14253 = vst [vmem:[#allocation143_spill] sm:$0xff] %v10097_v10 }
 0x23e   : > { %v10091_v63 = vpop.permute.xlu0 %1078 }
 0x23f   : > { %14250 = vst [vmem:[#allocation140_spill] sm:$0xff] %v10091_v63  ;;  %v10101_v60 = vpop.permute.xlu1 %794 }
 0x240   : > { %2122 = vmax.xlane.f32.xlu1 %v10080_v33  ;;  %14255 = vst [vmem:[#allocation145_spill] sm:$0xff] %v10101_v60 }
 0x242   : > { %v10095_v20 = vpop.permute.xlu0 %1122 }
 0x243   : > { %14252 = vst [vmem:[#allocation142_spill] sm:$0xff] %v10095_v20  ;;  %v10105_v2 = vpop.permute.xlu1 %1126 }
 0x244   : > { %14257 = vst [vmem:[#allocation147_spill] sm:$0xff] %v10105_v2 }
 0x246   : > { %v10099_v25 = vpop.permute.xlu0 %792 }
 0x247   : > { %14254 = vst [vmem:[#allocation144_spill] sm:$0xff] %v10099_v25  ;;  %v10109_v21 = vpop.permute.xlu1 %1170 }
 0x248   : > { %14259 = vst [vmem:[#allocation149_spill] sm:$0xff] %v10109_v21 }
 0x24a   : > { %v10103_v61 = vpop.permute.xlu0 %1124 }
 0x24b   : > { %14256 = vst [vmem:[#allocation146_spill] sm:$0xff] %v10103_v61  ;;  %v10113_v63 = vpop.permute.xlu1 %798 }
 0x24c   : > { %14261 = vst [vmem:[#allocation151_spill] sm:$0xff] %v10113_v63 }
 0x24e   : > { %v10107_v15 = vpop.permute.xlu0 %1168 }
 0x24f   : > { %14258 = vst [vmem:[#allocation148_spill] sm:$0xff] %v10107_v15  ;;  %v10117_v20 = vpop.permute.xlu1 %842 }
 0x250   : > { %14263 = vst [vmem:[#allocation153_spill] sm:$0xff] %v10117_v20 }
 0x252   : > { %v10111_v16 = vpop.permute.xlu0 %796 }
 0x253   : > { %14260 = vst [vmem:[#allocation150_spill] sm:$0xff] %v10111_v16  ;;  %v10121_v25 = vpop.permute.xlu1 %1174 }
 0x254   : > { %14265 = vst [vmem:[#allocation155_spill] sm:$0xff] %v10121_v25 }
 0x256   : > { %v10115_v5 = vpop.permute.xlu0 %840 }
 0x257   : > { %14262 = vst [vmem:[#allocation152_spill] sm:$0xff] %v10115_v5  ;;  %v10125_v61 = vpop.permute.xlu1 %514 }
 0x258   : > { %14267 = vst [vmem:[#allocation157_spill] sm:$0xff] %v10125_v61 }
 0x25a   : > { %v10119_v10 = vpop.permute.xlu0 %1172 }
 0x25b   : > { %14264 = vst [vmem:[#allocation154_spill] sm:$0xff] %v10119_v10  ;;  %v10129_v15 = vpop.permute.xlu1 %846 }
 0x25c   : > { %14269 = vst [vmem:[#allocation159_spill] sm:$0xff] %v10129_v15 }
 0x25e   : > { %v10123_v60 = vpop.permute.xlu0 %512 }
 0x25f   : > { %14266 = vst [vmem:[#allocation156_spill] sm:$0xff] %v10123_v60  ;;  %v10133_v16 = vpop.permute.xlu1 %890 }
 0x260   : > { %14271 = vst [vmem:[#allocation161_spill] sm:$0xff] %v10133_v16 }
 0x262   : > { %v10127_v2 = vpop.permute.xlu0 %844 }
 0x263   : > { %14268 = vst [vmem:[#allocation158_spill] sm:$0xff] %v10127_v2  ;;  %v10137_v5 = vpop.permute.xlu1 %518 }
 0x264   : > { %14273 = vst [vmem:[#allocation163_spill] sm:$0xff] %v10137_v5 }
 0x266   : > { %v10131_v21 = vpop.permute.xlu0 %888 }
 0x267   : > { %14270 = vst [vmem:[#allocation160_spill] sm:$0xff] %v10131_v21  ;;  %v10141_v10 = vpop.permute.xlu1 %562 }
 0x268   : > { %14275 = vst [vmem:[#allocation165_spill] sm:$0xff] %v10141_v10 }
 0x26a   : > { %v10135_v63 = vpop.permute.xlu0 %516 }
 0x26b   : > { %14272 = vst [vmem:[#allocation162_spill] sm:$0xff] %v10135_v63  ;;  %v10145_v60 = vpop.permute.xlu1 %894 }
 0x26c   : > { %14277 = vst [vmem:[#allocation167_spill] sm:$0xff] %v10145_v60 }
 0x26e   : > { %v10139_v20 = vpop.permute.xlu0 %560 }
 0x26f   : > { %14274 = vst [vmem:[#allocation164_spill] sm:$0xff] %v10139_v20  ;;  %v10147_v61 = vpop.permute.xlu1 %938 }
 0x270   : > { %14278 = vst [vmem:[#allocation168_spill] sm:$0xff] %v10147_v61 }
 0x272   : > { %v10143_v25 = vpop.permute.xlu0 %892 }
 0x273   : > { %14276 = vst [vmem:[#allocation166_spill] sm:$0xff] %v10143_v25 }
 0x276   : > { %v10149_v2 = vpop.permute.xlu0 %936 }
 0x277   : > { %14279 = vst [vmem:[#allocation169_spill] sm:$0xff] %v10149_v2 }
 0x2a1   : > { %v2101_v15 = vpop.xlane.xlu1 %2100 }
 0x2a2   : > { %v2130_v21 = vsub.f32 %v9870_v35, %v2101_v15  ;;  %v2097_v16 = vpop.xlane.xlu0 %2096 }
 0x2a3   : > { %v2128_v63 = vsub.f32 %v9875_v8, %v2097_v16 }
 0x2a4   : > { %v2148_v6 = vmul.f32 1.442695, %v2130_v21 }
 0x2a5   : > { %v2144_v5 = vmul.f32 1.442695, %v2128_v63  ;;  %v2103_v31 = vpop.xlane.xlu1 %2102 }
 0x2a6   : > { %8312 = vpow2.f32 %v2148_v6  ;;  %v2131_v10 = vsub.f32 %v9893_v54, %v2103_v31 }
 0x2a7   : > { %8314 = vpow2.f32 %v2144_v5 }
 0x2a8   : > { %v2150_v20 = vmul.f32 1.442695, %v2131_v10 }
 0x2a9   : > { %v2099_v25 = vpop.xlane.xlu1 %2098 }
 0x2aa   : > { %8316 = vpow2.f32 %v2150_v20  ;;  %v2129_v60 = vsub.f32 %v9907_v9, %v2099_v25 }
 0x2ac   : > { %v2146_v61 = vmul.f32 1.442695, %v2129_v60 }
 0x2ad   : > { %v2109_v2 = vpop.xlane.xlu1 %2108 }
 0x2ae   : > { %8318 = vpow2.f32 %v2146_v61  ;;  %v2134_v15 = vsub.f32 %v9925_v58, %v2109_v2 }
 0x2b0   : > { %v10156_v35 = vpop.eup %8312  ;;  %v2156_v8 = vmul.f32 1.442695, %v2134_v15 }
 0x2b1   : > { %v2105_v16 = vpop.xlane.xlu1 %2104  ;;  %v2117_v63 = vpop.xlane.xlu0 %2116  ;;  %2180 = vadd.xlane.f32.xlu1 %v10156_v35 }
 0x2b2   : > { %8320 = vpow2.f32 %v2156_v8  ;;  %v2132_v54 = vsub.f32 %v9950_v7, %v2105_v16  ;;  %v2138_v31 = vsub.f32 %v9954_v0, %v2117_v63  ;;  %v10161_v20 = vpop.eup %8314 }
 0x2b4   : > { %v10163_v9 = vpop.eup %8316  ;;  %v2152_v10 = vmul.f32 1.442695, %v2132_v54  ;;  %v2164_v60 = vmul.f32 1.442695, %v2138_v31 }
 0x2b5   : > { %v2111_v61 = vpop.xlane.xlu1 %2110  ;;  %2182 = vadd.xlane.f32.xlu0 %v10163_v9  ;;  %2176 = vadd.xlane.f32.xlu1 %v10161_v20 }
 0x2b6   : > { %8322 = vpow2.f32 %v2152_v10  ;;  %v2135_v58 = vsub.f32 %v9969_v56, %v2111_v61 }
 0x2b7   : > { %8324 = vpow2.f32 %v2164_v60 }
 0x2b8   : > { %v10168_v2 = vpop.eup %8318  ;;  %v2158_v21 = vmul.f32 1.442695, %v2135_v58 }
 0x2b9   : > { %v2107_v7 = vpop.xlane.xlu1 %2106  ;;  %2178 = vadd.xlane.f32.xlu0 %v10168_v2  ;;  %v2125_v25 = vpop.xlane.xlu0 %2124 }
 0x2ba   : > { %8326 = vpow2.f32 %v2158_v21  ;;  %v2133_v0 = vsub.f32 %v9992_v1, %v2107_v7 }
 0x2bc   : > { %v10172_v6 = vpop.eup %8320  ;;  %v2154_v5 = vmul.f32 1.442695, %v2133_v0 }
 0x2bd   : > { %v2113_v15 = vpop.xlane.xlu1 %2112  ;;  %2188 = vadd.xlane.f32.xlu1 %v10172_v6  ;;  %v2121_v31 = vpop.xlane.xlu0 %2120 }
 0x2be   : > { %8328 = vpow2.f32 %v2154_v5  ;;  %v2136_v56 = vsub.f32 %v10024_v27, %v2113_v15  ;;  %v2140_v27 = vsub.f32 %v10014_v37, %v2121_v31  ;;  %v10221_v31 = vld [vmem:[%s9025_s14 + $0x50] sm:$0xff] }
 0x2c0   : > { %v10176_v8 = vpop.eup %8322  ;;  %v2160_v16 = vmul.f32 1.442695, %v2136_v56  ;;  %v2168_v0 = vmul.f32 1.442695, %v2140_v27  ;;  %v2142_v27 = vsub.f32 %v10002_v19, %v2125_v25  ;;  %v366_v25 = vld [vmem:[%s10261_s23 + $0x8] sm:$0xff] }
 0x2c1   : > { %v2119_v63 = vpop.xlane.xlu1 %2118  ;;  %2184 = vadd.xlane.f32.xlu1 %v10176_v8  ;;  %v10180_v1 = vpop.eup %8324 }
 0x2c2   : > { %8330 = vpow2.f32 %v2160_v16  ;;  %v2139_v54 = vsub.f32 %v10038_v4, %v2119_v63  ;;  %14280 = vst [vmem:[#allocation170_spill] sm:$0xff] %v10180_v1 }
 0x2c4   : > { %v10182_v10 = vpop.eup %8326  ;;  %v2166_v60 = vmul.f32 1.442695, %v2139_v54 }
 0x2c5   : > { %v2115_v61 = vpop.xlane.xlu1 %2114  ;;  %2190 = vadd.xlane.f32.xlu0 %v10182_v10  ;;  %2196 = vadd.xlane.f32.xlu1 %v10180_v1 }
 0x2c6   : > { %8332 = vpow2.f32 %v2166_v60  ;;  %v2137_v58 = vsub.f32 %v10054_v62, %v2115_v61  ;;  %v10226_v60 = vld [vmem:[%s9025_s14 + $0x48] sm:$0xff]  ;;  %v10231_v61 = vld [vmem:[%s9025_s14 + $0x40] sm:$0xff] }
 0x2c8   : > { %v10188_v21 = vpop.eup %8328  ;;  %v2162_v7 = vmul.f32 1.442695, %v2137_v58  ;;  %v2172_v58 = vmul.f32 1.442695, %v2142_v27  ;;  %v367_v27 = vld [vmem:[%s10261_s23 + $0x10] sm:$0xff] }
 0x2c9   : > { %2186 = vadd.xlane.f32.xlu0 %v10188_v21  ;;  %v2127_v4 = vpop.xlane.xlu1 %2126 }
 0x2ca   : > { %8334 = vpow2.f32 %v2162_v7  ;;  %v2143_v7 = vsub.f32 %v10069_v14, %v2127_v4  ;;  %v365_v14 = vld [vmem:[%s10261_s23] sm:$0xff]  ;;  %v368_v4 = vld [vmem:[%s10261_s23 + $0x18] sm:$0xff] }
 0x2cb   : > { %8336 = vpow2.f32 %v2168_v0 }
 0x2cc   : > { %v10191_v5 = vpop.eup %8330  ;;  %v2174_v0 = vmul.f32 1.442695, %v2143_v7  ;;  %v369_v7 = vld [vmem:[%s10261_s23 + $0x20] sm:$0xff] }
 0x2cd   : > { %14281 = vst [vmem:[#allocation171_spill] sm:$0xff] %v10191_v5  ;;  %2192 = vadd.xlane.f32.xlu1 %v10191_v5  ;;  %v2123_v15 = vpop.xlane.xlu1 %2122 }
 0x2ce   : > { %v2141_v37 = vsub.f32 %v10080_v33, %v2123_v15  ;;  %v10216_v33 = vld [vmem:[%s9025_s14 + $0x58] sm:$0xff]  ;;  %v8286_v15 = vld [vmem:[%s13801_s1 + $0x80] sm:$0xff]  }
 0x2cf   : > { %7568 = vmatprep.subr.bf16.mxu0 %v8286_v15 }
 0x2d0   : > { %v10195_v56 = vpop.eup %8332  ;;  %v2170_v62 = vmul.f32 1.442695, %v2141_v37  ;;  %7569 = vmatpush3.bf16.msra.mxu0 %v8286_v15  ;;  %v8287_v37 = vld [vmem:[%s13801_s1 + $0x88] sm:$0xff]  }
 0x2d1   : > { %14282 = vst [vmem:[#allocation172_spill] sm:$0xff] %v10195_v56  ;;  %2198 = vadd.xlane.f32.xlu0 %v10195_v56  ;;  %7570 = vmatprep.subr.bf16.mxu0 %v8287_v37 }
 0x2d2   : > { %8338 = vpow2.f32 %v2170_v62 }
 0x2d3   : > { %8340 = vpow2.f32 %v2172_v58  ;;  %v370_v58 = vld [vmem:[%s10261_s23 + $0x28] sm:$0xff] }
 0x2d4   : > { %v10198_v16 = vpop.eup %8334  ;;  %8342 = vpow2.f32 %v2174_v0  ;;  %7571 = vmatpush3.bf16.msra.mxu0 %v8287_v37 }
 0x2d5   : > { %14283 = vst [vmem:[#allocation173_spill] sm:$0xff] %v10198_v16  ;;  %2194 = vadd.xlane.f32.xlu0 %v10198_v16  ;;  %v10201_v63 = vpop.eup %8336 }
 0x2d6   : > { %14284 = vst [vmem:[#allocation174_spill] sm:$0xff] %v10201_v63 }
 0x2d7   : > { %7573 = vmatmul.mubr.msk.bf16.vlgmr.msra.gmra.mrb[16].mxu0 %vm14288_vm4, %v9052_v13  ;;  %vm14292_vm4 = vmmov %vm14290_vm0 }
 0x2d8   : > { %7576 = vmatprep.mubr.msk.bf16.mxu0 %vm14289_vm12, %v9061_v17  ;;  %vm14293_vm12 = vmmov %vm14290_vm0 }
 0x2d9   : > { %2200 = vadd.xlane.f32.xlu0 %v10201_v63 }
 0x2dc   : > { %v10204_v54 = vpop.eup %8338 }
 0x2dd   : > { %14285 = vst [vmem:[#allocation175_spill] sm:$0xff] %v10204_v54  ;;  %2202 = vadd.xlane.f32.xlu1 %v10204_v54  ;;  %v10243_v62 = vpop.eup %8340 }
 0x2de   : > { %14286 = vst [vmem:[#allocation176_spill] sm:$0xff] %v10243_v62  ;;  %v10246_v19 = vpop.eup %8342 }
 0x2df   : > { %14287 = vst [vmem:[#allocation177_spill] sm:$0xff] %v10246_v19  ;;  %7577 = vmatmul.mubr.msk.bf16.gmra.mrb[20].mxu0 %vm14290_vm0, %v9083_v22 }
 0x2e0   : > { %7580 = vmatprep.mubr.msk.bf16.mxu0 %vm14291_vm10, %v9087_v23  ;;  %vm14294_vm10 = vmmov %vm14290_vm0  ;;  %vm14316_vm0 = vcmask 64512  }
 0x2e7   : > { %7581 = vmatmul.mubr.msk.bf16.gmra.mrb[24].mxu0 %vm14292_vm4, %v9107_v28  ;;  %vm14317_vm4 = vmmov %vm14316_vm0 }
 0x2e8   : > { %7584 = vmatprep.mubr.msk.bf16.mxu0 %vm14293_vm12, %v9111_v29  ;;  %vm13893_vm12 = vcmask 130048  }
 0x2ee   : > { %566 = vrot.lane.b32.xlu1 %v9710_v30, %s14129_s18 }
 0x2ef   : > { %564 = vrot.lane.b32.xlu0 %v9689_v36, %s14129_s18  ;;  %7585 = vmatmul.mubr.msk.bf16.gmra.mrb[28].mxu0 %vm14294_vm10, %v9129_v32  ;;  %s14307_s18 = smov 72   ;;  %v8797_v32 = vld [vmem:[%s9025_s14 + $0x8] sm:$0xff]  ;;  %vm13886_vm10 = vcmask 195584  }
 0x2f2   : > { %610 = vrot.lane.b32.xlu1 %v9670_v11, %s8893_s21 }
 0x2f3   : > { %608 = vrot.lane.b32.xlu0 %v9647_v34, %s8893_s21 }
 0x2f6   : > { %942 = vrot.lane.b32.xlu1 %v10216_v33, %s14087_s19 }
 0x2f7   : > { %940 = vrot.lane.b32.xlu0 %v10221_v31, %s14087_s19 }
 0x2fa   : > { %986 = vrot.lane.b32.xlu1 %v10226_v60, %s14094_s20 }
 0x2fb   : > { %984 = vrot.lane.b32.xlu0 %v10231_v61, %s14094_s20 }
 0x31a   : > { %2204 = vadd.xlane.f32.xlu0 %v10243_v62 }
 0x31e   : > { %2206 = vadd.xlane.f32.xlu1 %v10246_v19 }
 0x32f   : > { %2242 = vperm.xlu1 %8281, %v365_v14  }
 0x330   : > { %2247 = vperm.xlu0 %8280, %v366_v25   ;;  %v372_v25 = vld [vmem:[%s10261_s23 + $0x38] sm:$0xff] }
 0x333   : > { %2257 = vperm.xlu1 %8281, %v368_v4  }
 0x334   : > { %2252 = vperm.xlu0 %8280, %v367_v27   ;;  %v371_v27 = vld [vmem:[%s10261_s23 + $0x30] sm:$0xff] }
 0x337   : > { %614 = vrot.lane.b32.xlu1 %v9710_v30, %s8893_s21 }
 0x338   : > { %612 = vrot.lane.b32.xlu0 %v9689_v36, %s8893_s21  ;;  %s14296_s21 = smov 48  }
 0x33b   : > { %658 = vrot.lane.b32.xlu1 %v9670_v11, %s14295_s30 }
 0x33c   : > { %656 = vrot.lane.b32.xlu0 %v9647_v34, %s14295_s30 }
 0x33e   : > { %v10333_v15 = vpop.xlane.xlu1 %2180 }
 0x33f   : > { %990 = vrot.lane.b32.xlu1 %v10216_v33, %s14094_s20 }
 0x340   : > { %988 = vrot.lane.b32.xlu0 %v10221_v31, %s14094_s20 }
 0x342   : > { %v10327_v0 = vpop.xlane.xlu0 %2182  ;;  %v10341_v14 = vpop.xlane.xlu1 %2176 }
 0x343   : > { %1034 = vrot.lane.b32.xlu1 %v10226_v60, %s8902_s15  ;;  %8344 = vrcp.f32 %v10341_v14 }
 0x344   : > { %1032 = vrot.lane.b32.xlu0 %v10231_v61, %s8902_s15 }
 0x346   : > { %v10339_v37 = vpop.xlane.xlu0 %2178 }
 0x347   : > { %662 = vrot.lane.b32.xlu1 %v9710_v30, %s14295_s30  ;;  %8346 = vrcp.f32 %v10339_v37 }
 0x348   : > { %660 = vrot.lane.b32.xlu0 %v9689_v36, %s14295_s30  ;;  %8348 = vrcp.f32 %v10333_v15 }
 0x349   : > { %8350 = vrcp.f32 %v10327_v0 }
 0x34b   : > { %706 = vrot.lane.b32.xlu1 %v9670_v11, %s14102_s22 }
 0x34c   : > { %704 = vrot.lane.b32.xlu0 %v9647_v34, %s14102_s22 }
 0x34f   : > { %1038 = vrot.lane.b32.xlu1 %v10216_v33, %s8902_s15 }
 0x350   : > { %1036 = vrot.lane.b32.xlu0 %v10221_v31, %s8902_s15 }
 0x352   : > { %v10348_v4 = vpop.xlane.xlu0 %2190 }
 0x353   : > { %1082 = vrot.lane.b32.xlu1 %v10226_v60, %s8903_s16 }
 0x354   : > { %1080 = vrot.lane.b32.xlu0 %v10231_v61, %s8903_s16 }
 0x357   : > { %710 = vrot.lane.b32.xlu1 %v9710_v30, %s14102_s22 }
 0x358   : > { %708 = vrot.lane.b32.xlu0 %v9689_v36, %s14102_s22  ;;  %s14298_s22 = smov 56  }
 0x35b   : > { %754 = vrot.lane.b32.xlu1 %v9670_v11, %s14296_s21 }
 0x35c   : > { %752 = vrot.lane.b32.xlu0 %v9647_v34, %s14296_s21 }
 0x35f   : > { %1086 = vrot.lane.b32.xlu1 %v10216_v33, %s8903_s16 }
 0x360   : > { %1084 = vrot.lane.b32.xlu0 %v10221_v31, %s8903_s16 }
 0x363   : > { %1130 = vrot.lane.b32.xlu1 %v10226_v60, %s14297_s24 }
 0x364   : > { %1128 = vrot.lane.b32.xlu0 %v10231_v61, %s14297_s24 }
 0x367   : > { %2267 = vperm.xlu1 %8281, %v370_v58   ;;  %v10351_v58 = vpop.xlane.xlu1 %2188 }
 0x368   : > { %2262 = vperm.xlu0 %8280, %v369_v7   ;;  %v10353_v7 = vpop.xlane.xlu0 %2186 }
 0x36b   : > { %758 = vrot.lane.b32.xlu1 %v9710_v30, %s14296_s21  ;;  %v10359_v19 = vpop.xlane.xlu1 %2184 }
 0x36c   : > { %756 = vrot.lane.b32.xlu0 %v9689_v36, %s14296_s21  ;;  %v10361_v62 = vpop.xlane.xlu0 %2198 }
 0x36d   : > { %14300 = vst [vmem:[#allocation178_spill] sm:$0xff] %v10361_v62 }
 0x36f   : > { %802 = vrot.lane.b32.xlu1 %v9670_v11, %s14298_s22 }
 0x370   : > { %800 = vrot.lane.b32.xlu0 %v9647_v34, %s14298_s22 }
 0x373   : > { %1134 = vrot.lane.b32.xlu1 %v10216_v33, %s14297_s24 }
 0x374   : > { %1132 = vrot.lane.b32.xlu0 %v10221_v31, %s14297_s24 }
 0x377   : > { %1178 = vrot.lane.b32.xlu1 %v10226_v60, %s14299_s9 }
 0x378   : > { %1176 = vrot.lane.b32.xlu0 %v10231_v61, %s14299_s9 }
 0x37b   : > { %2277 = vperm.xlu1 %8281, %v372_v25   ;;  %v10367_v25 = vpop.xlane.xlu1 %2196 }
 0x37c   : > { %2272 = vperm.xlu0 %8280, %v371_v27   ;;  %14302 = vst [vmem:[#allocation179_spill] sm:$0xff] %v10367_v25  ;;  %v10373_v27 = vpop.xlane.xlu0 %2194 }
 0x37d   : > { %14303 = vst [vmem:[#allocation180_spill] sm:$0xff] %v10373_v27  ;;  %v1210_v27 = vsel %vm14317_vm4, %v8797_v32, %v9257_v38  ;;  %v8799_v38 = vld [vmem:[%s9025_s14 + $0x10] sm:$0xff]  ;;  %vm14320_vm4 = vmmov %vm14316_vm0 }
 0x37f   : > { %806 = vrot.lane.b32.xlu1 %v9710_v30, %s14298_s22  ;;  %v10375_v54 = vpop.xlane.xlu1 %2192 }
 0x380   : > { %804 = vrot.lane.b32.xlu0 %v9689_v36, %s14298_s22  ;;  %14304 = vst [vmem:[#allocation181_spill] sm:$0xff] %v10375_v54  ;;  %v10381_v63 = vpop.xlane.xlu0 %2200 }
 0x381   : > { %14305 = vst [vmem:[#allocation182_spill] sm:$0xff] %v10381_v63 }
 0x383   : > { %850 = vrot.lane.b32.xlu1 %v9670_v11, %s14301_s10  ;;  %v10383_v56 = vpop.xlane.xlu1 %2202 }
 0x384   : > { %848 = vrot.lane.b32.xlu0 %v9647_v34, %s14301_s10  ;;  %14306 = vst [vmem:[#allocation183_spill] sm:$0xff] %v10383_v56  ;;  %v10393_v16 = vpop.permute.xlu0 %564 }
 0x385   : > { %14308 = vst [vmem:[#allocation184_spill] sm:$0xff] %v10393_v16 }
 0x387   : > { %1182 = vrot.lane.b32.xlu1 %v10216_v33, %s14299_s9  ;;  %v10395_v1 = vpop.permute.xlu1 %566 }
 0x388   : > { %1180 = vrot.lane.b32.xlu0 %v10221_v31, %s14299_s9  ;;  %14309 = vst [vmem:[#allocation185_spill] sm:$0xff] %v10395_v1  ;;  %v10401_v56 = vpop.permute.xlu0 %608 }
 0x389   : > { %14310 = vst [vmem:[#allocation186_spill] sm:$0xff] %v10401_v56 }
 0x38b   : > { %854 = vrot.lane.b32.xlu1 %v9710_v30, %s14301_s10  ;;  %v10403_v5 = vpop.permute.xlu1 %610 }
 0x38c   : > { %852 = vrot.lane.b32.xlu0 %v9689_v36, %s14301_s10  ;;  %14311 = vst [vmem:[#allocation187_spill] sm:$0xff] %v10403_v5  ;;  %v10413_v1 = vpop.permute.xlu0 %940 }
 0x38d   : > { %14312 = vst [vmem:[#allocation188_spill] sm:$0xff] %v10413_v1 }
 0x38f   : > { %898 = vrot.lane.b32.xlu1 %v9670_v11, %s14307_s18  ;;  %v10415_v16 = vpop.permute.xlu1 %942 }
 0x390   : > { %896 = vrot.lane.b32.xlu0 %v9647_v34, %s14307_s18  ;;  %14313 = vst [vmem:[#allocation189_spill] sm:$0xff] %v10415_v16  ;;  %v10421_v5 = vpop.permute.xlu0 %984  ;;  %v8796_v16 = vld [vmem:[%s9025_s14] sm:$0xff] }
 0x391   : > { %v1209_v1 = vsel %vm14316_vm0, %v8796_v16, %v9263_v39  ;;  %v1227_v39 = vsel %vm13893_vm12, %v1210_v27, %v9283_v43  ;;  %v8798_v16 = vld [vmem:[%s9025_s14 + $0x18] sm:$0xff]  ;;  %v14331_v27 = vld [vmem:[#allocation16_spill] sm:$0xff] }
 0x392   : > { %v1212_v32 = vsel %vm14316_vm0, %v8798_v16, %v9271_v41  ;;  %v1244_v25 = vsel %vm13886_vm10, %v1227_v39, %v9303_v47  ;;  %vm14323_vm0 = vcmask 261120  }
 0x393   : > { %902 = vrot.lane.b32.xlu1 %v9710_v30, %s14307_s18  ;;  %v10423_v56 = vpop.permute.xlu1 %986  ;;  %v1229_v41 = vsel %vm13893_vm12, %v1212_v32, %v9285_v44  ;;  %v14334_v32 = vld [vmem:[#allocation17_spill] sm:$0xff] }
 0x394   : > { %900 = vrot.lane.b32.xlu0 %v9689_v36, %s14307_s18  ;;  %s7221_s18 = sshll.u32 %s8972_s0, 11 }
 0x397   : > { %946 = vrot.lane.b32.xlu1 %v9670_v11, %s14087_s19 }
 0x398   : > { %944 = vrot.lane.b32.xlu0 %v9647_v34, %s14087_s19 }
 0x39b   : > { %950 = vrot.lane.b32.xlu1 %v9710_v30, %s14087_s19 }
 0x39c   : > { %948 = vrot.lane.b32.xlu0 %v9689_v36, %s14087_s19 }
 0x39f   : > { %994 = vrot.lane.b32.xlu1 %v9670_v11, %s14094_s20 }
 0x3a0   : > { %992 = vrot.lane.b32.xlu0 %v9647_v34, %s14094_s20 }
 0x3a3   : > { %998 = vrot.lane.b32.xlu1 %v9710_v30, %s14094_s20 }
 0x3a4   : > { %996 = vrot.lane.b32.xlu0 %v9689_v36, %s14094_s20  ;;  %s13747_s20 = scalar_lea.hbm %s13807_s7, %s7221_s18 }
 0x3a7   : > { %1042 = vrot.lane.b32.xlu1 %v9670_v11, %s8902_s15  ;;  %v10429_v63 = vpop.xlane.xlu0 %2204 }
 0x3a8   : > { %1040 = vrot.lane.b32.xlu0 %v9647_v34, %s8902_s15  ;;  %14314 = vst [vmem:[#allocation190_spill] sm:$0xff] %v10429_v63  ;;  %v1226_v63 = vsel %vm13893_vm12, %v1209_v1, %v9277_v42  ;;  %v1211_v42 = vsel %vm14320_vm4, %v8799_v38, %v9265_v40  ;;  %vm14324_vm4 = vmmov %vm14323_vm0  ;;  %v8801_v38 = vld [vmem:[%s9025_s14 + $0x28] sm:$0xff] }
 0x3a9   : > { %v1243_v1 = vsel %vm13886_vm10, %v1226_v63, %v9297_v46  ;;  %v1228_v40 = vsel %vm13893_vm12, %v1211_v42, %v9291_v45  ;;  %v1261_v47 = vsel %vm14324_vm4, %v1244_v25, %v9323_v51  ;;  %vm13892_vm10 = vcmask 326656   ;;  %v14335_v42 = vld [vmem:[#allocation27_spill] sm:$0xff] }
 0x3aa   : > { %v1260_v46 = vsel %vm14323_vm0, %v1243_v1, %v9317_v50  ;;  %v1245_v45 = vsel %vm14328_vm1, %v1228_v40, %v9311_v49  ;;  %v1278_v51 = vsel %vm13892_vm10, %v1261_v47, %v9349_v57  ;;  %vm14330_vm1 = vmmov %vm14323_vm0  ;;  %vm13894_vm4 = vcmask 457728  }
 0x3ab   : > { %1046 = vrot.lane.b32.xlu1 %v9710_v30, %s8902_s15  ;;  %v10433_v62 = vpop.xlane.xlu1 %2206  ;;  %v1277_v50 = vsel %vm13892_vm10, %v1260_v46, %v9340_v55  ;;  %v1262_v49 = vsel %vm14330_vm1, %v1245_v45, %v9325_v52  ;;  %v14337_v52 = vld [vmem:[#allocation15_spill] sm:$0xff]  ;;  %v14339_v46 = vld [vmem:[#allocation20_spill] sm:$0xff]  ;;  %vm13896_vm1 = vcmask 523264  }
 0x3ac   : > { %14315 = vst [vmem:[#allocation191_spill] sm:$0xff] %v10433_v62  ;;  %1044 = vrot.lane.b32.xlu0 %v9689_v36, %s8902_s15  ;;  %s8906_s15 = smov [#allocation3]  }
 0x3af   : > { %v10445_v54 = vpop.permute.xlu0 %2247  ;;  %1090 = vrot.lane.b32.xlu1 %v9670_v11, %s8903_s16  ;;  %v10449_v62 = vpop.permute.xlu1 %2242 }
 0x3b0   : > { %14318 = vst [vmem:[#allocation192_spill] sm:$0xff] %v10445_v54  ;;  %14319 = vst [vmem:[#allocation193_spill] sm:$0xff] %v10449_v62  ;;  %1088 = vrot.lane.b32.xlu0 %v9647_v34, %s8903_s16 }
 0x3b3   : > { %v10465_v43 = vpop.permute.xlu0 %2252  ;;  %1094 = vrot.lane.b32.xlu1 %v9710_v30, %s8903_s16  ;;  %v10469_v34 = vpop.permute.xlu1 %2257  ;;  %v1246_v30 = vsel %vm14325_vm15, %v1229_v41, %v9305_v48  ;;  %v374_v48 = vld [vmem:[%s10261_s23 + $0x48] sm:$0xff]  ;;  %vm13891_vm15 = vcmask 392192   ;;  %v14338_v41 = vld [vmem:[#allocation14_spill] sm:$0xff] }
 0x3b4   : > { %14321 = vst [vmem:[#allocation194_spill] sm:$0xff] %v10465_v43  ;;  %14322 = vst [vmem:[#allocation195_spill] sm:$0xff] %v10469_v34  ;;  %1092 = vrot.lane.b32.xlu0 %v9689_v36, %s8903_s16  ;;  %v10494_v36 = vld [vmem:[%s9025_s14 + $0x60] sm:$0xff]  ;;  %v1263_v25 = vsel %vm14323_vm0, %v1246_v30, %v9331_v53  ;;  %v1294_v55 = vsel %vm13891_vm15, %v1277_v50, %v14331_v27  ;;  %v1295_v57 = vsel %vm13891_vm15, %v1278_v51, %v14334_v32  ;;  %vm14336_vm0 = vcmask 64512   ;;  %v14340_v30 = vld [vmem:[#allocation21_spill] sm:$0xff]  ;;  %s314_s16 = sand.u32 1, %s8880_s27  }
 0x3b5   : > { %14329 = vst [vmem:[#allocation198_spill] sm:$0xff] %v10494_v36  ;;  %v1214_v53 = vsel %vm14336_vm0, %v8801_v38, %v14335_v42  ;;  %v1280_v1 = vsel %vm13892_vm10, %v1263_v25, %v14337_v52  ;;  %v1279_v40 = vsel %vm13892_vm10, %v1262_v49, %v14338_v41  ;;  %v1311_v47 = vsel %vm13894_vm4, %v1294_v55, %v14339_v46  ;;  %v8802_v50 = vld [vmem:[%s9025_s14 + $0x20] sm:$0xff]  ;;  %vm14342_vm15 = vmmov %vm14336_vm0  ;;  %v10533_v25 = vld [vmem:[%s9025_s14 + $0x78] sm:$0xff]  ;;  %s6992_s21 = sshll.u32 %s314_s16, 7  ;;  %s13758_s0 = scalar_lea.sflag [#allocation4], %s314_s16 }
 0x3b6   : > { %v1312_v45 = vsel %vm13894_vm4, %v1295_v57, %v14340_v30  ;;  %14343 = vst [vmem:[#allocation17_spill] sm:$0xff] %v10533_v25  ;;  %v14344_v55 = vld [vmem:[#allocation19_spill] sm:$0xff]  ;;  %vm14345_vm0 = vcmask 392192   ;;  %v10542_v57 = vld [vmem:[%s9025_s14 + $0x70] sm:$0xff]  ;;  %v14347_v38 = vld [vmem:[#allocation18_spill] sm:$0xff]  ;;  %vm13895_vm10 = vcmask 588800  }
 0x3b7   : > { %v10483_v63 = vpop.permute.xlu0 %612  ;;  %1138 = vrot.lane.b32.xlu1 %v9670_v11, %s14297_s24  ;;  %v10487_v44 = vpop.permute.xlu1 %614  ;;  %v373_v11 = vld [vmem:[%s10261_s23 + $0x40] sm:$0xff]  ;;  %v1297_v32 = vsel %vm14345_vm0, %v1280_v1, %v14344_v55  ;;  %14346 = vst [vmem:[#allocation27_spill] sm:$0xff] %v10542_v57  ;;  %v14349_v42 = vld [vmem:[#allocation24_spill] sm:$0xff]  ;;  %v14350_v52 = vld [vmem:[#allocation25_spill] sm:$0xff]  ;;  %s13671_s10 = scalar_lea.vmem [#allocation3], %s6992_s21 }
 0x3b8   : > { %14326 = vst [vmem:[#allocation196_spill] sm:$0xff] %v10483_v63  ;;  %14327 = vst [vmem:[#allocation197_spill] sm:$0xff] %v10487_v44  ;;  %1136 = vrot.lane.b32.xlu0 %v10494_v36, %s14297_s24  ;;  %v1329_v41 = vsel %vm13896_vm1, %v1312_v45, %v14350_v52  ;;  %v14352_v30 = vld [vmem:[#allocation23_spill] sm:$0xff]  ;;  %v14354_v45 = vld [vmem:[#allocation22_spill] sm:$0xff] }
 0x3b9   : > { %v14356_v55 = vld [vmem:[#allocation31_spill] sm:$0xff]  ;;  %v14364_v63 = vld [vmem:[#allocation28_spill] sm:$0xff] }
 0x3bb   : > { %v10508_v39 = vpop.permute.xlu0 %656  ;;  %2287 = vperm.xlu1 %8281, %v374_v48   ;;  %v10510_v16 = vpop.permute.xlu1 %658  ;;  %v14341_v48 = vld [vmem:[#allocation26_spill] sm:$0xff] }
 0x3bc   : > { %14332 = vst [vmem:[#allocation16_spill] sm:$0xff] %v10508_v39  ;;  %14333 = vst [vmem:[#allocation199_spill] sm:$0xff] %v10510_v16  ;;  %2282 = vperm.xlu0 %8280, %v373_v11   ;;  %v1213_v51 = vsel %vm14342_vm15, %v8802_v50, %v14341_v48  ;;  %v1231_v11 = vsel %vm13893_vm12, %v1214_v53, %v9552_v59  ;;  %v1328_v53 = vsel %vm13896_vm1, %v1311_v47, %v14349_v42  ;;  %v14357_v42 = vld [vmem:[#allocation32_spill] sm:$0xff]  ;;  %v8807_v16 = vld [vmem:[%s9025_s14 + $0x38] sm:$0xff] }
 0x3bd   : > { %vm14348_vm15 = vmmov %vm14345_vm0  ;;  %v1230_v1 = vsel %vm13893_vm12, %v1213_v51, %v9529_v18  ;;  %vm14351_vm0 = vcmask 195584   ;;  %v1314_v50 = vsel %vm13894_vm4, %v1297_v32, %v14352_v30  ;;  %v14355_v51 = vld [vmem:[#allocation30_spill] sm:$0xff]  ;;  %v1346_v32 = vsel %vm13895_vm10, %v1329_v41, %v14356_v55  ;;  %v14362_v39 = vld [vmem:[#allocation33_spill] sm:$0xff] }
 0x3be   : > { %v1296_v59 = vsel %vm14348_vm15, %v1279_v40, %v14347_v38  ;;  %v1248_v46 = vsel %vm14351_vm0, %v1231_v11, %v9598_v3  ;;  %v10561_v40 = vld [vmem:[%s9025_s14 + $0x68] sm:$0xff]  ;;  %v1345_v3 = vsel %vm13895_vm10, %v1328_v53, %v14355_v51  ;;  %v376_v11 = vld [vmem:[%s10261_s23 + $0x58] sm:$0xff]  ;;  %v8806_v38 = vld [vmem:[%s9025_s14 + $0x30] sm:$0xff]  ;;  %vm14358_vm0 = vcmask 64512   ;;  %s10621_s14 = sld [smem:[#allocation2]] }
 0x3bf   : > { %v10530_v27 = vpop.permute.xlu0 %988  ;;  %1142 = vrot.lane.b32.xlu1 %v10533_v25, %s14297_s24  ;;  %v10537_v49 = vpop.permute.xlu1 %990  ;;  %14353 = vst [vmem:[#allocation15_spill] sm:$0xff] %v10561_v40  ;;  %v1313_v18 = vsel %vm13894_vm4, %v1296_v59, %v14354_v45  ;;  %v1215_v52 = vsel %vm14358_vm0, %v8806_v38, %v14357_v42  ;;  %vm14359_vm12 = vcmask 195584   ;;  %vm14360_vm4 = vcmask 261120   ;;  %v375_v45 = vld [vmem:[%s10261_s23 + $0x50] sm:$0xff]  ;;  %v14361_v53 = vld [vmem:[#allocation29_spill] sm:$0xff]  ;;  %vm14363_vm15 = vmmov %vm14358_vm0 }
 0x3c0   : > { %1140 = vrot.lane.b32.xlu0 %v10542_v57, %s14297_s24  ;;  %v1247_v30 = vsel %vm14359_vm12, %v1230_v1, %v9589_v26  ;;  %v1265_v59 = vsel %vm14360_vm4, %v1248_v46, %v9659_v12  ;;  %v1331_v51 = vsel %vm13896_vm1, %v1314_v50, %v14361_v53  ;;  %v1216_v44 = vsel %vm14363_vm15, %v8807_v16, %v14362_v39  ;;  %v14365_v55 = vld [vmem:[#allocation36_spill] sm:$0xff]  ;;  %v14369_v12 = vld [vmem:[#allocation37_spill] sm:$0xff]  ;;  %v14371_v46 = vld [vmem:[#allocation39_spill] sm:$0xff] }
 0x3c1   : > { %v1330_v41 = vsel %vm13896_vm1, %v1313_v18, %v14364_v63  ;;  %vm14366_vm10 = vcmask 654336   ;;  %vm14372_vm4 = vcmask 130048   ;;  %v14373_v53 = vld [vmem:[#allocation46_spill] sm:$0xff]  ;;  %vm14374_vm15 = vcmask 261120   ;;  %v14377_v18 = vld [vmem:[#allocation35_spill] sm:$0xff] }
 0x3c2   : > { %v1362_v38 = vsel %vm14366_vm10, %v1345_v3, %v14365_v55  ;;  %vm14370_vm12 = vmmov %vm14366_vm10  ;;  %v1232_v50 = vsel %vm14372_vm4, %v1215_v52, %v14371_v46  ;;  %v1264_v39 = vsel %vm14374_vm15, %v1247_v30, %v14373_v53  ;;  %v14375_v16 = vld [vmem:[#allocation54_spill] sm:$0xff]  ;;  %vm14376_vm1 = vcmask 326656   ;;  %v14385_v46 = vld [vmem:[#allocation43_spill] sm:$0xff] }
 0x3c3   : > { %v10558_v48 = vpop.permute.xlu0 %1032  ;;  %1186 = vrot.lane.b32.xlu1 %v10561_v40, %s14299_s9  ;;  %v10565_v47 = vpop.permute.xlu1 %1034  ;;  %v1363_v1 = vsel %vm14370_vm12, %v1346_v32, %v14369_v12  ;;  %v1282_v63 = vsel %vm14376_vm1, %v1265_v59, %v14375_v16  ;;  %vm14378_vm10 = vcmask 588800   ;;  %v14379_v55 = vld [vmem:[#allocation38_spill] sm:$0xff]  ;;  %vm14380_vm0 = vmmov %vm14372_vm4  ;;  %vm14384_vm12 = vcmask 719872   ;;  %v14387_v59 = vld [vmem:[#allocation45_spill] sm:$0xff] }
 0x3c4   : > { %1184 = vrot.lane.b32.xlu0 %v10494_v36, %s14299_s9  ;;  %v1348_v3 = vsel %vm14378_vm10, %v1331_v51, %v14377_v18  ;;  %vm14382_vm3 = vmmov %vm14378_vm10  ;;  %v14383_v12 = vld [vmem:[#allocation42_spill] sm:$0xff]  ;;  %vm1395_vm4 = vcmask 785408   ;;  %vm14388_vm1 = vcmask 195584   ;;  %v14389_v53 = vld [vmem:[#allocation53_spill] sm:$0xff]  ;;  %vm14390_vm10 = vcmask 326656  }
 0x3c5   : > { %v1379_v52 = vsel %vm14384_vm12, %v1362_v38, %v14383_v12  ;;  %vm14386_vm15 = vmmov %vm14384_vm12  ;;  %v1281_v51 = vsel %vm14390_vm10, %v1264_v39, %v14389_v53  ;;  %v14391_v16 = vld [vmem:[#allocation63_spill] sm:$0xff]  ;;  %v14397_v18 = vld [vmem:[#allocation44_spill] sm:$0xff]  ;;  %vm13973_vm12 = vcmask 850944   ;;  %vm14408_vm10 = vcmask 457728  }
 0x3c6   : > { %v1380_v30 = vsel %vm14386_vm15, %v1363_v1, %v14385_v46  ;;  %v378_v39 = vld [vmem:[%s10261_s23 + $0x68] sm:$0xff]  ;;  %v14401_v12 = vld [vmem:[#allocation49_spill] sm:$0xff]  ;;  %v14402_v53 = vld [vmem:[#allocation50_spill] sm:$0xff]  ;;  %vm14404_vm15 = vcmask 261120  }
 0x3c7   : > { %v10593_v42 = vpop.permute.xlu0 %660  ;;  %2297 = vperm.xlu1 %8281, %v376_v11   ;;  %v10595_v26 = vpop.permute.xlu1 %662  ;;  %v1233_v11 = vsel %vm14380_vm0, %v1216_v44, %v14379_v55  ;;  %v1299_v44 = vsel %vm14392_vm5, %v1282_v63, %v14391_v16  ;;  %vm14398_vm0 = vmmov %vm14388_vm1  ;;  %v14399_v63 = vld [vmem:[#allocation40_spill] sm:$0xff]  ;;  %v1396_v46 = vsel %vm1395_vm4, %v1379_v52, %v14401_v12  ;;  %v1397_v16 = vsel %vm1395_vm4, %v1380_v30, %v14402_v53  ;;  %v14414_v53 = vld [vmem:[#allocation47_spill] sm:$0xff] }
 0x3c8   : > { %14367 = vst [vmem:[#allocation14_spill] sm:$0xff] %v10593_v42  ;;  %14368 = vst [vmem:[#allocation20_spill] sm:$0xff] %v10595_v26  ;;  %2292 = vperm.xlu0 %8280, %v375_v45   ;;  %v14381_v26 = vld [vmem:[#allocation34_spill] sm:$0xff]  ;;  %v1249_v45 = vsel %vm14388_vm1, %v1232_v50, %v14387_v59  ;;  %v1250_v50 = vsel %vm14398_vm0, %v1233_v11, %v14397_v18  ;;  %v14405_v11 = vld [vmem:[#allocation60_spill] sm:$0xff]  ;;  %vm14406_vm1 = vcmask 392192  }
 0x3c9   : > { %v1347_v32 = vsel %vm14382_vm3, %v1330_v41, %v14381_v26  ;;  %v14395_v26 = vld [vmem:[#allocation41_spill] sm:$0xff]  ;;  %vm14396_vm3 = vcmask 654336   ;;  %v377_v59 = vld [vmem:[%s10261_s23 + $0x60] sm:$0xff]  ;;  %v1298_v18 = vsel %vm14406_vm1, %v1281_v51, %v14405_v11  ;;  %v14411_v52 = vld [vmem:[#allocation52_spill] sm:$0xff]  ;;  %vm14419_vm1 = vcmask 326656  }
 0x3ca   : > { %v1365_v1 = vsel %vm14396_vm3, %v1348_v3, %v14395_v26  ;;  %vm14400_vm5 = vmmov %vm14396_vm3  ;;  %v14403_v3 = vld [vmem:[#allocation51_spill] sm:$0xff]  ;;  %vm14410_vm3 = vcmask 719872   ;;  %v14416_v51 = vld [vmem:[#allocation56_spill] sm:$0xff] }
 0x3cb   : > { %v10623_v41 = vpop.permute.xlu0 %704  ;;  %1190 = vrot.lane.b32.xlu1 %v10533_v25, %s14299_s9  ;;  %v10627_v38 = vpop.permute.xlu1 %706  ;;  %v1364_v55 = vsel %vm14400_vm5, %v1347_v32, %v14399_v63  ;;  %v1266_v26 = vsel %vm14404_vm15, %v1249_v45, %v14403_v3  ;;  %v14409_v32 = vld [vmem:[#allocation48_spill] sm:$0xff]  ;;  %vm14412_vm0 = vmmov %vm14404_vm15  ;;  %v1413_v3 = vsel %vm13973_vm12, %v1396_v46, %v14416_v51  ;;  %vm13905_vm15 = vcmask 916480   ;;  %v14418_v11 = vld [vmem:[#allocation58_spill] sm:$0xff] }
 0x3cc   : > { %14393 = vst [vmem:[#allocation21_spill] sm:$0xff] %v10623_v41  ;;  %14394 = vst [vmem:[#allocation26_spill] sm:$0xff] %v10627_v38  ;;  %1188 = vrot.lane.b32.xlu0 %v10542_v57, %s14299_s9  ;;  %v14407_v38 = vld [vmem:[#allocation71_spill] sm:$0xff]  ;;  %v1382_v63 = vsel %vm14410_vm3, %v1365_v1, %v14409_v32  ;;  %v1267_v12 = vsel %vm14412_vm0, %v1250_v50, %v14411_v52  ;;  %v1283_v50 = vsel %vm14419_vm1, %v1266_v26, %v14418_v11  ;;  %v14420_v32 = vld [vmem:[#allocation68_spill] sm:$0xff] }
 0x3cd   : > { %v1316_v41 = vsel %vm14408_vm10, %v1299_v44, %v14407_v38  ;;  %vm14415_vm5 = vmmov %vm14410_vm3  ;;  %v380_v44 = vld [vmem:[%s10261_s23 + $0x78] sm:$0xff]  ;;  %v14417_v38 = vld [vmem:[#allocation59_spill] sm:$0xff]  ;;  %vm14422_vm3 = vcmask 523264   ;;  %v10680_v11 = vstv %s10621_s14 }
 0x3ce   : > { %v1381_v45 = vsel %vm14415_vm5, %v1364_v55, %v14414_v53  ;;  %v1414_v1 = vsel %vm13973_vm12, %v1397_v16, %v14417_v38  ;;  %v14421_v52 = vld [vmem:[#allocation79_spill] sm:$0xff]  ;;  %v379_v57 = vld [vmem:[%s10261_s23 + $0x70] sm:$0xff]  ;;  %v14423_v55 = vld [vmem:[#allocation57_spill] sm:$0xff]  ;;  %vm13970_vm5 = vcmask 982016   ;;  %s8830_s23 = sshll.u32 %s8906_s15, 4  ;;  %s8831_s23 = int_to_ptr.vmem [resolvable:$false] %s8830_s23 }
 0x3cf   : > { %v10653_v42 = vpop.permute.xlu0 %1036  ;;  %2307 = vperm.xlu1 %8281, %v378_v39   ;;  %v10655_v30 = vpop.permute.xlu1 %1038  ;;  %v1315_v39 = vsel %vm14408_vm10, %v1298_v18, %v14420_v32  ;;  %v1333_v25 = vsel %vm14422_vm3, %v1316_v41, %v14421_v52  ;;  %v1399_v53 = vsel %vm1395_vm4, %v1382_v63, %v14423_v55  ;;  %v14424_v46 = vld [vmem:[#allocation61_spill] sm:$0xff]  ;;  %vm14425_vm0 = vmmov %vm14419_vm1  ;;  %v14426_v51 = vld [vmem:[#allocation55_spill] sm:$0xff]  ;;  %vm14430_vm1 = vcmask 392192   ;;  %s8832_s30 = scalar_lea.vmem %s8831_s23, 4096 }
 0x3d0   : > { %14413 = vst [vmem:[#allocation19_spill] sm:$0xff] %v10655_v30  ;;  %2302 = vperm.xlu0 %8280, %v377_v59   ;;  %v1284_v59 = vsel %vm14425_vm0, %v1267_v12, %v14424_v46  ;;  %v1398_v16 = vsel %vm1395_vm4, %v1381_v45, %v14426_v51  ;;  %v14427_v38 = vld [vmem:[#allocation64_spill] sm:$0xff]  ;;  %v14428_v32 = vld [vmem:[#allocation67_spill] sm:$0xff]  ;;  %v14429_v52 = vld [vmem:[#allocation66_spill] sm:$0xff] }
 0x3d1   : > { %v1430_v26 = vsel %vm13905_vm15, %v1413_v3, %v14427_v38  ;;  %v1431_v63 = vsel %vm13905_vm15, %v1414_v1, %v14428_v32  ;;  %v1300_v12 = vsel %vm14430_vm1, %v1283_v50, %v14429_v52  ;;  %v14431_v55 = vld [vmem:[#allocation76_spill] sm:$0xff]  ;;  %vm14432_vm10 = vmmov %vm14422_vm3  ;;  %v14433_v45 = vld [vmem:[#allocation87_spill] sm:$0xff]  ;;  %vm14434_vm3 = vcmask 588800  }
 0x3d2   : > { %v1332_v46 = vsel %vm14432_vm10, %v1315_v39, %v14431_v55  ;;  %v1350_v51 = vsel %vm14434_vm3, %v1333_v25, %v14433_v45  ;;  %v14435_v3 = vld [vmem:[#allocation65_spill] sm:$0xff]  ;;  %vm14437_vm0 = vmmov %vm14430_vm1  ;;  %v14438_v30 = vld [vmem:[#allocation72_spill] sm:$0xff]  ;;  %vm14445_vm1 = vcmask 457728  }
 0x3d3   : > { %v10682_v18 = vpop.permute.xlu0 %1080  ;;  %2317 = vperm.xlu1 %8281, %v380_v44   ;;  %v10684_v41 = vpop.permute.xlu1 %1082  ;;  %v1416_v38 = vsel %vm13973_vm12, %v1399_v53, %v14435_v3  ;;  %v14436_v40 = vld [vmem:[#allocation69_spill] sm:$0xff]  ;;  %v10700_v36 = vsel %vm13970_vm5, %v1430_v26, %v14438_v30  ;;  %v14440_v1 = vld [vmem:[#allocation75_spill] sm:$0xff]  ;;  %v14442_v32 = vld [vmem:[#allocation62_spill] sm:$0xff] }
 0x3d4   : > { %2312 = vperm.xlu0 %8280, %v379_v57   ;;  %v1301_v44 = vsel %vm14437_vm0, %v1284_v59, %v14436_v40  ;;  %14439 = vst [vmem:[#allocation18_spill] sm:$0xff] %v10700_v36  ;;  %v10704_v50 = vsel %vm13970_vm5, %v1431_v63, %v14440_v1  ;;  %v1415_v39 = vsel %vm13973_vm12, %v1398_v16, %v14442_v32  ;;  %v14443_v52 = vld [vmem:[#allocation70_spill] sm:$0xff]  ;;  %v14446_v55 = vld [vmem:[#allocation84_spill] sm:$0xff]  ;;  %vm14447_vm10 = vmmov %vm14434_vm3  ;;  %vm14449_vm3 = vcmask 654336  }
 0x3d5   : > { %14441 = vst [vmem:[#allocation24_spill] sm:$0xff] %v10704_v50  ;;  %v1432_v25 = vsel %vm13905_vm15, %v1415_v39, %v14443_v52  ;;  %v14444_v57 = vld [vmem:[#allocation74_spill] sm:$0xff]  ;;  %v1349_v40 = vsel %vm14447_vm10, %v1332_v46, %v14446_v55  ;;  %v14448_v59 = vld [vmem:[#allocation95_spill] sm:$0xff]  ;;  %v14452_v63 = vld [vmem:[#allocation73_spill] sm:$0xff]  ;;  %v1464_v16 = vmul.f32 %v10680_v11, %v10700_v36  ;;  %v1465_v1 = vmul.f32 %v10680_v11, %v10704_v50 }
 0x3d6   : > { %v1317_v53 = vsel %vm14445_vm1, %v1300_v12, %v14444_v57  ;;  %v1367_v30 = vsel %vm14449_vm3, %v1350_v51, %v14448_v59  ;;  %v1433_v3 = vsel %vm13905_vm15, %v1416_v38, %v14452_v63  ;;  %v14453_v12 = vld [vmem:[#allocation77_spill] sm:$0xff]  ;;  %vm14454_vm0 = vmmov %vm14445_vm1  ;;  %v8808_v46 = vld [vmem:[%s13802_s2 + $0x8] ss:$0 sm:$0xff]  ;;  %vm14460_vm1 = vcmask 523264  }
 0x3d7   : > { %v10716_v26 = vpop.permute.xlu0 %708  ;;  %v10718_v45 = vpop.permute.xlu1 %710  ;;  %v1318_v32 = vsel %vm14454_vm0, %v1301_v44, %v14453_v12  ;;  %v14455_v51 = vld [vmem:[#allocation78_spill] sm:$0xff]  ;;  %v14457_v38 = vld [vmem:[#allocation81_spill] sm:$0xff]  ;;  %v14461_v44 = vld [vmem:[#allocation92_spill] sm:$0xff] }
 0x3d8   : > { %14450 = vst [vmem:[#allocation25_spill] sm:$0xff] %v10716_v26  ;;  %14451 = vst [vmem:[#allocation23_spill] sm:$0xff] %v10718_v45  ;;  %1803 = vrot.lane.b32.xlu0 %v8808_v46, %s14297_s24  ;;  %v10734_v39 = vsel %vm13970_vm5, %v1432_v25, %v14455_v51  ;;  %v10738_v52 = vsel %vm13970_vm5, %v1433_v3, %v14457_v38  ;;  %v14459_v57 = vld [vmem:[#allocation82_spill] sm:$0xff]  ;;  %v14463_v63 = vld [vmem:[#allocation103_spill] sm:$0xff]  ;;  %v1480_v45 = vmul.f32 1.442695, %v1464_v16 }
 0x3d9   : > { %14456 = vst [vmem:[#allocation22_spill] sm:$0xff] %v10734_v39  ;;  %14458 = vst [vmem:[#allocation30_spill] sm:$0xff] %v10738_v52  ;;  %v1334_v55 = vsel %vm14460_vm1, %v1317_v53, %v14459_v57  ;;  %v14465_v46 = vld [vmem:[#allocation85_spill] sm:$0xff]  ;;  %v14467_v51 = vld [vmem:[#allocation100_spill] sm:$0xff]  ;;  %v1482_v53 = vmul.f32 1.442695, %v1465_v1  ;;  %v1467_v37 = vmul.f32 %v10680_v11, %v10738_v52 }
 0x3da   : > { %vm14462_vm10 = vmmov %vm14449_vm3  ;;  %vm14464_vm3 = vcmask 719872   ;;  %v14471_v57 = vld [vmem:[#allocation111_spill] sm:$0xff]  ;;  %v14475_v16 = vld [vmem:[#allocation93_spill] sm:$0xff]  ;;  %8352 = vpow2.f32 %v1480_v45  ;;  %v8345_v45 = vpop.eup %8344 }
 0x3db   : > { %v1366_v59 = vsel %vm14462_vm10, %v1349_v40, %v14461_v44  ;;  %v1384_v12 = vsel %vm14464_vm3, %v1367_v30, %v14463_v63  ;;  %vm14466_vm0 = vmmov %vm14460_vm1  ;;  %v10752_v38 = vpop.permute.xlu0 %752  ;;  %v10754_v14 = vpop.permute.xlu1 %754  ;;  %v1466_v40 = vmul.f32 %v10680_v11, %v10734_v39  ;;  %v14472_v44 = vld [vmem:[#allocation90_spill] sm:$0xff]  ;;  %vm14473_vm1 = vcmask 588800  }
 0x3dc   : > { %v1335_v25 = vsel %vm14466_vm0, %v1318_v32, %v14465_v46  ;;  %vm14468_vm15 = vmmov %vm14464_vm3  ;;  %14469 = vst [vmem:[#allocation31_spill] sm:$0xff] %v10752_v38  ;;  %v1351_v32 = vsel %vm14473_vm1, %v1334_v55, %v14472_v44  ;;  %v14474_v63 = vld [vmem:[#allocation118_spill] sm:$0xff]  ;;  %v14478_v38 = vld [vmem:[#allocation139_spill] sm:$0xff]  ;;  %vm14479_vm10 = vcmask 916480   ;;  %8354 = vpow2.f32 %v1482_v53 }
 0x3dd   : > { %v1383_v3 = vsel %vm14468_vm15, %v1366_v59, %v14467_v51  ;;  %14470 = vst [vmem:[#allocation32_spill] sm:$0xff] %v10754_v14  ;;  %v1401_v59 = vsel %vm1395_vm4, %v1384_v12, %v14474_v63  ;;  %vm14476_vm15 = vmmov %vm14473_vm1  ;;  %v14477_v51 = vld [vmem:[#allocation133_spill] sm:$0xff]  ;;  %v14482_v44 = vld [vmem:[#allocation148_spill] sm:$0xff]  ;;  %v1484_v15 = vmul.f32 1.442695, %v1466_v40  ;;  %vm14488_vm0 = vcmask 654336  }
 0x3de   : > { %v1400_v30 = vsel %vm1395_vm4, %v1383_v3, %v14471_v57  ;;  %v1352_v1 = vsel %vm14476_vm15, %v1335_v25, %v14475_v16  ;;  %v1418_v14 = vsel %vm13973_vm12, %v1401_v59, %v14477_v51  ;;  %v14480_v57 = vld [vmem:[#allocation142_spill] sm:$0xff]  ;;  %vm14481_vm3 = vmmov %vm14479_vm10  ;;  %v14489_v59 = vld [vmem:[#allocation101_spill] sm:$0xff]  ;;  %v1486_v16 = vmul.f32 1.442695, %v1467_v37 }
 0x3df   : > { %v1417_v46 = vsel %vm13973_vm12, %v1400_v30, %v10020_v24  ;;  %v1435_v55 = vsel %vm14481_vm3, %v1418_v14, %v14480_v57  ;;  %v10782_v24 = vpop.permute.xlu0 %1084  ;;  %v10784_v25 = vpop.permute.xlu1 %1086  ;;  %v14485_v30 = vld [vmem:[#allocation149_spill] sm:$0xff]  ;;  %vm14490_vm1 = vmmov %vm14488_vm0  ;;  %v14491_v51 = vld [vmem:[#allocation107_spill] sm:$0xff]  ;;  %vm14492_vm15 = vcmask 719872   ;;  %8356 = vrcp.f32 %v10359_v19 }
 0x3e0   : > { %v1434_v3 = vsel %vm14479_vm10, %v1417_v46, %v14478_v38  ;;  %14484 = vst [vmem:[#allocation33_spill] sm:$0xff] %v10784_v25  ;;  %v10788_v63 = vsel %vm13970_vm5, %v1435_v55, %v14485_v30  ;;  %v14487_v38 = vld [vmem:[#allocation98_spill] sm:$0xff]  ;;  %v1369_v46 = vsel %vm14490_vm1, %v1352_v1, %v14489_v59  ;;  %v14493_v57 = vld [vmem:[#allocation124_spill] sm:$0xff]  ;;  %8358 = vrcp.f32 %v10353_v7  ;;  %v8347_v1 = vpop.eup %8346  ;;  %v14494_v55 = vld [vmem:[#allocation113_spill] sm:$0xff] }
 0x3e1   : > { %v10779_v12 = vsel %vm13970_vm5, %v1434_v3, %v14482_v44  ;;  %14486 = vst [vmem:[#allocation28_spill] sm:$0xff] %v10788_v63  ;;  %v1368_v14 = vsel %vm14488_vm0, %v1351_v32, %v14487_v38  ;;  %v1469_v40 = vmul.f32 %v10680_v11, %v10788_v63  ;;  %vm14495_vm10 = vmmov %vm14492_vm15  ;;  %v14496_v30 = vld [vmem:[#allocation137_spill] sm:$0xff]  ;;  %8360 = vpow2.f32 %v1484_v15  ;;  %v14498_v59 = vld [vmem:[#allocation146_spill] sm:$0xff] }
 0x3e2   : > { %14483 = vst [vmem:[#allocation29_spill] sm:$0xff] %v10779_v12  ;;  %v1385_v0 = vsel %vm14492_vm15, %v1368_v14, %v14491_v51  ;;  %v1468_v3 = vmul.f32 %v10680_v11, %v10779_v12  ;;  %v1386_v44 = vsel %vm14495_vm10, %v1369_v46, %v14494_v55  ;;  %v14497_v38 = vld [vmem:[#allocation129_spill] sm:$0xff]  ;;  %8362 = vpow2.f32 %v1486_v16  ;;  %v14499_v7 = vld [vmem:[#allocation140_spill] sm:$0xff]  ;;  %v14500_v26 = vld [vmem:[#allocation154_spill] sm:$0xff]  ;;  %v8349_v16 = vpop.eup %8348 }
 0x3e3   : > { %v1402_v53 = vsel %vm1395_vm4, %v1385_v0, %v14493_v57  ;;  %v10804_v32 = vpop.permute.xlu0 %1128  ;;  %v10806_v37 = vpop.permute.xlu1 %1130  ;;  %v1403_v14 = vsel %vm1395_vm4, %v1386_v44, %v14497_v38  ;;  %v14502_v46 = vld [vmem:[#allocation147_spill] sm:$0xff]  ;;  %vm14503_vm0 = vmmov %vm14481_vm3  ;;  %v2225_v15 = vmul.f32 %v8347_v1, %v10168_v2  ;;  %v2224_v44 = vmul.f32 %v8345_v45, %v10161_v20 }
 0x3e4   : > { %v1419_v19 = vsel %vm13973_vm12, %v1402_v53, %v14496_v30  ;;  %v1420_v0 = vsel %vm13973_vm12, %v1403_v14, %v14499_v7  ;;  %v1488_v57 = vmul.f32 1.442695, %v1468_v3  ;;  %v1490_v53 = vmul.f32 1.442695, %v1469_v40  ;;  %v14506_v38 = vld [vmem:[#allocation155_spill] sm:$0xff]  ;;  %v8351_v14 = vpop.eup %8350 }
 0x3e5   : > { %v1436_v51 = vsel %vm14481_vm3, %v1419_v19, %v14498_v59  ;;  %v1437_v55 = vsel %vm14503_vm0, %v1420_v0, %v14502_v46  ;;  %v2321_v59 = vmul.f32 %v10445_v54, %v2225_v15  ;;  %v2320_v40 = vmul.f32 %v10449_v62, %v2224_v44  ;;  %v10838_v2 = vpop.eup %8352 }
 0x3e6   : > { %v10820_v25 = vsel %vm13970_vm5, %v1436_v51, %v14500_v26  ;;  %v10832_v3 = vsel %vm13970_vm5, %v1437_v55, %v14506_v38  ;;  %14508 = vst [vmem:[#allocation54_spill] sm:$0xff] %v10838_v2  ;;  %8364 = vpow2.f32 %v1488_v57  ;;  %v10840_v20 = vpop.eup %8354  ;;  %v2226_v0 = vmul.f32 %v8349_v16, %v10156_v35 }
 0x3e7   : > { %14501 = vst [vmem:[#allocation36_spill] sm:$0xff] %v10820_v25  ;;  %v10826_v30 = vpop.permute.xlu0 %2262  ;;  %v10828_v19 = vpop.permute.xlu1 %2267  ;;  %14507 = vst [vmem:[#allocation46_spill] sm:$0xff] %v10832_v3  ;;  %v1470_v26 = vmul.f32 %v10680_v11, %v10820_v25  ;;  %8366 = vpow2.f32 %v1490_v53  ;;  %v1471_v45 = vmul.f32 %v10680_v11, %v10832_v3  ;;  %v2227_v46 = vmul.f32 %v8351_v14, %v10163_v9 }
 0x3e8   : > { %14504 = vst [vmem:[#allocation37_spill] sm:$0xff] %v10826_v30  ;;  %14505 = vst [vmem:[#allocation39_spill] sm:$0xff] %v10828_v19  ;;  %8368 = vrcp.f32 %v10351_v58  ;;  %v2337_v57 = vmul.f32 %v10840_v20, %v2321_v59  ;;  %v2336_v53 = vmul.f32 %v10838_v2, %v2320_v40  ;;  %v2322_v44 = vmul.f32 %v10465_v43, %v2226_v0  ;;  %v10876_v59 = vpop.f32.mrb[16].mxu0  ;;  %v14537_v2 = vld [vmem:[#allocation83_spill] sm:$0xff] }
 0x3e9   : > { %14509 = vst [vmem:[#allocation35_spill] sm:$0xff] %v10840_v20  ;;  %v8357_v7 = vpop.eup %8356  ;;  %v1492_v15 = vmul.f32 1.442695, %v1470_v26  ;;  %8370 = vrcp.f32 %v10348_v4  ;;  %v2323_v38 = vmul.f32 %v10469_v34, %v2227_v46  ;;  %v1494_v62 = vmul.f32 1.442695, %v1471_v45  ;;  %14514 = vst [vmem:[#allocation45_spill] sm:$0xff] %v10876_v59 }
 0x3ea   : > { %v8359_v55 = vpop.eup %8358  ;;  %vm13961_vm1 = vcmp.eq.f32.partialorder %v10700_v36, 0.0  ;;  %vm13920_vm15 = vcmp.eq.f32.partialorder %v10704_v50, 0.0  ;;  %v2228_v4 = vmul.f32 %v8357_v7, %v10176_v8  ;;  %vm13969_vm10 = vcmp.eq.f32.partialorder %v10734_v39, 0.0  ;;  %v14677_v59 = vld [vmem:[#allocation186_spill] sm:$0xff] }
 0x3eb   : > { %v10844_v1 = vpop.permute.xlu0 %756  ;;  %v10846_v51 = vpop.permute.xlu1 %758  ;;  %v2229_v16 = vmul.f32 %v8359_v55, %v10188_v21  ;;  %8372 = vpow2.f32 %v1492_v15  ;;  %v10870_v14 = vsel %vm13920_vm15, 0.0, %v2337_v57  ;;  %v10874_v26 = vsel %vm13961_vm1, 0.0, %v2336_v53 }
 0x3ec   : > { %v10856_v54 = vpop.eup %8360  ;;  %14512 = vst [vmem:[#allocation42_spill] sm:$0xff] %v10870_v14  ;;  %14513 = vst [vmem:[#allocation43_spill] sm:$0xff] %v10874_v26  ;;  %v2324_v40 = vmul.f32 %v10826_v30, %v2228_v4  ;;  %v10882_v21 = vpop.f32.mrb[17].mxu0  ;;  %8374 = vpow2.f32 %v1494_v62  ;;  %vm13957_vm3 = vcmp.eq.f32.partialorder %v10738_v52, 0.0  ;;  %v2369_v53 = vand.u32 2147483647, %v10870_v14 }
 0x3ed   : > { %14510 = vst [vmem:[#allocation38_spill] sm:$0xff] %v10856_v54  ;;  %v10862_v9 = vpop.eup %8362  ;;  %v2325_v45 = vmul.f32 %v10828_v19, %v2229_v16  ;;  %v2338_v0 = vmul.f32 %v10856_v54, %v2322_v44  ;;  %v10891_v15 = vpop.f32.mrb[18].mxu0  ;;  %v2368_v44 = vand.u32 2147483647, %v10874_v26  ;;  %vm13936_vm0 = vcmp.eq.f32.partialorder %v10779_v12, 0.0 }
 0x3ee   : > { %14511 = vst [vmem:[#allocation34_spill] sm:$0xff] %v10862_v9  ;;  %v2339_v8 = vmul.f32 %v10862_v9, %v2323_v38  ;;  %14516 = vst [vmem:[#allocation63_spill] sm:$0xff] %v10891_v15  ;;  %v10898_v38 = vpop.f32.mrb[19].mxu0  ;;  %vm13935_vm15 = vcmp.eq.f32.partialorder %v10788_v63, 0.0 }
 0x3ef   : > { %v10858_v58 = vpop.permute.xlu0 %800  ;;  %v10860_v35 = vpop.permute.xlu1 %802  ;;  %v10902_v4 = vsel %vm13969_vm10, 0.0, %v2338_v0 }
 0x3f0   : > { %v10888_v55 = vpop.eup %8364  ;;  %14518 = vst [vmem:[#allocation44_spill] sm:$0xff] %v10902_v4  ;;  %v10906_v16 = vsel %vm13957_vm3, 0.0, %v2339_v8  ;;  %v2370_v0 = vand.u32 2147483647, %v10902_v4  ;;  %v10918_v52 = vpop.f32.mrb[20].mxu0  ;;  %vm14540_vm3 = vcmask 130048  }
 0x3f1   : > { %14515 = vst [vmem:[#allocation53_spill] sm:$0xff] %v10888_v55  ;;  %v10893_v57 = vpop.eup %8366  ;;  %14519 = vst [vmem:[#allocation40_spill] sm:$0xff] %v10906_v16  ;;  %v2340_v19 = vmul.f32 %v10888_v55, %v2324_v40  ;;  %v2371_v8 = vand.u32 2147483647, %v10906_v16  ;;  %v14550_v4 = vld [vmem:[#allocation104_spill] sm:$0xff] }
 0x3f2   : > { %14517 = vst [vmem:[#allocation41_spill] sm:$0xff] %v10893_v57  ;;  %v8369_v62 = vpop.eup %8368  ;;  %v2341_v50 = vmul.f32 %v10893_v57, %v2325_v45  ;;  %v10930_v57 = vpop.f32.mrb[21].mxu0  ;;  %vm14542_vm1 = vmmov %vm14540_vm3 }
 0x3f3   : > { %v10884_v7 = vpop.permute.xlu0 %1132  ;;  %v10886_v46 = vpop.permute.xlu1 %1134  ;;  %v2230_v40 = vmul.f32 %v8369_v62, %v10172_v6  ;;  %14522 = vst [vmem:[#allocation51_spill] sm:$0xff] %v10930_v57  ;;  %v14689_v57 = vld [vmem:[#allocation14_spill] sm:$0xff] }
 0x3f4   : > { %v8371_v30 = vpop.eup %8370 }
 0x3f5   : > { %v2231_v45 = vmul.f32 %v8371_v30, %v10182_v10  ;;  %v10932_v55 = vpop.eup %8372  ;;  %v10940_v30 = vpop.f32.mrb[22].mxu0 }
 0x3f6   : > { %14523 = vst [vmem:[#allocation60_spill] sm:$0xff] %v10932_v55  ;;  %14526 = vst [vmem:[#allocation52_spill] sm:$0xff] %v10940_v30  ;;  %v10946_v63 = vpop.f32.mrb[23].mxu0 }
 0x3f7   : > { %2386 = vadd.xlane.f32.xlu0 %v2369_v53  ;;  %v10910_v20 = vpop.permute.xlu0 %1176  ;;  %2384 = vadd.xlane.f32.xlu1 %v2368_v44  ;;  %v10912_v9 = vpop.permute.xlu1 %1178  ;;  %v10924_v53 = vsel %vm13936_vm0, 0.0, %v2340_v19  ;;  %v10928_v44 = vsel %vm13935_vm15, 0.0, %v2341_v50  ;;  %14528 = vst [vmem:[#allocation56_spill] sm:$0xff] %v10946_v63  ;;  %vm13954_vm15 = vcmp.eq.f32.partialorder %v10820_v25, 0.0  ;;  %vm13945_vm0 = vcmp.eq.f32.partialorder %v10832_v3, 0.0  ;;  %v14687_v63 = vld [vmem:[#allocation199_spill] sm:$0xff] }
 0x3f8   : > { %14520 = vst [vmem:[#allocation49_spill] sm:$0xff] %v10924_v53  ;;  %14521 = vst [vmem:[#allocation50_spill] sm:$0xff] %v10928_v44  ;;  %v10942_v19 = vpop.eup %8374  ;;  %v2372_v50 = vand.u32 2147483647, %v10924_v53  ;;  %v2373_v62 = vand.u32 2147483647, %v10928_v44 }
 0x3f9   : > { %14527 = vst [vmem:[#allocation47_spill] sm:$0xff] %v10942_v19 }
 0x3fb   : > { %v10934_v34 = vpop.permute.xlu0 %2272  ;;  %2388 = vadd.xlane.f32.xlu0 %v2370_v0  ;;  %2390 = vadd.xlane.f32.xlu1 %v2371_v8  ;;  %v10936_v36 = vpop.permute.xlu1 %2277 }
 0x3fc   : > { %14524 = vst [vmem:[#allocation71_spill] sm:$0xff] %v10934_v34  ;;  %14525 = vst [vmem:[#allocation48_spill] sm:$0xff] %v10936_v36  ;;  %v2326_v6 = vmul.f32 %v10934_v34, %v2230_v40  ;;  %v2327_v10 = vmul.f32 %v10936_v36, %v2231_v45 }
 0x3fe   : > { %v2342_v12 = vmul.f32 %v10932_v55, %v2326_v6  ;;  %v2343_v0 = vmul.f32 %v10942_v19, %v2327_v10  ;;  %v10966_v19 = vpop.f32.mrb[24].mxu0 }
 0x3ff   : > { %v10952_v8 = vpop.permute.xlu0 %804  ;;  %2392 = vadd.xlane.f32.xlu0 %v2372_v50  ;;  %2394 = vadd.xlane.f32.xlu1 %v2373_v62  ;;  %v10954_v40 = vpop.permute.xlu1 %806  ;;  %14531 = vst [vmem:[#allocation68_spill] sm:$0xff] %v10966_v19 }
 0x400   : > { %v10958_v45 = vsel %vm13954_vm15, 0.0, %v2342_v12  ;;  %v10962_v36 = vsel %vm13945_vm0, 0.0, %v2343_v0  ;;  %v10968_v55 = vpop.f32.mrb[25].mxu0  ;;  %v14535_v0 = vld [vmem:[#allocation80_spill] sm:$0xff]  ;;  %vm14536_vm0 = vcmask 64512  }
 0x401   : > { %14529 = vst [vmem:[#allocation59_spill] sm:$0xff] %v10958_v45  ;;  %14530 = vst [vmem:[#allocation58_spill] sm:$0xff] %v10962_v36  ;;  %v2374_v6 = vand.u32 2147483647, %v10958_v45  ;;  %v2375_v10 = vand.u32 2147483647, %v10962_v36  ;;  %v1217_v3 = vsel %vm14536_vm0, %v10231_v61, %v14535_v0 }
 0x402   : > { %14532 = vst [vmem:[#allocation79_spill] sm:$0xff] %v10968_v55  ;;  %v10974_v12 = vpop.f32.mrb[26].mxu0  ;;  %vm14538_vm15 = vmmov %vm14536_vm0  ;;  %v14541_v36 = vld [vmem:[#allocation91_spill] sm:$0xff] }
 0x403   : > { %v10970_v50 = vpop.permute.xlu0 %848  ;;  %2396 = vadd.xlane.f32.xlu0 %v2374_v6  ;;  %2398 = vadd.xlane.f32.xlu1 %v2375_v10  ;;  %v10972_v62 = vpop.permute.xlu1 %850  ;;  %14533 = vst [vmem:[#allocation57_spill] sm:$0xff] %v10974_v12  ;;  %v1218_v54 = vsel %vm14538_vm15, %v10226_v60, %v14537_v2  ;;  %v8288_v6 = vld [vmem:[%s13801_s1 + $0x50] sm:$0xff]   ;;  %v8289_v60 = vld [vmem:[%s13801_s1 + $0x58] sm:$0xff]   ;;  %vm14545_vm15 = vcmask 195584  }
 0x404   : > { %v10976_v25 = vpop.f32.mrb[27].mxu0  ;;  %v14539_v10 = vld [vmem:[#allocation88_spill] sm:$0xff]  ;;  %7672 = vmatprep.subr.bf16.mxu1 %v8288_v6  ;;  %v1235_v45 = vsel %vm14542_vm1, %v1218_v54, %v14541_v36  ;;  %vm14551_vm1 = vcmask 261120  }
 0x405   : > { %14534 = vst [vmem:[#allocation61_spill] sm:$0xff] %v10976_v25  ;;  %v1234_v43 = vsel %vm14540_vm3, %v1217_v3, %v14539_v10  ;;  %7673 = vmatpush3.bf16.msra.mxu1 %v8288_v6  ;;  %v10999_v44 = vpop.f32.mrb[28].mxu0  ;;  %v14544_v2 = vld [vmem:[#allocation96_spill] sm:$0xff]  ;;  %v14547_v3 = vld [vmem:[#allocation99_spill] sm:$0xff]  ;;  %vm14548_vm3 = vmmov %vm14545_vm15 }
 0x406   : > { %14543 = vst [vmem:[#allocation55_spill] sm:$0xff] %v10999_v44  ;;  %v1251_v53 = vsel %vm14545_vm15, %v1234_v43, %v14544_v2  ;;  %v11006_v16 = vpop.f32.mrb[29].mxu0  ;;  %v1252_v10 = vsel %vm14548_vm3, %v1235_v45, %v14547_v3  ;;  %7674 = vmatprep.subr.bf16.mxu1 %v8289_v60  ;;  %v14553_v44 = vld [vmem:[#allocation110_spill] sm:$0xff]  ;;  %vm14554_vm0 = vmmov %vm14551_vm1  ;;  %v14556_v45 = vld [vmem:[#allocation119_spill] sm:$0xff]  ;;  %vm14557_vm3 = vcmask 326656  }
 0x407   : > { %v10981_v34 = vpop.permute.xlu0 %1180  ;;  %v10983_v39 = vpop.permute.xlu1 %1182  ;;  %14546 = vst [vmem:[#allocation64_spill] sm:$0xff] %v11006_v16  ;;  %v1268_v26 = vsel %vm14551_vm1, %v1251_v53, %v14550_v4  ;;  %v1269_v43 = vsel %vm14554_vm0, %v1252_v10, %v14553_v44  ;;  %vm14555_vm15 = vmmov %vm14554_vm0  ;;  %vm14560_vm1 = vcmask 64512   ;;  %v14561_v53 = vld [vmem:[#allocation127_spill] sm:$0xff]  ;;  %v14563_v10 = vld [vmem:[#allocation89_spill] sm:$0xff] }
 0x408   : > { %v11010_v54 = vpop.f32.mrb[30].mxu0  ;;  %v1285_v2 = vsel %vm14557_vm3, %v1268_v26, %v14556_v45  ;;  %vm14558_vm10 = vmmov %vm14554_vm0  ;;  %v14567_v45 = vld [vmem:[#allocation97_spill] sm:$0xff]  ;;  %v14569_v25 = vld [vmem:[#allocation138_spill] sm:$0xff] }
 0x409   : > { %14549 = vst [vmem:[#allocation67_spill] sm:$0xff] %v11010_v54  ;;  %7675 = vmatpush3.bf16.msra.mxu1 %v8289_v60  ;;  %v11018_v14 = vpop.f32.mrb[31].mxu0  ;;  %v14559_v60 = vld [vmem:[#allocation86_spill] sm:$0xff]  ;;  %vm14562_vm5 = vmmov %vm14557_vm3  ;;  %vm14568_vm3 = vcmask 130048  }
 0x40a   : > { %14552 = vst [vmem:[#allocation66_spill] sm:$0xff] %v11018_v14  ;;  %v1219_v4 = vsel %vm14560_vm1, %v10221_v31, %v14559_v60  ;;  %v1286_v44 = vsel %vm14562_vm5, %v1269_v43, %v14561_v53  ;;  %vm14564_vm0 = vmmov %vm14560_vm1  ;;  %v14565_v14 = vld [vmem:[#allocation134_spill] sm:$0xff]  ;;  %v14573_v60 = vld [vmem:[#allocation144_spill] sm:$0xff]  ;;  %vm14574_vm5 = vcmask 457728   ;;  %vm14576_vm1 = vcmask 195584  }
 0x40b   : > { %v10995_v61 = vpop.permute.xlu0 %852  ;;  %v10997_v0 = vpop.permute.xlu1 %854  ;;  %v1236_v16 = vsel %vm14568_vm3, %v1219_v4, %v14567_v45  ;;  %v14571_v31 = vld [vmem:[#allocation94_spill] sm:$0xff] }
 0x40c   : > { %7677 = vmatmul.mubr.msk.bf16.vlgmr.msra.gmra.mrb[32].mxu1 %vm14555_vm15, %v9052_v13  ;;  %v1220_v13 = vsel %vm14564_vm0, %v10216_v33, %v14563_v10  ;;  %vm14566_vm15 = vcmask 392192   ;;  %v14575_v33 = vld [vmem:[#allocation105_spill] sm:$0xff]  ;;  %vm14578_vm0 = vmmov %vm14574_vm5 }
 0x40d   : > { %7680 = vmatprep.mubr.msk.bf16.mxu1 %vm14558_vm10, %v9061_v17  ;;  %v1302_v26 = vsel %vm14566_vm15, %v1285_v2, %v14565_v14  ;;  %vm14570_vm12 = vmmov %vm14566_vm15  ;;  %v1253_v10 = vsel %vm14576_vm1, %v1236_v16, %v14575_v33  ;;  %v14577_v14 = vld [vmem:[#allocation145_spill] sm:$0xff]  ;;  %vm14579_vm15 = vcmask 261120   ;;  %v14585_v16 = vld [vmem:[#allocation115_spill] sm:$0xff] }
 0x40e   : > { %v1303_v17 = vsel %vm14570_vm12, %v1286_v44, %v14569_v25  ;;  %vm14572_vm10 = vmmov %vm14568_vm3  ;;  %v1319_v53 = vsel %vm14574_vm5, %v1302_v26, %v14573_v60  ;;  %v14583_v26 = vld [vmem:[#allocation152_spill] sm:$0xff]  ;;  %v14589_v33 = vld [vmem:[#allocation122_spill] sm:$0xff] }
 0x40f   : > { %v11012_v36 = vpop.permute.xlu0 %896  ;;  %v11014_v6 = vpop.permute.xlu1 %898  ;;  %v1237_v43 = vsel %vm14572_vm10, %v1220_v13, %v14571_v31  ;;  %v1320_v2 = vsel %vm14578_vm0, %v1303_v17, %v14577_v14  ;;  %vm14580_vm12 = vmmov %vm14579_vm15  ;;  %v14581_v13 = vld [vmem:[#allocation102_spill] sm:$0xff]  ;;  %vm14584_vm10 = vcmask 523264   ;;  %v14587_v17 = vld [vmem:[#allocation153_spill] sm:$0xff] }
 0x410   : > { %vm14582_vm3 = vmmov %vm14576_vm1  ;;  %v1336_v45 = vsel %vm14584_vm10, %v1319_v53, %v14583_v26  ;;  %v14595_v53 = vld [vmem:[#allocation161_spill] sm:$0xff] }
 0x411   : > { %v1254_v44 = vsel %vm14582_vm3, %v1237_v43, %v14581_v13  ;;  %vm14586_vm5 = vmmov %vm14580_vm12  ;;  %v14593_v43 = vld [vmem:[#allocation131_spill] sm:$0xff] }
 0x412   : > { %v1270_v31 = vsel %vm14586_vm5, %v1253_v10, %v14585_v16  ;;  %vm14588_vm1 = vmmov %vm14584_vm10  ;;  %v14597_v10 = vld [vmem:[#allocation136_spill] sm:$0xff] }
 0x413   : > { %v11026_v3 = vpop.permute.xlu0 %900  ;;  %v11028_v54 = vpop.permute.xlu1 %902  ;;  %v1337_v60 = vsel %vm14588_vm1, %v1320_v2, %v14587_v17  ;;  %vm14590_vm0 = vmmov %vm14586_vm5  ;;  %v14599_v2 = vld [vmem:[#allocation169_spill] sm:$0xff]  ;;  %vm14600_vm5 = vcmask 654336  }
 0x414   : > { %7681 = vmatmul.mubr.msk.bf16.gmra.mrb[36].mxu1 %vm14579_vm15, %v9083_v22  ;;  %v1271_v14 = vsel %vm14590_vm0, %v1254_v44, %v14589_v33  ;;  %v14591_v22 = vld [vmem:[#allocation160_spill] sm:$0xff]  ;;  %vm14592_vm15 = vcmask 588800   ;;  %vm14601_vm1 = vmmov %vm14590_vm0  ;;  %vm14603_vm0 = vcmask 392192  }
 0x415   : > { %7684 = vmatprep.mubr.msk.bf16.mxu1 %vm14580_vm12, %v9087_v23  ;;  %v1353_v19 = vsel %vm14592_vm15, %v1336_v45, %v14591_v22  ;;  %vm14594_vm12 = vcmask 326656   ;;  %vm14596_vm3 = vmmov %vm14592_vm15  ;;  %v14602_v22 = vld [vmem:[#allocation141_spill] sm:$0xff]  ;;  %v14604_v45 = vld [vmem:[#allocation168_spill] sm:$0xff] }
 0x416   : > { %v1287_v13 = vsel %vm14594_vm12, %v1270_v31, %v14593_v43  ;;  %v1354_v26 = vsel %vm14596_vm3, %v1337_v60, %v14595_v53  ;;  %vm14598_vm10 = vmmov %vm14594_vm12  ;;  %v1370_v17 = vsel %vm14600_vm5, %v1353_v19, %v14599_v2  ;;  %vm14606_vm12 = vcmask 719872  }
 0x417   : > { %v11046_v12 = vpop.permute.xlu0 %944  ;;  %v11048_v55 = vpop.permute.xlu1 %946  ;;  %v1288_v16 = vsel %vm14598_vm10, %v1271_v14, %v14597_v10  ;;  %v1304_v44 = vsel %vm14603_vm0, %v1287_v13, %v14602_v22  ;;  %vm14605_vm15 = vmmov %vm14600_vm5  ;;  %v1387_v31 = vsel %vm14606_vm12, %v1370_v17, %v10421_v5  ;;  %v14609_v13 = vld [vmem:[#allocation143_spill] sm:$0xff]  ;;  %v14612_v10 = vld [vmem:[#allocation150_spill] sm:$0xff] }
 0x418   : > { %v1371_v33 = vsel %vm14605_vm15, %v1354_v26, %v14604_v45  ;;  %vm14607_vm3 = vmmov %vm14601_vm1  ;;  %v1404_v14 = vsel %vm1395_vm4, %v1387_v31, %v10558_v48  ;;  %v14621_v45 = vld [vmem:[#allocation179_spill] sm:$0xff] }
 0x419   : > { %vm14608_vm10 = vmmov %vm14606_vm12  ;;  %vm14615_vm12 = vcmask 916480   ;;  %8376 = vrcp.f32 %v14621_v45  ;;  %v14639_v45 = vld [vmem:[#allocation189_spill] sm:$0xff] }
 0x41a   : > { %v1388_v19 = vsel %vm14608_vm10, %v1371_v33, %v10423_v56  ;;  %vm14610_vm5 = vmmov %vm14603_vm0  ;;  %vm14613_vm0 = vcmask 457728   ;;  %vm14617_vm10 = vcmask 982016   ;;  %v14626_v33 = vld [vmem:[#allocation181_spill] sm:$0xff] }
 0x41b   : > { %v11060_v25 = vpop.permute.xlu0 %948  ;;  %v11062_v4 = vpop.permute.xlu1 %950  ;;  %v1305_v53 = vsel %vm14610_vm5, %v1288_v16, %v14609_v13  ;;  %v1405_v26 = vsel %vm1395_vm4, %v1388_v19, %v10565_v47  ;;  %v1321_v2 = vsel %vm14613_vm0, %v1304_v44, %v14612_v10  ;;  %vm14620_vm5 = vmmov %vm14613_vm0  ;;  %vm14625_vm0 = vcmask 523264   ;;  %v14628_v19 = vld [vmem:[#allocation13_spill] sm:$0xff] }
 0x41c   : > { %7685 = vmatmul.mubr.msk.bf16.gmra.mrb[40].mxu1 %vm14601_vm1, %v9107_v28  ;;  %vm14611_vm1 = vcmask 850944   ;;  %8378 = vrcp.f32 %v14626_v33  ;;  %v14676_v28 = vld [vmem:[#allocation173_spill] sm:$0xff] }
 0x41d   : > { %7688 = vmatprep.mubr.msk.bf16.mxu1 %vm14607_vm3, %v9111_v29  ;;  %v1421_v5 = vsel %vm14611_vm1, %v1404_v14, %v10682_v18  ;;  %vm14614_vm15 = vmmov %vm14611_vm1  ;;  %v14619_v18 = vld [vmem:[#allocation151_spill] sm:$0xff] }
 0x41e   : > { %v1422_v17 = vsel %vm14614_vm15, %v1405_v26, %v10684_v41  ;;  %v1438_v56 = vsel %vm14615_vm12, %v1421_v5, %v10804_v32  ;;  %vm14616_vm3 = vmmov %vm14615_vm12  ;;  %v1322_v44 = vsel %vm14620_vm5, %v1305_v53, %v14619_v18  ;;  %v14624_v32 = vld [vmem:[#allocation158_spill] sm:$0xff]  ;;  %vm14629_vm15 = vcmask 261120   ;;  %v14630_v14 = vld [vmem:[#allocation159_spill] sm:$0xff] }
 0x41f   : > { %v11078_v15 = vpop.permute.xlu0 %992  ;;  %v11080_v23 = vpop.permute.xlu1 %994  ;;  %v1439_v48 = vsel %vm14616_vm3, %v1422_v17, %v10806_v37  ;;  %v11124_v16 = vsel %vm14617_vm10, %v1438_v56, %v10910_v20  ;;  %vm14622_vm1 = vmmov %vm14617_vm10  ;;  %v1338_v37 = vsel %vm14625_vm0, %v1321_v2, %v14624_v32  ;;  %v14627_v20 = vld [vmem:[#allocation180_spill] sm:$0xff]  ;;  %v14632_v5 = vld [vmem:[#allocation166_spill] sm:$0xff]  ;;  %vm14633_vm3 = vcmask 588800  }
 0x420   : > { %14618 = vst [vmem:[#allocation76_spill] sm:$0xff] %v11124_v16  ;;  %v11135_v41 = vsel %vm14622_vm1, %v1439_v48, %v10912_v9  ;;  %8380 = vrcp.f32 %v14627_v20  ;;  %v1472_v31 = vmul.f32 %v10680_v11, %v11124_v16  ;;  %vm14631_vm12 = vmmov %vm14625_vm0  ;;  %v1355_v10 = vsel %vm14633_vm3, %v1338_v37, %v14632_v5  ;;  %v14634_v2 = vld [vmem:[#allocation188_spill] sm:$0xff]  ;;  %v14636_v56 = vld [vmem:[#allocation167_spill] sm:$0xff] }
 0x421   : > { %14623 = vst [vmem:[#allocation87_spill] sm:$0xff] %v11135_v41  ;;  %v1339_v13 = vsel %vm14631_vm12, %v1322_v44, %v14630_v14  ;;  %v1473_v9 = vmul.f32 %v10680_v11, %v11135_v41  ;;  %vm14635_vm10 = vcmask 654336   ;;  %vm14637_vm5 = vmmov %vm14633_vm3  ;;  %vm14638_vm1 = vcmask 719872   ;;  %v14673_v29 = vld [vmem:[#allocation183_spill] sm:$0xff] }
 0x422   : > { %v1372_v17 = vsel %vm14635_vm10, %v1355_v10, %v14634_v2  ;;  %v1356_v48 = vsel %vm14637_vm5, %v1339_v13, %v14636_v56  ;;  %v1496_v44 = vmul.f32 1.442695, %v1472_v31  ;;  %vm14640_vm0 = vmmov %vm14635_vm10  ;;  %vm14642_vm12 = vcmask 850944   ;;  %v14643_v10 = vld [vmem:[#allocation156_spill] sm:$0xff]  ;;  %v14646_v2 = vld [vmem:[#allocation19_spill] sm:$0xff] }
 0x423   : > { %v11098_v43 = vpop.permute.xlu0 %996  ;;  %v11100_v60 = vpop.permute.xlu1 %998  ;;  %v1389_v18 = vsel %vm14638_vm1, %v1372_v17, %v10530_v27  ;;  %v1373_v32 = vsel %vm14640_vm0, %v1356_v48, %v14639_v45  ;;  %v1498_v20 = vmul.f32 1.442695, %v1473_v9  ;;  %v14644_v27 = vld [vmem:[#allocation198_spill] sm:$0xff]  ;;  %vm14645_vm3 = vcmask 64512   ;;  %v14648_v56 = vld [vmem:[#allocation157_spill] sm:$0xff]  ;;  %v14649_v48 = vld [vmem:[#allocation15_spill] sm:$0xff] }
 0x424   : > { %7689 = vmatmul.mubr.msk.bf16.gmra.mrb[44].mxu1 %vm14629_vm15, %v14628_v19  ;;  %v1406_v33 = vsel %vm1395_vm4, %v1389_v18, %v10653_v42  ;;  %vm14641_vm15 = vmmov %vm14638_vm1  ;;  %v1221_v31 = vsel %vm14645_vm3, %v14644_v27, %v14643_v10  ;;  %vm14647_vm10 = vcmask 916480   ;;  %v8377_v9 = vpop.eup %8376  ;;  %v14651_v45 = vld [vmem:[#allocation33_spill] sm:$0xff]  ;;  %8382 = vpow2.f32 %v1496_v44  ;;  %v14656_v10 = vld [vmem:[#allocation162_spill] sm:$0xff] }
 0x425   : > { %v1390_v5 = vsel %vm14641_vm15, %v1373_v32, %v10537_v49  ;;  %v1423_v13 = vsel %vm14642_vm12, %v1406_v33, %v10782_v24  ;;  %vm14650_vm5 = vmmov %vm14645_vm3  ;;  %vm14653_vm0 = vcmask 982016   ;;  %8384 = vpow2.f32 %v1498_v20  ;;  %v14657_v27 = vld [vmem:[#allocation27_spill] sm:$0xff]  ;;  %v14665_v20 = vld [vmem:[#allocation165_spill] sm:$0xff] }
 0x426   : > { %v1407_v17 = vsel %vm1395_vm4, %v1390_v5, %v14646_v2  ;;  %v1440_v42 = vsel %vm14647_vm10, %v1423_v13, %v10884_v7  ;;  %v1222_v18 = vsel %vm14650_vm5, %v14649_v48, %v14648_v56  ;;  %vm14652_vm1 = vmmov %vm14642_vm12  ;;  %v8379_v32 = vpop.eup %8378  ;;  %v14664_v56 = vld [vmem:[#allocation17_spill] sm:$0xff] }
 0x427   : > { %v11126_v47 = vpop.permute.xlu0 %1040  ;;  %v11128_v22 = vpop.permute.xlu1 %1042  ;;  %v1424_v49 = vsel %vm14652_vm1, %v1407_v17, %v14651_v45  ;;  %v11187_v24 = vsel %vm14653_vm0, %v1440_v42, %v10981_v34  ;;  %vm14655_vm15 = vmmov %vm14647_vm10  ;;  %v14659_v17 = vld [vmem:[#allocation164_spill] sm:$0xff]  ;;  %v14663_v42 = vld [vmem:[#allocation163_spill] sm:$0xff] }
 0x428   : > { %14654 = vst [vmem:[#allocation65_spill] sm:$0xff] %v11187_v24  ;;  %v1441_v33 = vsel %vm14655_vm15, %v1424_v49, %v10886_v46  ;;  %vm14658_vm12 = vmmov %vm14645_vm3  ;;  %vm14660_vm3 = vcmask 130048   ;;  %v1224_v46 = vsel %vm14650_vm5, %v14664_v56, %v14663_v42  ;;  %v14667_v45 = vld [vmem:[#allocation178_spill] sm:$0xff]  ;;  %v1474_v49 = vmul.f32 %v10680_v11, %v11187_v24  ;;  %v14674_v42 = vld [vmem:[#allocation185_spill] sm:$0xff] }
 0x429   : > { %v1223_v2 = vsel %vm14658_vm12, %v14657_v27, %v14656_v10  ;;  %v1238_v44 = vsel %vm14660_vm3, %v1221_v31, %v14659_v17  ;;  %vm14661_vm10 = vmmov %vm14653_vm0  ;;  %8386 = vrcp.f32 %v14667_v45  ;;  %v14668_v10 = vld [vmem:[#allocation182_spill] sm:$0xff]  ;;  %v14669_v27 = vld [vmem:[#allocation184_spill] sm:$0xff]  ;;  %vm14678_vm12 = vcmask 195584  }
 0x42a   : > { %v8381_v13 = vpop.eup %8380  ;;  %v11202_v34 = vsel %vm14661_vm10, %v1441_v33, %v10983_v39  ;;  %vm14666_vm1 = vmmov %vm14660_vm3  ;;  %8388 = vrcp.f32 %v14668_v10  ;;  %v14671_v17 = vld [vmem:[#allocation171_spill] sm:$0xff]  ;;  %v14672_v33 = vld [vmem:[#allocation170_spill] sm:$0xff] }
 0x42b   : > { %v11149_v53 = vpop.permute.xlu0 %1044  ;;  %v11151_v26 = vpop.permute.xlu1 %1046  ;;  %14662 = vst [vmem:[#allocation69_spill] sm:$0xff] %v11202_v34  ;;  %v1239_v48 = vsel %vm14666_vm1, %v1222_v18, %v14665_v20  ;;  %vm14670_vm0 = vmmov %vm14666_vm1  ;;  %v2232_v39 = vmul.f32 %v8379_v32, %v14671_v17  ;;  %v11217_v19 = vmul.f32 %v8377_v9, %v14672_v33  ;;  %8390 = vrcp.f32 %v14673_v29  ;;  %v14681_v9 = vld [vmem:[#allocation196_spill] sm:$0xff]  ;;  %v14683_v29 = vld [vmem:[#allocation197_spill] sm:$0xff] }
 0x42c   : > { %v1240_v31 = vsel %vm14670_vm0, %v1223_v2, %v14669_v27  ;;  %vm14675_vm15 = vmmov %vm14670_vm0  ;;  %v1475_v56 = vmul.f32 %v10680_v11, %v11202_v34  ;;  %v2233_v10 = vmul.f32 %v8381_v13, %v14676_v28  ;;  %v1255_v2 = vsel %vm14678_vm12, %v1238_v44, %v14677_v59  ;;  %v14679_v27 = vld [vmem:[#allocation187_spill] sm:$0xff]  ;;  %v14691_v59 = vld [vmem:[#allocation20_spill] sm:$0xff] }
 0x42d   : > { %v1241_v18 = vsel %vm14675_vm15, %v1224_v46, %v14674_v42  ;;  %vm14680_vm3 = vmmov %vm14678_vm12  ;;  %v14685_v46 = vld [vmem:[#allocation16_spill] sm:$0xff]  ;;  %vm14686_vm1 = vcmask 261120   ;;  %v1500_v13 = vmul.f32 1.442695, %v1474_v49 }
 0x42e   : > { %v1256_v32 = vsel %vm14680_vm3, %v1239_v48, %v14679_v27  ;;  %vm14682_vm10 = vmmov %vm14680_vm3  ;;  %v1272_v42 = vsel %vm14686_vm1, %v1255_v2, %v14685_v46  ;;  %v14693_v48 = vld [vmem:[#allocation21_spill] sm:$0xff]  ;;  %v14699_v2 = vld [vmem:[#allocation23_spill] sm:$0xff] }
 0x42f   : > { %v11165_v14 = vpop.permute.xlu0 %1088  ;;  %v11167_v37 = vpop.permute.xlu1 %1090  ;;  %v1257_v17 = vsel %vm14682_vm10, %v1240_v31, %v14681_v9  ;;  %vm14684_vm5 = vmmov %vm14680_vm3  ;;  %vm14694_vm3 = vcmask 326656   ;;  %v14695_v31 = vld [vmem:[#allocation26_spill] sm:$0xff]  ;;  %8392 = vpow2.f32 %v1500_v13 }
 0x430   : > { %v1258_v33 = vsel %vm14684_vm5, %v1241_v18, %v14683_v29  ;;  %vm14688_vm0 = vmmov %vm14686_vm1  ;;  %v1289_v27 = vsel %vm14694_vm3, %v1272_v42, %v14693_v48  ;;  %v14697_v18 = vld [vmem:[#allocation25_spill] sm:$0xff]  ;;  %v11257_v42 = vpop.eup %8382 }
 0x431   : > { %v1273_v30 = vsel %vm14688_vm0, %v1256_v32, %v14687_v63  ;;  %vm14690_vm15 = vmmov %vm14688_vm0  ;;  %v14701_v63 = vld [vmem:[#allocation31_spill] sm:$0xff]  ;;  %14707 = vst [vmem:[#allocation62_spill] sm:$0xff] %v11257_v42 }
 0x432   : > { %v1274_v28 = vsel %vm14690_vm15, %v1257_v17, %v14689_v57  ;;  %vm14692_vm12 = vmmov %vm14688_vm0  ;;  %vm14702_vm0 = vcmask 392192   ;;  %v14703_v57 = vld [vmem:[#allocation32_spill] sm:$0xff]  ;;  %v1502_v17 = vmul.f32 1.442695, %v1475_v56 }
 0x433   : > { %v11191_v5 = vpop.permute.xlu0 %1092  ;;  %v11193_v7 = vpop.permute.xlu1 %1094  ;;  %v1275_v44 = vsel %vm14692_vm12, %v1258_v33, %v14691_v59  ;;  %vm14696_vm10 = vmmov %vm14694_vm3  ;;  %v1306_v32 = vsel %vm14702_vm0, %v1289_v27, %v14701_v63  ;;  %vm14708_vm12 = vcmask 457728  }
 0x434   : > { %v1290_v9 = vsel %vm14696_vm10, %v1273_v30, %v14695_v31  ;;  %vm14698_vm5 = vmmov %vm14694_vm3  ;;  %v1323_v30 = vsel %vm14708_vm12, %v1306_v32, %v10858_v58  ;;  %v11265_v27 = vpop.eup %8384  ;;  %vm13984_vm10 = vcmp.eq.f32.partialorder %v11124_v16, 0.0  ;;  %8394 = vpow2.f32 %v1502_v17  ;;  %v14890_v16 = vld [vmem:[#allocation38_spill] sm:$0xff] }
 0x435   : > { %v1291_v29 = vsel %vm14698_vm5, %v1274_v28, %v14697_v18  ;;  %vm14700_vm1 = vmmov %vm14694_vm3  ;;  %14710 = vst [vmem:[#allocation70_spill] sm:$0xff] %v11265_v27  ;;  %vm14711_vm5 = vcmask 523264  }
 0x436   : > { %v1292_v46 = vsel %vm14700_vm1, %v1275_v44, %v14699_v2  ;;  %vm14704_vm15 = vmmov %vm14702_vm0  ;;  %v1340_v56 = vsel %vm14711_vm5, %v1323_v30, %v10970_v50  ;;  %vm14713_vm0 = vcmask 588800  }
 0x437   : > { %v1137_v20 = vpop.permute.xlu0 %1136  ;;  %v1139_v45 = vpop.permute.xlu1 %1138  ;;  %v1307_v49 = vsel %vm14704_vm15, %v1290_v9, %v14703_v57  ;;  %vm14709_vm3 = vmmov %vm14708_vm12  ;;  %v1357_v58 = vsel %vm14713_vm0, %v1340_v56, %v11012_v36  ;;  %vm13985_vm12 = vcmp.eq.f32.partialorder %v11135_v41, 0.0 }
 0x438   : > { %v1324_v28 = vsel %vm14709_vm3, %v1307_v49, %v10860_v35  ;;  %vm14712_vm1 = vmmov %vm14711_vm5  ;;  %v8387_v9 = vpop.eup %8386  ;;  %vm14715_vm3 = vcmask 654336  }
 0x439   : > { %v1341_v31 = vsel %vm14712_vm1, %v1324_v28, %v10972_v62  ;;  %vm14714_vm15 = vmmov %vm14713_vm0  ;;  %v1374_v50 = vsel %vm14715_vm3, %v1357_v58, %v11046_v12  ;;  %v11283_v36 = vpop.eup %8388  ;;  %vm14717_vm1 = vcmask 719872   ;;  %v14738_v58 = vld [vmem:[#allocation172_spill] sm:$0xff] }
 0x43a   : > { %v1358_v35 = vsel %vm14714_vm15, %v1341_v31, %v11014_v6  ;;  %vm14716_vm5 = vmmov %vm14715_vm3  ;;  %v1391_v6 = vsel %vm14717_vm1, %v1374_v50, %v11078_v15  ;;  %v11297_v32 = vpop.eup %8390  ;;  %vm14719_vm15 = vcmask 392192  }
 0x43b   : > { %v11253_v33 = vpop.permute.xlu0 %2282  ;;  %v11255_v59 = vpop.permute.xlu1 %2287  ;;  %v1375_v62 = vsel %vm14716_vm5, %v1358_v35, %v11048_v55  ;;  %vm14718_vm0 = vmmov %vm14717_vm1  ;;  %v1408_v55 = vsel %vm1395_vm4, %v1391_v6, %v11126_v47  ;;  %v1308_v49 = vsel %vm14719_vm15, %v1291_v29, %v10844_v1  ;;  %vm14721_vm5 = vcmask 850944   ;;  %v14723_v47 = vld [vmem:[#allocation190_spill] sm:$0xff] }
 0x43c   : > { %14705 = vst [vmem:[#allocation72_spill] sm:$0xff] %v11253_v33  ;;  %14706 = vst [vmem:[#allocation75_spill] sm:$0xff] %v11255_v59  ;;  %v2328_v44 = vmul.f32 %v11253_v33, %v2232_v39  ;;  %v2329_v48 = vmul.f32 %v11255_v59, %v2233_v10  ;;  %v1392_v2 = vsel %vm14718_vm0, %v1375_v62, %v11080_v23  ;;  %8396 = vrcp.f32 %v14723_v47  ;;  %v14891_v33 = vld [vmem:[#allocation54_spill] sm:$0xff] }
 0x43d   : > { %v1409_v57 = vsel %vm1395_vm4, %v1392_v2, %v11128_v22  ;;  %vm14720_vm3 = vmmov %vm14719_vm15  ;;  %v1425_v30 = vsel %vm14721_vm5, %v1408_v55, %v11165_v14  ;;  %vm14724_vm0 = vcmask 457728   ;;  %v2235_v35 = vmul.f32 %v8387_v9, %v14738_v58  ;;  %v14760_v58 = vld [vmem:[#allocation176_spill] sm:$0xff] }
 0x43e   : > { %v2344_v39 = vmul.f32 %v11257_v42, %v2328_v44  ;;  %v2345_v10 = vmul.f32 %v11265_v27, %v2329_v48  ;;  %v1309_v17 = vsel %vm14720_vm3, %v1292_v46, %v10846_v51  ;;  %vm14722_vm1 = vmmov %vm14721_vm5  ;;  %v1325_v22 = vsel %vm14724_vm0, %v1308_v49, %v10952_v8  ;;  %v14735_v46 = vld [vmem:[#allocation191_spill] sm:$0xff] }
 0x43f   : > { %v1141_v13 = vpop.permute.xlu0 %1140  ;;  %v1143_v18 = vpop.permute.xlu1 %1142  ;;  %v1426_v28 = vsel %vm14722_vm1, %v1409_v57, %v11167_v37  ;;  %vm14727_vm15 = vmmov %vm14724_vm0  ;;  %vm14728_vm3 = vcmask 523264   ;;  %vm14729_vm5 = vcmask 982016   ;;  %8398 = vrcp.f32 %v14735_v46 }
 0x440   : > { %v11291_v63 = vsel %vm13984_vm10, 0.0, %v2344_v39  ;;  %v11295_v12 = vsel %vm13985_vm12, 0.0, %v2345_v10  ;;  %vm14725_vm10 = vcmask 916480   ;;  %v1326_v51 = vsel %vm14727_vm15, %v1309_v17, %v10954_v40  ;;  %vm14731_vm1 = vmmov %vm14729_vm5 }
 0x441   : > { %v2376_v15 = vand.u32 2147483647, %v11291_v63  ;;  %v2377_v23 = vand.u32 2147483647, %v11295_v12  ;;  %v1442_v44 = vsel %vm14725_vm10, %v1425_v30, %v1137_v20  ;;  %vm14726_vm12 = vmmov %vm14725_vm10  ;;  %v1342_v14 = vsel %vm14728_vm3, %v1325_v22, %v10995_v61 }
 0x442   : > { %v1443_v48 = vsel %vm14726_vm12, %v1426_v28, %v1139_v45  ;;  %vm14733_vm10 = vmmov %vm14728_vm3  ;;  %vm14734_vm12 = vcmask 588800   ;;  %vm14737_vm15 = vcmask 654336  }
 0x443   : > { %v1185_v56 = vpop.permute.xlu0 %1184  ;;  %2400 = vadd.xlane.f32.xlu0 %v2376_v15  ;;  %2402 = vadd.xlane.f32.xlu1 %v2377_v23  ;;  %v1187_v1 = vpop.permute.xlu1 %1186  ;;  %v1343_v8 = vsel %vm14733_vm10, %v1326_v51, %v10997_v0  ;;  %v1359_v20 = vsel %vm14734_vm12, %v1342_v14, %v11026_v3  ;;  %vm14736_vm0 = vmmov %vm14734_vm12  ;;  %vm14744_vm10 = vcmask 850944   ;;  %v14754_v51 = vld [vmem:[#allocation174_spill] sm:$0xff] }
 0x444   : > { %v11323_v37 = vsel %vm14729_vm5, %v1442_v44, %v1185_v56  ;;  %v11326_v29 = vsel %vm14731_vm1, %v1443_v48, %v1187_v1  ;;  %v1360_v61 = vsel %vm14736_vm0, %v1343_v8, %v11028_v54  ;;  %v1376_v31 = vsel %vm14737_vm15, %v1359_v20, %v11060_v25  ;;  %v11342_v0 = vpop.eup %8392  ;;  %vm14740_vm3 = vmmov %vm14737_vm15  ;;  %v14755_v8 = vld [vmem:[#allocation175_spill] sm:$0xff] }
 0x445   : > { %14730 = vst [vmem:[#allocation74_spill] sm:$0xff] %v11323_v37  ;;  %14732 = vst [vmem:[#allocation84_spill] sm:$0xff] %v11326_v29  ;;  %v1476_v45 = vmul.f32 %v10680_v11, %v11323_v37  ;;  %v1477_v40 = vmul.f32 %v10680_v11, %v11326_v29  ;;  %v1377_v3 = vsel %vm14740_vm3, %v1360_v61, %v11062_v4  ;;  %vm14741_vm5 = vcmask 719872   ;;  %v11359_v2 = vpop.eup %8394 }
 0x446   : > { %14739 = vst [vmem:[#allocation95_spill] sm:$0xff] %v11342_v0  ;;  %v1393_v39 = vsel %vm14741_vm5, %v1376_v31, %v11098_v43  ;;  %vm14743_vm1 = vmmov %vm14741_vm5  ;;  %vm13991_vm0 = vcmp.eq.f32.partialorder %v11187_v24, 0.0  ;;  %vm13990_vm15 = vcmp.eq.f32.partialorder %v11202_v34, 0.0  ;;  %vm14746_vm3 = vcmask 916480   ;;  %v8397_v30 = vpop.eup %8396 }
 0x447   : > { %v1504_v10 = vmul.f32 1.442695, %v1476_v45  ;;  %v1506_v50 = vmul.f32 1.442695, %v1477_v40  ;;  %v11348_v62 = vpop.permute.xlu0 %2292  ;;  %v11350_v6 = vpop.permute.xlu1 %2297  ;;  %v1394_v54 = vsel %vm14743_vm1, %v1377_v3, %v11100_v60  ;;  %v1410_v25 = vsel %vm1395_vm4, %v1393_v39, %v11149_v53  ;;  %vm14745_vm12 = vmmov %vm14744_vm10 }
 0x448   : > { %14742 = vst [vmem:[#allocation73_spill] sm:$0xff] %v11348_v62  ;;  %v2330_v9 = vmul.f32 %v11348_v62, %v11217_v19  ;;  %v2331_v4 = vmul.f32 %v11350_v6, %v2235_v35  ;;  %v1411_v43 = vsel %vm1395_vm4, %v1394_v54, %v11151_v26  ;;  %v1427_v55 = vsel %vm14744_vm10, %v1410_v25, %v11191_v5  ;;  %vm14747_vm5 = vmmov %vm14746_vm3 }
 0x449   : > { %8400 = vpow2.f32 %v1504_v10  ;;  %v1428_v60 = vsel %vm14745_vm12, %v1411_v43, %v11193_v7  ;;  %v1444_v19 = vsel %vm14746_vm3, %v1427_v55, %v1141_v13  ;;  %vm14748_vm4 = vcmask 982016   ;;  %v8399_v1 = vpop.eup %8398 }
 0x44a   : > { %8402 = vpow2.f32 %v1506_v50  ;;  %v2346_v53 = vmul.f32 %v11342_v0, %v2330_v9  ;;  %v2347_v57 = vmul.f32 %v11359_v2, %v2331_v4  ;;  %v1445_v26 = vsel %vm14747_vm5, %v1428_v60, %v1143_v18  ;;  %vm14750_vm1 = vmmov %vm14748_vm4 }
 0x44b   : > { %v1189_v15 = vpop.permute.xlu0 %1188  ;;  %v1191_v23 = vpop.permute.xlu1 %1190  ;;  %v2236_v14 = vmul.f32 %v11283_v36, %v14754_v51  ;;  %vm13988_vm10 = vcmp.eq.f32.partialorder %v11323_v37, 0.0  ;;  %v2238_v35 = vmul.f32 %v8397_v30, %v14760_v58  ;;  %vm13987_vm12 = vcmp.eq.f32.partialorder %v11326_v29, 0.0 }
 0x44c   : > { %v11374_v5 = vsel %vm14748_vm4, %v1444_v19, %v1189_v15  ;;  %v11377_v7 = vsel %vm14750_vm1, %v1445_v26, %v1191_v23  ;;  %v11381_v49 = vsel %vm13991_vm0, 0.0, %v2346_v53  ;;  %v11385_v17 = vsel %vm13990_vm15, 0.0, %v2347_v57  ;;  %v14762_v57 = vld [vmem:[#allocation51_spill] sm:$0xff]  ;;  %v14763_v26 = vld [vmem:[#allocation52_spill] sm:$0xff] }
 0x44d   : > { %14749 = vst [vmem:[#allocation77_spill] sm:$0xff] %v11374_v5  ;;  %14751 = vst [vmem:[#allocation78_spill] sm:$0xff] %v11377_v7  ;;  %v1478_v13 = vmul.f32 %v10680_v11, %v11374_v5  ;;  %v1479_v18 = vmul.f32 %v10680_v11, %v11377_v7  ;;  %v2378_v28 = vand.u32 2147483647, %v11381_v49  ;;  %v2379_v47 = vand.u32 2147483647, %v11385_v17 }
 0x44e   : > { %v2237_v11 = vmul.f32 %v11297_v32, %v14755_v8  ;;  %v14761_v32 = vld [vmem:[#allocation177_spill] sm:$0xff]  ;;  %vm13989_vm3 = vcmp.eq.f32.partialorder %v11374_v5, 0.0  ;;  %v14764_v23 = vld [vmem:[#allocation56_spill] sm:$0xff]  ;;  %vm13986_vm5 = vcmp.eq.f32.partialorder %v11377_v7, 0.0  ;;  %vm14785_vm4 = vcmask 64512  }
 0x44f   : > { %v1508_v22 = vmul.f32 1.442695, %v1478_v13  ;;  %v1510_v44 = vmul.f32 1.442695, %v1479_v18  ;;  %v11393_v48 = vpop.permute.xlu0 %2302  ;;  %v11395_v56 = vpop.permute.xlu1 %2307  ;;  %2404 = vadd.xlane.f32.xlu0 %v2378_v28  ;;  %2406 = vadd.xlane.f32.xlu1 %v2379_v47  ;;  %v2239_v3 = vmul.f32 %v8399_v1, %v14761_v32  ;;  %v14765_v13 = vld [vmem:[#allocation45_spill] sm:$0xff]  ;;  %v14766_v47 = vld [vmem:[#allocation63_spill] sm:$0xff]  ;;  %vm14786_vm1 = vmmov %vm14785_vm4 }
 0x450   : > { %14752 = vst [vmem:[#allocation81_spill] sm:$0xff] %v11393_v48  ;;  %14753 = vst [vmem:[#allocation82_spill] sm:$0xff] %v11395_v56  ;;  %v2332_v20 = vmul.f32 %v11393_v48, %v2236_v14  ;;  %v2333_v40 = vmul.f32 %v11395_v56, %v2237_v11  ;;  %v14770_v8 = vld [vmem:[#allocation57_spill] sm:$0xff]  ;;  %v14773_v32 = vld [vmem:[#allocation55_spill] sm:$0xff] }
 0x451   : > { %8404 = vpow2.f32 %v1508_v22 }
 0x452   : > { %8406 = vpow2.f32 %v1510_v44  ;;  %v14767_v44 = vld [vmem:[#allocation68_spill] sm:$0xff] }
 0x453   : > { %v11402_v45 = vpop.eup %8400  ;;  %v11405_v46 = vpop.permute.xlu0 %2312 }
 0x454   : > { %14756 = vst [vmem:[#allocation92_spill] sm:$0xff] %v11402_v45  ;;  %14757 = vst [vmem:[#allocation103_spill] sm:$0xff] %v11405_v46  ;;  %v11407_v61 = vpop.eup %8402  ;;  %v11409_v31 = vpop.permute.xlu1 %2317  ;;  %v2348_v36 = vmul.f32 %v11402_v45, %v2332_v20  ;;  %v2334_v50 = vmul.f32 %v11405_v46, %v2238_v35  ;;  %v14771_v20 = vld [vmem:[#allocation61_spill] sm:$0xff] }
 0x455   : > { %14758 = vst [vmem:[#allocation85_spill] sm:$0xff] %v11407_v61  ;;  %14759 = vst [vmem:[#allocation100_spill] sm:$0xff] %v11409_v31  ;;  %v2349_v39 = vmul.f32 %v11407_v61, %v2333_v40  ;;  %v2335_v54 = vmul.f32 %v11409_v31, %v2239_v3 }
 0x456   : > { %v11420_v10 = vsel %vm13988_vm10, 0.0, %v2348_v36 }
 0x457   : > { %v2380_v25 = vand.u32 2147483647, %v11420_v10  ;;  %v11427_v9 = vsel %vm13987_vm12, 0.0, %v2349_v39  ;;  %v1804_v4 = vpop.permute.xlu0 %1803  ;;  %v14774_v39 = vld [vmem:[#allocation64_spill] sm:$0xff] }
 0x458   : > { %v2381_v43 = vand.u32 2147483647, %v11427_v9  ;;  %v1865_v55 = vadd.f32 %v10918_v52, %v1804_v4  ;;  %v1841_v60 = vadd.f32 %v10882_v21, %v1804_v4  ;;  %v1844_v53 = vadd.f32 %v10898_v38, %v1804_v4  ;;  %v14768_v52 = vld [vmem:[#allocation79_spill] sm:$0xff] }
 0x459   : > { %2408 = vadd.xlane.f32.xlu0 %v2380_v25  ;;  %v1857_v19 = vadd.f32 %v14762_v57, %v1804_v4  ;;  %v1868_v15 = vadd.f32 %v14763_v26, %v1804_v4  ;;  %v1860_v30 = vadd.f32 %v14764_v23, %v1804_v4  ;;  %v1849_v18 = vadd.f32 %v14765_v13, %v1804_v4 }
 0x45a   : > { %2410 = vadd.xlane.f32.xlu1 %v2381_v43  ;;  %v2472_v28 = vpack.c.bf16 %v1844_v53, %v1841_v60  ;;  %v1852_v22 = vadd.f32 %v14766_v47, %v1804_v4  ;;  %v1881_v1 = vadd.f32 %v14767_v44, %v1804_v4  ;;  %v1873_v51 = vadd.f32 %v14768_v52, %v1804_v4  ;;  %v14775_v53 = vld [vmem:[#allocation67_spill] sm:$0xff] }
 0x45b   : > { %v11440_v21 = vpop.eup %8404  ;;  %v2475_v38 = vpack.c.bf16 %v1868_v15, %v1865_v55  ;;  %v2474_v14 = vpack.c.bf16 %v1860_v30, %v1857_v19  ;;  %v1884_v11 = vadd.f32 %v14770_v8, %v1804_v4  ;;  %v1876_v40 = vadd.f32 %v14771_v20, %v1804_v4 }
 0x45c   : > { %14769 = vst [vmem:[#allocation111_spill] sm:$0xff] %v11440_v21  ;;  %v11444_v36 = vpop.eup %8406  ;;  %v2350_v58 = vmul.f32 %v11440_v21, %v2334_v50  ;;  %7620 = vmatprep.subr.bf16.mxu0 %v2472_v28  ;;  %v2473_v35 = vpack.c.bf16 %v1852_v22, %v1849_v18  ;;  %v1897_v3 = vadd.f32 %v14773_v32, %v1804_v4  ;;  %v14776_v50 = vld [vmem:[#allocation66_spill] sm:$0xff]  ;;  %v8290_v18 = vld [vmem:[%s13801_s1 + $0x10] sm:$0xff]  }
 0x45d   : > { %14772 = vst [vmem:[#allocation90_spill] sm:$0xff] %v11444_v36  ;;  %v1889_v25 = vadd.f32 %v14774_v39, %v1804_v4  ;;  %v2351_v43 = vmul.f32 %v11444_v36, %v2335_v54  ;;  %7621 = vmatpush3.bf16.msra.mxu0 %v2472_v28  ;;  %v2477_v60 = vpack.c.bf16 %v1884_v11, %v1881_v1 }
 0x45e   : > { %v2476_v55 = vpack.c.bf16 %v1876_v40, %v1873_v51  ;;  %v1900_v57 = vadd.f32 %v14775_v53, %v1804_v4  ;;  %v11454_v19 = vsel %vm13989_vm3, 0.0, %v2350_v58  ;;  %7622 = vmatprep.subr.bf16.mxu0 %v2473_v35  ;;  %v1892_v26 = vadd.f32 %v14776_v50, %v1804_v4  ;;  %v11466_v4 = vld [vmem:[%s13802_s2 + $0x9] ss:$0 sm:$0xff] }
 0x45f   : > { %v2382_v15 = vand.u32 2147483647, %v11454_v19  ;;  %v11460_v23 = vsel %vm13986_vm5, 0.0, %v2351_v43  ;;  %vm14787_vm5 = vmmov %vm14786_vm1 }
 0x460   : > { %v2479_v54 = vpack.c.bf16 %v1900_v57, %v1897_v3  ;;  %v2383_v30 = vand.u32 2147483647, %v11460_v23  ;;  %v2478_v13 = vpack.c.bf16 %v1892_v26, %v1889_v25  ;;  %v14777_v25 = vld [vmem:[#allocation42_spill] sm:$0xff]  ;;  %v14779_v26 = vld [vmem:[#allocation44_spill] sm:$0xff] }
 0x461   : > { %2412 = vadd.xlane.f32.xlu0 %v2382_v15  ;;  %7623 = vmatpush3.bf16.msra.mxu0 %v2473_v35 }
 0x462   : > { %2414 = vadd.xlane.f32.xlu1 %v2383_v30  ;;  %7624 = vmatprep.subr.bf16.mxu0 %v2474_v14 }
 0x465   : > { %7625 = vmatpush3.bf16.msra.mxu0 %v2474_v14 }
 0x466   : > { %7626 = vmatprep.subr.bf16.mxu0 %v2475_v38 }
 0x469   : > { %7627 = vmatpush3.bf16.msra.mxu0 %v2475_v38 }
 0x46a   : > { %7628 = vmatprep.subr.bf16.mxu0 %v2476_v55 }
 0x46d   : > { %7629 = vmatpush3.bf16.msra.mxu0 %v2476_v55 }
 0x46e   : > { %7630 = vmatprep.subr.bf16.mxu0 %v2477_v60 }
 0x471   : > { %7631 = vmatpush3.bf16.msra.mxu0 %v2477_v60  ;;  %v14778_v60 = vld [vmem:[#allocation43_spill] sm:$0xff] }
 0x472   : > { %7632 = vmatprep.subr.bf16.mxu0 %v2478_v13 }
 0x475   : > { %7633 = vmatpush3.bf16.msra.mxu0 %v2478_v13 }
 0x476   : > { %7634 = vmatprep.subr.bf16.mxu0 %v2479_v54 }
 0x477   : > { %2725 = vrot.lane.b32.xlu0 %v11466_v4, %s14299_s9 }
 0x479   : > { %7635 = vmatpush3.bf16.msra.mxu0 %v2479_v54  ;;  %v14780_v54 = vld [vmem:[#allocation40_spill] sm:$0xff] }
 0x47a   : > { %7652 = vmatprep.subr.bf16.mxu0 %v8290_v18 }
 0x484   : > { %v2387_v28 = vpop.xlane.xlu0 %2386  ;;  %v2385_v47 = vpop.xlane.xlu1 %2384 }
 0x485   : > { %v2417_v22 = vmax.f32 %v2387_v28, 1e-12  ;;  %v2416_v44 = vmax.f32 %v2385_v47, 1e-12  ;;  %v8291_v47 = vld [vmem:[%s13801_s1 + $0x18] sm:$0xff]  }
 0x487   : > { %8408 = vrcp.f32 %v2417_v22 }
 0x488   : > { %8410 = vrcp.f32 %v2416_v44  ;;  %v2389_v1 = vpop.xlane.xlu0 %2388  ;;  %v2391_v52 = vpop.xlane.xlu1 %2390  ;;  %v14781_v44 = vld [vmem:[#allocation49_spill] sm:$0xff] }
 0x489   : > { %v2418_v51 = vmax.f32 %v2389_v1, 1e-12  ;;  %v2419_v38 = vmax.f32 %v2391_v52, 1e-12  ;;  %v14782_v52 = vld [vmem:[#allocation50_spill] sm:$0xff] }
 0x48b   : > { %8412 = vrcp.f32 %v2418_v51 }
 0x48c   : > { %8414 = vrcp.f32 %v2419_v38  ;;  %v2393_v14 = vpop.xlane.xlu0 %2392  ;;  %v2395_v8 = vpop.xlane.xlu1 %2394 }
 0x48d   : > { %v2420_v11 = vmax.f32 %v2393_v14, 1e-12  ;;  %v2421_v20 = vmax.f32 %v2395_v8, 1e-12 }
 0x48f   : > { %8416 = vrcp.f32 %v2420_v11  ;;  %v14783_v11 = vld [vmem:[#allocation59_spill] sm:$0xff] }
 0x490   : > { %8418 = vrcp.f32 %v2421_v20  ;;  %v2397_v40 = vpop.xlane.xlu0 %2396  ;;  %v2399_v58 = vpop.xlane.xlu1 %2398 }
 0x491   : > { %v8409_v35 = vpop.eup %8408  ;;  %v2422_v32 = vmax.f32 %v2397_v40, 1e-12  ;;  %v2423_v3 = vmax.f32 %v2399_v58, 1e-12  ;;  %v14784_v40 = vld [vmem:[#allocation58_spill] sm:$0xff] }
 0x492   : > { %v8411_v39 = vpop.eup %8410  ;;  %v2449_v43 = vmul.f32 %v8409_v35, %v14777_v25 }
 0x493   : > { %8420 = vrcp.f32 %v2422_v32  ;;  %v2448_v55 = vmul.f32 %v8411_v39, %v14778_v60 }
 0x494   : > { %8422 = vrcp.f32 %v2423_v3 }
 0x495   : > { %v8413_v53 = vpop.eup %8412  ;;  %v2464_v57 = vpack.c.bf16 %v2449_v43, %v2448_v55 }
 0x496   : > { %v8415_v50 = vpop.eup %8414  ;;  %v2450_v15 = vmul.f32 %v8413_v53, %v14779_v26 }
 0x497   : > { %v2451_v30 = vmul.f32 %v8415_v50, %v14780_v54  ;;  %7636 = vmatprep.mubr.bf16.mxu0 %v2464_v57 }
 0x499   : > { %v8417_v13 = vpop.eup %8416  ;;  %v2465_v28 = vpack.c.bf16 %v2451_v30, %v2450_v15 }
 0x49a   : > { %v8419_v22 = vpop.eup %8418  ;;  %v2452_v1 = vmul.f32 %v8417_v13, %v14781_v44 }
 0x49b   : > { %7637 = vmatmul.mubr.bf16.vlgmr.msra.gmra.mrb[32].mxu0 %v2465_v28  ;;  %v2453_v51 = vmul.f32 %v8419_v22, %v14782_v52 }
 0x49c   : > { %7653 = vmatpush3.bf16.msra.mxu0 %v8290_v18 }
 0x49d   : > { %v8421_v38 = vpop.eup %8420  ;;  %v2466_v14 = vpack.c.bf16 %v2453_v51, %v2452_v1  ;;  %7654 = vmatprep.subr.bf16.mxu0 %v8291_v47 }
 0x49e   : > { %v8423_v8 = vpop.eup %8422  ;;  %v2454_v20 = vmul.f32 %v8421_v38, %v14783_v11 }
 0x49f   : > { %7640 = vmatprep.mubr.bf16.mxu0 %v2466_v14  ;;  %v2455_v58 = vmul.f32 %v8423_v8, %v14784_v40 }
 0x4a0   : > { %7655 = vmatpush3.bf16.msra.mxu0 %v8291_v47 }
 0x4a1   : > { %v2467_v35 = vpack.c.bf16 %v2455_v58, %v2454_v20 }
 0x4a3   : > { %7641 = vmatmul.mubr.bf16.gmra.mrb[36].mxu0 %v2467_v35 }
 0x4d0   : > { %v2401_v32 = vpop.xlane.xlu0 %2400  ;;  %v2403_v3 = vpop.xlane.xlu1 %2402 }
 0x4d1   : > { %v2424_v39 = vmax.f32 %v2401_v32, 1e-12  ;;  %v2425_v25 = vmax.f32 %v2403_v3, 1e-12 }
 0x4d3   : > { %8424 = vrcp.f32 %v2424_v39 }
 0x4d4   : > { %8426 = vrcp.f32 %v2425_v25 }
 0x4dc   : > { %v2405_v18 = vpop.xlane.xlu0 %2404  ;;  %v2407_v60 = vpop.xlane.xlu1 %2406 }
 0x4dd   : > { %v8425_v43 = vpop.eup %8424  ;;  %v2426_v53 = vmax.f32 %v2405_v18, 1e-12  ;;  %v2427_v57 = vmax.f32 %v2407_v60, 1e-12 }
 0x4de   : > { %v8427_v55 = vpop.eup %8426  ;;  %v2456_v50 = vmul.f32 %v8425_v43, %v11291_v63 }
 0x4df   : > { %v2457_v26 = vmul.f32 %v8427_v55, %v11295_v12  ;;  %8428 = vrcp.f32 %v2426_v53  ;;  %v7678_v54 = vpop.f32.mrb[32].mxu1 }
 0x4e0   : > { %8430 = vrcp.f32 %v2427_v57  ;;  %v2762_v13 = vpop.f32.mrb[33].mxu1 }
 0x4e1   : > { %v2468_v15 = vpack.c.bf16 %v2457_v26, %v2456_v50  ;;  %v7679_v22 = vpop.f32.mrb[34].mxu1 }
 0x4e2   : > { %v2765_v1 = vpop.f32.mrb[35].mxu1 }
 0x4e3   : > { %7644 = vmatprep.mubr.bf16.mxu0 %v2468_v15 }
 0x4e6   : > { %v2409_v30 = vpop.xlane.xlu0 %2408 }
 0x4e7   : > { %v2428_v28 = vmax.f32 %v2409_v30, 1e-12  ;;  %v2411_v47 = vpop.xlane.xlu1 %2410  ;;  %v7682_v58 = vpop.f32.mrb[36].mxu1 }
 0x4e8   : > { %v2429_v44 = vmax.f32 %v2411_v47, 1e-12  ;;  %v2778_v53 = vpop.f32.mrb[37].mxu1 }
 0x4e9   : > { %8432 = vrcp.f32 %v2428_v28  ;;  %v8429_v52 = vpop.eup %8428  ;;  %v7683_v26 = vpop.f32.mrb[38].mxu1 }
 0x4ea   : > { %8434 = vrcp.f32 %v2429_v44  ;;  %v8431_v51 = vpop.eup %8430  ;;  %v2458_v63 = vmul.f32 %v8429_v52, %v11381_v49 }
 0x4eb   : > { %v2459_v12 = vmul.f32 %v8431_v51, %v11385_v17 }
 0x4ed   : > { %v2469_v14 = vpack.c.bf16 %v2459_v12, %v2458_v63 }
 0x4ee   : > { %v2413_v38 = vpop.xlane.xlu0 %2412 }
 0x4ef   : > { %v2430_v8 = vmax.f32 %v2413_v38, 1e-12  ;;  %v2415_v11 = vpop.xlane.xlu1 %2414  ;;  %7645 = vmatmul.mubr.bf16.gmra.mrb[40].mxu0 %v2469_v14 }
 0x4f0   : > { %v2431_v20 = vmax.f32 %v2415_v11, 1e-12 }
 0x4f1   : > { %8436 = vrcp.f32 %v2430_v8 }
 0x4f2   : > { %8438 = vrcp.f32 %v2431_v20  ;;  %v2726_v40 = vpop.permute.xlu0 %2725 }
 0x4f3   : > { %v8433_v35 = vpop.eup %8432  ;;  %v2763_v32 = vadd.f32 %v2762_v13, %v2726_v40  ;;  %v2766_v3 = vadd.f32 %v2765_v1, %v2726_v40  ;;  %v2771_v39 = vadd.f32 %v7678_v54, %v2726_v40  ;;  %v2774_v49 = vadd.f32 %v7679_v22, %v2726_v40 }
 0x4f4   : > { %v8435_v25 = vpop.eup %8434  ;;  %v2460_v43 = vmul.f32 %v8433_v35, %v11420_v10  ;;  %v2787_v60 = vadd.f32 %v7682_v58, %v2726_v40  ;;  %v2779_v15 = vadd.f32 %v2778_v53, %v2726_v40  ;;  %v2790_v30 = vadd.f32 %v7683_v26, %v2726_v40  ;;  %v2781_v10 = vpop.f32.mrb[39].mxu1  ;;  %v14792_v53 = vld [vmem:[#allocation7_spill] sm:$0xff]  ;;  %v14798_v26 = vld [vmem:[#allocation9_spill] sm:$0xff] }
 0x4f5   : > { %v2461_v17 = vmul.f32 %v8435_v25, %v11427_v9  ;;  %v2945_v18 = vpack.c.bf16 %v2766_v3, %v2763_v32  ;;  %v2946_v55 = vpack.c.bf16 %v2774_v49, %v2771_v39  ;;  %v2782_v13 = vadd.f32 %v2781_v10, %v2726_v40  ;;  %v7686_v9 = vpop.f32.mrb[40].mxu1  ;;  %v14807_v10 = vld [vmem:[#allocation12_spill] sm:$0xff] }
 0x4f6   : > { %v2948_v54 = vpack.c.bf16 %v2790_v30, %v2787_v60  ;;  %v2803_v47 = vadd.f32 %v7686_v9, %v2726_v40  ;;  %v2794_v22 = vpop.f32.mrb[41].mxu1  ;;  %v14804_v30 = vld [vmem:[#allocation11_spill] sm:$0xff] }
 0x4f7   : > { %v2470_v57 = vpack.c.bf16 %v2461_v17, %v2460_v43  ;;  %8196 = vmatprep.subr.msk.bf16.mxu1 %vm14785_vm4, %v2945_v18  ;;  %v2978_v50 = vsel %vm14786_vm1, %v2945_v18, 0  ;;  %v2947_v52 = vpack.c.bf16 %v2782_v13, %v2779_v15  ;;  %v2795_v51 = vadd.f32 %v2794_v22, %v2726_v40  ;;  %v7687_v63 = vpop.f32.mrb[42].mxu1  ;;  %vm14788_vm4 = vmmov %vm14786_vm1  ;;  %v14810_v13 = vld [vmem:[#allocation13_spill] sm:$0xff] }
 0x4f8   : > { %7713 = vmatpush3.bf16.xpose.msra.mxu1 %v2978_v50  ;;  %v2981_v38 = vsel %vm14788_vm4, %v2946_v55, 0  ;;  %v2806_v14 = vadd.f32 %v7687_v63, %v2726_v40  ;;  %v2797_v8 = vpop.f32.mrb[43].mxu1  ;;  %vm14794_vm10 = vmmov %vm14788_vm4 }
 0x4f9   : > { %7648 = vmatprep.mubr.bf16.mxu0 %v2470_v57  ;;  %8197 = vmatprep.subr.msk.bf16.mxu1 %vm14787_vm5, %v2946_v55  ;;  %v2798_v11 = vadd.f32 %v2797_v8, %v2726_v40  ;;  %v7690_v20 = vpop.f32.mrb[44].mxu1  ;;  %vm14789_vm5 = vmmov %vm14786_vm1  ;;  %vm14791_vm1 = vcmask 261120   ;;  %v2984_v55 = vsel %vm14788_vm4, %v2947_v52, 0  ;;  %v14795_v57 = vld [vmem:[#allocation8_spill] sm:$0xff] }
 0x4fa   : > { %v2950_v35 = vpack.c.bf16 %v2806_v14, %v2803_v47  ;;  %v2819_v32 = vadd.f32 %v7690_v20, %v2726_v40  ;;  %v2810_v3 = vpop.f32.mrb[45].mxu1  ;;  %vm14793_vm12 = vmmov %vm14791_vm1 }
 0x4fb   : > { %v8437_v28 = vpop.eup %8436  ;;  %v2949_v39 = vpack.c.bf16 %v2798_v11, %v2795_v51  ;;  %v2811_v25 = vadd.f32 %v2810_v3, %v2726_v40  ;;  %v7691_v43 = vpop.f32.mrb[46].mxu1  ;;  %vm14796_vm3 = vmmov %vm14791_vm1 }
 0x4fc   : > { %v8439_v44 = vpop.eup %8438  ;;  %v2462_v1 = vmul.f32 %v8437_v28, %v11454_v19  ;;  %v2822_v19 = vadd.f32 %v7691_v43, %v2726_v40  ;;  %v2813_v49 = vpop.f32.mrb[47].mxu1  ;;  %vm14799_vm15 = vmmov %vm14791_vm1 }
 0x4fd   : > { %v2463_v12 = vmul.f32 %v8439_v44, %v11460_v23  ;;  %v14790_v23 = vld [vmem:[#allocation6_spill] sm:$0xff]  ;;  %v2814_v17 = vadd.f32 %v2813_v49, %v2726_v40  ;;  %vm14802_vm0 = vmmov %vm14796_vm3 }
 0x4fe   : > { %v2952_v18 = vpack.c.bf16 %v2822_v19, %v2819_v32  ;;  %v14801_v40 = vld [vmem:[#allocation10_spill] sm:$0xff] }
 0x4ff   : > { %v2471_v58 = vpack.c.bf16 %v2463_v12, %v2462_v1  ;;  %v2951_v60 = vpack.c.bf16 %v2814_v17, %v2811_v25 }
 0x500   : > { %7715 = vmatpush3.bf16.xpose.msra.mxu1 %v2981_v38 }
 0x501   : > { %7649 = vmatmul.mubr.bf16.gmra.mrb[44].mxu0 %v2471_v58  ;;  %8198 = vmatprep.subr.msk.bf16.mxu1 %vm14789_vm5, %v2947_v52  ;;  %vm14797_vm5 = vmmov %vm14788_vm4 }
 0x502   : > { %7656 = vmatprep.mubr.msk.bf16.mxu0 %vm14791_vm1, %v14790_v23  ;;  %v2987_v50 = vsel %vm14797_vm5, %v2948_v54, 0  ;;  %vm14800_vm1 = vmmov %vm14788_vm4 }
 0x503   : > { %vm14803_vm4 = vmmov %vm14800_vm1 }
 0x504   : > { %v2990_v15 = vsel %vm14803_vm4, %v2949_v39, 0  ;;  %vm14809_vm5 = vmmov %vm14800_vm1 }
 0x505   : > { %vm14812_vm4 = vmmov %vm14800_vm1 }
 0x506   : > { %v2996_v9 = vsel %vm14812_vm4, %v2951_v60, 0 }
 0x508   : > { %7717 = vmatpush3.bf16.xpose.msra.mxu1 %v2984_v55 }
 0x509   : > { %7657 = vmatmul.mubr.msk.bf16.vlgmr.msra.gmra.mrb[48].mxu0 %vm14793_vm12, %v14792_v53  ;;  %8199 = vmatprep.subr.msk.bf16.mxu1 %vm14794_vm10, %v2948_v54  ;;  %vm14805_vm12 = vmmov %vm14802_vm0  ;;  %v2993_v54 = vsel %vm14809_vm5, %v2950_v35, 0 }
 0x50a   : > { %7660 = vmatprep.mubr.msk.bf16.mxu0 %vm14796_vm3, %v14795_v57  ;;  %vm14806_vm10 = vmmov %vm14800_vm1 }
 0x50b   : > { %vm14808_vm3 = vmmov %vm14802_vm0 }
 0x50c   : > { %vm14832_vm5 = vmmov %vm14800_vm1 }
 0x510   : > { %7719 = vmatpush3.bf16.xpose.msra.mxu1 %v2987_v50 }
 0x511   : > { %7661 = vmatmul.mubr.msk.bf16.gmra.mrb[52].mxu0 %vm14799_vm15, %v14798_v26  ;;  %8200 = vmatprep.subr.msk.bf16.mxu1 %vm14800_vm1, %v2949_v39  ;;  %vm14811_vm15 = vmmov %vm14802_vm0 }
 0x512   : > { %7664 = vmatprep.mubr.msk.bf16.mxu0 %vm14802_vm0, %v14801_v40 }
 0x518   : > { %7721 = vmatpush3.bf16.xpose.msra.mxu1 %v2990_v15 }
 0x519   : > { %7665 = vmatmul.mubr.msk.bf16.gmra.mrb[56].mxu0 %vm14805_vm12, %v14804_v30  ;;  %8201 = vmatprep.subr.msk.bf16.mxu1 %vm14806_vm10, %v2950_v35  ;;  %vm14813_vm12 = vmmov %vm14800_vm1 }
 0x51a   : > { %7668 = vmatprep.mubr.msk.bf16.mxu0 %vm14808_vm3, %v14807_v10  ;;  %vm14814_vm10 = vmmov %vm14800_vm1 }
 0x51b   : > { %v2999_v28 = vsel %vm14814_vm10, %v2952_v18, 0  ;;  %vm14831_vm3 = vmmov %vm14800_vm1 }
 0x520   : > { %7723 = vmatpush3.bf16.xpose.msra.mxu1 %v2993_v54 }
 0x521   : > { %7669 = vmatmul.mubr.msk.bf16.gmra.mrb[60].mxu0 %vm14811_vm15, %v14810_v13  ;;  %8202 = vmatprep.subr.msk.bf16.mxu1 %vm14800_vm1, %v2951_v60  ;;  %vm14833_vm15 = vmmov %vm14800_vm1 }
 0x522   : > { %7696 = vmatprep.mubr.msk.bf16.mxu0 %vm14802_vm0, %v14790_v23  ;;  %vm14834_vm0 = vmmov %vm14800_vm1 }
 0x523   : > { %vm14835_vm4 = vmmov %vm14834_vm0 }
 0x524   : > { %vm14837_vm10 = vmmov %vm14834_vm0 }
 0x528   : > { %7725 = vmatpush3.bf16.xpose.msra.mxu1 %v2996_v9 }
 0x529   : > { %8203 = vmatprep.subr.msk.bf16.mxu1 %vm14813_vm12, %v2952_v18  ;;  %vm14836_vm12 = vmmov %vm14834_vm0 }
 0x530   : > { %7727 = vmatpush3.bf16.xpose.msra.mxu1 %v2999_v28 }
 0x56e   : > { %v11526_v47 = vpop.f32.mrb[32].mxu0 }
 0x56f   : > { %14815 = vst [vmem:[#allocation118_spill] sm:$0xff] %v11526_v47  ;;  %v11528_v22 = vpop.f32.mrb[33].mxu0 }
 0x570   : > { %14816 = vst [vmem:[#allocation93_spill] sm:$0xff] %v11528_v22  ;;  %v11530_v44 = vpop.f32.mrb[34].mxu0  ;;  %v14851_v22 = vld [vmem:[#allocation126_spill] sm:$0xff] }
 0x571   : > { %14817 = vst [vmem:[#allocation133_spill] sm:$0xff] %v11530_v44  ;;  %v11534_v52 = vpop.f32.mrb[35].mxu0 }
 0x572   : > { %14818 = vst [vmem:[#allocation139_spill] sm:$0xff] %v11534_v52 }
 0x576   : > { %v11538_v63 = vpop.f32.mrb[36].mxu0 }
 0x577   : > { %14819 = vst [vmem:[#allocation142_spill] sm:$0xff] %v11538_v63  ;;  %v11540_v12 = vpop.f32.mrb[37].mxu0  ;;  %v14849_v63 = vld [vmem:[#allocation117_spill] sm:$0xff] }
 0x578   : > { %14820 = vst [vmem:[#allocation148_spill] sm:$0xff] %v11540_v12  ;;  %v11542_v38 = vpop.f32.mrb[38].mxu0 }
 0x579   : > { %14821 = vst [vmem:[#allocation149_spill] sm:$0xff] %v11542_v38  ;;  %v11546_v8 = vpop.f32.mrb[39].mxu0 }
 0x57a   : > { %14822 = vst [vmem:[#allocation98_spill] sm:$0xff] %v11546_v8 }
 0x5c2   : > { %v11550_v20 = vpop.f32.mrb[40].mxu0 }
 0x5c3   : > { %14823 = vst [vmem:[#allocation101_spill] sm:$0xff] %v11550_v20  ;;  %v11552_v58 = vpop.f32.mrb[41].mxu0 }
 0x5c4   : > { %14824 = vst [vmem:[#allocation107_spill] sm:$0xff] %v11552_v58  ;;  %v11554_v35 = vpop.f32.mrb[42].mxu0 }
 0x5c5   : > { %14825 = vst [vmem:[#allocation124_spill] sm:$0xff] %v11554_v35  ;;  %v11558_v3 = vpop.f32.mrb[43].mxu0 }
 0x5c6   : > { %14826 = vst [vmem:[#allocation113_spill] sm:$0xff] %v11558_v3 }
 0x5d4   : > { %v11562_v25 = vpop.f32.mrb[44].mxu0 }
 0x5d5   : > { %14827 = vst [vmem:[#allocation137_spill] sm:$0xff] %v11562_v25  ;;  %v11564_v43 = vpop.f32.mrb[45].mxu0 }
 0x5d6   : > { %14828 = vst [vmem:[#allocation129_spill] sm:$0xff] %v11564_v43  ;;  %v11566_v19 = vpop.f32.mrb[46].mxu0 }
 0x5d7   : > { %14829 = vst [vmem:[#allocation146_spill] sm:$0xff] %v11566_v19  ;;  %v11570_v17 = vpop.f32.mrb[47].mxu0 }
 0x5d8   : > { %14830 = vst [vmem:[#allocation140_spill] sm:$0xff] %v11570_v17 }
 0x5dc   : > { %v7658_v60 = vpop.f32.mrb[48].mxu0 }
 0x5dd   : > { %v2649_v55 = vpop.f32.mrb[49].mxu0  ;;  %v2658_v15 = vadd.f32 %v7658_v60, %v11466_v4 }
 0x5de   : > { %v7659_v50 = vpop.f32.mrb[50].mxu0  ;;  %v2650_v28 = vadd.f32 %v11466_v4, %v2649_v55 }
 0x5df   : > { %v2661_v54 = vadd.f32 %v7659_v50, %v11466_v4  ;;  %v2652_v9 = vpop.f32.mrb[51].mxu0 }
 0x5e0   : > { %v2653_v32 = vadd.f32 %v11466_v4, %v2652_v9 }
 0x5e1   : > { %v2938_v39 = vpack.c.bf16 %v2661_v54, %v2658_v15 }
 0x5e2   : > { %v2937_v14 = vpack.c.bf16 %v2653_v32, %v2650_v28 }
 0x5e4   : > { %v7662_v49 = vpop.f32.mrb[52].mxu0  ;;  %7728 = vmatprep.mubr.msk.bf16.mxu1 %vm14831_vm3, %v2937_v14  ;;  %vm14838_vm3 = vcmask 261120  }
 0x5e5   : > { %v2674_v11 = vadd.f32 %v7662_v49, %v11466_v4  ;;  %v2665_v18 = vpop.f32.mrb[53].mxu0  ;;  %7729 = vmatmul.mubr.msk.bf16.vlgmr.msra.gmra.mrb[48].mxu1 %vm14832_vm5, %v2938_v39 }
 0x5e6   : > { %v2666_v1 = vadd.f32 %v11466_v4, %v2665_v18  ;;  %v7663_v60 = vpop.f32.mrb[54].mxu0 }
 0x5e7   : > { %v2677_v50 = vadd.f32 %v7663_v60, %v11466_v4  ;;  %v2668_v51 = vpop.f32.mrb[55].mxu0 }
 0x5e8   : > { %v2669_v55 = vadd.f32 %v11466_v4, %v2668_v51 }
 0x5e9   : > { %v2940_v25 = vpack.c.bf16 %v2677_v50, %v2674_v11 }
 0x5ea   : > { %v2939_v9 = vpack.c.bf16 %v2669_v55, %v2666_v1 }
 0x5ec   : > { %v7666_v15 = vpop.f32.mrb[56].mxu0  ;;  %7732 = vmatprep.mubr.msk.bf16.mxu1 %vm14833_vm15, %v2939_v9  ;;  %vm14850_vm15 = vnez %v14849_v63 }
 0x5ed   : > { %v2690_v14 = vadd.f32 %v7666_v15, %v11466_v4  ;;  %v2681_v32 = vpop.f32.mrb[57].mxu0  ;;  %7733 = vmatmul.mubr.msk.bf16.gmra.mrb[52].mxu1 %vm14800_vm1, %v2940_v25  ;;  %vm14852_vm1 = vnez %v14851_v22 }
 0x5ee   : > { %v2682_v39 = vadd.f32 %v11466_v4, %v2681_v32  ;;  %v7667_v49 = vpop.f32.mrb[58].mxu0 }
 0x5ef   : > { %v2693_v18 = vadd.f32 %v7667_v49, %v11466_v4  ;;  %v2684_v54 = vpop.f32.mrb[59].mxu0 }
 0x5f0   : > { %v2685_v28 = vadd.f32 %v11466_v4, %v2684_v54 }
 0x5f1   : > { %v2942_v60 = vpack.c.bf16 %v2693_v18, %v2690_v14 }
 0x5f2   : > { %v2941_v51 = vpack.c.bf16 %v2685_v28, %v2682_v39 }
 0x5f4   : > { %v7670_v11 = vpop.f32.mrb[60].mxu0  ;;  %7736 = vmatprep.mubr.msk.bf16.mxu1 %vm14834_vm0, %v2941_v51 }
 0x5f5   : > { %v2706_v1 = vadd.f32 %v7670_v11, %v11466_v4  ;;  %v2697_v50 = vpop.f32.mrb[61].mxu0  ;;  %7737 = vmatmul.mubr.msk.bf16.gmra.mrb[56].mxu1 %vm14835_vm4, %v2942_v60 }
 0x5f6   : > { %v2698_v25 = vadd.f32 %v11466_v4, %v2697_v50  ;;  %v7671_v55 = vpop.f32.mrb[62].mxu0 }
 0x5f7   : > { %v2709_v9 = vadd.f32 %v7671_v55, %v11466_v4  ;;  %v2700_v15 = vpop.f32.mrb[63].mxu0 }
 0x5f8   : > { %v2701_v32 = vadd.f32 %v11466_v4, %v2700_v15 }
 0x5f9   : > { %v2944_v49 = vpack.c.bf16 %v2709_v9, %v2706_v1 }
 0x5fa   : > { %v2943_v54 = vpack.c.bf16 %v2701_v32, %v2698_v25 }
 0x5fc   : > { %7740 = vmatprep.mubr.msk.bf16.mxu1 %vm14836_vm12, %v2943_v54 }
 0x5fd   : > { %7741 = vmatmul.mubr.msk.bf16.gmra.mrb[60].mxu1 %vm14837_vm10, %v2944_v49 }
 0x5fe   : > { %7816 = vmatprep.mubr.msk.bf16.mxu1 %vm14838_vm3, %v14790_v23 }
 0x6b8   : > { %v7730_v14 = vpop.f32.mrb[48].mxu1 }
 0x6b9   : > { %v3100_v39 = vmul.f32 0.35355338, %v7730_v14  ;;  %v3035_v18 = vpop.f32.mrb[49].mxu1 }
 0x6ba   : > { %v7731_v28 = vpop.f32.mrb[50].mxu1  ;;  %v3098_v60 = vmul.f32 0.35355338, %v3035_v18 }
 0x6bb   : > { %v3038_v51 = vpop.f32.mrb[51].mxu1  ;;  %v11602_v50 = vsel %vm9854_vm6, %v3100_v39, -1e+30  ;;  %v3101_v1 = vmul.f32 0.35355338, %v7731_v28 }
 0x6bc   : > { %3134 = vmax.xlane.f32.xlu1 %v11602_v50  ;;  %v11607_v55 = vsel %vm9862_vm7, %v3098_v60, -1e+30  ;;  %v3099_v49 = vmul.f32 0.35355338, %v3038_v51  ;;  %v14888_v60 = vld [vmem:[#allocation193_spill] sm:$0xff] }
 0x6bd   : > { %v11612_v19 = vsel %vm9879_vm9, %v3101_v1, -1e+30 }
 0x6c0   : > { %3130 = vmax.xlane.f32.xlu1 %v11607_v55  ;;  %v7734_v9 = vpop.f32.mrb[52].mxu1 }
 0x6c1   : > { %v3104_v15 = vmul.f32 0.35355338, %v7734_v9  ;;  %v3051_v32 = vpop.f32.mrb[53].mxu1  ;;  %v11622_v9 = vsel %vm9898_vm11, %v3099_v49, -1e+30 }
 0x6c2   : > { %v7735_v54 = vpop.f32.mrb[54].mxu1  ;;  %v3102_v28 = vmul.f32 0.35355338, %v3051_v32 }
 0x6c3   : > { %v3054_v14 = vpop.f32.mrb[55].mxu1  ;;  %v11616_v43 = vsel %vm9914_vm13, %v3104_v15, -1e+30  ;;  %v3105_v1 = vmul.f32 0.35355338, %v7735_v54 }
 0x6c4   : > { %3136 = vmax.xlane.f32.xlu1 %v11612_v19  ;;  %3142 = vmax.xlane.f32.xlu0 %v11616_v43  ;;  %v11627_v58 = vsel %vm9929_vm2, %v3102_v28, -1e+30  ;;  %v3103_v3 = vmul.f32 0.35355338, %v3054_v14  ;;  %v14847_v28 = vld [vmem:[#allocation123_spill] sm:$0xff] }
 0x6c5   : > { %v11632_v32 = vsel %vm9961_vm8, %v3105_v1, -1e+30  ;;  %vm14848_vm5 = vnez %v14847_v28  ;;  %v14853_v28 = vld [vmem:[#allocation128_spill] sm:$0xff] }
 0x6c6   : > { %v11637_v44 = vsel %vm9973_vm14, %v3103_v3, -1e+30  ;;  %vm14854_vm0 = vnez %v14853_v28  ;;  %v14859_v28 = vld [vmem:[#allocation135_spill] sm:$0xff] }
 0x6c7   : > { %vm14860_vm10 = vnez %v14859_v28 }
 0x6c8   : > { %3132 = vmax.xlane.f32.xlu1 %v11622_v9  ;;  %v7738_v51 = vpop.f32.mrb[56].mxu1 }
 0x6c9   : > { %v3067_v17 = vpop.f32.mrb[57].mxu1  ;;  %v3108_v38 = vmul.f32 0.35355338, %v7738_v51 }
 0x6ca   : > { %v7739_v20 = vpop.f32.mrb[58].mxu1  ;;  %v3106_v1 = vmul.f32 0.35355338, %v3067_v17  ;;  %v14855_v17 = vld [vmem:[#allocation130_spill] sm:$0xff] }
 0x6cb   : > { %v3070_v15 = vpop.f32.mrb[59].mxu1  ;;  %v11647_v51 = vsel %vm14850_vm15, %v3108_v38, -1e+30  ;;  %vm14856_vm4 = vnez %v14855_v17  ;;  %v14861_v17 = vld [vmem:[#allocation132_spill] sm:$0xff] }
 0x6cc   : > { %3138 = vmax.xlane.f32.xlu1 %v11627_v58  ;;  %v11652_v3 = vsel %vm14852_vm1, %v3106_v1, -1e+30  ;;  %vm14862_vm3 = vnez %v14861_v17 }
 0x6d0   : > { %3144 = vmax.xlane.f32.xlu1 %v11632_v32  ;;  %v7742_v49 = vpop.f32.mrb[60].mxu1 }
 0x6d1   : > { %v3112_v12 = vmul.f32 0.35355338, %v7742_v49  ;;  %v3083_v8 = vpop.f32.mrb[61].mxu1  ;;  %v3109_v49 = vmul.f32 0.35355338, %v7739_v20  ;;  %v14857_v20 = vld [vmem:[#allocation125_spill] sm:$0xff] }
 0x6d2   : > { %v7743_v47 = vpop.f32.mrb[62].mxu1  ;;  %v3110_v63 = vmul.f32 0.35355338, %v3083_v8  ;;  %vm14858_vm12 = vnez %v14857_v20  ;;  %v8295_v8 = vld [vmem:[%s13801_s1 + $0x98] sm:$0xff]  }
 0x6d3   : > { %v11641_v39 = vsel %vm14848_vm5, %v3112_v12, -1e+30  ;;  %v3086_v14 = vpop.f32.mrb[63].mxu1  ;;  %v3107_v12 = vmul.f32 0.35355338, %v3070_v15 }
 0x6d4   : > { %3140 = vmax.xlane.f32.xlu1 %v11637_v44  ;;  %3158 = vmax.xlane.f32.xlu0 %v11641_v39  ;;  %v11657_v52 = vsel %vm14854_vm0, %v3109_v49, -1e+30  ;;  %v11667_v1 = vsel %vm14858_vm12, %v3110_v63, -1e+30  ;;  %v3111_v22 = vmul.f32 0.35355338, %v3086_v14 }
 0x6d5   : > { %v11662_v38 = vsel %vm14856_vm4, %v3107_v12, -1e+30  ;;  %v3113_v15 = vmul.f32 0.35355338, %v7743_v47  ;;  %v8292_v63 = vld [vmem:[%s13801_s1 + $0x20] sm:$0xff]   ;;  %v8293_v47 = vld [vmem:[%s13801_s1 + $0x28] sm:$0xff]  }
 0x6d6   : > { %v11672_v49 = vsel %vm14860_vm10, %v3111_v22, -1e+30  ;;  %v8294_v22 = vld [vmem:[%s13801_s1 + $0x90] sm:$0xff]   ;;  %7812 = vmatprep.subr.bf16.mxu1 %v8292_v63  ;;  %v8296_v14 = vld [vmem:[%s13801_s1 + $0x60] sm:$0xff]  }
 0x6d7   : > { %v11677_v12 = vsel %vm14862_vm3, %v3113_v15, -1e+30  ;;  %7692 = vmatprep.subr.bf16.mxu0 %v8294_v22  ;;  %7813 = vmatpush3.bf16.msra.mxu1 %v8292_v63  ;;  %v8297_v15 = vld [vmem:[%s13801_s1 + $0x68] sm:$0xff]   ;;  %vm14863_vm3 = vcmask 261120  }
 0x6d8   : > { %3150 = vmax.xlane.f32.xlu1 %v11647_v51  ;;  %7693 = vmatpush3.bf16.msra.mxu0 %v8294_v22  ;;  %vm14864_vm5 = vmmov %vm14863_vm3 }
 0x6d9   : > { %7814 = vmatprep.subr.bf16.mxu1 %v8293_v47  ;;  %7694 = vmatprep.subr.bf16.mxu0 %v8295_v8  ;;  %vm14865_vm10 = vmmov %vm14863_vm3 }
 0x6da   : > { %vm14866_vm12 = vmmov %vm14863_vm3 }
 0x6db   : > { %7815 = vmatpush3.bf16.msra.mxu1 %v8293_v47  ;;  %vm14867_vm0 = vmmov %vm14863_vm3 }
 0x6dc   : > { %3146 = vmax.xlane.f32.xlu1 %v11652_v3  ;;  %7695 = vmatpush3.bf16.msra.mxu0 %v8295_v8  ;;  %vm14868_vm15 = vmmov %vm14867_vm0 }
 0x6dd   : > { %7832 = vmatprep.subr.bf16.mxu1 %v8296_v14  ;;  %vm14872_vm4 = vmmov %vm14867_vm0 }
 0x6de   : > { %7817 = vmatmul.mubr.msk.bf16.vlgmr.msra.gmra.mrb[64].mxu1 %vm14863_vm3, %v14792_v53  ;;  %vm14869_vm3 = vmmov %vm14867_vm0 }
 0x6df   : > { %7697 = vmatmul.mubr.msk.bf16.vlgmr.msra.gmra.mrb[64].mxu0 %vm14864_vm5, %v14792_v53  ;;  %7820 = vmatprep.mubr.msk.bf16.mxu1 %vm14865_vm10, %v14795_v57  ;;  %vm14870_vm5 = vmmov %vm14867_vm0 }
 0x6e0   : > { %3152 = vmax.xlane.f32.xlu1 %v11657_v52  ;;  %7833 = vmatpush3.bf16.msra.mxu1 %v8296_v14  ;;  %vm14871_vm10 = vmmov %vm14867_vm0 }
 0x6e1   : > { %7834 = vmatprep.subr.bf16.mxu1 %v8297_v15  ;;  %7700 = vmatprep.mubr.msk.bf16.mxu0 %vm14866_vm12, %v14795_v57  ;;  %vm14873_vm12 = vmmov %vm14867_vm0 }
 0x6e4   : > { %3148 = vmax.xlane.f32.xlu1 %v11662_v38  ;;  %7835 = vmatpush3.bf16.msra.mxu1 %v8297_v15 }
 0x6e6   : > { %7821 = vmatmul.mubr.msk.bf16.gmra.mrb[68].mxu1 %vm14867_vm0, %v14798_v26 }
 0x6e7   : > { %7701 = vmatmul.mubr.msk.bf16.gmra.mrb[68].mxu0 %vm14868_vm15, %v14798_v26  ;;  %7824 = vmatprep.mubr.msk.bf16.mxu1 %vm14869_vm3, %v14801_v40  ;;  %vm14874_vm15 = vmmov %vm14867_vm0 }
 0x6e8   : > { %3154 = vmax.xlane.f32.xlu1 %v11667_v1  ;;  %7704 = vmatprep.mubr.msk.bf16.mxu0 %vm14870_vm5, %v14801_v40  ;;  %vm14875_vm3 = vmmov %vm14867_vm0 }
 0x6e9   : > { %vm14876_vm5 = vmmov %vm14867_vm0 }
 0x6ec   : > { %3156 = vmax.xlane.f32.xlu1 %v11672_v49 }
 0x6ee   : > { %7825 = vmatmul.mubr.msk.bf16.gmra.mrb[72].mxu1 %vm14871_vm10, %v14804_v30  ;;  %vm14877_vm10 = vmmov %vm14867_vm0 }
 0x6ef   : > { %7705 = vmatmul.mubr.msk.bf16.gmra.mrb[72].mxu0 %vm14872_vm4, %v14804_v30  ;;  %7828 = vmatprep.mubr.msk.bf16.mxu1 %vm14873_vm12, %v14807_v10  ;;  %vm14878_vm4 = vmmov %vm14867_vm0 }
 0x6f0   : > { %3160 = vmax.xlane.f32.xlu1 %v11677_v12  ;;  %7708 = vmatprep.mubr.msk.bf16.mxu0 %vm14867_vm0, %v14807_v10  ;;  %vm14879_vm12 = vmmov %vm14867_vm0 }
 0x6f6   : > { %7829 = vmatmul.mubr.msk.bf16.gmra.mrb[76].mxu1 %vm14874_vm15, %v14810_v13  ;;  %vm14880_vm15 = vmmov %vm14867_vm0 }
 0x6f7   : > { %7709 = vmatmul.mubr.msk.bf16.gmra.mrb[76].mxu0 %vm14875_vm3, %v14810_v13  ;;  %7836 = vmatprep.mubr.msk.bf16.mxu1 %vm14876_vm5, %v14790_v23  ;;  %vm14881_vm3 = vmmov %vm14867_vm0  ;;  %v14889_v23 = vld [vmem:[#allocation194_spill] sm:$0xff] }
 0x6f8   : > { %vm14882_vm5 = vmmov %vm14867_vm0 }
 0x6fe   : > { %7837 = vmatmul.mubr.msk.bf16.vlgmr.msra.gmra.mrb[80].mxu1 %vm14877_vm10, %v14792_v53  ;;  %vm14885_vm10 = vcmask 64512  }
 0x6ff   : > { %7840 = vmatprep.mubr.msk.bf16.mxu1 %vm14878_vm4, %v14795_v57 }
 0x706   : > { %7841 = vmatmul.mubr.msk.bf16.gmra.mrb[84].mxu1 %vm14879_vm12, %v14798_v26 }
 0x707   : > { %7844 = vmatprep.mubr.msk.bf16.mxu1 %vm14867_vm0, %v14801_v40 }
 0x70e   : > { %7845 = vmatmul.mubr.msk.bf16.gmra.mrb[88].mxu1 %vm14880_vm15, %v14804_v30 }
 0x70f   : > { %7848 = vmatprep.mubr.msk.bf16.mxu1 %vm14881_vm3, %v14807_v10 }
 0x716   : > { %7849 = vmatmul.mubr.msk.bf16.gmra.mrb[92].mxu1 %vm14882_vm5, %v14810_v13 }
 0x749   : > { %v3135_v63 = vpop.xlane.xlu1 %3134 }
 0x74a   : > { %v3164_v22 = vsub.f32 %v11602_v50, %v3135_v63 }
 0x74c   : > { %v3182_v26 = vmul.f32 1.442695, %v3164_v22 }
 0x74d   : > { %v3131_v47 = vpop.xlane.xlu1 %3130 }
 0x74e   : > { %v3162_v8 = vsub.f32 %v11607_v55, %v3131_v47 }
 0x750   : > { %v3178_v14 = vmul.f32 1.442695, %v3162_v8 }
 0x751   : > { %v3137_v15 = vpop.xlane.xlu1 %3136  ;;  %v3143_v10 = vpop.xlane.xlu0 %3142 }
 0x752   : > { %8440 = vpow2.f32 %v3178_v14  ;;  %v3165_v40 = vsub.f32 %v11612_v19, %v3137_v15  ;;  %v3168_v50 = vsub.f32 %v11616_v43, %v3143_v10 }
 0x753   : > { %8442 = vpow2.f32 %v3182_v26 }
 0x754   : > { %v3184_v17 = vmul.f32 1.442695, %v3165_v40  ;;  %v3190_v19 = vmul.f32 1.442695, %v3168_v50 }
 0x755   : > { %v3133_v57 = vpop.xlane.xlu1 %3132 }
 0x756   : > { %v3163_v30 = vsub.f32 %v11622_v9, %v3133_v57 }
 0x758   : > { %v3180_v53 = vmul.f32 1.442695, %v3163_v30 }
 0x759   : > { %v3139_v28 = vpop.xlane.xlu1 %3138 }
 0x75a   : > { %8444 = vpow2.f32 %v3180_v53  ;;  %v3166_v55 = vsub.f32 %v11627_v58, %v3139_v28 }
 0x75b   : > { %8446 = vpow2.f32 %v3184_v17 }
 0x75c   : > { %v11748_v63 = vpop.eup %8440  ;;  %v3186_v47 = vmul.f32 1.442695, %v3166_v55 }
 0x75d   : > { %v3145_v22 = vpop.xlane.xlu1 %3144  ;;  %3210 = vadd.xlane.f32.xlu0 %v11748_v63  ;;  %v11751_v26 = vpop.eup %8442 }
 0x75e   : > { %8448 = vpow2.f32 %v3186_v47  ;;  %v3169_v40 = vsub.f32 %v11632_v32, %v3145_v22 }
 0x75f   : > { %8450 = vpow2.f32 %v3190_v19 }
 0x760   : > { %v3192_v43 = vmul.f32 1.442695, %v3169_v40 }
 0x761   : > { %v3141_v57 = vpop.xlane.xlu1 %3140  ;;  %3214 = vadd.xlane.f32.xlu0 %v11751_v26  ;;  %v3159_v19 = vpop.xlane.xlu0 %3158 }
 0x762   : > { %v3167_v53 = vsub.f32 %v11637_v44, %v3141_v57  ;;  %v3176_v40 = vsub.f32 %v11641_v39, %v3159_v19 }
 0x764   : > { %v11756_v30 = vpop.eup %8444  ;;  %v3188_v10 = vmul.f32 1.442695, %v3167_v53 }
 0x765   : > { %v3151_v58 = vpop.xlane.xlu1 %3150  ;;  %3212 = vadd.xlane.f32.xlu1 %v11756_v30  ;;  %v11759_v9 = vpop.eup %8446 }
 0x766   : > { %8452 = vpow2.f32 %v3188_v10  ;;  %v3172_v44 = vsub.f32 %v11647_v51, %v3151_v58 }
 0x767   : > { %8454 = vpow2.f32 %v3192_v43 }
 0x768   : > { %v11761_v28 = vpop.eup %8448  ;;  %v3198_v50 = vmul.f32 1.442695, %v3172_v44 }
 0x769   : > { %v3147_v17 = vpop.xlane.xlu1 %3146  ;;  %3218 = vadd.xlane.f32.xlu0 %v11761_v28  ;;  %3216 = vadd.xlane.f32.xlu1 %v11759_v9  ;;  %v11767_v8 = vpop.eup %8450 }
 0x76a   : > { %v3170_v32 = vsub.f32 %v11652_v3, %v3147_v17  ;;  %v3206_v17 = vmul.f32 1.442695, %v3176_v40 }
 0x76c   : > { %v3194_v14 = vmul.f32 1.442695, %v3170_v32 }
 0x76d   : > { %v3153_v15 = vpop.xlane.xlu1 %3152  ;;  %3222 = vadd.xlane.f32.xlu0 %v11767_v8 }
 0x76e   : > { %8456 = vpow2.f32 %v3194_v14  ;;  %v3173_v47 = vsub.f32 %v11657_v52, %v3153_v15 }
 0x76f   : > { %8458 = vpow2.f32 %v3198_v50 }
 0x770   : > { %v11770_v55 = vpop.eup %8452  ;;  %v3200_v53 = vmul.f32 1.442695, %v3173_v47 }
 0x771   : > { %v3149_v22 = vpop.xlane.xlu1 %3148  ;;  %3220 = vadd.xlane.f32.xlu1 %v11770_v55  ;;  %v11775_v3 = vpop.eup %8454 }
 0x772   : > { %v3171_v51 = vsub.f32 %v11662_v38, %v3149_v22 }
 0x774   : > { %v3196_v57 = vmul.f32 1.442695, %v3171_v51 }
 0x775   : > { %v3155_v10 = vpop.xlane.xlu1 %3154  ;;  %3224 = vadd.xlane.f32.xlu1 %v11775_v3 }
 0x776   : > { %8460 = vpow2.f32 %v3196_v57  ;;  %v3174_v58 = vsub.f32 %v11667_v1, %v3155_v10  ;;  %v11811_v57 = vld [vmem:[%s13802_s2 + $0xa] ss:$0 sm:$0xff] }
 0x777   : > { %8462 = vpow2.f32 %v3200_v53 }
 0x778   : > { %v11780_v52 = vpop.eup %8456  ;;  %v3202_v43 = vmul.f32 1.442695, %v3174_v58 }
 0x779   : > { %3226 = vadd.xlane.f32.xlu0 %v11780_v52  ;;  %v3157_v38 = vpop.xlane.xlu1 %3156  ;;  %v11784_v32 = vpop.eup %8458 }
 0x77a   : > { %8464 = vpow2.f32 %v3202_v43  ;;  %v3175_v44 = vsub.f32 %v11672_v49, %v3157_v38 }
 0x77b   : > { %8466 = vpow2.f32 %v3206_v17 }
 0x77c   : > { %v3204_v39 = vmul.f32 1.442695, %v3175_v44 }
 0x77d   : > { %3230 = vadd.xlane.f32.xlu0 %v11784_v32  ;;  %v3161_v14 = vpop.xlane.xlu1 %3160 }
 0x77e   : > { %8468 = vpow2.f32 %v3204_v39  ;;  %v3177_v1 = vsub.f32 %v11677_v12, %v3161_v14 }
 0x780   : > { %v11788_v15 = vpop.eup %8460  ;;  %v3208_v50 = vmul.f32 1.442695, %v3177_v1 }
 0x781   : > { %3228 = vadd.xlane.f32.xlu1 %v11788_v15  ;;  %v11791_v47 = vpop.eup %8462 }
 0x782   : > { %8470 = vpow2.f32 %v3208_v50 }
 0x784   : > { %v11793_v22 = vpop.eup %8464 }
 0x785   : > { %3234 = vadd.xlane.f32.xlu0 %v11793_v22  ;;  %3232 = vadd.xlane.f32.xlu1 %v11791_v47  ;;  %v11797_v49 = vpop.eup %8466 }
 0x788   : > { %v11799_v19 = vpop.eup %8468 }
 0x789   : > { %3238 = vadd.xlane.f32.xlu0 %v11797_v49  ;;  %3236 = vadd.xlane.f32.xlu1 %v11799_v19 }
 0x78c   : > { %v11803_v12 = vpop.eup %8470 }
 0x78d   : > { %3240 = vadd.xlane.f32.xlu1 %v11803_v12 }
 0x79f   : > { %2837 = vrot.lane.b32.xlu0 %v11466_v4, %s14297_s24 }
 0x7b1   : > { %v7818_v40 = vpop.f32.mrb[64].mxu1 }
 0x7b2   : > { %v11814_v53 = vadd.f32 %v7818_v40, %v11811_v57  ;;  %v11816_v10 = vpop.f32.mrb[64].mxu0  ;;  %v3852_v58 = vpop.f32.mrb[65].mxu1 }
 0x7b3   : > { %v3853_v43 = vadd.f32 %v11811_v57, %v3852_v58  ;;  %v11819_v17 = vpop.f32.mrb[65].mxu0  ;;  %v7819_v38 = vpop.f32.mrb[66].mxu1 }
 0x7b4   : > { %14883 = vst [vmem:[#allocation154_spill] sm:$0xff] %v11814_v53  ;;  %v11822_v4 = vadd.f32 %v7819_v38, %v11811_v57  ;;  %v11824_v44 = vpop.f32.mrb[66].mxu0  ;;  %v3855_v39 = vpop.f32.mrb[67].mxu1 }
 0x7b5   : > { %v3856_v1 = vadd.f32 %v11811_v57, %v3855_v39  ;;  %v11827_v50 = vpop.f32.mrb[67].mxu0 }
 0x7b6   : > { %14884 = vst [vmem:[#allocation147_spill] sm:$0xff] %v11822_v4 }
 0x7b7   : > { %v4140_v40 = vpack.c.bf16 %v3856_v1, %v3853_v43 }
 0x7b9   : > { %v7822_v13 = vpop.f32.mrb[68].mxu1  ;;  %7888 = vmatprep.mubr.msk.bf16.mxu1 %vm14885_vm10, %v4140_v40 }
 0x7ba   : > { %v11833_v38 = vadd.f32 %v7822_v13, %v11811_v57  ;;  %v11835_v20 = vpop.f32.mrb[68].mxu0  ;;  %v11837_v54 = vpop.f32.mrb[69].mxu1 }
 0x7bb   : > { %v11839_v39 = vpop.f32.mrb[69].mxu0  ;;  %v7823_v35 = vpop.f32.mrb[70].mxu1 }
 0x7bc   : > { %14886 = vst [vmem:[#allocation155_spill] sm:$0xff] %v11833_v38  ;;  %v11842_v18 = vadd.f32 %v7823_v35, %v11811_v57 }
 0x7be   : > { %14887 = vst [vmem:[#allocation80_spill] sm:$0xff] %v11842_v18 }
 0x7ea   : > { %v3211_v51 = vpop.xlane.xlu0 %3210 }
 0x7eb   : > { %8472 = vrcp.f32 %v3211_v51 }
 0x7ee   : > { %v3215_v14 = vpop.xlane.xlu0 %3214 }
 0x7ef   : > { %8474 = vrcp.f32 %v3215_v14 }
 0x7f2   : > { %v3213_v58 = vpop.xlane.xlu1 %3212 }
 0x7f3   : > { %8476 = vrcp.f32 %v3213_v58 }
 0x7f5   : > { %v8473_v14 = vpop.eup %8472 }
 0x7f6   : > { %v3219_v43 = vpop.xlane.xlu0 %3218  ;;  %v3217_v1 = vpop.xlane.xlu1 %3216  ;;  %v3258_v51 = vmul.f32 %v8473_v14, %v11748_v63 }
 0x7f7   : > { %8478 = vrcp.f32 %v3219_v43  ;;  %v14892_v43 = vld [vmem:[#allocation22_spill] sm:$0xff] }
 0x7f8   : > { %8480 = vrcp.f32 %v3217_v1  ;;  %v3274_v25 = vmul.f32 %v3258_v51, %v14888_v60  ;;  %vm14893_vm4 = vcmp.eq.f32.partialorder %v14892_v43, 0.0  ;;  %v14897_v43 = vld [vmem:[#allocation195_spill] sm:$0xff]  ;;  %v14900_v60 = vld [vmem:[#allocation37_spill] sm:$0xff] }
 0x7f9   : > { %v8475_v40 = vpop.eup %8474 }
 0x7fa   : > { %v3223_v58 = vpop.xlane.xlu0 %3222  ;;  %v3260_v11 = vmul.f32 %v8475_v40, %v11751_v26  ;;  %v3290_v63 = vmul.f32 %v14891_v33, %v3274_v25 }
 0x7fb   : > { %8482 = vrcp.f32 %v3223_v58  ;;  %v14894_v58 = vld [vmem:[#allocation18_spill] sm:$0xff] }
 0x7fc   : > { %v3276_v53 = vmul.f32 %v3260_v11, %v14889_v23  ;;  %vm14895_vm12 = vcmp.eq.f32.partialorder %v14894_v58, 0.0 }
 0x7fd   : > { %v8477_v35 = vpop.eup %8476  ;;  %v11860_v11 = vsel %vm14895_vm12, 0.0, %v3290_v63  ;;  %v14898_v63 = vld [vmem:[#allocation34_spill] sm:$0xff]  ;;  %vm14923_vm12 = vcmp.eq.f32.partialorder %v11187_v24, 0.0 }
 0x7fe   : > { %v3221_v4 = vpop.xlane.xlu1 %3220  ;;  %v3292_v42 = vmul.f32 %v14890_v16, %v3276_v53  ;;  %v3259_v14 = vmul.f32 %v8477_v35, %v11756_v30  ;;  %v14896_v53 = vld [vmem:[#allocation192_spill] sm:$0xff] }
 0x7ff   : > { %8484 = vrcp.f32 %v3221_v4 }
 0x800   : > { %v11855_v1 = vsel %vm14893_vm4, 0.0, %v3292_v42  ;;  %v3275_v4 = vmul.f32 %v3259_v14, %v14896_v53  ;;  %v3322_v42 = vand.u32 2147483647, %v11860_v11 }
 0x801   : > { %v8479_v13 = vpop.eup %8478  ;;  %v3324_v26 = vand.u32 2147483647, %v11855_v1 }
 0x802   : > { %v8481_v51 = vpop.eup %8480  ;;  %v3225_v40 = vpop.xlane.xlu1 %3224  ;;  %v3262_v30 = vmul.f32 %v8479_v13, %v11761_v28  ;;  %v14902_v28 = vld [vmem:[#allocation30_spill] sm:$0xff] }
 0x803   : > { %8486 = vrcp.f32 %v3225_v40  ;;  %3342 = vadd.xlane.f32.xlu1 %v3324_v26  ;;  %v3261_v25 = vmul.f32 %v8481_v51, %v11759_v9  ;;  %v14899_v40 = vld [vmem:[#allocation35_spill] sm:$0xff]  ;;  %vm14903_vm0 = vcmp.eq.f32.partialorder %v14902_v28, 0.0 }
 0x804   : > { %v3291_v26 = vmul.f32 %v14899_v40, %v3275_v4  ;;  %v3278_v9 = vmul.f32 %v3262_v30, %v14900_v60  ;;  %v14901_v51 = vld [vmem:[#allocation71_spill] sm:$0xff]  ;;  %v14907_v4 = vld [vmem:[#allocation53_spill] sm:$0xff] }
 0x805   : > { %v8483_v35 = vpop.eup %8482  ;;  %v3277_v33 = vmul.f32 %v3261_v25, %v14897_v43  ;;  %v14904_v43 = vld [vmem:[#allocation60_spill] sm:$0xff] }
 0x806   : > { %v11867_v16 = vpop.xlane.xlu0 %3226  ;;  %v3264_v23 = vmul.f32 %v8483_v35, %v11767_v8  ;;  %v14905_v8 = vld [vmem:[#allocation24_spill] sm:$0xff]  ;;  %v3294_v35 = vmul.f32 %v14907_v4, %v3278_v9 }
 0x807   : > { %3338 = vadd.xlane.f32.xlu1 %v3322_v42  ;;  %v3293_v58 = vmul.f32 %v14898_v63, %v3277_v33  ;;  %vm14906_vm15 = vcmp.eq.f32.partialorder %v14905_v8, 0.0 }
 0x808   : > { %v3280_v14 = vmul.f32 %v3264_v23, %v14901_v51  ;;  %v11882_v33 = vsel %vm14906_vm15, 0.0, %v3291_v26  ;;  %v14908_v23 = vld [vmem:[#allocation36_spill] sm:$0xff]  ;;  %v14911_v26 = vld [vmem:[#allocation29_spill] sm:$0xff]  ;;  %vm14926_vm15 = vcmp.eq.f32.partialorder %v11135_v41, 0.0 }
 0x809   : > { %v8485_v53 = vpop.eup %8484  ;;  %v11876_v13 = vsel %vm14903_vm0, 0.0, %v3293_v58  ;;  %vm14909_vm3 = vcmp.eq.f32.partialorder %v14908_v23, 0.0  ;;  %vm14912_vm5 = vcmp.eq.f32.partialorder %v14911_v26, 0.0  ;;  %vm14925_vm0 = vcmp.eq.f32.partialorder %v11202_v34, 0.0 }
 0x80a   : > { %v3231_v38 = vpop.xlane.xlu0 %3230  ;;  %v3325_v25 = vand.u32 2147483647, %v11876_v13  ;;  %v3296_v18 = vmul.f32 %v14904_v43, %v3280_v14  ;;  %v3263_v30 = vmul.f32 %v8485_v53, %v11770_v55  ;;  %v3323_v14 = vand.u32 2147483647, %v11882_v33  ;;  %v14913_v55 = vld [vmem:[#allocation39_spill] sm:$0xff] }
 0x80b   : > { %8488 = vrcp.f32 %v3231_v38  ;;  %v11895_v9 = vsel %vm14912_vm5, 0.0, %v3294_v35  ;;  %v14915_v43 = vld [vmem:[#allocation47_spill] sm:$0xff]  ;;  %v3871_v35 = vpop.f32.mrb[71].mxu1  ;;  %vm14928_vm5 = vcmp.eq.f32.partialorder %v11323_v37, 0.0 }
 0x80c   : > { %3344 = vadd.xlane.f32.xlu1 %v3325_v25  ;;  %v11888_v42 = vsel %vm14909_vm3, 0.0, %v3296_v18  ;;  %v3279_v53 = vmul.f32 %v3263_v30, %v14913_v55  ;;  %v14914_v25 = vld [vmem:[#allocation48_spill] sm:$0xff]  ;;  %v3326_v23 = vand.u32 2147483647, %v11895_v9  ;;  %v14918_v30 = vld [vmem:[#allocation46_spill] sm:$0xff]  ;;  %vm14927_vm3 = vcmp.eq.f32.partialorder %v11374_v5, 0.0 }
 0x80d   : > { %14910 = vst [vmem:[#allocation83_spill] sm:$0xff] %v11888_v42  ;;  %v8487_v58 = vpop.eup %8486  ;;  %v3328_v60 = vand.u32 2147483647, %v11888_v42  ;;  %vm14919_vm10 = vcmp.eq.f32.partialorder %v14918_v30, 0.0  ;;  %v7826_v30 = vpop.f32.mrb[72].mxu1 }
 0x80e   : > { %v3229_v28 = vpop.xlane.xlu1 %3228  ;;  %v3265_v38 = vmul.f32 %v8487_v58, %v11775_v3  ;;  %v11903_v3 = vadd.f32 %v11811_v57, %v11837_v54  ;;  %v7703_v58 = vpop.f32.mrb[70].mxu0 }
 0x80f   : > { %8490 = vrcp.f32 %v3229_v28  ;;  %3350 = vadd.xlane.f32.xlu0 %v3328_v60  ;;  %v14917_v60 = vld [vmem:[#allocation41_spill] sm:$0xff]  ;;  %v2893_v26 = vpop.f32.mrb[71].mxu0 }
 0x810   : > { %3340 = vadd.xlane.f32.xlu1 %v3323_v14  ;;  %v3281_v18 = vmul.f32 %v3265_v38, %v14914_v25  ;;  %14916 = vst [vmem:[#allocation88_spill] sm:$0xff] %v11903_v3  ;;  %v3295_v28 = vmul.f32 %v14917_v60, %v3279_v53  ;;  %v11911_v38 = vadd.f32 %v11811_v57, %v3871_v35  ;;  %v3884_v60 = vpop.f32.mrb[73].mxu1 }
 0x811   : > { %v7827_v51 = vpop.f32.mrb[74].mxu1 }
 0x812   : > { %v3235_v4 = vpop.xlane.xlu0 %3234  ;;  %v3233_v8 = vpop.xlane.xlu1 %3232  ;;  %v3297_v40 = vmul.f32 %v14915_v43, %v3281_v18  ;;  %14920 = vst [vmem:[#allocation91_spill] sm:$0xff] %v11911_v38 }
 0x813   : > { %8492 = vrcp.f32 %v3233_v8 }
 0x814   : > { %3346 = vadd.xlane.f32.xlu1 %v3326_v23  ;;  %v11908_v14 = vsel %vm14919_vm10, 0.0, %v3297_v40  ;;  %8494 = vrcp.f32 %v3235_v4  ;;  %v14921_v23 = vld [vmem:[#allocation28_spill] sm:$0xff]  ;;  %v7706_v4 = vpop.f32.mrb[72].mxu0  ;;  %vm14929_vm10 = vcmp.eq.f32.partialorder %v11326_v29, 0.0 }
 0x815   : > { %v8489_v55 = vpop.eup %8488  ;;  %v3329_v18 = vand.u32 2147483647, %v11908_v14  ;;  %vm14922_vm4 = vcmp.eq.f32.partialorder %v14921_v23, 0.0  ;;  %v2906_v63 = vpop.f32.mrb[73].mxu0 }
 0x816   : > { %v3239_v54 = vpop.xlane.xlu0 %3238  ;;  %v3237_v43 = vpop.xlane.xlu1 %3236  ;;  %v3268_v53 = vmul.f32 %v8489_v55, %v11784_v32  ;;  %v11919_v40 = vsel %vm14922_vm4, 0.0, %v3295_v28  ;;  %vm14930_vm4 = vcmp.eq.f32.partialorder %v11377_v7, 0.0 }
 0x817   : > { %8496 = vrcp.f32 %v3239_v54  ;;  %v3327_v32 = vand.u32 2147483647, %v11919_v40  ;;  %v7707_v23 = vpop.f32.mrb[74].mxu0 }
 0x818   : > { %3352 = vadd.xlane.f32.xlu1 %v3329_v18  ;;  %v3284_v35 = vmul.f32 %v3268_v53, %v11348_v62  ;;  %8498 = vrcp.f32 %v3237_v43  ;;  %v3887_v53 = vpop.f32.mrb[75].mxu1 }
 0x819   : > { %v8491_v25 = vpop.eup %8490 }
 0x81a   : > { %v3241_v42 = vpop.xlane.xlu1 %3240  ;;  %v3300_v55 = vmul.f32 %v11342_v0, %v3284_v35  ;;  %v3267_v54 = vmul.f32 %v8491_v25, %v11788_v15  ;;  %v11925_v8 = vpop.permute.xlu0 %2837 }
 0x81b   : > { %v2899_v28 = vadd.f32 %v11835_v20, %v11925_v8  ;;  %v2875_v18 = vadd.f32 %v11819_v17, %v11925_v8  ;;  %v2878_v43 = vadd.f32 %v11827_v50, %v11925_v8  ;;  %v2891_v25 = vadd.f32 %v11839_v39, %v11925_v8  ;;  %v7830_v35 = vpop.f32.mrb[76].mxu1  ;;  %v2909_v0 = vpop.f32.mrb[75].mxu0 }
 0x81c   : > { %3348 = vadd.xlane.f32.xlu1 %v3327_v32  ;;  %v11935_v62 = vsel %vm14923_vm12, 0.0, %v3300_v55  ;;  %v3283_v15 = vmul.f32 %v3267_v54, %v11255_v59  ;;  %v2902_v20 = vadd.f32 %v7703_v58, %v11925_v8  ;;  %v2894_v50 = vadd.f32 %v2893_v26, %v11925_v8  ;;  %v3900_v24 = vpop.f32.mrb[77].mxu1 }
 0x81d   : > { %14924 = vst [vmem:[#allocation96_spill] sm:$0xff] %v11935_v62  ;;  %v3332_v17 = vand.u32 2147483647, %v11935_v62  ;;  %v3426_v3 = vpack.c.bf16 %v2878_v43, %v2875_v18  ;;  %v2883_v32 = vadd.f32 %v11816_v10, %v11925_v8  ;;  %v8493_v55 = vpop.eup %8492  ;;  %8500 = vrcp.f32 %v3241_v42  ;;  %v7831_v54 = vpop.f32.mrb[78].mxu1 }
 0x81e   : > { %v11945_v38 = vpack.c.bf16 %v2902_v20, %v2899_v28  ;;  %v2886_v39 = vadd.f32 %v11824_v44, %v11925_v8  ;;  %v8495_v58 = vpop.eup %8494  ;;  %v3269_v59 = vmul.f32 %v8493_v55, %v11791_v47  ;;  %v3428_v18 = vpack.c.bf16 %v2894_v50, %v2891_v25  ;;  %v3903_v43 = vpop.f32.mrb[79].mxu1 }
 0x81f   : > { %3358 = vadd.xlane.f32.xlu0 %v3332_v17  ;;  %7744 = vmatprep.subr.bf16.mxu0 %v3426_v3  ;;  %v11951_v26 = vadd.f32 %v7826_v30, %v11811_v57  ;;  %v11954_v42 = vadd.f32 %v11811_v57, %v3884_v60  ;;  %v11956_v28 = vpop.f32.mrb[80].mxu1  ;;  %v7710_v20 = vpop.f32.mrb[76].mxu0  ;;  %v3299_v17 = vmul.f32 %v11265_v27, %v3283_v15  ;;  %8502 = vrcp.f32 %v11867_v16 }
 0x820   : > { %7745 = vmatpush3.bf16.msra.mxu0 %v3426_v3  ;;  %v3427_v10 = vpack.c.bf16 %v2886_v39, %v2883_v32  ;;  %v3285_v62 = vmul.f32 %v3269_v59, %v11350_v6  ;;  %v2915_v47 = vadd.f32 %v7706_v4, %v11925_v8  ;;  %v11962_v25 = vadd.f32 %v7827_v51, %v11811_v57  ;;  %v11964_v30 = vpop.f32.mrb[81].mxu1  ;;  %v2922_v3 = vpop.f32.mrb[77].mxu0 }
 0x821   : > { %v8497_v44 = vpop.eup %8496  ;;  %v3270_v60 = vmul.f32 %v8495_v58, %v11793_v22  ;;  %v11969_v32 = vadd.f32 %v11811_v57, %v3887_v53  ;;  %v11971_v55 = vpop.f32.mrb[82].mxu1  ;;  %v2918_v39 = vadd.f32 %v7707_v23, %v11925_v8  ;;  %v2907_v53 = vadd.f32 %v2906_v63, %v11925_v8 }
 0x822   : > { %v3272_v50 = vmul.f32 %v8497_v44, %v11797_v49  ;;  %7746 = vmatprep.subr.bf16.mxu0 %v3427_v10  ;;  %v7711_v59 = vpop.f32.mrb[78].mxu0  ;;  %v8499_v15 = vpop.eup %8498  ;;  %v3301_v4 = vmul.f32 %v11359_v2, %v3285_v62  ;;  %v11991_v23 = vsel %vm14926_vm15, 0.0, %v3299_v17  ;;  %v12006_v41 = vadd.f32 %v11811_v57, %v3900_v24 }
 0x823   : > { %v11977_v27 = vpop.f32.mrb[83].mxu1  ;;  %v2925_v49 = vpop.f32.mrb[79].mxu0  ;;  %v3431_v51 = vpack.c.bf16 %v2918_v39, %v2915_v47  ;;  %v3286_v58 = vmul.f32 %v3270_v60, %v11393_v48  ;;  %v12012_v47 = vadd.f32 %v11811_v57, %v3903_v43 }
 0x824   : > { %v3288_v22 = vmul.f32 %v3272_v50, %v11405_v46  ;;  %7747 = vmatpush3.bf16.msra.mxu0 %v3427_v10  ;;  %v11983_v44 = vpop.f32.mrb[84].mxu1  ;;  %v11987_v62 = vsel %vm14925_vm0, 0.0, %v3301_v4  ;;  %v11994_v50 = vadd.f32 %v7830_v35, %v11811_v57  ;;  %v3271_v46 = vmul.f32 %v8499_v15, %v11799_v19 }
 0x825   : > { %7748 = vmatprep.subr.bf16.mxu0 %v3428_v18  ;;  %v11996_v10 = vpop.f32.mrb[85].mxu1  ;;  %v3333_v63 = vand.u32 2147483647, %v11987_v62  ;;  %v2910_v4 = vadd.f32 %v2909_v0, %v11925_v8  ;;  %v12009_v35 = vadd.f32 %v7831_v54, %v11811_v57  ;;  %v2931_v0 = vadd.f32 %v7710_v20, %v11925_v8 }
 0x826   : > { %v12002_v34 = vpop.f32.mrb[86].mxu1  ;;  %v3304_v17 = vmul.f32 %v11440_v21, %v3288_v22  ;;  %v3331_v22 = vand.u32 2147483647, %v11991_v23  ;;  %v2934_v20 = vadd.f32 %v7711_v59, %v11925_v8  ;;  %v3287_v24 = vmul.f32 %v3271_v46, %v11395_v56 }
 0x827   : > { %v12014_v39 = vpop.f32.mrb[87].mxu1  ;;  %v8501_v60 = vpop.eup %8500  ;;  %3360 = vadd.xlane.f32.xlu0 %v3333_v63  ;;  %v3430_v19 = vpack.c.bf16 %v2910_v4, %v2907_v53  ;;  %v3302_v63 = vmul.f32 %v11402_v45, %v3286_v58  ;;  %v2926_v21 = vadd.f32 %v2925_v49, %v11925_v8  ;;  %vm14935_vm0 = vcmask 64512  }
 0x828   : > { %7749 = vmatpush3.bf16.msra.mxu0 %v3428_v18  ;;  %v12017_v15 = vpop.f32.mrb[88].mxu1  ;;  %v2923_v18 = vadd.f32 %v2922_v3, %v11925_v8  ;;  %v12034_v4 = vsel %vm14927_vm3, 0.0, %v3304_v17  ;;  %v3273_v54 = vmul.f32 %v8501_v60, %v11803_v12  ;;  %v3433_v3 = vpack.c.bf16 %v2934_v20, %v2931_v0  ;;  %vm14936_vm15 = vmmov %vm14935_vm0 }
 0x829   : > { %7750 = vmatprep.subr.bf16.mxu0 %v11945_v38  ;;  %v12024_v43 = vpop.f32.mrb[89].mxu1  ;;  %v3336_v46 = vand.u32 2147483647, %v12034_v4  ;;  %v12053_v8 = vsel %vm14928_vm5, 0.0, %v3302_v63  ;;  %v14931_v63 = vld [vmem:[#allocation72_spill] sm:$0xff]  ;;  %vm14937_vm3 = vmmov %vm14935_vm0 }
 0x82a   : > { %v12030_v53 = vpop.f32.mrb[90].mxu1  ;;  %v3432_v59 = vpack.c.bf16 %v2926_v21, %v2923_v18  ;;  %v3289_v49 = vmul.f32 %v3273_v54, %v11409_v31  ;;  %v3334_v21 = vand.u32 2147483647, %v12053_v8  ;;  %vm14939_vm5 = vmmov %vm14935_vm0 }
 0x82b   : > { %v12039_v48 = vpop.f32.mrb[91].mxu1  ;;  %3356 = vadd.xlane.f32.xlu0 %v3331_v22 }
 0x82c   : > { %7751 = vmatpush3.bf16.msra.mxu0 %v11945_v38  ;;  %v12042_v58 = vpop.f32.mrb[92].mxu1  ;;  %v3303_v38 = vmul.f32 %v11407_v61, %v3287_v24  ;;  %v3305_v0 = vmul.f32 %v11444_v36, %v3289_v49 }
 0x82d   : > { %3928 = vrot.lane.b32.xlu1 %v11811_v57, %s14299_s9  ;;  %7752 = vmatprep.subr.bf16.mxu0 %v3430_v19  ;;  %v12046_v17 = vpop.f32.mrb[93].mxu1 }
 0x82e   : > { %v12049_v12 = vpop.f32.mrb[94].mxu1  ;;  %v12063_v57 = vsel %vm14929_vm10, 0.0, %v3303_v38  ;;  %v12069_v54 = vsel %vm14930_vm4, 0.0, %v3305_v0  ;;  %vm14940_vm10 = vmmov %vm14935_vm0 }
 0x82f   : > { %v12057_v60 = vpop.f32.mrb[95].mxu1  ;;  %3366 = vadd.xlane.f32.xlu0 %v3336_v46  ;;  %v3335_v24 = vand.u32 2147483647, %v12063_v57  ;;  %v3337_v16 = vand.u32 2147483647, %v12069_v54  ;;  %v14933_v46 = vld [vmem:[#allocation76_spill] sm:$0xff]  ;;  %vm14941_vm4 = vmmov %vm14935_vm0 }
 0x830   : > { %7753 = vmatpush3.bf16.msra.mxu0 %v3430_v19  ;;  %v8503_v19 = vpop.eup %8502  ;;  %vm14934_vm12 = vcmp.eq.f32.partialorder %v14933_v46, 0.0 }
 0x831   : > { %7754 = vmatprep.subr.bf16.mxu0 %v3431_v51  ;;  %v3266_v22 = vmul.f32 %v8503_v19, %v11780_v52 }
 0x833   : > { %3362 = vadd.xlane.f32.xlu0 %v3334_v21  ;;  %v3282_v18 = vmul.f32 %v3266_v22, %v14931_v63 }
 0x834   : > { %7755 = vmatpush3.bf16.msra.mxu0 %v3431_v51  ;;  %v14932_v51 = vld [vmem:[#allocation62_spill] sm:$0xff] }
 0x835   : > { %7756 = vmatprep.subr.bf16.mxu0 %v3432_v59  ;;  %v3298_v20 = vmul.f32 %v14932_v51, %v3282_v18 }
 0x837   : > { %3364 = vadd.xlane.f32.xlu0 %v3335_v24  ;;  %v12077_v38 = vsel %vm14934_vm12, 0.0, %v3298_v20  ;;  %vm14942_vm12 = vmmov %vm14935_vm0 }
 0x838   : > { %7757 = vmatpush3.bf16.msra.mxu0 %v3432_v59  ;;  %v3330_v49 = vand.u32 2147483647, %v12077_v38 }
 0x839   : > { %7758 = vmatprep.subr.bf16.mxu0 %v3433_v3 }
 0x83b   : > { %3368 = vadd.xlane.f32.xlu0 %v3337_v16 }
 0x83c   : > { %7759 = vmatpush3.bf16.msra.mxu0 %v3433_v3 }
 0x851   : > { %3354 = vadd.xlane.f32.xlu1 %v3330_v49 }
 0x890   : > { %v3343_v59 = vpop.xlane.xlu1 %3342 }
 0x891   : > { %v3372_v0 = vmax.f32 %v3343_v59, 1e-12 }
 0x894   : > { %v3339_v21 = vpop.xlane.xlu1 %3338 }
 0x895   : > { %v3370_v16 = vmax.f32 %v3339_v21, 1e-12 }
 0x899   : > { %v3345_v24 = vpop.xlane.xlu1 %3344 }
 0x89a   : > { %v3373_v3 = vmax.f32 %v3345_v24, 1e-12 }
 0x89c   : > { %8504 = vrcp.f32 %v3373_v3  ;;  %v3351_v18 = vpop.xlane.xlu0 %3350 }
 0x89d   : > { %8506 = vrcp.f32 %v3372_v0  ;;  %v3341_v52 = vpop.xlane.xlu1 %3340  ;;  %v3376_v49 = vmax.f32 %v3351_v18, 1e-12 }
 0x89e   : > { %8508 = vrcp.f32 %v3370_v16  ;;  %v3371_v19 = vmax.f32 %v3341_v52, 1e-12 }
 0x8a0   : > { %8510 = vrcp.f32 %v3371_v19 }
 0x8a1   : > { %v3347_v22 = vpop.xlane.xlu1 %3346 }
 0x8a2   : > { %v3374_v29 = vmax.f32 %v3347_v22, 1e-12 }
 0x8a5   : > { %v3353_v5 = vpop.xlane.xlu1 %3352 }
 0x8a6   : > { %v8505_v20 = vpop.eup %8504  ;;  %v3377_v61 = vmax.f32 %v3353_v5, 1e-12 }
 0x8a7   : > { %v8507_v37 = vpop.eup %8506  ;;  %v3405_v59 = vmul.f32 %v8505_v20, %v11876_v13 }
 0x8a8   : > { %v8509_v56 = vpop.eup %8508  ;;  %8512 = vrcp.f32 %v3377_v61  ;;  %v3404_v16 = vmul.f32 %v8507_v37, %v11855_v1 }
 0x8a9   : > { %v3349_v21 = vpop.xlane.xlu1 %3348  ;;  %8514 = vrcp.f32 %v3374_v29  ;;  %v3402_v3 = vmul.f32 %v8509_v56, %v11860_v11 }
 0x8aa   : > { %v8511_v24 = vpop.eup %8510  ;;  %v3375_v0 = vmax.f32 %v3349_v21, 1e-12  ;;  %8516 = vrcp.f32 %v3376_v49  ;;  %v3419_v22 = vpack.c.bf16 %v3405_v59, %v3404_v16 }
 0x8ab   : > { %v3403_v52 = vmul.f32 %v8511_v24, %v11882_v33 }
 0x8ac   : > { %8518 = vrcp.f32 %v3375_v0 }
 0x8ad   : > { %v3929_v19 = vpop.permute.xlu1 %3928  ;;  %v3418_v5 = vpack.c.bf16 %v3403_v52, %v3402_v3 }
 0x8ae   : > { %v3966_v18 = vadd.f32 %v11964_v30, %v3929_v19  ;;  %v3969_v13 = vadd.f32 %v11977_v27, %v3929_v19  ;;  %v3974_v61 = vadd.f32 %v11956_v28, %v3929_v19  ;;  %v3977_v29 = vadd.f32 %v11971_v55, %v3929_v19 }
 0x8af   : > { %7760 = vmatprep.mubr.bf16.mxu0 %v3418_v5  ;;  %v3982_v37 = vadd.f32 %v11996_v10, %v3929_v19  ;;  %v3985_v1 = vadd.f32 %v12014_v39, %v3929_v19  ;;  %v3990_v33 = vadd.f32 %v11983_v44, %v3929_v19  ;;  %v3993_v20 = vadd.f32 %v12002_v34, %v3929_v19 }
 0x8b0   : > { %7761 = vmatmul.mubr.bf16.vlgmr.msra.gmra.mrb[80].mxu0 %v3419_v22  ;;  %v4148_v56 = vpack.c.bf16 %v3969_v13, %v3966_v18  ;;  %v4149_v11 = vpack.c.bf16 %v3977_v29, %v3974_v61  ;;  %v3998_v30 = vadd.f32 %v12024_v43, %v3929_v19  ;;  %v4001_v27 = vadd.f32 %v12039_v48, %v3929_v19  ;;  %v14938_v22 = vld [vmem:[#allocation83_spill] sm:$0xff] }
 0x8b1   : > { %v4150_v49 = vpack.c.bf16 %v3985_v1, %v3982_v37  ;;  %v4006_v28 = vadd.f32 %v12017_v15, %v3929_v19  ;;  %v4151_v10 = vpack.c.bf16 %v3993_v20, %v3990_v33  ;;  %v4009_v39 = vadd.f32 %v12030_v53, %v3929_v19 }
 0x8b2   : > { %8206 = vmatprep.subr.msk.bf16.mxu1 %vm14935_vm0, %v4148_v56  ;;  %v4181_v55 = vsel %vm14936_vm15, %v4148_v56, 0  ;;  %v8513_v59 = vpop.eup %8512  ;;  %v4152_v21 = vpack.c.bf16 %v4001_v27, %v3998_v30  ;;  %v4014_v44 = vadd.f32 %v12046_v17, %v3929_v19  ;;  %v4017_v48 = vadd.f32 %v12057_v60, %v3929_v19  ;;  %vm14943_vm15 = vmmov %vm14935_vm0 }
 0x8b3   : > { %7873 = vmatpush3.bf16.xpose.msra.mxu1 %v4181_v55  ;;  %v8515_v34 = vpop.eup %8514  ;;  %v4153_v43 = vpack.c.bf16 %v4009_v39, %v4006_v28  ;;  %v4022_v15 = vadd.f32 %v12042_v58, %v3929_v19  ;;  %v4025_v0 = vadd.f32 %v12049_v12, %v3929_v19  ;;  %v3409_v3 = vmul.f32 %v8513_v59, %v11908_v14  ;;  %v3359_v58 = vpop.xlane.xlu0 %3358 }
 0x8b4   : > { %8207 = vmatprep.subr.msk.bf16.mxu1 %vm14937_vm3, %v4149_v11  ;;  %v8517_v24 = vpop.eup %8516  ;;  %v4154_v53 = vpack.c.bf16 %v4017_v48, %v4014_v44  ;;  %v3406_v52 = vmul.f32 %v8515_v34, %v11895_v9  ;;  %v4184_v61 = vsel %vm14939_vm5, %v4149_v11, 0  ;;  %v4187_v14 = vsel %vm14941_vm4, %v4150_v49, 0  ;;  %vm14944_vm3 = vmmov %vm14935_vm0 }
 0x8b5   : > { %v4155_v17 = vpack.c.bf16 %v4025_v0, %v4022_v15  ;;  %v3408_v18 = vmul.f32 %v8517_v24, %v14938_v22  ;;  %v4193_v37 = vsel %vm14944_vm3, %v4152_v21, 0  ;;  %vm14945_vm5 = vmmov %vm14935_vm0  ;;  %v3380_v1 = vmax.f32 %v3359_v58, 1e-12  ;;  %v14951_v58 = vld [vmem:[#allocation147_spill] sm:$0xff] }
 0x8b6   : > { %v8519_v16 = vpop.eup %8518  ;;  %vm14947_vm4 = vmmov %vm14935_vm0 }
 0x8b7   : > { %v3407_v5 = vmul.f32 %v8519_v16, %v11919_v40  ;;  %v3421_v60 = vpack.c.bf16 %v3409_v3, %v3408_v18  ;;  %v3361_v12 = vpop.xlane.xlu0 %3360  ;;  %v4190_v40 = vsel %vm14935_vm0, %v4151_v10, 0  ;;  %8520 = vrcp.f32 %v3380_v1  ;;  %vm14954_vm3 = vmmov %vm14935_vm0 }
 0x8b8   : > { %v3381_v11 = vmax.f32 %v3361_v12, 1e-12  ;;  %v14965_v1 = vpack.c.bf16 %v11962_v25, %v11951_v26  ;;  %v14968_v26 = vpack.c.bf16 %v12009_v35, %v11994_v50  ;;  %v14970_v25 = vld [vmem:[#allocation6_spill] sm:$0xff] }
 0x8b9   : > { %v3420_v13 = vpack.c.bf16 %v3407_v5, %v3406_v52  ;;  %v14950_v52 = vld [vmem:[#allocation96_spill] sm:$0xff] }
 0x8ba   : > { %8522 = vrcp.f32 %v3381_v11 }
 0x8bb   : > { %7764 = vmatprep.mubr.bf16.mxu0 %v3420_v13  ;;  %7875 = vmatpush3.bf16.xpose.msra.mxu1 %v4184_v61  ;;  %v3357_v9 = vpop.xlane.xlu0 %3356 }
 0x8bc   : > { %7765 = vmatmul.mubr.bf16.gmra.mrb[84].mxu0 %v3421_v60  ;;  %8208 = vmatprep.subr.msk.bf16.mxu1 %vm14940_vm10, %v4150_v49  ;;  %v3379_v33 = vmax.f32 %v3357_v9, 1e-12  ;;  %vm14946_vm10 = vmmov %vm14935_vm0 }
 0x8bd   : > { %v4196_v20 = vsel %vm14946_vm10, %v4153_v43, 0  ;;  %vm14962_vm10 = vmmov %vm14935_vm0 }
 0x8be   : > { %8524 = vrcp.f32 %v3379_v33 }
 0x8bf   : > { %v3367_v19 = vpop.xlane.xlu0 %3366 }
 0x8c0   : > { %v3384_v59 = vmax.f32 %v3367_v19, 1e-12  ;;  %v14960_v19 = vld [vmem:[#allocation155_spill] sm:$0xff] }
 0x8c3   : > { %7877 = vmatpush3.bf16.xpose.msra.mxu1 %v4187_v14  ;;  %v3363_v29 = vpop.xlane.xlu0 %3362 }
 0x8c4   : > { %8209 = vmatprep.subr.msk.bf16.mxu1 %vm14942_vm12, %v4151_v10  ;;  %v3382_v30 = vmax.f32 %v3363_v29, 1e-12  ;;  %vm14948_vm12 = vmmov %vm14935_vm0 }
 0x8c5   : > { %v4199_v39 = vsel %vm14948_vm12, %v4154_v53, 0  ;;  %vm14966_vm12 = vmmov %vm14935_vm0 }
 0x8c7   : > { %v3365_v56 = vpop.xlane.xlu0 %3364 }
 0x8c8   : > { %v3383_v49 = vmax.f32 %v3365_v56, 1e-12 }
 0x8ca   : > { %8526 = vrcp.f32 %v3383_v49 }
 0x8cb   : > { %7879 = vmatpush3.bf16.xpose.msra.mxu1 %v4190_v40  ;;  %v3369_v28 = vpop.xlane.xlu0 %3368  ;;  %8528 = vrcp.f32 %v3382_v30  ;;  %v14959_v40 = vld [vmem:[#allocation80_spill] sm:$0xff] }
 0x8cc   : > { %8210 = vmatprep.subr.msk.bf16.mxu1 %vm14943_vm15, %v4152_v21  ;;  %v3385_v10 = vmax.f32 %v3369_v28, 1e-12  ;;  %v8521_v21 = vpop.eup %8520  ;;  %vm14949_vm15 = vmmov %vm14935_vm0  ;;  %v14961_v29 = vpack.c.bf16 %v14959_v40, %v14960_v19 }
 0x8cd   : > { %v8523_v44 = vpop.eup %8522  ;;  %v4202_v15 = vsel %vm14949_vm15, %v4155_v17, 0  ;;  %v3412_v5 = vmul.f32 %v8521_v21, %v14950_v52  ;;  %vm14060_vm15 = vcmask 1043456  }
 0x8ce   : > { %v8525_v34 = vpop.eup %8524  ;;  %v3413_v0 = vmul.f32 %v8523_v44, %v11987_v62  ;;  %v14952_v62 = vld [vmem:[#allocation154_spill] sm:$0xff] }
 0x8cf   : > { %v3411_v3 = vmul.f32 %v8525_v34, %v11991_v23  ;;  %v14953_v12 = vpack.c.bf16 %v14951_v58, %v14952_v62  ;;  %v14955_v23 = vld [vmem:[#allocation91_spill] sm:$0xff] }
 0x8d0   : > { %v3423_v13 = vpack.c.bf16 %v3413_v0, %v3412_v5 }
 0x8d3   : > { %7881 = vmatpush3.bf16.xpose.msra.mxu1 %v4193_v37  ;;  %v14963_v37 = vpack.c.bf16 %v11969_v32, %v11954_v42 }
 0x8d4   : > { %8211 = vmatprep.subr.msk.bf16.mxu1 %vm14945_vm5, %v4153_v43  ;;  %v8527_v43 = vpop.eup %8526  ;;  %vm14958_vm5 = vmmov %vm14935_vm0 }
 0x8d5   : > { %v8529_v48 = vpop.eup %8528 }
 0x8d6   : > { %v3414_v18 = vmul.f32 %v8529_v48, %v12053_v8 }
 0x8db   : > { %7883 = vmatpush3.bf16.xpose.msra.mxu1 %v4196_v20 }
 0x8dc   : > { %8212 = vmatprep.subr.msk.bf16.mxu1 %vm14947_vm4, %v4154_v53  ;;  %v3415_v53 = vmul.f32 %v8527_v43, %v12063_v57  ;;  %vm14964_vm4 = vmmov %vm14935_vm0 }
 0x8de   : > { %v3355_v27 = vpop.xlane.xlu1 %3354  ;;  %v3424_v60 = vpack.c.bf16 %v3415_v53, %v3414_v18 }
 0x8df   : > { %v3378_v55 = vmax.f32 %v3355_v27, 1e-12 }
 0x8e1   : > { %8530 = vrcp.f32 %v3378_v55 }
 0x8e2   : > { %8532 = vrcp.f32 %v3385_v10 }
 0x8e3   : > { %7885 = vmatpush3.bf16.xpose.msra.mxu1 %v4199_v39  ;;  %8534 = vrcp.f32 %v3384_v59 }
 0x8e4   : > { %8213 = vmatprep.subr.msk.bf16.mxu1 %vm14935_vm0, %v4155_v17 }
 0x8eb   : > { %v8531_v24 = vpop.eup %8530  ;;  %7887 = vmatpush3.bf16.xpose.msra.mxu1 %v4202_v15 }
 0x8ec   : > { %v3410_v16 = vmul.f32 %v8531_v24, %v12077_v38  ;;  %v8533_v61 = vpop.eup %8532  ;;  %v14956_v38 = vld [vmem:[#allocation88_spill] sm:$0xff] }
 0x8ed   : > { %v8535_v17 = vpop.eup %8534  ;;  %v14957_v57 = vpack.c.bf16 %v14955_v23, %v14956_v38  ;;  %v3417_v14 = vmul.f32 %v8533_v61, %v12069_v54  ;;  %v3531_v54 = vld [vmem:[%s13801_s1 + $0xc4] sm:$0xf] }
 0x8ee   : > { %v3422_v22 = vpack.c.bf16 %v3411_v3, %v3410_v16  ;;  %v3416_v8 = vmul.f32 %v8535_v17, %v12034_v4  ;;  %v14967_v4 = vpack.c.bf16 %v12012_v47, %v12006_v41  ;;  %8204 = vmatprep.subr.msk.bf16.mxu0 %vm14060_vm15, %v3531_v54  ;;  %v3566_v42 = vsel %vm14060_vm15, %v3531_v54, 0  ;;  %v2577_v41 = vld [vmem:[%s13801_s1 + $0xc0] sm:$0xf] }
 0x8ef   : > { %7777 = vmatpush3.bf16.msra.mxu0 %v3566_v42  ;;  %v3690_v49 = vsel %vm14060_vm15, %v2577_v41, 0  ;;  %v15047_v17 = vld [vmem:[#allocation194_spill] sm:$0xff] }
 0x8f0   : > { %7768 = vmatprep.mubr.bf16.mxu0 %v3422_v22  ;;  %v3425_v9 = vpack.c.bf16 %v3417_v14, %v3416_v8  ;;  %8205 = vmatprep.subr.msk.bf16.mxu0 %vm14060_vm15, %v2577_v41  ;;  %v14985_v41 = vld [vmem:[#allocation139_spill] sm:$0xff]  ;;  %vm15015_vm15 = vmmov %vm14935_vm0  ;;  %v15046_v22 = vld [vmem:[#allocation193_spill] sm:$0xff] }
 0x8f1   : > { %7769 = vmatmul.mubr.bf16.gmra.mrb[88].mxu0 %v3423_v13 }
 0x8f2   : > { %7772 = vmatprep.mubr.bf16.mxu0 %v3424_v60  ;;  %7889 = vmatmul.mubr.msk.bf16.vlgmr.msra.gmra.mrb[96].mxu1 %vm14954_vm3, %v14953_v12  ;;  %vm14969_vm3 = vmmov %vm14935_vm0 }
 0x8f3   : > { %7892 = vmatprep.mubr.msk.bf16.mxu1 %vm14958_vm5, %v14957_v57  ;;  %vm14971_vm5 = vcmask 261120  }
 0x8f9   : > { %7773 = vmatmul.mubr.bf16.gmra.mrb[92].mxu0 %v3425_v9 }
 0x8fa   : > { %7893 = vmatmul.mubr.msk.bf16.gmra.mrb[100].mxu1 %vm14962_vm10, %v14961_v29  ;;  %vm14972_vm10 = vmmov %vm14935_vm0 }
 0x8fb   : > { %7896 = vmatprep.mubr.msk.bf16.mxu1 %vm14964_vm4, %v14963_v37  ;;  %vm14973_vm4 = vmmov %vm14935_vm0 }
 0x902   : > { %7897 = vmatmul.mubr.msk.bf16.gmra.mrb[104].mxu1 %vm14966_vm12, %v14965_v1  ;;  %vm14974_vm12 = vmmov %vm14935_vm0 }
 0x903   : > { %7900 = vmatprep.mubr.msk.bf16.mxu1 %vm14935_vm0, %v14967_v4 }
 0x90a   : > { %7901 = vmatmul.mubr.msk.bf16.gmra.mrb[108].mxu1 %vm14969_vm3, %v14968_v26  ;;  %vm14976_vm3 = vmmov %vm14935_vm0 }
 0x90b   : > { %7958 = vmatprep.mubr.msk.bf16.mxu1 %vm14971_vm5, %v14970_v25  ;;  %vm14977_vm5 = vmmov %vm14935_vm0 }
 0x983   : > { %v7762_v32 = vpop.f32.mrb[80].mxu0 }
 0x984   : > { %v3468_v47 = vpop.f32.mrb[81].mxu0 }
 0x985   : > { %v7763_v56 = vpop.f32.mrb[82].mxu0 }
 0x986   : > { %v3533_v11 = vpack.c.bf16 %v7763_v56, %v7762_v32  ;;  %v3471_v33 = vpop.f32.mrb[83].mxu0  ;;  %v14986_v32 = vld [vmem:[#allocation93_spill] sm:$0xff] }
 0x987   : > { %v3532_v20 = vpack.c.bf16 %v3471_v33, %v3468_v47  ;;  %v14987_v47 = vpack.c.bf16 %v14985_v41, %v14986_v32  ;;  %v15010_v41 = vld [vmem:[#allocation135_spill] sm:$0xff] }
 0x989   : > { %7778 = vmatprep.mubr.msk.bf16.mxu0 %vm14972_vm10, %v3532_v20  ;;  %vm14982_vm10 = vmmov %vm14935_vm0 }
 0x98a   : > { %7779 = vmatmul.mubr.msk.bf16.vlgmr.msra.gmra.mrb[96].mxu0 %vm14973_vm4, %v3533_v11  ;;  %vm14983_vm4 = vmmov %vm14935_vm0 }
 0x98b   : > { %7795 = vmatpush3.bf16.msra.mxu0 %v3690_v49 }
 0x98f   : > { %v7766_v50 = vpop.f32.mrb[84].mxu0 }
 0x990   : > { %v3484_v35 = vpop.f32.mrb[85].mxu0 }
 0x991   : > { %v7767_v30 = vpop.f32.mrb[86].mxu0 }
 0x992   : > { %v3535_v27 = vpack.c.bf16 %v7767_v30, %v7766_v50  ;;  %v3487_v28 = vpop.f32.mrb[87].mxu0 }
 0x993   : > { %v3534_v55 = vpack.c.bf16 %v3487_v28, %v3484_v35 }
 0x995   : > { %7782 = vmatprep.mubr.msk.bf16.mxu0 %vm14974_vm12, %v3534_v55  ;;  %vm14988_vm12 = vmmov %vm14935_vm0 }
 0x996   : > { %7783 = vmatmul.mubr.msk.bf16.gmra.mrb[100].mxu0 %vm14935_vm0, %v3535_v27 }
 0x9c4   : > { %v7770_v10 = vpop.f32.mrb[88].mxu0 }
 0x9c5   : > { %v3500_v39 = vpop.f32.mrb[89].mxu0  ;;  %v7890_v59 = vpop.f32.mrb[96].mxu1 }
 0x9c6   : > { %v7771_v21 = vpop.f32.mrb[90].mxu0  ;;  %v4238_v44 = vpop.f32.mrb[97].mxu1  ;;  %v4303_v16 = vmul.f32 0.35355338, %v7890_v59 }
 0x9c7   : > { %v3537_v34 = vpack.c.bf16 %v7771_v21, %v7770_v10  ;;  %v4301_v43 = vmul.f32 0.35355338, %v4238_v44  ;;  %v3503_v48 = vpop.f32.mrb[91].mxu0  ;;  %v7891_v15 = vpop.f32.mrb[98].mxu1  ;;  %v14992_v21 = vld [vmem:[#allocation133_spill] sm:$0xff]  ;;  %v14993_v44 = vld [vmem:[#allocation118_spill] sm:$0xff] }
 0x9c8   : > { %v3536_v24 = vpack.c.bf16 %v3503_v48, %v3500_v39  ;;  %v4241_v0 = vpop.f32.mrb[99].mxu1  ;;  %v4304_v5 = vmul.f32 0.35355338, %v7891_v15  ;;  %v12186_v58 = vsel %vm9854_vm6, %v4303_v16, -1e+30  ;;  %v14997_v15 = vld [vmem:[#allocation98_spill] sm:$0xff] }
 0x9c9   : > { %v4302_v3 = vmul.f32 0.35355338, %v4241_v0  ;;  %v12174_v52 = vsel %vm9862_vm7, %v4301_v43, -1e+30  ;;  %v14995_v43 = vld [vmem:[#allocation130_spill] sm:$0xff] }
 0x9ca   : > { %4333 = vmax.xlane.f32.xlu0 %v12174_v52  ;;  %7786 = vmatprep.mubr.msk.bf16.mxu0 %vm14976_vm3, %v3536_v24  ;;  %v12191_v9 = vsel %vm9879_vm9, %v4304_v5, -1e+30  ;;  %vm14996_vm3 = vnez %v14995_v43  ;;  %v14998_v24 = vld [vmem:[#allocation148_spill] sm:$0xff] }
 0x9cb   : > { %7787 = vmatmul.mubr.msk.bf16.gmra.mrb[104].mxu0 %vm14977_vm5, %v3537_v34  ;;  %v12181_v18 = vsel %vm9898_vm11, %v4302_v3, -1e+30  ;;  %v14994_v34 = vpack.c.bf16 %v14992_v21, %v14993_v44  ;;  %v14999_v0 = vpack.c.bf16 %v14997_v15, %v14998_v24  ;;  %vm15000_vm5 = vmmov %vm14935_vm0  ;;  %v15001_v3 = vld [vmem:[#allocation117_spill] sm:$0xff]  ;;  %v15023_v44 = vld [vmem:[#allocation140_spill] sm:$0xff] }
 0x9cc   : > { %4335 = vmax.xlane.f32.xlu1 %v12181_v18  ;;  %v7774_v13 = vpop.f32.mrb[92].mxu0  ;;  %v15027_v24 = vld [vmem:[#allocation146_spill] sm:$0xff] }
 0x9cd   : > { %v3516_v61 = vpop.f32.mrb[93].mxu0  ;;  %v7894_v60 = vpop.f32.mrb[100].mxu1 }
 0x9ce   : > { %4337 = vmax.xlane.f32.xlu0 %v12186_v58  ;;  %v7775_v62 = vpop.f32.mrb[94].mxu0  ;;  %v4254_v12 = vpop.f32.mrb[101].mxu1  ;;  %v4307_v29 = vmul.f32 0.35355338, %v7894_v60 }
 0x9cf   : > { %v3539_v23 = vpack.c.bf16 %v7775_v62, %v7774_v13  ;;  %v4305_v38 = vmul.f32 0.35355338, %v4254_v12  ;;  %v3519_v57 = vpop.f32.mrb[95].mxu0  ;;  %v7895_v14 = vpop.f32.mrb[102].mxu1  ;;  %v15003_v62 = vld [vmem:[#allocation128_spill] sm:$0xff] }
 0x9d0   : > { %v3538_v40 = vpack.c.bf16 %v3519_v57, %v3516_v61  ;;  %4339 = vmax.xlane.f32.xlu1 %v12191_v9  ;;  %v4257_v19 = vpop.f32.mrb[103].mxu1  ;;  %v4308_v54 = vmul.f32 0.35355338, %v7895_v14  ;;  %v12212_v33 = vsel %vm9914_vm13, %v4307_v29, -1e+30  ;;  %v15005_v14 = vld [vmem:[#allocation125_spill] sm:$0xff] }
 0x9d1   : > { %v4306_v37 = vmul.f32 0.35355338, %v4257_v19  ;;  %v12196_v4 = vsel %vm9929_vm2, %v4305_v38, -1e+30  ;;  %v15007_v29 = vld [vmem:[#allocation149_spill] sm:$0xff] }
 0x9d2   : > { %4341 = vmax.xlane.f32.xlu0 %v12196_v4  ;;  %7790 = vmatprep.mubr.msk.bf16.mxu0 %vm14982_vm10, %v3538_v40  ;;  %v12217_v30 = vsel %vm9961_vm8, %v4308_v54, -1e+30  ;;  %vm15002_vm10 = vnez %v15001_v3 }
 0x9d3   : > { %7791 = vmatmul.mubr.msk.bf16.gmra.mrb[108].mxu0 %vm14983_vm4, %v3539_v23  ;;  %v12203_v26 = vsel %vm9973_vm14, %v4306_v37, -1e+30  ;;  %vm15004_vm4 = vnez %v15003_v62  ;;  %v15008_v37 = vld [vmem:[#allocation142_spill] sm:$0xff] }
 0x9d4   : > { %4343 = vmax.xlane.f32.xlu1 %v12203_v26  ;;  %7796 = vmatprep.mubr.msk.bf16.mxu0 %vm14988_vm12, %v14987_v47  ;;  %vm15006_vm12 = vnez %v15005_v14  ;;  %v15009_v54 = vpack.c.bf16 %v15007_v29, %v15008_v37  ;;  %v15012_v47 = vld [vmem:[#allocation113_spill] sm:$0xff]  ;;  %v15042_v29 = vld [vmem:[#allocation12_spill] sm:$0xff] }
 0x9d5   : > { %v7898_v56 = vpop.f32.mrb[104].mxu1  ;;  %v15044_v37 = vld [vmem:[#allocation13_spill] sm:$0xff] }
 0x9d6   : > { %4345 = vmax.xlane.f32.xlu0 %v12212_v33  ;;  %v4270_v20 = vpop.f32.mrb[105].mxu1  ;;  %v4311_v28 = vmul.f32 0.35355338, %v7898_v56  ;;  %v15013_v56 = vld [vmem:[#allocation107_spill] sm:$0xff] }
 0x9d7   : > { %v4309_v49 = vmul.f32 0.35355338, %v4270_v20  ;;  %v7899_v50 = vpop.f32.mrb[106].mxu1  ;;  %v15014_v20 = vpack.c.bf16 %v15012_v47, %v15013_v56 }
 0x9d8   : > { %4347 = vmax.xlane.f32.xlu1 %v12217_v30  ;;  %v4273_v27 = vpop.f32.mrb[107].mxu1  ;;  %v4312_v59 = vmul.f32 0.35355338, %v7899_v50  ;;  %v12240_v5 = vsel %vm15002_vm10, %v4311_v28, -1e+30 }
 0x9d9   : > { %v4310_v55 = vmul.f32 0.35355338, %v4273_v27  ;;  %v12222_v39 = vsel %vm14852_vm1, %v4309_v49, -1e+30  ;;  %v15016_v49 = vld [vmem:[#allocation123_spill] sm:$0xff]  ;;  %v15018_v27 = vld [vmem:[#allocation132_spill] sm:$0xff] }
 0x9da   : > { %4349 = vmax.xlane.f32.xlu0 %v12222_v39  ;;  %v12245_v12 = vsel %vm15004_vm4, %v4312_v59, -1e+30  ;;  %v15021_v59 = vld [vmem:[#allocation101_spill] sm:$0xff] }
 0x9db   : > { %7797 = vmatmul.mubr.msk.bf16.vlgmr.msra.gmra.mrb[96].mxu0 %vm14935_vm0, %v14994_v34  ;;  %v12231_v48 = vsel %vm14996_vm3, %v4310_v55, -1e+30  ;;  %vm15019_vm3 = vnez %v15018_v27  ;;  %v15020_v55 = vld [vmem:[#allocation124_spill] sm:$0xff]  ;;  %v15024_v34 = vld [vmem:[#allocation129_spill] sm:$0xff] }
 0x9dc   : > { %4351 = vmax.xlane.f32.xlu1 %v12231_v48  ;;  %7800 = vmatprep.mubr.msk.bf16.mxu0 %vm15000_vm5, %v14999_v0  ;;  %vm15011_vm5 = vnez %v15010_v41  ;;  %v15022_v21 = vpack.c.bf16 %v15020_v55, %v15021_v59  ;;  %v15025_v15 = vpack.c.bf16 %v15023_v44, %v15024_v34  ;;  %v15028_v0 = vld [vmem:[#allocation137_spill] sm:$0xff] }
 0x9dd   : > { %v7902_v16 = vpop.f32.mrb[108].mxu1 }
 0x9de   : > { %4353 = vmax.xlane.f32.xlu0 %v12240_v5  ;;  %v4286_v13 = vpop.f32.mrb[109].mxu1  ;;  %v4315_v38 = vmul.f32 0.35355338, %v7902_v16  ;;  %v15029_v16 = vpack.c.bf16 %v15027_v24, %v15028_v0 }
 0x9df   : > { %v4313_v61 = vmul.f32 0.35355338, %v4286_v13  ;;  %v7903_v60 = vpop.f32.mrb[110].mxu1  ;;  %v8298_v13 = vld [vmem:[%s13801_s1 + $0xa0] sm:$0xff]  }
 0x9e0   : > { %4355 = vmax.xlane.f32.xlu1 %v12245_v12  ;;  %v4289_v23 = vpop.f32.mrb[111].mxu1  ;;  %v4316_v19 = vmul.f32 0.35355338, %v7903_v60  ;;  %7852 = vmatprep.subr.bf16.mxu0 %v8298_v13  ;;  %v15032_v60 = vld [vmem:[#allocation7_spill] sm:$0xff] }
 0x9e1   : > { %v4314_v57 = vmul.f32 0.35355338, %v4289_v23  ;;  %v12250_v40 = vsel %vm15006_vm12, %v4313_v61, -1e+30  ;;  %vm15017_vm12 = vnez %v15016_v49  ;;  %v8299_v61 = vld [vmem:[%s13801_s1 + $0xa8] sm:$0xff]   ;;  %7853 = vmatpush3.bf16.msra.mxu0 %v8298_v13  ;;  %v15034_v23 = vld [vmem:[#allocation8_spill] sm:$0xff] }
 0x9e2   : > { %4357 = vmax.xlane.f32.xlu0 %v12250_v40  ;;  %v12268_v50 = vsel %vm15017_vm12, %v4315_v38, -1e+30  ;;  %v12273_v28 = vsel %vm15019_vm3, %v4316_v19, -1e+30  ;;  %vm15030_vm12 = vmmov %vm14935_vm0  ;;  %7854 = vmatprep.subr.bf16.mxu0 %v8299_v61  ;;  %v15036_v38 = vld [vmem:[#allocation9_spill] sm:$0xff]  ;;  %v15040_v19 = vld [vmem:[#allocation11_spill] sm:$0xff] }
 0x9e3   : > { %7801 = vmatmul.mubr.msk.bf16.gmra.mrb[100].mxu0 %vm14935_vm0, %v15009_v54  ;;  %v12259_v32 = vsel %vm15011_vm5, %v4314_v57, -1e+30  ;;  %vm15031_vm5 = vcmask 261120   ;;  %v15038_v57 = vld [vmem:[#allocation10_spill] sm:$0xff] }
 0x9e4   : > { %4359 = vmax.xlane.f32.xlu1 %v12259_v32  ;;  %7804 = vmatprep.mubr.msk.bf16.mxu0 %vm15015_vm15, %v15014_v20  ;;  %vm15026_vm15 = vmmov %vm14935_vm0 }
 0x9e5   : > { %7855 = vmatpush3.bf16.msra.mxu0 %v8299_v61 }
 0x9e6   : > { %4361 = vmax.xlane.f32.xlu0 %v12268_v50 }
 0x9e8   : > { %4363 = vmax.xlane.f32.xlu1 %v12273_v28 }
 0x9eb   : > { %7805 = vmatmul.mubr.msk.bf16.gmra.mrb[104].mxu0 %vm14935_vm0, %v15022_v21  ;;  %vm15033_vm0 = vmmov %vm15031_vm5 }
 0x9ec   : > { %7808 = vmatprep.mubr.msk.bf16.mxu0 %vm15026_vm15, %v15025_v15  ;;  %vm15039_vm15 = vmmov %vm15033_vm0 }
 0x9ed   : > { %vm15041_vm4 = vmmov %vm15033_vm0 }
 0x9ee   : > { %vm15043_vm1 = vmmov %vm15033_vm0 }
 0x9ef   : > { %vm15045_vm10 = vmmov %vm15033_vm0 }
 0x9f3   : > { %7809 = vmatmul.mubr.msk.bf16.gmra.mrb[108].mxu0 %vm15030_vm12, %v15029_v16  ;;  %vm15035_vm12 = vmmov %vm15033_vm0 }
 0x9f4   : > { %7856 = vmatprep.mubr.msk.bf16.mxu0 %vm15031_vm5, %v14970_v25  ;;  %vm15037_vm5 = vmmov %vm15033_vm0 }
 0x9fb   : > { %7857 = vmatmul.mubr.msk.bf16.vlgmr.msra.gmra.mrb[112].mxu0 %vm15033_vm0, %v15032_v60 }
 0x9fc   : > { %7860 = vmatprep.mubr.msk.bf16.mxu0 %vm15035_vm12, %v15034_v23 }
 0xa03   : > { %7861 = vmatmul.mubr.msk.bf16.gmra.mrb[116].mxu0 %vm15037_vm5, %v15036_v38 }
 0xa04   : > { %7864 = vmatprep.mubr.msk.bf16.mxu0 %vm15039_vm15, %v15038_v57 }
 0xa0b   : > { %7865 = vmatmul.mubr.msk.bf16.gmra.mrb[120].mxu0 %vm15041_vm4, %v15040_v19  ;;  %v15050_v19 = vld [vmem:[#allocation195_spill] sm:$0xff] }
 0xa0c   : > { %7868 = vmatprep.mubr.msk.bf16.mxu0 %vm15043_vm1, %v15042_v29  ;;  %v15049_v29 = vld [vmem:[#allocation54_spill] sm:$0xff] }
 0xa13   : > { %7869 = vmatmul.mubr.msk.bf16.gmra.mrb[124].mxu0 %vm15045_vm10, %v15044_v37 }
 0xa57   : > { %v4334_v54 = vpop.xlane.xlu0 %4333 }
 0xa58   : > { %v4365_v47 = vsub.f32 %v12174_v52, %v4334_v54 }
 0xa59   : > { %v4336_v56 = vpop.xlane.xlu1 %4335 }
 0xa5a   : > { %v4381_v20 = vmul.f32 1.442695, %v4365_v47  ;;  %v4366_v55 = vsub.f32 %v12181_v18, %v4336_v56 }
 0xa5b   : > { %v4338_v59 = vpop.xlane.xlu0 %4337 }
 0xa5c   : > { %8536 = vpow2.f32 %v4381_v20  ;;  %v4383_v21 = vmul.f32 1.442695, %v4366_v55  ;;  %v4367_v44 = vsub.f32 %v12186_v58, %v4338_v59 }
 0xa5d   : > { %v4340_v34 = vpop.xlane.xlu1 %4339 }
 0xa5e   : > { %8538 = vpow2.f32 %v4383_v21  ;;  %v4385_v15 = vmul.f32 1.442695, %v4367_v44  ;;  %v4368_v24 = vsub.f32 %v12191_v9, %v4340_v34 }
 0xa5f   : > { %v4342_v0 = vpop.xlane.xlu0 %4341 }
 0xa60   : > { %8540 = vpow2.f32 %v4385_v15  ;;  %v4387_v16 = vmul.f32 1.442695, %v4368_v24  ;;  %v4369_v13 = vsub.f32 %v12196_v4, %v4342_v0 }
 0xa61   : > { %v4344_v52 = vpop.xlane.xlu1 %4343 }
 0xa62   : > { %8542 = vpow2.f32 %v4387_v16  ;;  %v4389_v61 = vmul.f32 1.442695, %v4369_v13  ;;  %v4370_v18 = vsub.f32 %v12203_v26, %v4344_v52 }
 0xa63   : > { %v4346_v54 = vpop.xlane.xlu0 %4345 }
 0xa64   : > { %8544 = vpow2.f32 %v4389_v61  ;;  %v4391_v47 = vmul.f32 1.442695, %v4370_v18  ;;  %v4371_v58 = vsub.f32 %v12212_v33, %v4346_v54 }
 0xa65   : > { %v4348_v56 = vpop.xlane.xlu1 %4347 }
 0xa66   : > { %v12317_v20 = vpop.eup %8536  ;;  %8546 = vpow2.f32 %v4391_v47  ;;  %v4393_v9 = vmul.f32 1.442695, %v4371_v58  ;;  %v4372_v55 = vsub.f32 %v12217_v30, %v4348_v56 }
 0xa67   : > { %v4350_v59 = vpop.xlane.xlu0 %4349  ;;  %4413 = vadd.xlane.f32.xlu0 %v12317_v20 }
 0xa68   : > { %v12321_v4 = vpop.eup %8538  ;;  %8548 = vpow2.f32 %v4393_v9  ;;  %v4395_v21 = vmul.f32 1.442695, %v4372_v55  ;;  %v4373_v26 = vsub.f32 %v12222_v39, %v4350_v59 }
 0xa69   : > { %4415 = vadd.xlane.f32.xlu1 %v12321_v4  ;;  %v4352_v44 = vpop.xlane.xlu1 %4351 }
 0xa6a   : > { %v12325_v33 = vpop.eup %8540  ;;  %8550 = vpow2.f32 %v4395_v21  ;;  %v4397_v34 = vmul.f32 1.442695, %v4373_v26  ;;  %v4374_v15 = vsub.f32 %v12231_v48, %v4352_v44 }
 0xa6b   : > { %v4354_v24 = vpop.xlane.xlu0 %4353  ;;  %4417 = vadd.xlane.f32.xlu0 %v12325_v33 }
 0xa6c   : > { %v12329_v30 = vpop.eup %8542  ;;  %8552 = vpow2.f32 %v4397_v34  ;;  %v4399_v0 = vmul.f32 1.442695, %v4374_v15  ;;  %v4375_v16 = vsub.f32 %v12240_v5, %v4354_v24 }
 0xa6d   : > { %4419 = vadd.xlane.f32.xlu1 %v12329_v30  ;;  %v4356_v39 = vpop.xlane.xlu1 %4355 }
 0xa6e   : > { %v12333_v13 = vpop.eup %8544  ;;  %8554 = vpow2.f32 %v4399_v0  ;;  %v4401_v52 = vmul.f32 1.442695, %v4375_v16  ;;  %v4376_v61 = vsub.f32 %v12245_v12, %v4356_v39 }
 0xa6f   : > { %4421 = vadd.xlane.f32.xlu0 %v12333_v13  ;;  %v4358_v48 = vpop.xlane.xlu0 %4357 }
 0xa70   : > { %v12337_v18 = vpop.eup %8546  ;;  %8556 = vpow2.f32 %v4401_v52  ;;  %v4403_v54 = vmul.f32 1.442695, %v4376_v61  ;;  %v4377_v47 = vsub.f32 %v12250_v40, %v4358_v48  ;;  %v8809_v52 = vld [vmem:[%s13802_s2 + $0xa] ss:$0 sm:$0xff] }
 0xa71   : > { %4423 = vadd.xlane.f32.xlu1 %v12337_v18  ;;  %v4360_v5 = vpop.xlane.xlu1 %4359 }
 0xa72   : > { %v12341_v58 = vpop.eup %8548  ;;  %8558 = vpow2.f32 %v4403_v54  ;;  %v4405_v56 = vmul.f32 1.442695, %v4377_v47  ;;  %v4378_v9 = vsub.f32 %v12259_v32, %v4360_v5 }
 0xa73   : > { %4425 = vadd.xlane.f32.xlu0 %v12341_v58  ;;  %v4362_v12 = vpop.xlane.xlu0 %4361 }
 0xa74   : > { %v12345_v55 = vpop.eup %8550  ;;  %8560 = vpow2.f32 %v4405_v56  ;;  %v4407_v59 = vmul.f32 1.442695, %v4378_v9  ;;  %v4379_v21 = vsub.f32 %v12268_v50, %v4362_v12 }
 0xa75   : > { %4427 = vadd.xlane.f32.xlu1 %v12345_v55  ;;  %v4364_v40 = vpop.xlane.xlu1 %4363 }
 0xa76   : > { %v12349_v26 = vpop.eup %8552  ;;  %8562 = vpow2.f32 %v4407_v59  ;;  %v4409_v44 = vmul.f32 1.442695, %v4379_v21  ;;  %v4380_v34 = vsub.f32 %v12273_v28, %v4364_v40 }
 0xa77   : > { %4429 = vadd.xlane.f32.xlu0 %v12349_v26 }
 0xa78   : > { %v12353_v32 = vpop.eup %8554  ;;  %8564 = vpow2.f32 %v4409_v44  ;;  %v4411_v15 = vmul.f32 1.442695, %v4380_v34 }
 0xa79   : > { %4431 = vadd.xlane.f32.xlu1 %v12353_v32 }
 0xa7a   : > { %v12356_v24 = vpop.eup %8556  ;;  %8566 = vpow2.f32 %v4411_v15 }
 0xa7b   : > { %4433 = vadd.xlane.f32.xlu0 %v12356_v24 }
 0xa7c   : > { %v12359_v50 = vpop.eup %8558 }
 0xa7d   : > { %4435 = vadd.xlane.f32.xlu1 %v12359_v50 }
 0xa7e   : > { %v12362_v0 = vpop.eup %8560 }
 0xa7f   : > { %4437 = vadd.xlane.f32.xlu0 %v12362_v0 }
 0xa80   : > { %v12365_v28 = vpop.eup %8562 }
 0xa81   : > { %4439 = vadd.xlane.f32.xlu1 %v12365_v28 }
 0xa82   : > { %v12368_v16 = vpop.eup %8564 }
 0xa83   : > { %4441 = vadd.xlane.f32.xlu0 %v12368_v16 }
 0xa84   : > { %v12371_v39 = vpop.eup %8566 }
 0xa85   : > { %4443 = vadd.xlane.f32.xlu1 %v12371_v39 }
 0xa99   : > { %4040 = vrot.lane.b32.xlu0 %v8809_v52, %s14297_s24 }
 0xace   : > { %v12378_v61 = vpop.f32.mrb[112].mxu0 }
 0xacf   : > { %v12380_v48 = vpop.f32.mrb[113].mxu0 }
 0xad0   : > { %v12382_v54 = vpop.f32.mrb[114].mxu0 }
 0xad1   : > { %v12384_v47 = vpop.f32.mrb[115].mxu0 }
 0xad6   : > { %v12386_v5 = vpop.f32.mrb[116].mxu0 }
 0xad7   : > { %v12388_v56 = vpop.f32.mrb[117].mxu0 }
 0xad8   : > { %v12390_v9 = vpop.f32.mrb[118].mxu0 }
 0xad9   : > { %v12392_v12 = vpop.f32.mrb[119].mxu0 }
 0xade   : > { %v12394_v59 = vpop.f32.mrb[120].mxu0 }
 0xadf   : > { %v12396_v21 = vpop.f32.mrb[121].mxu0 }
 0xae0   : > { %v12398_v44 = vpop.f32.mrb[122].mxu0 }
 0xae1   : > { %v12400_v34 = vpop.f32.mrb[123].mxu0 }
 0xae6   : > { %v12402_v41 = vpop.f32.mrb[124].mxu0 }
 0xae7   : > { %v12404_v14 = vpop.f32.mrb[125].mxu0 }
 0xae8   : > { %v12406_v62 = vpop.f32.mrb[126].mxu0 }
 0xae9   : > { %v12408_v10 = vpop.f32.mrb[127].mxu0 }
 0xaf4   : > { %v4414_v40 = vpop.xlane.xlu0 %4413 }
 0xaf5   : > { %8568 = vrcp.f32 %v4414_v40 }
 0xaf6   : > { %v4416_v15 = vpop.xlane.xlu1 %4415 }
 0xaf8   : > { %v4418_v52 = vpop.xlane.xlu0 %4417 }
 0xaf9   : > { %8570 = vrcp.f32 %v4418_v52 }
 0xafa   : > { %8572 = vrcp.f32 %v4416_v15  ;;  %v4420_v49 = vpop.xlane.xlu1 %4419 }
 0xafb   : > { %8574 = vrcp.f32 %v4420_v49 }
 0xafc   : > { %v4422_v43 = vpop.xlane.xlu0 %4421 }
 0xafd   : > { %8576 = vrcp.f32 %v4422_v43 }
 0xafe   : > { %v4424_v3 = vpop.xlane.xlu1 %4423 }
 0xaff   : > { %v8569_v27 = vpop.eup %8568 }
 0xb00   : > { %v4426_v40 = vpop.xlane.xlu0 %4425  ;;  %v4461_v35 = vmul.f32 %v8569_v27, %v12317_v20  ;;  %v15048_v20 = vld [vmem:[#allocation38_spill] sm:$0xff] }
 0xb01   : > { %8578 = vrcp.f32 %v4426_v40 }
 0xb02   : > { %v4428_v52 = vpop.xlane.xlu1 %4427  ;;  %v4477_v42 = vmul.f32 %v4461_v35, %v15046_v22 }
 0xb03   : > { %v8571_v15 = vpop.eup %8570  ;;  %8580 = vrcp.f32 %v4428_v52 }
 0xb04   : > { %v8573_v11 = vpop.eup %8572  ;;  %v4430_v1 = vpop.xlane.xlu0 %4429  ;;  %v4463_v49 = vmul.f32 %v8571_v15, %v12325_v33  ;;  %8582 = vrcp.f32 %v4424_v3  ;;  %v4493_v52 = vmul.f32 %v15049_v29, %v4477_v42  ;;  %v15051_v15 = vld [vmem:[#allocation22_spill] sm:$0xff] }
 0xb05   : > { %v8575_v8 = vpop.eup %8574  ;;  %v4462_v37 = vmul.f32 %v8573_v11, %v12321_v4  ;;  %vm15052_vm1 = vcmp.eq.f32.partialorder %v15051_v15, 0.0  ;;  %v15054_v4 = vld [vmem:[#allocation18_spill] sm:$0xff] }
 0xb06   : > { %v4432_v53 = vpop.xlane.xlu1 %4431  ;;  %v4479_v25 = vmul.f32 %v4463_v49, %v15047_v17  ;;  %v4464_v43 = vmul.f32 %v8575_v8, %v12329_v30  ;;  %v15053_v8 = vld [vmem:[#allocation192_spill] sm:$0xff]  ;;  %vm15055_vm10 = vcmp.eq.f32.partialorder %v15054_v4, 0.0 }
 0xb07   : > { %v8577_v38 = vpop.eup %8576  ;;  %v4478_v30 = vmul.f32 %v4462_v37, %v15053_v8  ;;  %v15058_v8 = vld [vmem:[#allocation35_spill] sm:$0xff] }
 0xb08   : > { %v4434_v27 = vpop.xlane.xlu0 %4433  ;;  %v4495_v40 = vmul.f32 %v15048_v20, %v4479_v25  ;;  %v4480_v57 = vmul.f32 %v4464_v43, %v15050_v19  ;;  %v12427_v25 = vsel %vm15055_vm10, 0.0, %v4493_v52  ;;  %v15056_v43 = vld [vmem:[#allocation34_spill] sm:$0xff]  ;;  %v4465_v29 = vmul.f32 %v8577_v38, %v12333_v13  ;;  %v15059_v52 = vld [vmem:[#allocation60_spill] sm:$0xff]  ;;  %v15062_v38 = vld [vmem:[#allocation37_spill] sm:$0xff] }
 0xb09   : > { %8584 = vrcp.f32 %v4434_v27  ;;  %v15057_v27 = vld [vmem:[#allocation71_spill] sm:$0xff]  ;;  %v4525_v37 = vand.u32 2147483647, %v12427_v25  ;;  %v4494_v22 = vmul.f32 %v15058_v8, %v4478_v30  ;;  %vm15080_vm10 = vcmp.eq.f32.partialorder %v11377_v7, 0.0 }
 0xb0a   : > { %v4436_v33 = vpop.xlane.xlu1 %4435  ;;  %v12421_v35 = vsel %vm15052_vm1, 0.0, %v4495_v40  ;;  %v4496_v19 = vmul.f32 %v15056_v43, %v4480_v57  ;;  %8586 = vrcp.f32 %v4430_v1  ;;  %v4481_v13 = vmul.f32 %v4465_v29, %v15062_v38  ;;  %v15067_v29 = vld [vmem:[#allocation53_spill] sm:$0xff] }
 0xb0b   : > { %v8579_v3 = vpop.eup %8578  ;;  %v4527_v49 = vand.u32 2147483647, %v12421_v35  ;;  %8588 = vrcp.f32 %v4436_v33 }
 0xb0c   : > { %v4438_v11 = vpop.xlane.xlu0 %4437  ;;  %v4467_v42 = vmul.f32 %v8579_v3, %v12341_v58  ;;  %v15060_v58 = vld [vmem:[#allocation30_spill] sm:$0xff] }
 0xb0d   : > { %v8581_v15 = vpop.eup %8580  ;;  %4545 = vadd.xlane.f32.xlu1 %v4527_v49  ;;  %vm15061_vm4 = vcmp.eq.f32.partialorder %v15060_v58, 0.0  ;;  %v15063_v49 = vld [vmem:[#allocation36_spill] sm:$0xff] }
 0xb0e   : > { %v4440_v40 = vpop.xlane.xlu1 %4439  ;;  %v4483_v20 = vmul.f32 %v4467_v42, %v15057_v27  ;;  %v8583_v17 = vpop.eup %8582  ;;  %v12440_v57 = vsel %vm15061_vm4, 0.0, %v4496_v19  ;;  %v4468_v1 = vmul.f32 %v8581_v15, %v12345_v55  ;;  %vm15064_vm0 = vcmp.eq.f32.partialorder %v15063_v49, 0.0  ;;  %v15065_v19 = vld [vmem:[#allocation24_spill] sm:$0xff] }
 0xb0f   : > { %v4466_v30 = vmul.f32 %v8583_v17, %v12337_v18  ;;  %vm15066_vm12 = vcmp.eq.f32.partialorder %v15065_v19, 0.0  ;;  %v4497_v55 = vmul.f32 %v15067_v29, %v4481_v13  ;;  %v15068_v15 = vld [vmem:[#allocation48_spill] sm:$0xff] }
 0xb10   : > { %v12435_v4 = vpop.xlane.xlu0 %4441  ;;  %v4499_v23 = vmul.f32 %v15059_v52, %v4483_v20  ;;  %v4528_v52 = vand.u32 2147483647, %v12440_v57  ;;  %v12453_v27 = vsel %vm15066_vm12, 0.0, %v4494_v22  ;;  %v4484_v33 = vmul.f32 %v4468_v1, %v15068_v15  ;;  %v15070_v15 = vld [vmem:[#allocation29_spill] sm:$0xff] }
 0xb11   : > { %4541 = vadd.xlane.f32.xlu1 %v4525_v37  ;;  %v4526_v22 = vand.u32 2147483647, %v12453_v27  ;;  %vm15071_vm5 = vcmp.eq.f32.partialorder %v15070_v15, 0.0 }
 0xb12   : > { %v4444_v3 = vpop.xlane.xlu1 %4443  ;;  %v12446_v42 = vsel %vm15064_vm0, 0.0, %v4499_v23  ;;  %vm15083_vm0 = vcmp.eq.f32.partialorder %v14933_v46, 0.0 }
 0xb13   : > { %8590 = vrcp.f32 %v4444_v3  ;;  %v4531_v20 = vand.u32 2147483647, %v12446_v42  ;;  %v8585_v58 = vpop.eup %8584  ;;  %v15069_v3 = vld [vmem:[#allocation39_spill] sm:$0xff] }
 0xb14   : > { %v4041_v37 = vpop.permute.xlu0 %4040  ;;  %8592 = vrcp.f32 %v4432_v53  ;;  %v4482_v49 = vmul.f32 %v4466_v30, %v15069_v3  ;;  %v8587_v19 = vpop.eup %8586 }
 0xb15   : > { %4553 = vadd.xlane.f32.xlu0 %v4531_v20  ;;  %4547 = vadd.xlane.f32.xlu1 %v4528_v52  ;;  %v4078_v23 = vadd.f32 %v12380_v48, %v4041_v37  ;;  %v4081_v17 = vadd.f32 %v12384_v47, %v4041_v37  ;;  %v4102_v18 = vadd.f32 %v12386_v5, %v4041_v37  ;;  %v12466_v52 = vsel %vm15071_vm5, 0.0, %v4497_v55  ;;  %v15072_v48 = vld [vmem:[#allocation47_spill] sm:$0xff] }
 0xb16   : > { %v4094_v13 = vadd.f32 %v12388_v56, %v4041_v37  ;;  %v4105_v1 = vadd.f32 %v12390_v9, %v4041_v37  ;;  %v4500_v20 = vmul.f32 %v15072_v48, %v4484_v33  ;;  %v4471_v47 = vmul.f32 %v8585_v58, %v12356_v24  ;;  %v8589_v58 = vpop.eup %8588 }
 0xb17   : > { %v4629_v38 = vpack.c.bf16 %v4081_v17, %v4078_v23  ;;  %v4097_v5 = vadd.f32 %v12392_v12, %v4041_v37  ;;  %v4086_v30 = vadd.f32 %v12378_v61, %v4041_v37  ;;  %8594 = vrcp.f32 %v4438_v11  ;;  %v15073_v23 = vld [vmem:[#allocation41_spill] sm:$0xff] }
 0xb18   : > { %v4632_v53 = vpack.c.bf16 %v4105_v1, %v4102_v18  ;;  %v4498_v56 = vmul.f32 %v15073_v23, %v4482_v49  ;;  %v4469_v9 = vmul.f32 %v8587_v19, %v12349_v26  ;;  %v4529_v55 = vand.u32 2147483647, %v12466_v52  ;;  %v15076_v12 = vld [vmem:[#allocation73_spill] sm:$0xff]  ;;  %v15077_v19 = vld [vmem:[#allocation28_spill] sm:$0xff] }
 0xb19   : > { %4543 = vadd.xlane.f32.xlu1 %v4526_v22  ;;  %7904 = vmatprep.subr.bf16.mxu0 %v4629_v38  ;;  %v4631_v17 = vpack.c.bf16 %v4097_v5, %v4094_v13  ;;  %v4089_v33 = vadd.f32 %v12382_v54, %v4041_v37  ;;  %v4118_v24 = vadd.f32 %v12394_v59, %v4041_v37  ;;  %v15074_v22 = vld [vmem:[#allocation46_spill] sm:$0xff]  ;;  %8596 = vrcp.f32 %v4440_v40  ;;  %v15079_v40 = vld [vmem:[#allocation95_spill] sm:$0xff] }
 0xb1a   : > { %7905 = vmatpush3.bf16.msra.mxu0 %v4629_v38  ;;  %vm15075_vm15 = vcmp.eq.f32.partialorder %v15074_v22, 0.0  ;;  %v4487_v61 = vmul.f32 %v4471_v47, %v15076_v12  ;;  %v4110_v26 = vadd.f32 %v12396_v21, %v4041_v37  ;;  %v4121_v38 = vadd.f32 %v12398_v44, %v4041_v37 }
 0xb1b   : > { %v12479_v18 = vsel %vm15075_vm15, 0.0, %v4500_v20  ;;  %v4630_v49 = vpack.c.bf16 %v4089_v33, %v4086_v30  ;;  %vm15078_vm1 = vcmp.eq.f32.partialorder %v15077_v19, 0.0  ;;  %v4485_v13 = vmul.f32 %v4469_v9, %v14931_v63 }
 0xb1c   : > { %v12486_v54 = vsel %vm15078_vm1, 0.0, %v4498_v56  ;;  %v4532_v1 = vand.u32 2147483647, %v12479_v18  ;;  %v4634_v20 = vpack.c.bf16 %v4121_v38, %v4118_v24  ;;  %v4113_v47 = vadd.f32 %v12400_v34, %v4041_v37 }
 0xb1d   : > { %v8591_v11 = vpop.eup %8590  ;;  %4549 = vadd.xlane.f32.xlu1 %v4529_v55  ;;  %7906 = vmatprep.subr.bf16.mxu0 %v4630_v49  ;;  %v4134_v5 = vadd.f32 %v12402_v41, %v4041_v37  ;;  %v4503_v30 = vmul.f32 %v15079_v40, %v4487_v61  ;;  %v4472_v56 = vmul.f32 %v8589_v58, %v12359_v50  ;;  %8598 = vrcp.f32 %v12435_v4 }
 0xb1e   : > { %v4476_v59 = vmul.f32 %v8591_v11, %v12371_v39  ;;  %v8593_v21 = vpop.eup %8592  ;;  %7907 = vmatpush3.bf16.msra.mxu0 %v4630_v49  ;;  %v4126_v39 = vadd.f32 %v12404_v14, %v4041_v37  ;;  %v4633_v9 = vpack.c.bf16 %v4113_v47, %v4110_v26  ;;  %v4137_v55 = vadd.f32 %v12406_v62, %v4041_v37  ;;  %v15081_v11 = vld [vmem:[#allocation65_spill] sm:$0xff] }
 0xb1f   : > { %7908 = vmatprep.subr.bf16.mxu0 %v4631_v17  ;;  %v4129_v33 = vadd.f32 %v12408_v10, %v4041_v37  ;;  %v4530_v34 = vand.u32 2147483647, %v12486_v54  ;;  %v4470_v24 = vmul.f32 %v8593_v21, %v12353_v32  ;;  %vm15082_vm4 = vcmp.eq.f32.partialorder %v15081_v11, 0.0 }
 0xb20   : > { %v4492_v44 = vmul.f32 %v4476_v59, %v11409_v31  ;;  %v4636_v61 = vpack.c.bf16 %v4137_v55, %v4134_v5  ;;  %v12509_v62 = vsel %vm15082_vm4, 0.0, %v4503_v30  ;;  %v4501_v10 = vmul.f32 %v14932_v51, %v4485_v13  ;;  %v15084_v59 = vld [vmem:[#allocation75_spill] sm:$0xff]  ;;  %v15085_v5 = vld [vmem:[#allocation69_spill] sm:$0xff] }
 0xb21   : > { %4555 = vadd.xlane.f32.xlu1 %v4532_v1  ;;  %v4635_v50 = vpack.c.bf16 %v4129_v33, %v4126_v39  ;;  %v8595_v58 = vpop.eup %8594  ;;  %v4488_v4 = vmul.f32 %v4472_v56, %v11350_v6  ;;  %v4535_v32 = vand.u32 2147483647, %v12509_v62  ;;  %v4486_v1 = vmul.f32 %v4470_v24, %v15084_v59  ;;  %v15088_v56 = vld [vmem:[#allocation81_spill] sm:$0xff] }
 0xb22   : > { %v4508_v41 = vmul.f32 %v11444_v36, %v4492_v44  ;;  %7909 = vmatpush3.bf16.msra.mxu0 %v4631_v17  ;;  %v12517_v26 = vsel %vm15083_vm0, 0.0, %v4501_v10  ;;  %v4473_v13 = vmul.f32 %v8595_v58, %v12362_v0  ;;  %vm15086_vm12 = vcmp.eq.f32.partialorder %v15085_v5, 0.0  ;;  %v15087_v44 = vld [vmem:[#allocation70_spill] sm:$0xff] }
 0xb23   : > { %7910 = vmatprep.subr.bf16.mxu0 %v4632_v53  ;;  %v8597_v49 = vpop.eup %8596  ;;  %v4504_v38 = vmul.f32 %v11359_v2, %v4488_v4  ;;  %v4533_v17 = vand.u32 2147483647, %v12517_v26  ;;  %v4502_v30 = vmul.f32 %v15087_v44, %v4486_v1  ;;  %v15094_v4 = vld [vmem:[#allocation85_spill] sm:$0xff]  ;;  %v15096_v1 = vld [vmem:[#allocation84_spill] sm:$0xff]  ;;  %vm15101_vm4 = vcmask 1043456  }
 0xb24   : > { %v12505_v14 = vsel %vm15080_vm10, 0.0, %v4508_v41  ;;  %v4489_v39 = vmul.f32 %v4473_v13, %v15088_v56  ;;  %v4474_v55 = vmul.f32 %v8597_v49, %v12365_v28  ;;  %vm15097_vm1 = vcmp.eq.f32.partialorder %v15096_v1, 0.0  ;;  %vm15102_vm0 = vmmov %vm15101_vm4 }
 0xb25   : > { %4551 = vadd.xlane.f32.xlu1 %v4530_v34  ;;  %v4540_v37 = vand.u32 2147483647, %v12505_v14  ;;  %v12525_v21 = vsel %vm15086_vm12, 0.0, %v4504_v38  ;;  %v15091_v34 = vld [vmem:[#allocation82_spill] sm:$0xff]  ;;  %vm15103_vm12 = vcmask 261120  }
 0xb26   : > { %7911 = vmatpush3.bf16.msra.mxu0 %v4632_v53  ;;  %v4536_v0 = vand.u32 2147483647, %v12525_v21  ;;  %v15089_v53 = vld [vmem:[#allocation87_spill] sm:$0xff]  ;;  %v4505_v41 = vmul.f32 %v11402_v45, %v4489_v39  ;;  %v4490_v24 = vmul.f32 %v4474_v55, %v15091_v34 }
 0xb27   : > { %4571 = vadd.xlane.f32.xlu0 %v4540_v37  ;;  %7912 = vmatprep.subr.bf16.mxu0 %v4633_v9  ;;  %v8599_v47 = vpop.eup %8598  ;;  %vm15090_vm5 = vcmp.eq.f32.partialorder %v15089_v53, 0.0  ;;  %v4734_v39 = vld [vmem:[%s13801_s1 + $0xc8] sm:$0xf] }
 0xb28   : > { %v12533_v33 = vsel %vm15090_vm5, 0.0, %v4502_v30  ;;  %v4475_v58 = vmul.f32 %v8599_v47, %v12368_v16  ;;  %v4506_v37 = vmul.f32 %v15094_v4, %v4490_v24  ;;  %v15099_v47 = vld [vmem:[#allocation77_spill] sm:$0xff]  ;;  %vm15105_vm5 = vmmov %vm15103_vm12 }
 0xb29   : > { %4561 = vadd.xlane.f32.xlu1 %v4535_v32  ;;  %v4534_v28 = vand.u32 2147483647, %v12533_v33  ;;  %v15095_v32 = vld [vmem:[#allocation103_spill] sm:$0xff]  ;;  %vm15100_vm10 = vcmp.eq.f32.partialorder %v15099_v47, 0.0 }
 0xb2a   : > { %7913 = vmatpush3.bf16.msra.mxu0 %v4633_v9  ;;  %v15092_v9 = vld [vmem:[#allocation74_spill] sm:$0xff]  ;;  %v4491_v49 = vmul.f32 %v4475_v58, %v15095_v32  ;;  %v12548_v16 = vsel %vm15097_vm1, 0.0, %v4506_v37  ;;  %vm15109_vm1 = vmmov %vm15105_vm5 }
 0xb2b   : > { %7914 = vmatprep.subr.bf16.mxu0 %v4634_v20  ;;  %vm15093_vm15 = vcmp.eq.f32.partialorder %v15092_v9, 0.0 }
 0xb2c   : > { %v12541_v10 = vsel %vm15093_vm15, 0.0, %v4505_v41  ;;  %vm15107_vm15 = vmmov %vm15105_vm5 }
 0xb2d   : > { %4557 = vadd.xlane.f32.xlu1 %v4533_v17  ;;  %v4537_v38 = vand.u32 2147483647, %v12541_v10  ;;  %v4538_v17 = vand.u32 2147483647, %v12548_v16 }
 0xb2e   : > { %7915 = vmatpush3.bf16.msra.mxu0 %v4634_v20  ;;  %v15098_v20 = vld [vmem:[#allocation111_spill] sm:$0xff] }
 0xb2f   : > { %7916 = vmatprep.subr.bf16.mxu0 %v4635_v50  ;;  %v4507_v13 = vmul.f32 %v15098_v20, %v4491_v49 }
 0xb31   : > { %4563 = vadd.xlane.f32.xlu1 %v4536_v0  ;;  %v12554_v30 = vsel %vm15100_vm10, 0.0, %v4507_v13  ;;  %vm15111_vm10 = vmmov %vm15109_vm1 }
 0xb32   : > { %7917 = vmatpush3.bf16.msra.mxu0 %v4635_v50  ;;  %v4539_v50 = vand.u32 2147483647, %v12554_v30 }
 0xb33   : > { %7918 = vmatprep.subr.bf16.mxu0 %v4636_v61 }
 0xb35   : > { %4559 = vadd.xlane.f32.xlu1 %v4534_v28 }
 0xb36   : > { %7919 = vmatpush3.bf16.msra.mxu0 %v4636_v61 }
 0xb37   : > { %8214 = vmatprep.subr.msk.bf16.mxu0 %vm15101_vm4, %v4734_v39  ;;  %vm15113_vm4 = vmmov %vm15109_vm1 }
 0xb39   : > { %4565 = vadd.xlane.f32.xlu1 %v4537_v38 }
 0xb3d   : > { %4567 = vadd.xlane.f32.xlu1 %v4538_v17 }
 0xb41   : > { %4569 = vadd.xlane.f32.xlu1 %v4539_v50 }
 0xb9a   : > { %v4546_v55 = vpop.xlane.xlu1 %4545 }
 0xb9b   : > { %v4575_v58 = vmax.f32 %v4546_v55, 1e-12 }
 0xb9e   : > { %v4542_v0 = vpop.xlane.xlu1 %4541 }
 0xb9f   : > { %v4573_v41 = vmax.f32 %v4542_v0, 1e-12 }
 0xba2   : > { %v4548_v61 = vpop.xlane.xlu1 %4547  ;;  %v4554_v38 = vpop.xlane.xlu0 %4553 }
 0xba3   : > { %v4576_v24 = vmax.f32 %v4548_v61, 1e-12  ;;  %v4579_v20 = vmax.f32 %v4554_v38, 1e-12  ;;  %v4768_v38 = vsel %vm15102_vm0, %v4734_v39, 0  ;;  %vm15115_vm0 = vmmov %vm15109_vm1 }
 0xba5   : > { %8600 = vrcp.f32 %v4576_v24 }
 0xba6   : > { %v4544_v28 = vpop.xlane.xlu1 %4543  ;;  %8602 = vrcp.f32 %v4573_v41 }
 0xba7   : > { %v4574_v37 = vmax.f32 %v4544_v28, 1e-12  ;;  %8604 = vrcp.f32 %v4575_v58 }
 0xba9   : > { %8606 = vrcp.f32 %v4574_v37 }
 0xbaa   : > { %v4550_v49 = vpop.xlane.xlu1 %4549 }
 0xbab   : > { %v4577_v17 = vmax.f32 %v4550_v49, 1e-12 }
 0xbae   : > { %v4556_v13 = vpop.xlane.xlu1 %4555 }
 0xbaf   : > { %v4580_v50 = vmax.f32 %v4556_v13, 1e-12  ;;  %v8601_v47 = vpop.eup %8600 }
 0xbb0   : > { %v8603_v1 = vpop.eup %8602  ;;  %v4608_v55 = vmul.f32 %v8601_v47, %v12440_v57 }
 0xbb1   : > { %v8605_v7 = vpop.eup %8604  ;;  %8608 = vrcp.f32 %v4580_v50  ;;  %v4605_v41 = vmul.f32 %v8603_v1, %v12427_v25 }
 0xbb2   : > { %v4552_v32 = vpop.xlane.xlu1 %4551  ;;  %8610 = vrcp.f32 %v4577_v17  ;;  %v4607_v58 = vmul.f32 %v8605_v7, %v12421_v35 }
 0xbb3   : > { %v8607_v0 = vpop.eup %8606  ;;  %v4578_v61 = vmax.f32 %v4552_v32, 1e-12  ;;  %8612 = vrcp.f32 %v4579_v20 }
 0xbb4   : > { %v4606_v24 = vmul.f32 %v8607_v0, %v12453_v27  ;;  %v4622_v49 = vpack.c.bf16 %v4608_v55, %v4607_v58 }
 0xbb5   : > { %8614 = vrcp.f32 %v4578_v61 }
 0xbb6   : > { %v4562_v28 = vpop.xlane.xlu1 %4561  ;;  %v4621_v37 = vpack.c.bf16 %v4606_v24, %v4605_v41 }
 0xbb7   : > { %v4583_v7 = vmax.f32 %v4562_v28, 1e-12 }
 0xbb8   : > { %7920 = vmatprep.mubr.bf16.mxu0 %v4621_v37 }
 0xbb9   : > { %7921 = vmatmul.mubr.bf16.vlgmr.msra.gmra.mrb[128].mxu0 %v4622_v49 }
 0xbba   : > { %v4558_v13 = vpop.xlane.xlu1 %4557  ;;  %7937 = vmatpush3.bf16.msra.mxu0 %v4768_v38 }
 0xbbb   : > { %v8609_v57 = vpop.eup %8608  ;;  %v4581_v25 = vmax.f32 %v4558_v13, 1e-12 }
 0xbbc   : > { %v8611_v47 = vpop.eup %8610  ;;  %v4612_v27 = vmul.f32 %v8609_v57, %v12479_v18  ;;  %v4572_v18 = vpop.xlane.xlu0 %4571 }
 0xbbd   : > { %v8613_v32 = vpop.eup %8612  ;;  %v4609_v35 = vmul.f32 %v8611_v47, %v12466_v52  ;;  %v4588_v37 = vmax.f32 %v4572_v18, 1e-12  ;;  %v15114_v18 = vld [vmem:[#allocation13_spill] sm:$0xff] }
 0xbbe   : > { %v4564_v20 = vpop.xlane.xlu1 %4563  ;;  %v4611_v39 = vmul.f32 %v8613_v32, %v12446_v42 }
 0xbbf   : > { %v8615_v17 = vpop.eup %8614  ;;  %v4584_v1 = vmax.f32 %v4564_v20, 1e-12 }
 0xbc0   : > { %v4610_v50 = vmul.f32 %v8615_v17, %v12486_v54  ;;  %v4624_v41 = vpack.c.bf16 %v4612_v27, %v4611_v39 }
 0xbc1   : > { %8616 = vrcp.f32 %v4584_v1 }
 0xbc2   : > { %v4560_v0 = vpop.xlane.xlu1 %4559  ;;  %v4623_v55 = vpack.c.bf16 %v4610_v50, %v4609_v35  ;;  %8618 = vrcp.f32 %v4581_v25 }
 0xbc3   : > { %v4582_v61 = vmax.f32 %v4560_v0, 1e-12  ;;  %8620 = vrcp.f32 %v4583_v7 }
 0xbc4   : > { %7924 = vmatprep.mubr.bf16.mxu0 %v4623_v55 }
 0xbc5   : > { %8622 = vrcp.f32 %v4582_v61  ;;  %7925 = vmatmul.mubr.bf16.gmra.mrb[132].mxu0 %v4624_v41  ;;  %v15106_v61 = vld [vmem:[#allocation9_spill] sm:$0xff]  ;;  %v15108_v41 = vld [vmem:[#allocation10_spill] sm:$0xff] }
 0xbc6   : > { %v4566_v24 = vpop.xlane.xlu1 %4565 }
 0xbc7   : > { %v4585_v58 = vmax.f32 %v4566_v24, 1e-12  ;;  %v15110_v24 = vld [vmem:[#allocation11_spill] sm:$0xff] }
 0xbc9   : > { %8624 = vrcp.f32 %v4585_v58  ;;  %v15112_v58 = vld [vmem:[#allocation12_spill] sm:$0xff] }
 0xbca   : > { %v4568_v28 = vpop.xlane.xlu1 %4567 }
 0xbcb   : > { %v4586_v52 = vmax.f32 %v4568_v28, 1e-12  ;;  %v8617_v54 = vpop.eup %8616  ;;  %v15116_v28 = vld [vmem:[#allocation6_spill] sm:$0xff] }
 0xbcc   : > { %v8619_v49 = vpop.eup %8618  ;;  %v4616_v47 = vmul.f32 %v8617_v54, %v12525_v21 }
 0xbcd   : > { %8626 = vrcp.f32 %v4586_v52  ;;  %v8621_v42 = vpop.eup %8620  ;;  %v4613_v32 = vmul.f32 %v8619_v49, %v12517_v26 }
 0xbce   : > { %v4570_v38 = vpop.xlane.xlu1 %4569  ;;  %8628 = vrcp.f32 %v4588_v37  ;;  %v4615_v17 = vmul.f32 %v8621_v42, %v12509_v62  ;;  %v8300_v62 = vld [vmem:[%s13801_s1 + $0x70] sm:$0xff]  }
 0xbcf   : > { %v8623_v13 = vpop.eup %8622  ;;  %v4587_v57 = vmax.f32 %v4570_v38, 1e-12  ;;  %7974 = vmatprep.subr.bf16.mxu0 %v8300_v62 }
 0xbd0   : > { %v4614_v20 = vmul.f32 %v8623_v13, %v12533_v33  ;;  %v4626_v1 = vpack.c.bf16 %v4616_v47, %v4615_v17  ;;  %v8301_v13 = vld [vmem:[%s13801_s1 + $0x78] sm:$0xff]  }
 0xbd1   : > { %8630 = vrcp.f32 %v4587_v57 }
 0xbd2   : > { %v4625_v25 = vpack.c.bf16 %v4614_v20, %v4613_v32 }
 0xbd3   : > { %v8625_v27 = vpop.eup %8624 }
 0xbd4   : > { %7928 = vmatprep.mubr.bf16.mxu0 %v4625_v25  ;;  %v4617_v35 = vmul.f32 %v8625_v27, %v12541_v10  ;;  %v8302_v10 = vld [vmem:[%s13801_s1 + $0x30] sm:$0xff]  }
 0xbd5   : > { %7929 = vmatmul.mubr.bf16.gmra.mrb[136].mxu0 %v4626_v1  ;;  %7954 = vmatprep.subr.bf16.mxu1 %v8302_v10 }
 0xbd6   : > { %7955 = vmatpush3.bf16.msra.mxu1 %v8302_v10 }
 0xbd7   : > { %v8627_v7 = vpop.eup %8626 }
 0xbd8   : > { %v4618_v50 = vmul.f32 %v8627_v7, %v12548_v16  ;;  %v8629_v39 = vpop.eup %8628  ;;  %v8303_v16 = vld [vmem:[%s13801_s1 + $0x38] sm:$0xff]  }
 0xbd9   : > { %v4620_v33 = vmul.f32 %v8629_v39, %v12505_v14  ;;  %7956 = vmatprep.subr.bf16.mxu1 %v8303_v16  ;;  %v15104_v14 = vld [vmem:[#allocation8_spill] sm:$0xff] }
 0xbda   : > { %v4627_v0 = vpack.c.bf16 %v4618_v50, %v4617_v35  ;;  %7957 = vmatpush3.bf16.msra.mxu1 %v8303_v16 }
 0xbdb   : > { %v8631_v21 = vpop.eup %8630 }
 0xbdc   : > { %7932 = vmatprep.mubr.bf16.mxu0 %v4627_v0  ;;  %v4619_v26 = vmul.f32 %v8631_v21, %v12554_v30  ;;  %v12590_v30 = vld [vmem:[%s13802_s2 + $0xb] ss:$0 sm:$0xff] }
 0xbdd   : > { %5022 = vrot.lane.b32.xlu1 %v12590_v30, %s14299_s9  ;;  %7959 = vmatmul.mubr.msk.bf16.vlgmr.msra.gmra.mrb[112].mxu1 %vm15103_vm12, %v15032_v60  ;;  %vm15117_vm12 = vmmov %vm15115_vm0 }
 0xbde   : > { %v4628_v55 = vpack.c.bf16 %v4620_v33, %v4619_v26  ;;  %7962 = vmatprep.mubr.msk.bf16.mxu1 %vm15105_vm5, %v15104_v14  ;;  %vm15118_vm5 = vcmask 64512  }
 0xbe0   : > { %7933 = vmatmul.mubr.bf16.gmra.mrb[140].mxu0 %v4628_v55 }
 0xbe5   : > { %7963 = vmatmul.mubr.msk.bf16.gmra.mrb[116].mxu1 %vm15107_vm15, %v15106_v61  ;;  %vm15119_vm15 = vmmov %vm15118_vm5 }
 0xbe6   : > { %7966 = vmatprep.mubr.msk.bf16.mxu1 %vm15109_vm1, %v15108_v41  ;;  %vm15120_vm1 = vmmov %vm15118_vm5 }
 0xbed   : > { %7967 = vmatmul.mubr.msk.bf16.gmra.mrb[120].mxu1 %vm15111_vm10, %v15110_v24  ;;  %vm15121_vm10 = vmmov %vm15120_vm1 }
 0xbee   : > { %7970 = vmatprep.mubr.msk.bf16.mxu1 %vm15113_vm4, %v15112_v58  ;;  %vm15122_vm4 = vmmov %vm15120_vm1 }
 0xbf5   : > { %7971 = vmatmul.mubr.msk.bf16.gmra.mrb[124].mxu1 %vm15115_vm0, %v15114_v18  ;;  %vm15123_vm0 = vmmov %vm15120_vm1 }
 0xbf6   : > { %7998 = vmatprep.mubr.msk.bf16.mxu1 %vm15117_vm12, %v15116_v28  ;;  %vm15124_vm12 = vmmov %vm15123_vm0 }
 0xc8c   : > { %v7922_v37 = vpop.f32.mrb[128].mxu0 }
 0xc8d   : > { %v4671_v52 = vpop.f32.mrb[129].mxu0 }
 0xc8e   : > { %v7923_v54 = vpop.f32.mrb[130].mxu0 }
 0xc8f   : > { %v4736_v49 = vpack.c.bf16 %v7923_v54, %v7922_v37  ;;  %v4674_v42 = vpop.f32.mrb[131].mxu0 }
 0xc90   : > { %v4735_v38 = vpack.c.bf16 %v4674_v42, %v4671_v52 }
 0xc92   : > { %7938 = vmatprep.mubr.msk.bf16.mxu0 %vm15118_vm5, %v4735_v38  ;;  %vm15125_vm5 = vmmov %vm15123_vm0 }
 0xc93   : > { %7939 = vmatmul.mubr.msk.bf16.vlgmr.msra.gmra.mrb[96].mxu0 %vm15119_vm15, %v4736_v49  ;;  %vm15126_vm15 = vcmask 261120  }
 0xc94   : > { %7975 = vmatpush3.bf16.msra.mxu0 %v8300_v62 }
 0xc95   : > { %7976 = vmatprep.subr.bf16.mxu0 %v8301_v13 }
 0xc98   : > { %v7926_v57 = vpop.f32.mrb[132].mxu0  ;;  %7977 = vmatpush3.bf16.msra.mxu0 %v8301_v13 }
 0xc99   : > { %v4687_v47 = vpop.f32.mrb[133].mxu0 }
 0xc9a   : > { %v7927_v32 = vpop.f32.mrb[134].mxu0 }
 0xc9b   : > { %v4738_v20 = vpack.c.bf16 %v7927_v32, %v7926_v57  ;;  %v4690_v17 = vpop.f32.mrb[135].mxu0 }
 0xc9c   : > { %v4737_v25 = vpack.c.bf16 %v4690_v17, %v4687_v47 }
 0xc9e   : > { %7942 = vmatprep.mubr.msk.bf16.mxu0 %vm15120_vm1, %v4737_v25  ;;  %vm15127_vm1 = vmmov %vm15126_vm15 }
 0xc9f   : > { %7943 = vmatmul.mubr.msk.bf16.gmra.mrb[100].mxu0 %vm15121_vm10, %v4738_v20  ;;  %vm15128_vm10 = vmmov %vm15127_vm1 }
 0xca8   : > { %v7930_v1 = vpop.f32.mrb[136].mxu0 }
 0xca9   : > { %v4703_v27 = vpop.f32.mrb[137].mxu0 }
 0xcaa   : > { %v7931_v7 = vpop.f32.mrb[138].mxu0 }
 0xcab   : > { %v4740_v35 = vpack.c.bf16 %v7931_v7, %v7930_v1  ;;  %v4706_v50 = vpop.f32.mrb[139].mxu0 }
 0xcac   : > { %v4739_v39 = vpack.c.bf16 %v4706_v50, %v4703_v27 }
 0xcae   : > { %7946 = vmatprep.mubr.msk.bf16.mxu0 %vm15122_vm4, %v4739_v39  ;;  %vm15129_vm4 = vmmov %vm15127_vm1 }
 0xcaf   : > { %7947 = vmatmul.mubr.msk.bf16.gmra.mrb[104].mxu0 %vm15123_vm0, %v4740_v35  ;;  %vm15130_vm0 = vmmov %vm15127_vm1 }
 0xcb0   : > { %vm15131_vm3 = vmmov %vm15130_vm0  ;;  %v7960_v10 = vpop.f32.mrb[112].mxu1 }
 0xcb1   : > { %v12638_v16 = vadd.f32 %v7960_v10, %v12590_v30 }
 0xcb3   : > { %v7934_v0 = vpop.f32.mrb[140].mxu0 }
 0xcb4   : > { %v4719_v21 = vpop.f32.mrb[141].mxu0 }
 0xcb5   : > { %v7935_v26 = vpop.f32.mrb[142].mxu0 }
 0xcb6   : > { %v4742_v33 = vpack.c.bf16 %v7935_v26, %v7934_v0  ;;  %v4722_v55 = vpop.f32.mrb[143].mxu0 }
 0xcb7   : > { %v4741_v62 = vpack.c.bf16 %v4722_v55, %v4719_v21 }
 0xcb9   : > { %7950 = vmatprep.mubr.msk.bf16.mxu0 %vm15124_vm12, %v4741_v62  ;;  %vm15132_vm12 = vmmov %vm15130_vm0 }
 0xcba   : > { %7951 = vmatmul.mubr.msk.bf16.gmra.mrb[108].mxu0 %vm15125_vm5, %v4742_v33  ;;  %vm15133_vm5 = vmmov %vm15130_vm0 }
 0xcbb   : > { %7978 = vmatprep.mubr.msk.bf16.mxu0 %vm15126_vm15, %v15116_v28  ;;  %v4946_v28 = vpop.f32.mrb[113].mxu1 }
 0xcbc   : > { %v4947_v37 = vadd.f32 %v12590_v30, %v4946_v28  ;;  %v7961_v52 = vpop.f32.mrb[114].mxu1 }
 0xcbd   : > { %v12642_v54 = vadd.f32 %v7961_v52, %v12590_v30  ;;  %v4949_v49 = vpop.f32.mrb[115].mxu1 }
 0xcbe   : > { %v4950_v42 = vadd.f32 %v12590_v30, %v4949_v49  ;;  %v7964_v57 = vpop.f32.mrb[116].mxu1 }
 0xcbf   : > { %v4962_v47 = vpop.f32.mrb[117].mxu1  ;;  %v12649_v32 = vadd.f32 %v7964_v57, %v12590_v30 }
 0xcc0   : > { %v5234_v13 = vpack.c.bf16 %v4950_v42, %v4947_v37  ;;  %v12652_v20 = vadd.f32 %v12590_v30, %v4962_v47  ;;  %v7965_v17 = vpop.f32.mrb[118].mxu1 }
 0xcc1   : > { %v12655_v25 = vadd.f32 %v7965_v17, %v12590_v30  ;;  %v4965_v1 = vpop.f32.mrb[119].mxu1 }
 0xcc2   : > { %7979 = vmatmul.mubr.msk.bf16.vlgmr.msra.gmra.mrb[144].mxu0 %vm15127_vm1, %v15032_v60  ;;  %v12658_v27 = vadd.f32 %v12590_v30, %v4965_v1  ;;  %v7968_v7 = vpop.f32.mrb[120].mxu1 }
 0xcc3   : > { %7982 = vmatprep.mubr.msk.bf16.mxu0 %vm15128_vm10, %v15104_v14  ;;  %v4978_v50 = vpop.f32.mrb[121].mxu1  ;;  %v12665_v0 = vadd.f32 %v7968_v7, %v12590_v30 }
 0xcc4   : > { %v12668_v21 = vadd.f32 %v12590_v30, %v4978_v50  ;;  %v7969_v26 = vpop.f32.mrb[122].mxu1  ;;  %v5023_v50 = vpop.permute.xlu1 %5022 }
 0xcc5   : > { %v12671_v33 = vadd.f32 %v7969_v26, %v12590_v30  ;;  %v4981_v55 = vpop.f32.mrb[123].mxu1 }
 0xcc6   : > { %v12674_v62 = vadd.f32 %v12590_v30, %v4981_v55 }
 0xcc8   : > { %v7972_v10 = vpop.f32.mrb[124].mxu1 }
 0xcc9   : > { %v4994_v37 = vpop.f32.mrb[125].mxu1  ;;  %v12681_v49 = vadd.f32 %v7972_v10, %v12590_v30 }
 0xcca   : > { %7983 = vmatmul.mubr.msk.bf16.gmra.mrb[148].mxu0 %vm15129_vm4, %v15106_v61  ;;  %v12684_v42 = vadd.f32 %v12590_v30, %v4994_v37 }
 0xccb   : > { %7986 = vmatprep.mubr.msk.bf16.mxu0 %vm15130_vm0, %v15108_v41 }
 0xcd2   : > { %7987 = vmatmul.mubr.msk.bf16.gmra.mrb[152].mxu0 %vm15131_vm3, %v15110_v24  ;;  %vm15134_vm3 = vcmask 64512  }
 0xcd3   : > { %7990 = vmatprep.mubr.msk.bf16.mxu0 %vm15132_vm12, %v15112_v58  ;;  %vm15135_vm15 = vmmov %vm15134_vm3 }
 0xcd4   : > { %vm15136_vm1 = vmmov %vm15134_vm3 }
 0xcd5   : > { %vm15137_vm10 = vmmov %vm15136_vm1 }
 0xcd6   : > { %vm15138_vm4 = vmmov %vm15136_vm1 }
 0xcd7   : > { %vm15139_vm0 = vmmov %vm15136_vm1 }
 0xcd8   : > { %vm15140_vm12 = vmmov %vm15139_vm0 }
 0xcd9   : > { %vm15149_vm8 = vmmov %vm15139_vm0 }
 0xcda   : > { %7991 = vmatmul.mubr.msk.bf16.gmra.mrb[156].mxu0 %vm15133_vm5, %v15114_v18  ;;  %vm15141_vm5 = vmmov %vm15139_vm0 }
 0xcdb   : > { %8030 = vmatprep.mubr.msk.bf16.mxu0 %vm15134_vm3, %v5234_v13  ;;  %v7973_v13 = vpop.f32.mrb[126].mxu1  ;;  %vm15142_vm3 = vmmov %vm15139_vm0 }
 0xcdc   : > { %v12687_v57 = vadd.f32 %v7973_v13, %v12590_v30  ;;  %v4997_v47 = vpop.f32.mrb[127].mxu1 }
 0xcdd   : > { %v12690_v17 = vadd.f32 %v12590_v30, %v4997_v47 }
 0xd95   : > { %v7980_v26 = vpop.f32.mrb[144].mxu0 }
 0xd96   : > { %v5059_v55 = vpop.f32.mrb[145].mxu0  ;;  %v5068_v37 = vadd.f32 %v7980_v26, %v5023_v50 }
 0xd97   : > { %v7981_v10 = vpop.f32.mrb[146].mxu0  ;;  %v5060_v35 = vadd.f32 %v5059_v55, %v5023_v50 }
 0xd98   : > { %v5071_v28 = vadd.f32 %v7981_v10, %v5023_v50  ;;  %v5062_v52 = vpop.f32.mrb[147].mxu0 }
 0xd99   : > { %v5063_v13 = vadd.f32 %v5062_v52, %v5023_v50 }
 0xd9a   : > { %v5243_v39 = vpack.c.bf16 %v5071_v28, %v5068_v37 }
 0xd9b   : > { %v5242_v38 = vpack.c.bf16 %v5063_v13, %v5060_v35 }
 0xd9c   : > { %v5278_v35 = vsel %vm15138_vm4, %v5243_v39, 0  ;;  %vm15146_vm4 = vmmov %vm15139_vm0 }
 0xd9d   : > { %v7984_v4 = vpop.f32.mrb[148].mxu0  ;;  %8215 = vmatprep.subr.msk.bf16.mxu0 %vm15135_vm15, %v5242_v38  ;;  %v5275_v47 = vsel %vm15136_vm1, %v5242_v38, 0  ;;  %vm15143_vm15 = vmmov %vm15139_vm0 }
 0xd9e   : > { %v5075_v1 = vpop.f32.mrb[149].mxu0  ;;  %8015 = vmatpush3.bf16.xpose.msra.mxu0 %v5275_v47  ;;  %v5084_v7 = vadd.f32 %v7984_v4, %v5023_v50  ;;  %vm15144_vm1 = vmmov %vm15139_vm0 }
 0xd9f   : > { %v7985_v9 = vpop.f32.mrb[150].mxu0  ;;  %8216 = vmatprep.subr.msk.bf16.mxu0 %vm15137_vm10, %v5243_v39  ;;  %v5076_v26 = vadd.f32 %v5075_v1, %v5023_v50  ;;  %vm15145_vm10 = vmmov %vm15139_vm0 }
 0xda0   : > { %v5087_v36 = vadd.f32 %v7985_v9, %v5023_v50  ;;  %v5078_v31 = vpop.f32.mrb[151].mxu0 }
 0xda1   : > { %v5079_v10 = vadd.f32 %v5078_v31, %v5023_v50 }
 0xda2   : > { %v5245_v34 = vpack.c.bf16 %v5087_v36, %v5084_v7 }
 0xda3   : > { %v5244_v55 = vpack.c.bf16 %v5079_v10, %v5076_v26 }
 0xda5   : > { %v7988_v52 = vpop.f32.mrb[152].mxu0  ;;  %v5281_v31 = vsel %vm15140_vm12, %v5244_v55, 0  ;;  %vm15147_vm12 = vmmov %vm15139_vm0 }
 0xda6   : > { %v5091_v28 = vpop.f32.mrb[153].mxu0  ;;  %8017 = vmatpush3.bf16.xpose.msra.mxu0 %v5278_v35  ;;  %v5100_v38 = vadd.f32 %v7988_v52, %v5023_v50 }
 0xda7   : > { %v7989_v37 = vpop.f32.mrb[154].mxu0  ;;  %8217 = vmatprep.subr.msk.bf16.mxu0 %vm15139_vm0, %v5244_v55  ;;  %v5092_v45 = vadd.f32 %v5091_v28, %v5023_v50  ;;  %v5284_v28 = vsel %vm15142_vm3, %v5245_v34, 0  ;;  %vm15151_vm3 = vmmov %vm15139_vm0  ;;  %v15152_v55 = vpack.c.bf16 %v12658_v27, %v12652_v20 }
 0xda8   : > { %v5103_v13 = vadd.f32 %v7989_v37, %v5023_v50  ;;  %v5094_v47 = vpop.f32.mrb[155].mxu0 }
 0xda9   : > { %v5095_v53 = vadd.f32 %v5094_v47, %v5023_v50 }
 0xdaa   : > { %v5247_v4 = vpack.c.bf16 %v5103_v13, %v5100_v38  ;;  %v15154_v38 = vpack.c.bf16 %v12655_v25, %v12649_v32  ;;  %v15156_v13 = vpack.c.bf16 %v12674_v62, %v12668_v21  ;;  %v15162_v32 = vpack.c.bf16 %v12687_v57, %v12681_v49 }
 0xdab   : > { %v5246_v9 = vpack.c.bf16 %v5095_v53, %v5092_v45 }
 0xdac   : > { %v5290_v53 = vsel %vm15146_vm4, %v5247_v4, 0  ;;  %vm15161_vm4 = vmmov %vm15139_vm0 }
 0xdad   : > { %v7992_v5 = vpop.f32.mrb[156].mxu0  ;;  %v5287_v45 = vsel %vm15144_vm1, %v5246_v9, 0  ;;  %vm15155_vm1 = vmmov %vm15139_vm0 }
 0xdae   : > { %v5107_v36 = vpop.f32.mrb[157].mxu0  ;;  %8019 = vmatpush3.bf16.xpose.msra.mxu0 %v5281_v31  ;;  %v5116_v39 = vadd.f32 %v7992_v5, %v5023_v50 }
 0xdaf   : > { %v7993_v1 = vpop.f32.mrb[158].mxu0  ;;  %8218 = vmatprep.subr.msk.bf16.mxu0 %vm15141_vm5, %v5245_v34  ;;  %v5108_v10 = vadd.f32 %v5107_v36, %v5023_v50  ;;  %vm15148_vm5 = vmmov %vm15139_vm0 }
 0xdb0   : > { %v5119_v7 = vadd.f32 %v7993_v1, %v5023_v50  ;;  %v5110_v26 = vpop.f32.mrb[159].mxu0 }
 0xdb1   : > { %v5111_v35 = vadd.f32 %v5110_v26, %v5023_v50  ;;  %v15150_v50 = vpack.c.bf16 %v12642_v54, %v12638_v16  ;;  %v15158_v16 = vpack.c.bf16 %v12671_v33, %v12665_v0  ;;  %v15160_v54 = vpack.c.bf16 %v12690_v17, %v12684_v42 }
 0xdb2   : > { %v5249_v52 = vpack.c.bf16 %v5119_v7, %v5116_v39 }
 0xdb3   : > { %v5248_v37 = vpack.c.bf16 %v5111_v35, %v5108_v10 }
 0xdb4   : > { %v5296_v34 = vsel %vm15149_vm8, %v5249_v52, 0  ;;  %vm15157_vm8 = vmmov %vm15139_vm0 }
 0xdb5   : > { %v5293_v5 = vsel %vm15147_vm12, %v5248_v37, 0 }
 0xdb6   : > { %8021 = vmatpush3.bf16.xpose.msra.mxu0 %v5284_v28 }
 0xdb7   : > { %8219 = vmatprep.subr.msk.bf16.mxu0 %vm15143_vm15, %v5246_v9  ;;  %vm15153_vm15 = vmmov %vm15139_vm0 }
 0xdbe   : > { %8023 = vmatpush3.bf16.xpose.msra.mxu0 %v5287_v45 }
 0xdbf   : > { %8220 = vmatprep.subr.msk.bf16.mxu0 %vm15145_vm10, %v5247_v4  ;;  %vm15159_vm10 = vmmov %vm15139_vm0  ;;  %v15172_v4 = vld [vmem:[#allocation132_spill] sm:$0xff] }
 0xdc6   : > { %8025 = vmatpush3.bf16.xpose.msra.mxu0 %v5290_v53 }
 0xdc7   : > { %8221 = vmatprep.subr.msk.bf16.mxu0 %vm15139_vm0, %v5248_v37 }
 0xdce   : > { %8027 = vmatpush3.bf16.xpose.msra.mxu0 %v5293_v5 }
 0xdcf   : > { %8222 = vmatprep.subr.msk.bf16.mxu0 %vm15148_vm5, %v5249_v52  ;;  %v15180_v52 = vld [vmem:[#allocation130_spill] sm:$0xff] }
 0xdd6   : > { %8029 = vmatpush3.bf16.xpose.msra.mxu0 %v5296_v34  ;;  %v15184_v34 = vld [vmem:[#allocation135_spill] sm:$0xff] }
 0xdd7   : > { %vm15185_vm12 = vnez %v15184_v34 }
 0xddd   : > { %8031 = vmatmul.mubr.msk.bf16.vlgmr.msra.gmra.mrb[160].mxu0 %vm15151_vm3, %v15150_v50  ;;  %vm15188_vm3 = vcmask 261120  }
 0xdde   : > { %8034 = vmatprep.mubr.msk.bf16.mxu0 %vm15153_vm15, %v15152_v55  ;;  %vm15189_vm15 = vmmov %vm15188_vm3 }
 0xde5   : > { %8035 = vmatmul.mubr.msk.bf16.gmra.mrb[164].mxu0 %vm15155_vm1, %v15154_v38  ;;  %vm15190_vm1 = vmmov %vm15188_vm3 }
 0xde6   : > { %8038 = vmatprep.mubr.msk.bf16.mxu0 %vm15157_vm8, %v15156_v13  ;;  %v15186_v13 = vld [vmem:[#allocation123_spill] sm:$0xff]  ;;  %vm15191_vm8 = vmmov %vm15190_vm1 }
 0xde7   : > { %vm15187_vm5 = vnez %v15186_v13 }
 0xded   : > { %8039 = vmatmul.mubr.msk.bf16.gmra.mrb[168].mxu0 %vm15159_vm10, %v15158_v16  ;;  %vm15192_vm10 = vmmov %vm15190_vm1 }
 0xdee   : > { %8042 = vmatprep.mubr.msk.bf16.mxu0 %vm15161_vm4, %v15160_v54  ;;  %vm15193_vm4 = vmmov %vm15190_vm1 }
 0xdf5   : > { %8043 = vmatmul.mubr.msk.bf16.gmra.mrb[172].mxu0 %vm15139_vm0, %v15162_v32  ;;  %vm15194_vm0 = vmmov %vm15190_vm1 }
 0xeb0   : > { %v8032_v20 = vpop.f32.mrb[160].mxu0 }
 0xeb1   : > { %v5397_v25 = vmul.f32 0.35355338, %v8032_v20  ;;  %v5332_v27 = vpop.f32.mrb[161].mxu0 }
 0xeb2   : > { %v8033_v21 = vpop.f32.mrb[162].mxu0  ;;  %v5395_v62 = vmul.f32 0.35355338, %v5332_v27 }
 0xeb3   : > { %v5335_v47 = vpop.f32.mrb[163].mxu0  ;;  %v12742_v0 = vsel %vm9854_vm6, %v5397_v25, -1e+30  ;;  %v5398_v33 = vmul.f32 0.35355338, %v8033_v21  ;;  %v15170_v25 = vld [vmem:[#allocation120_spill] sm:$0xff] }
 0xeb4   : > { %5431 = vmax.xlane.f32.xlu0 %v12742_v0  ;;  %v12747_v17 = vsel %vm9862_vm7, %v5395_v62, -1e+30  ;;  %v5396_v31 = vmul.f32 0.35355338, %v5335_v47  ;;  %vm15171_vm6 = vnez %v15170_v25  ;;  %vm15173_vm7 = vnez %v15172_v4  ;;  %v8305_v25 = vld [vmem:[%s13801_s1 + $0xb8] sm:$0xff]  }
 0xeb5   : > { %v12752_v39 = vsel %vm9879_vm9, %v5398_v33, -1e+30 }
 0xeb6   : > { %v12762_v37 = vsel %vm9898_vm11, %v5396_v31, -1e+30  ;;  %v15176_v31 = vld [vmem:[#allocation126_spill] sm:$0xff] }
 0xeb7   : > { %vm15177_vm11 = vnez %v15176_v31 }
 0xeb8   : > { %5427 = vmax.xlane.f32.xlu0 %v12747_v17  ;;  %v8036_v49 = vpop.f32.mrb[164].mxu0 }
 0xeb9   : > { %v5348_v57 = vpop.f32.mrb[165].mxu0  ;;  %v5401_v5 = vmul.f32 0.35355338, %v8036_v49  ;;  %v15174_v49 = vld [vmem:[#allocation117_spill] sm:$0xff] }
 0xeba   : > { %v8037_v9 = vpop.f32.mrb[166].mxu0  ;;  %v5399_v35 = vmul.f32 0.35355338, %v5348_v57  ;;  %vm15175_vm9 = vnez %v15174_v49 }
 0xebb   : > { %v5351_v36 = vpop.f32.mrb[167].mxu0  ;;  %v5402_v38 = vmul.f32 0.35355338, %v8037_v9  ;;  %v12772_v16 = vsel %vm9914_vm13, %v5401_v5, -1e+30 }
 0xebc   : > { %v5400_v7 = vmul.f32 0.35355338, %v5351_v36  ;;  %5433 = vmax.xlane.f32.xlu0 %v12752_v39  ;;  %v12767_v50 = vsel %vm9929_vm2, %v5399_v35, -1e+30  ;;  %vm15181_vm2 = vnez %v15180_v52 }
 0xebd   : > { %v12777_v27 = vsel %vm15171_vm6, %v5402_v38, -1e+30 }
 0xebe   : > { %v12757_v10 = vsel %vm9973_vm14, %v5400_v7, -1e+30  ;;  %v15178_v7 = vld [vmem:[#allocation128_spill] sm:$0xff] }
 0xebf   : > { %5437 = vmax.xlane.f32.xlu1 %v12757_v10  ;;  %vm15179_vm13 = vnez %v15178_v7 }
 0xec0   : > { %5429 = vmax.xlane.f32.xlu0 %v12762_v37  ;;  %v8040_v28 = vpop.f32.mrb[168].mxu0 }
 0xec1   : > { %v5364_v45 = vpop.f32.mrb[169].mxu0  ;;  %v5405_v21 = vmul.f32 0.35355338, %v8040_v28 }
 0xec2   : > { %v8041_v53 = vpop.f32.mrb[170].mxu0  ;;  %v5403_v42 = vmul.f32 0.35355338, %v5364_v45 }
 0xec3   : > { %v5367_v55 = vpop.f32.mrb[171].mxu0  ;;  %v12787_v57 = vsel %vm15175_vm9, %v5405_v21, -1e+30  ;;  %v5406_v9 = vmul.f32 0.35355338, %v8041_v53  ;;  %v15182_v53 = vld [vmem:[#allocation125_spill] sm:$0xff] }
 0xec4   : > { %5435 = vmax.xlane.f32.xlu0 %v12767_v50  ;;  %v12792_v36 = vsel %vm15177_vm11, %v5403_v42, -1e+30  ;;  %v5404_v1 = vmul.f32 0.35355338, %v5367_v55  ;;  %vm15183_vm14 = vnez %v15182_v53 }
 0xec5   : > { %v12797_v26 = vsel %vm15179_vm13, %v5406_v9, -1e+30 }
 0xec6   : > { %v12802_v28 = vsel %vm15181_vm2, %v5404_v1, -1e+30  ;;  %vm15220_vm2 = vcmp.eq.f32.partialorder %v15070_v15, 0.0 }
 0xec8   : > { %5439 = vmax.xlane.f32.xlu0 %v12772_v16  ;;  %v8044_v54 = vpop.f32.mrb[172].mxu0 }
 0xec9   : > { %v5380_v32 = vpop.f32.mrb[173].mxu0  ;;  %v5409_v38 = vmul.f32 0.35355338, %v8044_v54 }
 0xeca   : > { %v8045_v20 = vpop.f32.mrb[174].mxu0  ;;  %v5407_v35 = vmul.f32 0.35355338, %v5380_v32 }
 0xecb   : > { %v5410_v62 = vmul.f32 0.35355338, %v8045_v20  ;;  %v5383_v47 = vpop.f32.mrb[175].mxu0  ;;  %v12817_v32 = vsel %vm15187_vm5, %v5409_v38, -1e+30  ;;  %v8304_v20 = vld [vmem:[%s13801_s1 + $0xb0] sm:$0xff]  }
 0xecc   : > { %5441 = vmax.xlane.f32.xlu0 %v12777_v27  ;;  %v5408_v45 = vmul.f32 0.35355338, %v5383_v47  ;;  %v12807_v5 = vsel %vm15183_vm14, %v5407_v35, -1e+30  ;;  %7994 = vmatprep.subr.bf16.mxu1 %v8304_v20  ;;  %vm15221_vm14 = vcmp.eq.f32.partialorder %v15074_v22, 0.0  ;;  %vm15223_vm5 = vcmp.eq.f32.partialorder %v15081_v11, 0.0 }
 0xecd   : > { %v12782_v33 = vsel %vm15173_vm7, %v5410_v62, -1e+30  ;;  %7995 = vmatpush3.bf16.msra.mxu1 %v8304_v20 }
 0xece   : > { %5457 = vmax.xlane.f32.xlu1 %v12782_v33  ;;  %v12812_v55 = vsel %vm15185_vm12, %v5408_v45, -1e+30  ;;  %7996 = vmatprep.subr.bf16.mxu1 %v8305_v25  ;;  %vm15222_vm12 = vcmp.eq.f32.partialorder %v15077_v19, 0.0 }
 0xed0   : > { %5447 = vmax.xlane.f32.xlu0 %v12787_v57 }
 0xed1   : > { %7997 = vmatpush3.bf16.msra.mxu1 %v8305_v25 }
 0xed4   : > { %5443 = vmax.xlane.f32.xlu0 %v12792_v36  ;;  %7999 = vmatmul.mubr.msk.bf16.vlgmr.msra.gmra.mrb[128].mxu1 %vm15188_vm3, %v15032_v60  ;;  %vm15224_vm3 = vcmp.eq.f32.partialorder %v14933_v46, 0.0 }
 0xed5   : > { %8002 = vmatprep.mubr.msk.bf16.mxu1 %vm15189_vm15, %v15104_v14 }
 0xed8   : > { %5449 = vmax.xlane.f32.xlu0 %v12797_v26 }
 0xedc   : > { %5445 = vmax.xlane.f32.xlu0 %v12802_v28  ;;  %8003 = vmatmul.mubr.msk.bf16.gmra.mrb[132].mxu1 %vm15190_vm1, %v15106_v61 }
 0xedd   : > { %8006 = vmatprep.mubr.msk.bf16.mxu1 %vm15191_vm8, %v15108_v41 }
 0xee0   : > { %5451 = vmax.xlane.f32.xlu0 %v12807_v5 }
 0xee4   : > { %5453 = vmax.xlane.f32.xlu0 %v12812_v55  ;;  %8007 = vmatmul.mubr.msk.bf16.gmra.mrb[136].mxu1 %vm15192_vm10, %v15110_v24 }
 0xee5   : > { %8010 = vmatprep.mubr.msk.bf16.mxu1 %vm15193_vm4, %v15112_v58 }
 0xee8   : > { %5455 = vmax.xlane.f32.xlu0 %v12817_v32 }
 0xeec   : > { %8011 = vmatmul.mubr.msk.bf16.gmra.mrb[140].mxu1 %vm15194_vm0, %v15114_v18 }
 0xf41   : > { %v5432_v54 = vpop.xlane.xlu0 %5431 }
 0xf42   : > { %v5461_v21 = vsub.f32 %v12742_v0, %v5432_v54 }
 0xf44   : > { %v5479_v47 = vmul.f32 1.442695, %v5461_v21 }
 0xf45   : > { %v5428_v60 = vpop.xlane.xlu0 %5427 }
 0xf46   : > { %v5459_v14 = vsub.f32 %v12747_v17, %v5428_v60 }
 0xf48   : > { %v5475_v62 = vmul.f32 1.442695, %v5459_v14 }
 0xf49   : > { %v5434_v61 = vpop.xlane.xlu0 %5433 }
 0xf4a   : > { %8632 = vpow2.f32 %v5475_v62  ;;  %v5462_v41 = vsub.f32 %v12752_v39, %v5434_v61 }
 0xf4b   : > { %8634 = vpow2.f32 %v5479_v47 }
 0xf4c   : > { %v5438_v24 = vpop.xlane.xlu1 %5437  ;;  %v5481_v49 = vmul.f32 1.442695, %v5462_v41 }
 0xf4d   : > { %v5430_v4 = vpop.xlane.xlu0 %5429  ;;  %v5464_v18 = vsub.f32 %v12757_v10, %v5438_v24 }
 0xf4e   : > { %v5460_v58 = vsub.f32 %v12762_v37, %v5430_v4 }
 0xf4f   : > { %v5485_v1 = vmul.f32 1.442695, %v5464_v18 }
 0xf50   : > { %v5477_v42 = vmul.f32 1.442695, %v5460_v58 }
 0xf51   : > { %v5436_v9 = vpop.xlane.xlu0 %5435 }
 0xf52   : > { %8636 = vpow2.f32 %v5477_v42  ;;  %v5463_v0 = vsub.f32 %v12767_v50, %v5436_v9 }
 0xf53   : > { %8638 = vpow2.f32 %v5481_v49 }
 0xf54   : > { %v12846_v17 = vpop.eup %8632  ;;  %v5483_v31 = vmul.f32 1.442695, %v5463_v0 }
 0xf55   : > { %v5440_v7 = vpop.xlane.xlu0 %5439  ;;  %5507 = vadd.xlane.f32.xlu0 %v12846_v17  ;;  %v12850_v37 = vpop.eup %8634 }
 0xf56   : > { %8640 = vpow2.f32 %v5483_v31  ;;  %v5465_v39 = vsub.f32 %v12772_v16, %v5440_v7 }
 0xf57   : > { %8642 = vpow2.f32 %v5485_v1 }
 0xf58   : > { %v5487_v35 = vmul.f32 1.442695, %v5465_v39 }
 0xf59   : > { %v5442_v10 = vpop.xlane.xlu0 %5441  ;;  %5511 = vadd.xlane.f32.xlu0 %v12850_v37 }
 0xf5a   : > { %8644 = vpow2.f32 %v5487_v35  ;;  %v5466_v50 = vsub.f32 %v12777_v27, %v5442_v10 }
 0xf5b   : > { %v5458_v4 = vpop.xlane.xlu1 %5457 }
 0xf5c   : > { %v12854_v52 = vpop.eup %8636  ;;  %v5489_v45 = vmul.f32 1.442695, %v5466_v50  ;;  %v5474_v49 = vsub.f32 %v12782_v33, %v5458_v4 }
 0xf5d   : > { %v5448_v53 = vpop.xlane.xlu0 %5447  ;;  %5509 = vadd.xlane.f32.xlu1 %v12854_v52  ;;  %v12857_v34 = vpop.eup %8638 }
 0xf5e   : > { %8646 = vpow2.f32 %v5489_v45  ;;  %v5469_v13 = vsub.f32 %v12787_v57, %v5448_v53  ;;  %v5505_v0 = vmul.f32 1.442695, %v5474_v49 }
 0xf60   : > { %v12859_v16 = vpop.eup %8640  ;;  %v5495_v21 = vmul.f32 1.442695, %v5469_v13 }
 0xf61   : > { %v5444_v38 = vpop.xlane.xlu0 %5443  ;;  %5513 = vadd.xlane.f32.xlu1 %v12857_v34  ;;  %5515 = vadd.xlane.f32.xlu0 %v12859_v16  ;;  %v12865_v20 = vpop.eup %8642 }
 0xf62   : > { %v5467_v27 = vsub.f32 %v12792_v36, %v5444_v38 }
 0xf64   : > { %v12867_v25 = vpop.eup %8644  ;;  %v5491_v54 = vmul.f32 1.442695, %v5467_v27 }
 0xf65   : > { %v5450_v60 = vpop.xlane.xlu0 %5449  ;;  %5517 = vadd.xlane.f32.xlu1 %v12865_v20  ;;  %5519 = vadd.xlane.f32.xlu0 %v12867_v25 }
 0xf66   : > { %8648 = vpow2.f32 %v5491_v54  ;;  %v5470_v62 = vsub.f32 %v12797_v26, %v5450_v60 }
 0xf67   : > { %8650 = vpow2.f32 %v5495_v21 }
 0xf68   : > { %v12871_v14 = vpop.eup %8646  ;;  %v5497_v47 = vmul.f32 1.442695, %v5470_v62 }
 0xf69   : > { %v5446_v61 = vpop.xlane.xlu0 %5445  ;;  %5521 = vadd.xlane.f32.xlu1 %v12871_v14 }
 0xf6a   : > { %v5468_v57 = vsub.f32 %v12802_v28, %v5446_v61 }
 0xf6c   : > { %v5493_v36 = vmul.f32 1.442695, %v5468_v57 }
 0xf6d   : > { %v5452_v41 = vpop.xlane.xlu0 %5451 }
 0xf6e   : > { %8652 = vpow2.f32 %v5493_v36  ;;  %v5471_v24 = vsub.f32 %v12807_v5, %v5452_v41 }
 0xf6f   : > { %8654 = vpow2.f32 %v5497_v47 }
 0xf70   : > { %v12877_v58 = vpop.eup %8648  ;;  %v5499_v42 = vmul.f32 1.442695, %v5471_v24 }
 0xf71   : > { %5523 = vadd.xlane.f32.xlu0 %v12877_v58  ;;  %v5454_v26 = vpop.xlane.xlu0 %5453  ;;  %v12882_v28 = vpop.eup %8650 }
 0xf72   : > { %8656 = vpow2.f32 %v5499_v42  ;;  %v5472_v18 = vsub.f32 %v12812_v55, %v5454_v26 }
 0xf74   : > { %v5501_v9 = vmul.f32 1.442695, %v5472_v18 }
 0xf75   : > { %5527 = vadd.xlane.f32.xlu0 %v12882_v28  ;;  %v5456_v31 = vpop.xlane.xlu0 %5455 }
 0xf76   : > { %8658 = vpow2.f32 %v5501_v9  ;;  %v5473_v5 = vsub.f32 %v12817_v32, %v5456_v31 }
 0xf77   : > { %8660 = vpow2.f32 %v5505_v0 }
 0xf78   : > { %v12886_v1 = vpop.eup %8652  ;;  %v5503_v33 = vmul.f32 1.442695, %v5473_v5  ;;  %v15199_v5 = vld [vmem:[#allocation193_spill] sm:$0xff] }
 0xf79   : > { %5525 = vadd.xlane.f32.xlu1 %v12886_v1  ;;  %v12889_v7 = vpop.eup %8654 }
 0xf7a   : > { %8662 = vpow2.f32 %v5503_v33 }
 0xf7c   : > { %v12891_v55 = vpop.eup %8656 }
 0xf7d   : > { %5529 = vadd.xlane.f32.xlu1 %v12889_v7  ;;  %5531 = vadd.xlane.f32.xlu0 %v12891_v55 }
 0xf80   : > { %v12895_v39 = vpop.eup %8658 }
 0xf81   : > { %5533 = vadd.xlane.f32.xlu1 %v12895_v39  ;;  %v12898_v32 = vpop.eup %8660 }
 0xf84   : > { %v12900_v35 = vpop.eup %8662 }
 0xf85   : > { %15195 = vst [vmem:[#allocation99_spill] sm:$0xff] %v12900_v35  ;;  %5537 = vadd.xlane.f32.xlu1 %v12898_v32  ;;  %5535 = vadd.xlane.f32.xlu0 %v12900_v35  ;;  %v15203_v35 = vld [vmem:[#allocation22_spill] sm:$0xff] }
 0xf86   : > { %vm15204_vm6 = vcmp.eq.f32.partialorder %v15203_v35, 0.0 }
 0xf9b   : > { %5134 = vrot.lane.b32.xlu0 %v12590_v30, %s14297_s24 }
 0xfa7   : > { %v12906_v10 = vpop.f32.mrb[128].mxu1 }
 0xfa8   : > { %v12908_v50 = vpop.f32.mrb[129].mxu1 }
 0xfa9   : > { %v12910_v45 = vpop.f32.mrb[130].mxu1 }
 0xfaa   : > { %v12912_v53 = vpop.f32.mrb[131].mxu1 }
 0xfaf   : > { %v12914_v38 = vpop.f32.mrb[132].mxu1 }
 0xfb0   : > { %v12916_v13 = vpop.f32.mrb[133].mxu1 }
 0xfb1   : > { %v12918_v27 = vpop.f32.mrb[134].mxu1 }
 0xfb2   : > { %v12920_v60 = vpop.f32.mrb[135].mxu1 }
 0xfb7   : > { %v12922_v30 = vpop.f32.mrb[136].mxu1 }
 0xfb8   : > { %v12924_v62 = vpop.f32.mrb[137].mxu1 }
 0xfb9   : > { %v12926_v61 = vpop.f32.mrb[138].mxu1 }
 0xfba   : > { %v12928_v36 = vpop.f32.mrb[139].mxu1 }
 0xfbf   : > { %v12931_v42 = vpop.f32.mrb[140].mxu1 }
 0xfc0   : > { %15196 = vst [vmem:[#allocation104_spill] sm:$0xff] %v12931_v42  ;;  %v12933_v49 = vpop.f32.mrb[141].mxu1 }
 0xfc1   : > { %15197 = vst [vmem:[#allocation110_spill] sm:$0xff] %v12933_v49  ;;  %v12935_v18 = vpop.f32.mrb[142].mxu1  ;;  %v15202_v49 = vld [vmem:[#allocation54_spill] sm:$0xff] }
 0xfc2   : > { %15198 = vst [vmem:[#allocation119_spill] sm:$0xff] %v12935_v18 }
 0xfe2   : > { %v5508_v54 = vpop.xlane.xlu0 %5507 }
 0xfe3   : > { %8664 = vrcp.f32 %v5508_v54  ;;  %v12939_v54 = vpop.f32.mrb[143].mxu1 }
 0xfe6   : > { %v5512_v21 = vpop.xlane.xlu0 %5511 }
 0xfe7   : > { %8666 = vrcp.f32 %v5512_v21  ;;  %v15200_v21 = vld [vmem:[#allocation194_spill] sm:$0xff] }
 0xfea   : > { %v5510_v57 = vpop.xlane.xlu1 %5509 }
 0xfeb   : > { %8668 = vrcp.f32 %v5510_v57 }
 0xfed   : > { %v8665_v47 = vpop.eup %8664 }
 0xfee   : > { %v5514_v41 = vpop.xlane.xlu1 %5513  ;;  %v5516_v4 = vpop.xlane.xlu0 %5515  ;;  %v5555_v24 = vmul.f32 %v8665_v47, %v12846_v17 }
 0xfef   : > { %8670 = vrcp.f32 %v5514_v41  ;;  %v15201_v41 = vld [vmem:[#allocation38_spill] sm:$0xff] }
 0xff0   : > { %8672 = vrcp.f32 %v5516_v4  ;;  %v5571_v33 = vmul.f32 %v5555_v24, %v15199_v5  ;;  %v15206_v5 = vld [vmem:[#allocation18_spill] sm:$0xff] }
 0xff1   : > { %v8667_v26 = vpop.eup %8666  ;;  %vm15207_vm7 = vcmp.eq.f32.partialorder %v15206_v5, 0.0  ;;  %v15210_v5 = vld [vmem:[#allocation37_spill] sm:$0xff] }
 0xff2   : > { %v5518_v9 = vpop.xlane.xlu1 %5517  ;;  %v5520_v0 = vpop.xlane.xlu0 %5519  ;;  %v5557_v31 = vmul.f32 %v8667_v26, %v12850_v37  ;;  %v5587_v42 = vmul.f32 %v15202_v49, %v5571_v33  ;;  %v15209_v49 = vld [vmem:[#allocation195_spill] sm:$0xff] }
 0xff3   : > { %8674 = vrcp.f32 %v5520_v0 }
 0xff4   : > { %v5573_v17 = vmul.f32 %v5557_v31, %v15200_v21  ;;  %8676 = vrcp.f32 %v5518_v9  ;;  %v12952_v31 = vsel %vm15207_vm7, 0.0, %v5587_v42  ;;  %v15208_v21 = vld [vmem:[#allocation192_spill] sm:$0xff] }
 0xff5   : > { %v8669_v57 = vpop.eup %8668  ;;  %v5619_v35 = vand.u32 2147483647, %v12952_v31 }
 0xff6   : > { %v5522_v47 = vpop.xlane.xlu1 %5521  ;;  %v5589_v4 = vmul.f32 %v15201_v41, %v5573_v17  ;;  %v5556_v18 = vmul.f32 %v8669_v57, %v12854_v52 }
 0xff7   : > { %8678 = vrcp.f32 %v5522_v47 }
 0xff8   : > { %v12947_v37 = vsel %vm15204_vm6, 0.0, %v5589_v4  ;;  %v5572_v17 = vmul.f32 %v5556_v18, %v15208_v21  ;;  %v15211_v18 = vld [vmem:[#allocation30_spill] sm:$0xff]  ;;  %vm15248_vm6 = vcmask 1043456  }
 0xff9   : > { %15205 = vst [vmem:[#allocation86_spill] sm:$0xff] %v12947_v37  ;;  %v8671_v24 = vpop.eup %8670  ;;  %v5621_v26 = vand.u32 2147483647, %v12947_v37  ;;  %vm15212_vm9 = vcmp.eq.f32.partialorder %v15211_v18, 0.0  ;;  %vm15249_vm7 = vmmov %vm15248_vm6 }
 0xffa   : > { %v8673_v0 = vpop.eup %8672  ;;  %v5558_v9 = vmul.f32 %v8671_v24, %v12857_v34  ;;  %v5588_v4 = vmul.f32 %v15058_v8, %v5572_v17 }
 0xffb   : > { %5639 = vadd.xlane.f32.xlu1 %v5621_v26  ;;  %v5559_v52 = vmul.f32 %v8673_v0, %v12859_v16  ;;  %v15213_v0 = vld [vmem:[#allocation71_spill] sm:$0xff] }
 0xffc   : > { %v5574_v33 = vmul.f32 %v5558_v9, %v15209_v49  ;;  %v15216_v49 = vld [vmem:[#allocation60_spill] sm:$0xff] }
 0xffd   : > { %v8675_v57 = vpop.eup %8674  ;;  %v5575_v42 = vmul.f32 %v5559_v52, %v15210_v5 }
 0xffe   : > { %v5524_v47 = vpop.xlane.xlu0 %5523  ;;  %v5590_v41 = vmul.f32 %v15056_v43, %v5574_v33  ;;  %v8677_v37 = vpop.eup %8676  ;;  %v5561_v34 = vmul.f32 %v8675_v57, %v12867_v25  ;;  %v15214_v43 = vld [vmem:[#allocation24_spill] sm:$0xff] }
 0xfff   : > { %8680 = vrcp.f32 %v5524_v47  ;;  %5635 = vadd.xlane.f32.xlu1 %v5619_v35  ;;  %vm15215_vm11 = vcmp.eq.f32.partialorder %v15214_v43, 0.0  ;;  %v5591_v17 = vmul.f32 %v15067_v29, %v5575_v42  ;;  %v5560_v25 = vmul.f32 %v8677_v37, %v12865_v20  ;;  %v15217_v35 = vld [vmem:[#allocation48_spill] sm:$0xff] }
0x1000   : > { %v12965_v16 = vsel %vm15212_vm9, 0.0, %v5590_v41  ;;  %v5577_v9 = vmul.f32 %v5561_v34, %v15213_v0  ;;  %v12971_v8 = vsel %vm15215_vm11, 0.0, %v5588_v4  ;;  %v15218_v41 = vld [vmem:[#allocation36_spill] sm:$0xff]  ;;  %vm15251_vm9 = vcmask 64512  }
0x1001   : > { %v8679_v24 = vpop.eup %8678  ;;  %v5622_v26 = vand.u32 2147483647, %v12965_v16  ;;  %v5620_v47 = vand.u32 2147483647, %v12971_v8  ;;  %vm15219_vm13 = vcmp.eq.f32.partialorder %v15218_v41, 0.0  ;;  %v12986_v29 = vsel %vm15220_vm2, 0.0, %v5591_v17  ;;  %vm15252_vm11 = vmmov %vm15251_vm9 }
0x1002   : > { %v5528_v21 = vpop.xlane.xlu0 %5527  ;;  %v5562_v52 = vmul.f32 %v8679_v24, %v12871_v14  ;;  %v5593_v33 = vmul.f32 %v15216_v49, %v5577_v9  ;;  %v5576_v14 = vmul.f32 %v5560_v25, %v15069_v3  ;;  %v5623_v42 = vand.u32 2147483647, %v12986_v29  ;;  %vm15254_vm2 = vmmov %vm15251_vm9 }
0x1003   : > { %8682 = vrcp.f32 %v5528_v21  ;;  %5641 = vadd.xlane.f32.xlu1 %v5622_v26 }
0x1004   : > { %v5578_v57 = vmul.f32 %v5562_v52, %v15217_v35  ;;  %v12981_v5 = vsel %vm15219_vm13, 0.0, %v5593_v33  ;;  %v5592_v15 = vmul.f32 %v15073_v23, %v5576_v14  ;;  %vm15253_vm13 = vmmov %vm15251_vm9 }
0x1005   : > { %v5625_v34 = vand.u32 2147483647, %v12981_v5 }
0x1006   : > { %v5526_v4 = vpop.xlane.xlu1 %5525  ;;  %v5594_v20 = vmul.f32 %v15072_v48, %v5578_v57  ;;  %v13001_v43 = vsel %vm15222_vm12, 0.0, %v5592_v15  ;;  %vm15256_vm12 = vmmov %vm15254_vm2 }
0x1007   : > { %8684 = vrcp.f32 %v5526_v4  ;;  %5637 = vadd.xlane.f32.xlu1 %v5620_v47  ;;  %5647 = vadd.xlane.f32.xlu0 %v5625_v34  ;;  %v5624_v17 = vand.u32 2147483647, %v13001_v43 }
0x1008   : > { %v12993_v26 = vsel %vm15221_vm14, 0.0, %v5594_v20  ;;  %vm15255_vm14 = vmmov %vm15254_vm2 }
0x1009   : > { %v8681_v37 = vpop.eup %8680  ;;  %v5626_v48 = vand.u32 2147483647, %v12993_v26 }
0x100a   : > { %v5530_v18 = vpop.xlane.xlu1 %5529  ;;  %v5532_v24 = vpop.xlane.xlu0 %5531  ;;  %v5563_v0 = vmul.f32 %v8681_v37, %v12877_v58 }
0x100b   : > { %8686 = vrcp.f32 %v5530_v18  ;;  %5643 = vadd.xlane.f32.xlu1 %v5623_v42 }
0x100c   : > { %8688 = vrcp.f32 %v5532_v24  ;;  %v5579_v9 = vmul.f32 %v5563_v0, %v14931_v63  ;;  %v15227_v24 = vld [vmem:[#allocation87_spill] sm:$0xff] }
0x100d   : > { %v8683_v3 = vpop.eup %8682  ;;  %vm15228_vm1 = vcmp.eq.f32.partialorder %v15227_v24, 0.0 }
0x100e   : > { %v5534_v21 = vpop.xlane.xlu1 %5533  ;;  %v5565_v22 = vmul.f32 %v8683_v3, %v12882_v28  ;;  %v5595_v52 = vmul.f32 %v14932_v51, %v5579_v9 }
0x100f   : > { %8690 = vrcp.f32 %v5534_v21  ;;  %5649 = vadd.xlane.f32.xlu1 %v5626_v48  ;;  %v15229_v48 = vld [vmem:[#allocation92_spill] sm:$0xff]  ;;  %v15230_v21 = vld [vmem:[#allocation82_spill] sm:$0xff] }
0x1010   : > { %v5581_v23 = vmul.f32 %v5565_v22, %v15076_v12  ;;  %v13016_v35 = vsel %vm15224_vm3, 0.0, %v5595_v52  ;;  %vm15258_vm3 = vmmov %vm15254_vm2 }
0x1011   : > { %v8685_v58 = vpop.eup %8684  ;;  %v5627_v34 = vand.u32 2147483647, %v13016_v35 }
0x1012   : > { %v5538_v25 = vpop.xlane.xlu1 %5537  ;;  %v5536_v49 = vpop.xlane.xlu0 %5535  ;;  %v5597_v63 = vmul.f32 %v15079_v40, %v5581_v23  ;;  %v5564_v33 = vmul.f32 %v8685_v58, %v12886_v1 }
0x1013   : > { %8692 = vrcp.f32 %v5538_v25  ;;  %5645 = vadd.xlane.f32.xlu1 %v5624_v17  ;;  %v15232_v17 = vld [vmem:[#allocation104_spill] sm:$0xff] }
0x1014   : > { %8694 = vrcp.f32 %v5536_v49  ;;  %v13011_v19 = vsel %vm15223_vm5, 0.0, %v5597_v63  ;;  %v5580_v51 = vmul.f32 %v5564_v33, %v15084_v59  ;;  %v15233_v25 = vld [vmem:[#allocation100_spill] sm:$0xff]  ;;  %v15234_v63 = vld [vmem:[#allocation110_spill] sm:$0xff]  ;;  %vm15257_vm5 = vmmov %vm15254_vm2 }
0x1015   : > { %v8687_v28 = vpop.eup %8686  ;;  %v5629_v12 = vand.u32 2147483647, %v13011_v19 }
0x1016   : > { %v8689_v57 = vpop.eup %8688  ;;  %v5566_v40 = vmul.f32 %v8687_v28, %v12889_v7  ;;  %v5135_v1 = vpop.permute.xlu0 %5134  ;;  %v5596_v7 = vmul.f32 %v15087_v44, %v5580_v51  ;;  %v15235_v28 = vld [vmem:[#allocation119_spill] sm:$0xff]  ;;  %v15236_v51 = vld [vmem:[#allocation90_spill] sm:$0xff] }
0x1017   : > { %5655 = vadd.xlane.f32.xlu1 %v5629_v12  ;;  %v5567_v47 = vmul.f32 %v8689_v57, %v12891_v55  ;;  %v5196_v11 = vadd.f32 %v12914_v38, %v5135_v1  ;;  %v5172_v41 = vadd.f32 %v12908_v50, %v5135_v1  ;;  %v5175_v4 = vadd.f32 %v12912_v53, %v5135_v1 }
0x1018   : > { %v5582_v46 = vmul.f32 %v5566_v40, %v11350_v6  ;;  %v5188_v20 = vadd.f32 %v12916_v13, %v5135_v1  ;;  %v5199_v59 = vadd.f32 %v12918_v27, %v5135_v1  ;;  %v5191_v38 = vadd.f32 %v12920_v60, %v5135_v1  ;;  %v15225_v27 = vld [vmem:[#allocation69_spill] sm:$0xff]  ;;  %v15237_v40 = vld [vmem:[#allocation74_spill] sm:$0xff] }
0x1019   : > { %v8691_v14 = vpop.eup %8690  ;;  %v5583_v37 = vmul.f32 %v5567_v47, %v15088_v56  ;;  %v5723_v55 = vpack.c.bf16 %v5175_v4, %v5172_v41  ;;  %v5180_v18 = vadd.f32 %v12906_v10, %v5135_v1  ;;  %v5183_v13 = vadd.f32 %v12910_v45, %v5135_v1  ;;  %v15240_v4 = vld [vmem:[#allocation103_spill] sm:$0xff] }
0x101a   : > { %v5598_v50 = vmul.f32 %v11359_v2, %v5582_v46  ;;  %v5568_v53 = vmul.f32 %v8691_v14, %v12895_v39  ;;  %v5726_v42 = vpack.c.bf16 %v5199_v59, %v5196_v11  ;;  %v5725_v6 = vpack.c.bf16 %v5191_v38, %v5188_v20  ;;  %v15239_v11 = vld [vmem:[#allocation85_spill] sm:$0xff]  ;;  %v15241_v59 = vld [vmem:[#allocation78_spill] sm:$0xff] }
0x101b   : > { %5651 = vadd.xlane.f32.xlu1 %v5627_v34  ;;  %8046 = vmatprep.subr.bf16.mxu1 %v5723_v55  ;;  %vm15226_vm15 = vcmp.eq.f32.partialorder %v15225_v27, 0.0  ;;  %v5212_v56 = vadd.f32 %v12922_v30, %v5135_v1  ;;  %v5204_v60 = vadd.f32 %v12924_v62, %v5135_v1  ;;  %v13044_v10 = vsel %vm15228_vm1, 0.0, %v5596_v7  ;;  %v15231_v62 = vld [vmem:[#allocation99_spill] sm:$0xff]  ;;  %v15243_v7 = vld [vmem:[#allocation84_spill] sm:$0xff] }
0x101c   : > { %v13037_v44 = vsel %vm15226_vm15, 0.0, %v5598_v50  ;;  %8047 = vmatpush3.bf16.msra.mxu1 %v5723_v55  ;;  %v5724_v15 = vpack.c.bf16 %v5183_v13, %v5180_v18  ;;  %v5215_v0 = vadd.f32 %v12926_v61, %v5135_v1  ;;  %v5599_v9 = vmul.f32 %v15229_v48, %v5583_v37  ;;  %v15245_v55 = vld [vmem:[#allocation111_spill] sm:$0xff] }
0x101d   : > { %v8693_v2 = vpop.eup %8692  ;;  %v5630_v39 = vand.u32 2147483647, %v13037_v44  ;;  %v5584_v22 = vmul.f32 %v5568_v53, %v15230_v21  ;;  %v5207_v30 = vadd.f32 %v12928_v36, %v5135_v1  ;;  %v5228_v52 = vadd.f32 %v15232_v17, %v5135_v1  ;;  %v15246_v53 = vld [vmem:[#allocation77_spill] sm:$0xff] }
0x101e   : > { %v8695_v45 = vpop.eup %8694  ;;  %v5570_v3 = vmul.f32 %v8693_v2, %v12898_v32  ;;  %8048 = vmatprep.subr.bf16.mxu1 %v5724_v15  ;;  %v5728_v58 = vpack.c.bf16 %v5215_v0, %v5212_v56  ;;  %v5220_v33 = vadd.f32 %v15234_v63, %v5135_v1  ;;  %v5628_v32 = vand.u32 2147483647, %v13044_v10  ;;  %v15250_v63 = vld [vmem:[#allocation86_spill] sm:$0xff] }
0x101f   : > { %5657 = vadd.xlane.f32.xlu1 %v5630_v39  ;;  %v5569_v23 = vmul.f32 %v8695_v45, %v15231_v62  ;;  %v5727_v61 = vpack.c.bf16 %v5207_v30, %v5204_v60  ;;  %v5231_v12 = vadd.f32 %v15235_v28, %v5135_v1  ;;  %v5223_v36 = vadd.f32 %v12939_v54, %v5135_v1 }
0x1020   : > { %v5586_v49 = vmul.f32 %v5570_v3, %v15233_v25  ;;  %8049 = vmatpush3.bf16.msra.mxu1 %v5724_v15  ;;  %vm15238_vm8 = vcmp.eq.f32.partialorder %v15237_v40, 0.0  ;;  %v5600_v41 = vmul.f32 %v15239_v11, %v5584_v22  ;;  %vm15242_vm10 = vcmp.eq.f32.partialorder %v15241_v59, 0.0 }
0x1021   : > { %8050 = vmatprep.subr.bf16.mxu1 %v5725_v6  ;;  %v13061_v47 = vsel %vm15238_vm8, 0.0, %v5599_v9  ;;  %v5585_v34 = vmul.f32 %v5569_v23, %v15240_v4  ;;  %v5730_v46 = vpack.c.bf16 %v5231_v12, %v5228_v52  ;;  %v5729_v20 = vpack.c.bf16 %v5223_v36, %v5220_v33 }
0x1022   : > { %v5602_v57 = vmul.f32 %v15236_v51, %v5586_v49  ;;  %v5631_v1 = vand.u32 2147483647, %v13061_v47  ;;  %vm15244_vm4 = vcmp.eq.f32.partialorder %v15243_v7, 0.0  ;;  %vm15247_vm0 = vcmp.eq.f32.partialorder %v15246_v53, 0.0 }
0x1023   : > { %5653 = vadd.xlane.f32.xlu1 %v5628_v32  ;;  %v13073_v37 = vsel %vm15244_vm4, 0.0, %v5600_v41  ;;  %v5601_v38 = vmul.f32 %v15245_v55, %v5585_v34  ;;  %vm15259_vm15 = vcmask 261120  }
0x1024   : > { %v13067_v14 = vsel %vm15242_vm10, 0.0, %v5602_v57  ;;  %8051 = vmatpush3.bf16.msra.mxu1 %v5725_v6  ;;  %v5632_v50 = vand.u32 2147483647, %v13073_v37  ;;  %vm15260_vm1 = vmmov %vm15259_vm15 }
0x1025   : > { %v5634_v54 = vand.u32 2147483647, %v13067_v14  ;;  %8052 = vmatprep.subr.bf16.mxu1 %v5726_v42  ;;  %v13079_v18 = vsel %vm15247_vm0, 0.0, %v5601_v38  ;;  %vm15261_vm8 = vmmov %vm15260_vm1 }
0x1026   : > { %v5633_v6 = vand.u32 2147483647, %v13079_v18  ;;  %vm15262_vm10 = vmmov %vm15260_vm1 }
0x1027   : > { %5665 = vadd.xlane.f32.xlu0 %v5634_v54  ;;  %5659 = vadd.xlane.f32.xlu1 %v5631_v1  ;;  %vm15263_vm4 = vmmov %vm15260_vm1 }
0x1028   : > { %8053 = vmatpush3.bf16.msra.mxu1 %v5726_v42  ;;  %v5828_v42 = vld [vmem:[%s13801_s1 + $0xcc] sm:$0xf]  ;;  %vm15264_vm0 = vmmov %vm15260_vm1 }
0x1029   : > { %8054 = vmatprep.subr.bf16.mxu1 %v5727_v61  ;;  %8223 = vmatprep.subr.msk.bf16.mxu0 %vm15248_vm6, %v5828_v42  ;;  %v5862_v13 = vsel %vm15249_vm7, %v5828_v42, 0  ;;  %vm15265_vm6 = vmmov %vm15264_vm0 }
0x102a   : > { %8079 = vmatpush3.bf16.msra.mxu0 %v5862_v13  ;;  %vm15266_vm7 = vmmov %vm15264_vm0 }
0x102b   : > { %5661 = vadd.xlane.f32.xlu1 %v5632_v50 }
0x102c   : > { %8055 = vmatpush3.bf16.msra.mxu1 %v5727_v61 }
0x102d   : > { %8056 = vmatprep.subr.bf16.mxu1 %v5728_v58 }
0x102f   : > { %5663 = vadd.xlane.f32.xlu1 %v5633_v6 }
0x1030   : > { %8057 = vmatpush3.bf16.msra.mxu1 %v5728_v58 }
0x1031   : > { %8058 = vmatprep.subr.bf16.mxu1 %v5729_v20 }
0x1034   : > { %8059 = vmatpush3.bf16.msra.mxu1 %v5729_v20 }
0x1035   : > { %8060 = vmatprep.subr.bf16.mxu1 %v5730_v46 }
0x1038   : > { %8061 = vmatpush3.bf16.msra.mxu1 %v5730_v46 }
0x1088   : > { %v5640_v27 = vpop.xlane.xlu1 %5639 }
0x1089   : > { %v5669_v24 = vmax.f32 %v5640_v27, 1e-12 }
0x108c   : > { %v5636_v56 = vpop.xlane.xlu1 %5635 }
0x108d   : > { %v5667_v2 = vmax.f32 %v5636_v56, 1e-12 }
0x1090   : > { %v5642_v60 = vpop.xlane.xlu1 %5641 }
0x1091   : > { %v5670_v39 = vmax.f32 %v5642_v60, 1e-12 }
0x1093   : > { %8696 = vrcp.f32 %v5670_v39 }
0x1094   : > { %v5638_v15 = vpop.xlane.xlu1 %5637  ;;  %8698 = vrcp.f32 %v5667_v2  ;;  %v5648_v3 = vpop.xlane.xlu0 %5647 }
0x1095   : > { %v5668_v0 = vmax.f32 %v5638_v15, 1e-12  ;;  %8700 = vrcp.f32 %v5669_v24  ;;  %v5673_v30 = vmax.f32 %v5648_v3, 1e-12 }
0x1097   : > { %8702 = vrcp.f32 %v5668_v0 }
0x1098   : > { %v5644_v45 = vpop.xlane.xlu1 %5643 }
0x1099   : > { %v5671_v9 = vmax.f32 %v5644_v45, 1e-12 }
0x109c   : > { %v5650_v48 = vpop.xlane.xlu1 %5649 }
0x109d   : > { %v5674_v21 = vmax.f32 %v5650_v48, 1e-12  ;;  %v8697_v22 = vpop.eup %8696 }
0x109e   : > { %v8699_v62 = vpop.eup %8698  ;;  %v5702_v52 = vmul.f32 %v8697_v22, %v12965_v16 }
0x109f   : > { %v8701_v23 = vpop.eup %8700  ;;  %8704 = vrcp.f32 %v5674_v21  ;;  %v5699_v49 = vmul.f32 %v8699_v62, %v12952_v31 }
0x10a0   : > { %v5646_v58 = vpop.xlane.xlu1 %5645  ;;  %8706 = vrcp.f32 %v5671_v9  ;;  %v5701_v33 = vmul.f32 %v8701_v23, %v15250_v63 }
0x10a1   : > { %v8703_v17 = vpop.eup %8702  ;;  %v5672_v25 = vmax.f32 %v5646_v58, 1e-12  ;;  %8708 = vrcp.f32 %v5673_v30 }
0x10a2   : > { %v5700_v61 = vmul.f32 %v8703_v17, %v12971_v8  ;;  %v5716_v12 = vpack.c.bf16 %v5702_v52, %v5701_v33 }
0x10a3   : > { %8710 = vrcp.f32 %v5672_v25 }
0x10a4   : > { %v5656_v32 = vpop.xlane.xlu1 %5655  ;;  %v5715_v28 = vpack.c.bf16 %v5700_v61, %v5699_v49 }
0x10a5   : > { %v5677_v34 = vmax.f32 %v5656_v32, 1e-12 }
0x10a6   : > { %8062 = vmatprep.mubr.bf16.mxu1 %v5715_v28 }
0x10a7   : > { %8063 = vmatmul.mubr.bf16.vlgmr.msra.gmra.mrb[144].mxu1 %v5716_v12 }
0x10a8   : > { %v5652_v36 = vpop.xlane.xlu1 %5651 }
0x10a9   : > { %v8705_v51 = vpop.eup %8704  ;;  %v5675_v41 = vmax.f32 %v5652_v36, 1e-12 }
0x10aa   : > { %v8707_v57 = vpop.eup %8706  ;;  %v5706_v31 = vmul.f32 %v8705_v51, %v12993_v26 }
0x10ab   : > { %v8709_v40 = vpop.eup %8708  ;;  %v5703_v8 = vmul.f32 %v8707_v57, %v12986_v29 }
0x10ac   : > { %v5658_v16 = vpop.xlane.xlu1 %5657  ;;  %v5705_v20 = vmul.f32 %v8709_v40, %v12981_v5 }
0x10ad   : > { %v8711_v11 = vpop.eup %8710  ;;  %v5678_v4 = vmax.f32 %v5658_v16, 1e-12 }
0x10ae   : > { %v5704_v46 = vmul.f32 %v8711_v11, %v13001_v43  ;;  %v5718_v7 = vpack.c.bf16 %v5706_v31, %v5705_v20  ;;  %v13114_v11 = vld [vmem:[%s13802_s2] ss:$0 sm:$0xff] }
0x10af   : > { %8712 = vrcp.f32 %v5678_v4  ;;  %v8810_v20 = vld [vmem:[%s9031_s17] sm:$0xff] }
0x10b0   : > { %v5654_v59 = vpop.xlane.xlu1 %5653  ;;  %v5717_v54 = vpack.c.bf16 %v5704_v46, %v5703_v8  ;;  %8714 = vrcp.f32 %v5675_v41 }
0x10b1   : > { %v5676_v1 = vmax.f32 %v5654_v59, 1e-12  ;;  %8716 = vrcp.f32 %v5677_v34 }
0x10b2   : > { %8066 = vmatprep.mubr.bf16.mxu1 %v5717_v54 }
0x10b3   : > { %8718 = vrcp.f32 %v5676_v1  ;;  %8067 = vmatmul.mubr.bf16.gmra.mrb[148].mxu1 %v5718_v7  ;;  %v8811_v7 = vld [vmem:[%s9031_s17 + $0x10] sm:$0xff] }
0x10b4   : > { %v5660_v55 = vpop.xlane.xlu1 %5659  ;;  %v5666_v26 = vpop.xlane.xlu0 %5665 }
0x10b5   : > { %v5679_v38 = vmax.f32 %v5660_v55, 1e-12  ;;  %v5682_v29 = vmax.f32 %v5666_v26, 1e-12 }
0x10b7   : > { %8720 = vrcp.f32 %v5679_v38  ;;  %v8812_v38 = vld [vmem:[%s9031_s17 + $0x8] sm:$0xff] }
0x10b8   : > { %v5662_v50 = vpop.xlane.xlu1 %5661 }
0x10b9   : > { %v5680_v53 = vmax.f32 %v5662_v50, 1e-12  ;;  %v8713_v43 = vpop.eup %8712 }
0x10ba   : > { %v8715_v6 = vpop.eup %8714  ;;  %v5710_v56 = vmul.f32 %v8713_v43, %v13037_v44 }
0x10bb   : > { %8722 = vrcp.f32 %v5680_v53  ;;  %v8717_v5 = vpop.eup %8716  ;;  %v5707_v60 = vmul.f32 %v8715_v6, %v13016_v35 }
0x10bc   : > { %v5664_v42 = vpop.xlane.xlu1 %5663  ;;  %8724 = vrcp.f32 %v5682_v29  ;;  %v5709_v39 = vmul.f32 %v8717_v5, %v13011_v19  ;;  %v8813_v29 = vld [vmem:[%s9031_s17 + $0x18] sm:$0xff] }
0x10bd   : > { %v8719_v13 = vpop.eup %8718  ;;  %v5681_v27 = vmax.f32 %v5664_v42, 1e-12 }
0x10be   : > { %v5708_v2 = vmul.f32 %v8719_v13, %v13044_v10  ;;  %v5720_v15 = vpack.c.bf16 %v5710_v56, %v5709_v39  ;;  %v8814_v39 = vld [vmem:[%s9031_s17 + $0x20] sm:$0xff] }
0x10bf   : > { %8726 = vrcp.f32 %v5681_v27 }
0x10c0   : > { %v5719_v24 = vpack.c.bf16 %v5708_v2, %v5707_v60 }
0x10c1   : > { %v8721_v0 = vpop.eup %8720 }
0x10c2   : > { %8070 = vmatprep.mubr.bf16.mxu1 %v5719_v24  ;;  %v5711_v3 = vmul.f32 %v8721_v0, %v13061_v47 }
0x10c3   : > { %8071 = vmatmul.mubr.bf16.gmra.mrb[152].mxu1 %v5720_v15 }
0x10c5   : > { %v8723_v45 = vpop.eup %8722 }
0x10c6   : > { %v5712_v48 = vmul.f32 %v8723_v45, %v13073_v37  ;;  %v8725_v9 = vpop.eup %8724  ;;  %v8815_v45 = vld [vmem:[%s9031_s17 + $0x30] sm:$0xff] }
0x10c7   : > { %v5714_v10 = vmul.f32 %v8725_v9, %v13067_v14 }
0x10c8   : > { %v5721_v21 = vpack.c.bf16 %v5712_v48, %v5711_v3  ;;  %v8816_v48 = vld [vmem:[%s9031_s17 + $0x28] sm:$0xff] }
0x10c9   : > { %v8727_v44 = vpop.eup %8726 }
0x10ca   : > { %8074 = vmatprep.mubr.bf16.mxu1 %v5721_v21  ;;  %v5713_v35 = vmul.f32 %v8727_v44, %v13079_v18  ;;  %v8817_v44 = vld [vmem:[%s9031_s17 + $0x38] sm:$0xff] }
0x10cc   : > { %v5722_v22 = vpack.c.bf16 %v5714_v10, %v5713_v35 }
0x10ce   : > { %8075 = vmatmul.mubr.bf16.gmra.mrb[156].mxu1 %v5722_v22 }
0x117a   : > { %v8064_v19 = vpop.f32.mrb[144].mxu1 }
0x117b   : > { %v5765_v30 = vpop.f32.mrb[145].mxu1 }
0x117c   : > { %v8065_v62 = vpop.f32.mrb[146].mxu1 }
0x117d   : > { %v5830_v23 = vpack.c.bf16 %v8065_v62, %v8064_v19  ;;  %v5768_v58 = vpop.f32.mrb[147].mxu1 }
0x117e   : > { %v5829_v17 = vpack.c.bf16 %v5768_v58, %v5765_v30 }
0x1180   : > { %8080 = vmatprep.mubr.msk.bf16.mxu0 %vm15251_vm9, %v5829_v17  ;;  %vm15267_vm9 = vmmov %vm15264_vm0 }
0x1181   : > { %8081 = vmatmul.mubr.msk.bf16.vlgmr.msra.gmra.mrb[96].mxu0 %vm15252_vm11, %v5830_v23  ;;  %vm15268_vm11 = vmmov %vm15264_vm0 }
0x1186   : > { %v8068_v47 = vpop.f32.mrb[148].mxu1 }
0x1187   : > { %v5781_v37 = vpop.f32.mrb[149].mxu1 }
0x1188   : > { %v8069_v52 = vpop.f32.mrb[150].mxu1 }
0x1189   : > { %v5832_v25 = vpack.c.bf16 %v8069_v52, %v8068_v47  ;;  %v5784_v49 = vpop.f32.mrb[151].mxu1 }
0x118a   : > { %v5831_v18 = vpack.c.bf16 %v5784_v49, %v5781_v37  ;;  %v8818_v37 = vld [vmem:[%s9031_s17 + $0x40] sm:$0xff] }
0x118c   : > { %8084 = vmatprep.mubr.msk.bf16.mxu0 %vm15253_vm13, %v5831_v18  ;;  %v8819_v18 = vld [vmem:[%s9031_s17 + $0x50] sm:$0xff]  ;;  %vm15269_vm13 = vmmov %vm15264_vm0 }
0x118d   : > { %8085 = vmatmul.mubr.msk.bf16.gmra.mrb[100].mxu0 %vm15254_vm2, %v5832_v25  ;;  %vm15270_vm2 = vmmov %vm15264_vm0 }
0x1196   : > { %v8072_v14 = vpop.f32.mrb[152].mxu1 }
0x1197   : > { %v5797_v61 = vpop.f32.mrb[153].mxu1 }
0x1198   : > { %v8073_v63 = vpop.f32.mrb[154].mxu1 }
0x1199   : > { %v5834_v33 = vpack.c.bf16 %v8073_v63, %v8072_v14  ;;  %v5800_v32 = vpop.f32.mrb[155].mxu1 }
0x119a   : > { %v5833_v28 = vpack.c.bf16 %v5800_v32, %v5797_v61  ;;  %v8820_v61 = vld [vmem:[%s9031_s17 + $0x48] sm:$0xff]  ;;  %v8821_v32 = vld [vmem:[%s9031_s17 + $0x58] sm:$0xff] }
0x119c   : > { %8088 = vmatprep.mubr.msk.bf16.mxu0 %vm15255_vm14, %v5833_v28  ;;  %vm15271_vm14 = vmmov %vm15264_vm0 }
0x119d   : > { %8089 = vmatmul.mubr.msk.bf16.gmra.mrb[104].mxu0 %vm15256_vm12, %v5834_v33  ;;  %vm15272_vm12 = vmmov %vm15264_vm0 }
0x11a1   : > { %v8076_v12 = vpop.f32.mrb[156].mxu1 }
0x11a2   : > { %v5813_v36 = vpop.f32.mrb[157].mxu1 }
0x11a3   : > { %v8077_v51 = vpop.f32.mrb[158].mxu1 }
0x11a4   : > { %v5836_v57 = vpack.c.bf16 %v8077_v51, %v8076_v12  ;;  %v5816_v40 = vpop.f32.mrb[159].mxu1 }
0x11a5   : > { %v5835_v16 = vpack.c.bf16 %v5816_v40, %v5813_v36 }
0x11a7   : > { %8092 = vmatprep.mubr.msk.bf16.mxu0 %vm15257_vm5, %v5835_v16  ;;  %vm15273_vm5 = vmmov %vm15264_vm0 }
0x11a8   : > { %8093 = vmatmul.mubr.msk.bf16.gmra.mrb[108].mxu0 %vm15258_vm3, %v5836_v57  ;;  %vm15274_vm3 = vmmov %vm15264_vm0 }
0x1254   : > { %v8082_v41 = vpop.f32.mrb[96].mxu0 }
0x1255   : > { %v5898_v4 = vpop.f32.mrb[97].mxu0  ;;  %v5984_v31 = vadd.f32 %v8082_v41, %v13114_v11 }
0x1256   : > { %v5982_v34 = vadd.f32 %v13114_v11, %v5898_v4  ;;  %v8083_v8 = vpop.f32.mrb[98].mxu0 }
0x1257   : > { %v5901_v46 = vpop.f32.mrb[99].mxu0  ;;  %v5985_v54 = vadd.f32 %v8083_v8, %v13114_v11  ;;  %v13124_v55 = vadd.f32 %v8811_v7, %v5984_v31  ;;  %v8824_v7 = vld [vmem:[%s9031_s17 + $0x68] sm:$0xff] }
0x1258   : > { %v13119_v59 = vadd.f32 %v8810_v20, %v5982_v34  ;;  %v5983_v1 = vadd.f32 %v13114_v11, %v5901_v46  ;;  %v8822_v34 = vld [vmem:[%s9031_s17 + $0x60] sm:$0xff] }
0x1259   : > { %v13132_v53 = vadd.f32 %v8813_v29, %v5985_v54  ;;  %v6022_v6 = vsel %vm15261_vm8, %v13124_v55, 0.0  ;;  %v8823_v54 = vld [vmem:[%s9031_s17 + $0x70] sm:$0xff]  ;;  %v8825_v29 = vld [vmem:[%s9031_s17 + $0x78] sm:$0xff]  ;;  %vm15277_vm8 = vmmov %vm15264_vm0  ;;  %s6893_s17 = sshll.u32 %s13671_s10, 4  ;;  %s13752_s17 = int_to_ptr.vmem [resolvable:$true] %s6893_s17 }
0x125a   : > { %v13127_v26 = vadd.f32 %v8812_v38, %v5983_v1  ;;  %v6016_v50 = vsel %vm15259_vm15, %v13119_v59, 0.0  ;;  %vm15275_vm15 = vmmov %vm15264_vm0  ;;  %s8826_s9 = scalar_lea.vmem %s13752_s17, 2048  ;;  %p8833_p1 = scmp.lt.s32.totalorder %s13752_s17, %s8831_s23 }
0x125b   : > { %6017 = vadd.xlane.f32.xlu1 %v6016_v50  ;;  %v6025_v42 = vsel %vm15262_vm10, %v13132_v53, 0.0  ;;  %vm15278_vm10 = vmmov %vm15264_vm0  ;;  %p8827_p12 = scmp.ne.s32.totalorder %s13752_s17, %s8826_s9  ;;  %p8834_p2 = scmp.lt.s32.totalorder %s8832_s30, %s8826_s9 }
0x125c   : > { %v6019_v43 = vsel %vm15260_vm1, %v13127_v26, 0.0  ;;  %vm15276_vm1 = vmmov %vm15264_vm0 }
0x125d   : > { %6020 = vadd.xlane.f32.xlu0 %v6019_v43  ;;  %p8828_p13 = pnand %p8827_p12, %p8989_p5  ;;  %p8835_p3 = por %p8834_p2, %p8833_p1 }
0x125f   : > { %6023 = vadd.xlane.f32.xlu1 %v6022_v6  ;;  %p8829_p0 = pneg %p8828_p13 }
0x1260   : > { %v8086_v5 = vpop.f32.mrb[100].mxu0 }
0x1261   : > { %6026 = vadd.xlane.f32.xlu0 %v6025_v42  ;;  %v5914_v13 = vpop.f32.mrb[101].mxu0  ;;  %v5988_v27 = vadd.f32 %v8086_v5, %v13114_v11  ;;  %p8836_p4 = pnand %p8835_p3, %p8829_p0 }
0x1262   : > { %v5986_v56 = vadd.f32 %v13114_v11, %v5914_v13  ;;  %v8087_v60 = vpop.f32.mrb[102].mxu0 }
0x1263   : > { %v5917_v2 = vpop.f32.mrb[103].mxu0  ;;  %v5989_v15 = vadd.f32 %v8087_v60, %v13114_v11  ;;  %v13148_v3 = vadd.f32 %v8815_v45, %v5988_v27 }
0x1264   : > { %v13143_v24 = vadd.f32 %v8814_v39, %v5986_v56  ;;  %v5987_v0 = vadd.f32 %v13114_v11, %v5917_v2 }
0x1265   : > { %v13156_v35 = vadd.f32 %v8817_v44, %v5989_v15  ;;  %v6034_v22 = vsel %vm15265_vm6, %v13148_v3, 0.0  ;;  %vm15280_vm6 = vmmov %vm15264_vm0 }
0x1266   : > { %v13151_v9 = vadd.f32 %v8816_v48, %v5987_v0  ;;  %v6028_v21 = vsel %vm15263_vm4, %v13143_v24, 0.0  ;;  %vm15279_vm4 = vmmov %vm15264_vm0 }
0x1267   : > { %6029 = vadd.xlane.f32.xlu1 %v6028_v21  ;;  %v6037_v19 = vsel %vm15266_vm7, %v13156_v35, 0.0  ;;  %vm15281_vm7 = vmmov %vm15264_vm0 }
0x1268   : > { %v6031_v10 = vsel %vm15264_vm0, %v13151_v9, 0.0 }
0x1269   : > { %6032 = vadd.xlane.f32.xlu0 %v6031_v10 }
0x126b   : > { %6035 = vadd.xlane.f32.xlu1 %v6034_v22 }
0x126d   : > { %6038 = vadd.xlane.f32.xlu0 %v6037_v19 }
0x1270   : > { %v8090_v30 = vpop.f32.mrb[104].mxu0 }
0x1271   : > { %v5930_v62 = vpop.f32.mrb[105].mxu0  ;;  %v5992_v23 = vadd.f32 %v8090_v30, %v13114_v11 }
0x1272   : > { %v5990_v58 = vadd.f32 %v13114_v11, %v5930_v62  ;;  %v8091_v17 = vpop.f32.mrb[106].mxu0 }
0x1273   : > { %v5933_v47 = vpop.f32.mrb[107].mxu0  ;;  %v5993_v25 = vadd.f32 %v8091_v17, %v13114_v11  ;;  %v13172_v14 = vadd.f32 %v8819_v18, %v5992_v23 }
0x1274   : > { %v13167_v52 = vadd.f32 %v8818_v37, %v5990_v58  ;;  %v5991_v49 = vadd.f32 %v13114_v11, %v5933_v47 }
0x1275   : > { %v13180_v28 = vadd.f32 %v8821_v32, %v5993_v25  ;;  %v6046_v36 = vsel %vm15269_vm13, %v13172_v14, 0.0  ;;  %vm15284_vm13 = vmmov %vm15264_vm0 }
0x1276   : > { %v13175_v63 = vadd.f32 %v8820_v61, %v5991_v49  ;;  %v6040_v33 = vsel %vm15267_vm9, %v13167_v52, 0.0  ;;  %vm15282_vm9 = vmmov %vm15264_vm0 }
0x1277   : > { %6041 = vadd.xlane.f32.xlu1 %v6040_v33  ;;  %v6049_v40 = vsel %vm15270_vm2, %v13180_v28, 0.0  ;;  %vm15285_vm2 = vmmov %vm15264_vm0 }
0x1278   : > { %v6043_v12 = vsel %vm15268_vm11, %v13175_v63, 0.0  ;;  %vm15283_vm11 = vmmov %vm15264_vm0 }
0x1279   : > { %6044 = vadd.xlane.f32.xlu0 %v6043_v12 }
0x127b   : > { %6047 = vadd.xlane.f32.xlu1 %v6046_v36  ;;  %v8094_v51 = vpop.f32.mrb[108].mxu0 }
0x127c   : > { %v5946_v57 = vpop.f32.mrb[109].mxu0  ;;  %v5996_v16 = vadd.f32 %v8094_v51, %v13114_v11 }
0x127d   : > { %v5994_v41 = vadd.f32 %v13114_v11, %v5946_v57  ;;  %6050 = vadd.xlane.f32.xlu0 %v6049_v40  ;;  %v8095_v4 = vpop.f32.mrb[110].mxu0 }
0x127e   : > { %v5949_v31 = vpop.f32.mrb[111].mxu0  ;;  %v5997_v46 = vadd.f32 %v8095_v4, %v13114_v11  ;;  %v13196_v1 = vadd.f32 %v8823_v54, %v5996_v16 }
0x127f   : > { %v13191_v8 = vadd.f32 %v8822_v34, %v5994_v41  ;;  %v5995_v20 = vadd.f32 %v13114_v11, %v5949_v31 }
0x1280   : > { %v13204_v43 = vadd.f32 %v8825_v29, %v5997_v46  ;;  %v6058_v11 = vsel %vm15273_vm5, %v13196_v1, 0.0  ;;  %vm15288_vm5 = vmmov %vm15264_vm0 }
0x1281   : > { %v13199_v38 = vadd.f32 %v8824_v7, %v5995_v20  ;;  %v6052_v50 = vsel %vm15271_vm14, %v13191_v8, 0.0  ;;  %vm15286_vm14 = vmmov %vm15264_vm0 }
0x1282   : > { %6053 = vadd.xlane.f32.xlu1 %v6052_v50  ;;  %v6061_v5 = vsel %vm15274_vm3, %v13204_v43, 0.0  ;;  %vm15289_vm3 = vmmov %vm15264_vm0 }
0x1283   : > { %v6055_v6 = vsel %vm15272_vm12, %v13199_v38, 0.0  ;;  %vm15287_vm12 = vmmov %vm15264_vm0 }
0x1284   : > { %6056 = vadd.xlane.f32.xlu0 %v6055_v6 }
0x1286   : > { %6059 = vadd.xlane.f32.xlu1 %v6058_v11 }
0x1288   : > { %6062 = vadd.xlane.f32.xlu0 %v6061_v5 }
0x12e8   : > { %v6018_v42 = vpop.xlane.xlu1 %6017 }
0x12e9   : > { %v6065_v13 = vmul.f32 0.03125, %v6018_v42 }
0x12ea   : > { %v6021_v27 = vpop.xlane.xlu0 %6020 }
0x12eb   : > { %v13213_v56 = vsub.f32 %v13119_v59, %v6065_v13  ;;  %v6066_v60 = vmul.f32 0.03125, %v6021_v27 }
0x12ec   : > { %v6024_v2 = vpop.xlane.xlu1 %6023 }
0x12ed   : > { %v13216_v39 = vsub.f32 %v13127_v26, %v6066_v60  ;;  %v6067_v15 = vmul.f32 0.03125, %v6024_v2  ;;  %v6097_v0 = vmul.f32 %v13213_v56, %v13213_v56 }
0x12ee   : > { %v6027_v45 = vpop.xlane.xlu0 %6026 }
0x12ef   : > { %v13221_v48 = vsub.f32 %v13124_v55, %v6067_v15  ;;  %v6068_v21 = vmul.f32 0.03125, %v6027_v45  ;;  %v6113_v44 = vsel %vm15275_vm15, %v6097_v0, 0.0  ;;  %v6098_v59 = vmul.f32 %v13216_v39, %v13216_v39  ;;  %vm15290_vm15 = vmmov %vm15264_vm0 }
0x12f0   : > { %6114 = vadd.xlane.f32.xlu1 %v6113_v44 }
0x12f1   : > { %v13227_v10 = vsub.f32 %v13132_v53, %v6068_v21  ;;  %v6116_v26 = vsel %vm15276_vm1, %v6098_v59, 0.0  ;;  %v6099_v22 = vmul.f32 %v13221_v48, %v13221_v48  ;;  %vm15291_vm1 = vmmov %vm15264_vm0 }
0x12f2   : > { %6117 = vadd.xlane.f32.xlu0 %v6116_v26 }
0x12f3   : > { %v6119_v19 = vsel %vm15277_vm8, %v6099_v22, 0.0  ;;  %v6100_v55 = vmul.f32 %v13227_v10, %v13227_v10  ;;  %vm15292_vm8 = vmmov %vm15264_vm0 }
0x12f4   : > { %v6030_v30 = vpop.xlane.xlu1 %6029  ;;  %6120 = vadd.xlane.f32.xlu1 %v6119_v19 }
0x12f5   : > { %v6069_v62 = vmul.f32 0.03125, %v6030_v30  ;;  %v6122_v23 = vsel %vm15278_vm10, %v6100_v55, 0.0  ;;  %vm15293_vm10 = vmmov %vm15264_vm0 }
0x12f6   : > { %6123 = vadd.xlane.f32.xlu0 %v6122_v23  ;;  %v6033_v58 = vpop.xlane.xlu0 %6032 }
0x12f7   : > { %v13237_v53 = vsub.f32 %v13143_v24, %v6069_v62  ;;  %v6070_v17 = vmul.f32 0.03125, %v6033_v58  ;;  %v13317_v58 = vld [vmem:[%s13801_s1 + $0xe0] sm:$0xff]  }
0x12f8   : > { %v6036_v47 = vpop.xlane.xlu1 %6035 }
0x12f9   : > { %v13240_v37 = vsub.f32 %v13151_v9, %v6070_v17  ;;  %v6071_v25 = vmul.f32 0.03125, %v6036_v47  ;;  %v6101_v49 = vmul.f32 %v13237_v53, %v13237_v53 }
0x12fa   : > { %v6039_v18 = vpop.xlane.xlu0 %6038 }
0x12fb   : > { %v13245_v61 = vsub.f32 %v13148_v3, %v6071_v25  ;;  %v6072_v33 = vmul.f32 0.03125, %v6039_v18  ;;  %v6125_v32 = vsel %vm15279_vm4, %v6101_v49, 0.0  ;;  %v6102_v24 = vmul.f32 %v13240_v37, %v13240_v37  ;;  %vm15294_vm4 = vmmov %vm15264_vm0 }
0x12fc   : > { %6126 = vadd.xlane.f32.xlu1 %v6125_v32 }
0x12fd   : > { %v13251_v12 = vsub.f32 %v13156_v35, %v6072_v33  ;;  %v6128_v9 = vsel %vm15264_vm0, %v6102_v24, 0.0  ;;  %v6103_v36 = vmul.f32 %v13245_v61, %v13245_v61 }
0x12fe   : > { %6129 = vadd.xlane.f32.xlu0 %v6128_v9 }
0x12ff   : > { %v6131_v51 = vsel %vm15280_vm6, %v6103_v36, 0.0  ;;  %v6104_v3 = vmul.f32 %v13251_v12, %v13251_v12  ;;  %vm15295_vm6 = vmmov %vm15264_vm0 }
0x1300   : > { %6132 = vadd.xlane.f32.xlu1 %v6131_v51 }
0x1301   : > { %v6134_v57 = vsel %vm15281_vm7, %v6104_v3, 0.0  ;;  %vm15296_vm7 = vmmov %vm15264_vm0 }
0x1302   : > { %6135 = vadd.xlane.f32.xlu0 %v6134_v57 }
0x1304   : > { %v6042_v40 = vpop.xlane.xlu1 %6041 }
0x1305   : > { %v6073_v16 = vmul.f32 0.03125, %v6042_v40 }
0x1306   : > { %v6045_v41 = vpop.xlane.xlu0 %6044 }
0x1307   : > { %v13261_v35 = vsub.f32 %v13167_v52, %v6073_v16  ;;  %v6074_v4 = vmul.f32 0.03125, %v6045_v41 }
0x1308   : > { %v6048_v31 = vpop.xlane.xlu1 %6047 }
0x1309   : > { %v13264_v34 = vsub.f32 %v13175_v63, %v6074_v4  ;;  %v6075_v46 = vmul.f32 0.03125, %v6048_v31  ;;  %v6105_v20 = vmul.f32 %v13261_v35, %v13261_v35  ;;  %v13323_v4 = vld [vmem:[%s13802_s2 + $0x3] ss:$0 sm:$0xff] }
0x130a   : > { %v6051_v54 = vpop.xlane.xlu0 %6050 }
0x130b   : > { %v13269_v7 = vsub.f32 %v13172_v14, %v6075_v46  ;;  %v6076_v50 = vmul.f32 0.03125, %v6051_v54  ;;  %v6137_v29 = vsel %vm15282_vm9, %v6105_v20, 0.0  ;;  %v6106_v52 = vmul.f32 %v13264_v34, %v13264_v34 }
0x130c   : > { %6138 = vadd.xlane.f32.xlu1 %v6137_v29  ;;  %vm15297_vm9 = vcmask 523264  }
0x130d   : > { %v13275_v6 = vsub.f32 %v13180_v28, %v6076_v50  ;;  %v6140_v63 = vsel %vm15283_vm11, %v6106_v52, 0.0  ;;  %v6107_v11 = vmul.f32 %v13269_v7, %v13269_v7  ;;  %vm15298_vm11 = vmmov %vm15297_vm9 }
0x130e   : > { %6141 = vadd.xlane.f32.xlu0 %v6140_v63 }
0x130f   : > { %v6054_v5 = vpop.xlane.xlu1 %6053  ;;  %v6143_v14 = vsel %vm15284_vm13, %v6107_v11, 0.0  ;;  %v6108_v42 = vmul.f32 %v13275_v6, %v13275_v6  ;;  %vm15299_vm13 = vmmov %vm15297_vm9 }
0x1310   : > { %v6077_v13 = vmul.f32 0.03125, %v6054_v5  ;;  %6144 = vadd.xlane.f32.xlu1 %v6143_v14 }
0x1311   : > { %v6057_v27 = vpop.xlane.xlu0 %6056  ;;  %v6146_v60 = vsel %vm15285_vm2, %v6108_v42, 0.0  ;;  %v13331_v42 = vld [vmem:[%s13802_s2 + $0x4] ss:$0 sm:$0xff]  ;;  %vm15300_vm2 = vmmov %vm15297_vm9 }
0x1312   : > { %v13285_v28 = vsub.f32 %v13191_v8, %v6077_v13  ;;  %v6078_v2 = vmul.f32 0.03125, %v6057_v27  ;;  %6147 = vadd.xlane.f32.xlu0 %v6146_v60 }
0x1313   : > { %v6060_v15 = vpop.xlane.xlu1 %6059 }
0x1314   : > { %v13288_v0 = vsub.f32 %v13199_v38, %v6078_v2  ;;  %v6079_v45 = vmul.f32 0.03125, %v6060_v15  ;;  %v6109_v21 = vmul.f32 %v13285_v28, %v13285_v28  ;;  %v8306_v38 = vld [vmem:[%s13801_s1 + $0xd0] sm:$0xff]  }
0x1315   : > { %v6063_v44 = vpop.xlane.xlu0 %6062  ;;  %8096 = vmatprep.subr.bf16.mxu1 %v8306_v38 }
0x1316   : > { %v13293_v59 = vsub.f32 %v13196_v1, %v6079_v45  ;;  %v6080_v26 = vmul.f32 0.03125, %v6063_v44  ;;  %v6149_v22 = vsel %vm15286_vm14, %v6109_v21, 0.0  ;;  %v6110_v8 = vmul.f32 %v13288_v0, %v13288_v0  ;;  %8097 = vmatpush3.bf16.msra.mxu1 %v8306_v38  ;;  %vm15301_vm14 = vmmov %vm15300_vm2 }
0x1317   : > { %6150 = vadd.xlane.f32.xlu1 %v6149_v22 }
0x1318   : > { %v13302_v19 = vsub.f32 %v13204_v43, %v6080_v26  ;;  %v6152_v55 = vsel %vm15287_vm12, %v6110_v8, 0.0  ;;  %v6111_v1 = vmul.f32 %v13293_v59, %v13293_v59  ;;  %v8307_v43 = vld [vmem:[%s13801_s1 + $0xd8] sm:$0xff]   ;;  %vm15302_vm12 = vmmov %vm15300_vm2 }
0x1319   : > { %6153 = vadd.xlane.f32.xlu0 %v6152_v55  ;;  %8098 = vmatprep.subr.bf16.mxu1 %v8307_v43 }
0x131a   : > { %v6155_v30 = vsel %vm15288_vm5, %v6111_v1, 0.0  ;;  %v6112_v62 = vmul.f32 %v13302_v19, %v13302_v19  ;;  %8099 = vmatpush3.bf16.msra.mxu1 %v8307_v43  ;;  %vm15303_vm5 = vmmov %vm15300_vm2 }
0x131b   : > { %6156 = vadd.xlane.f32.xlu1 %v6155_v30  ;;  %8116 = vmatprep.subr.bf16.mxu1 %v13317_v58  ;;  %v8309_v30 = vld [vmem:[%s13801_s1 + $0xe8] sm:$0xff]  }
0x131c   : > { %v6158_v23 = vsel %vm15289_vm3, %v6112_v62, 0.0  ;;  %vm15304_vm3 = vmmov %vm15300_vm2 }
0x131d   : > { %6159 = vadd.xlane.f32.xlu0 %v6158_v23 }
0x137d   : > { %v6115_v17 = vpop.xlane.xlu1 %6114 }
0x137e   : > { %v6161_v47 = vmul.f32 0.03125, %v6115_v17 }
0x137f   : > { %v6118_v25 = vpop.xlane.xlu0 %6117 }
0x1380   : > { %v6177_v49 = vadd.f32 1e-05, %v6161_v47  ;;  %v6162_v18 = vmul.f32 0.03125, %v6118_v25 }
0x1381   : > { %v6121_v33 = vpop.xlane.xlu1 %6120 }
0x1382   : > { %8728 = vrsqrt.f32 %v6177_v49  ;;  %v6178_v32 = vadd.f32 1e-05, %v6162_v18  ;;  %v6163_v24 = vmul.f32 0.03125, %v6121_v33 }
0x1383   : > { %v6124_v9 = vpop.xlane.xlu0 %6123 }
0x1384   : > { %8730 = vrsqrt.f32 %v6178_v32  ;;  %v6179_v36 = vadd.f32 1e-05, %v6163_v24  ;;  %v6164_v51 = vmul.f32 0.03125, %v6124_v9 }
0x1386   : > { %8732 = vrsqrt.f32 %v6179_v36  ;;  %v6180_v3 = vadd.f32 1e-05, %v6164_v51 }
0x1388   : > { %8734 = vrsqrt.f32 %v6180_v3 }
0x1389   : > { %v6127_v57 = vpop.xlane.xlu1 %6126 }
0x138a   : > { %v6165_v40 = vmul.f32 0.03125, %v6127_v57 }
0x138b   : > { %v6130_v16 = vpop.xlane.xlu0 %6129 }
0x138c   : > { %v8729_v41 = vpop.eup %8728  ;;  %v6181_v31 = vadd.f32 1e-05, %v6165_v40  ;;  %v6166_v46 = vmul.f32 0.03125, %v6130_v16 }
0x138d   : > { %v6209_v20 = vmul.f32 %v8729_v41, %v13213_v56  ;;  %v6133_v54 = vpop.xlane.xlu1 %6132 }
0x138e   : > { %v8731_v50 = vpop.eup %8730  ;;  %8736 = vrsqrt.f32 %v6181_v31  ;;  %v6182_v29 = vadd.f32 1e-05, %v6166_v46  ;;  %v6167_v52 = vmul.f32 0.03125, %v6133_v54 }
0x138f   : > { %v6210_v63 = vmul.f32 %v8731_v50, %v13216_v39  ;;  %v6136_v11 = vpop.xlane.xlu0 %6135  ;;  %v6229_v5 = vmul.f32 %v13323_v4, %v6209_v20 }
0x1390   : > { %v8733_v14 = vpop.eup %8732  ;;  %8738 = vrsqrt.f32 %v6182_v29  ;;  %v6183_v13 = vadd.f32 1e-05, %v6167_v52  ;;  %v6168_v27 = vmul.f32 0.03125, %v6136_v11 }
0x1391   : > { %v6211_v56 = vmul.f32 %v8733_v14, %v13221_v48  ;;  %v6230_v60 = vmul.f32 %v13323_v4, %v6210_v63  ;;  %v13338_v21 = vadd.f32 %v13331_v42, %v6229_v5 }
0x1392   : > { %v8735_v2 = vpop.eup %8734  ;;  %8740 = vrsqrt.f32 %v6183_v13  ;;  %v6184_v15 = vadd.f32 1e-05, %v6168_v27 }
0x1393   : > { %v6231_v39 = vmul.f32 %v13323_v4, %v6211_v56  ;;  %v6212_v45 = vmul.f32 %v8735_v2, %v13227_v10  ;;  %v13341_v44 = vadd.f32 %v13331_v42, %v6230_v60 }
0x1394   : > { %8742 = vrsqrt.f32 %v6184_v15 }
0x1395   : > { %v6232_v26 = vmul.f32 %v13323_v4, %v6212_v45  ;;  %v6265_v48 = vpack.c.bf16 %v13341_v44, %v13338_v21  ;;  %v13347_v22 = vadd.f32 %v13331_v42, %v6231_v39 }
0x1397   : > { %v13350_v8 = vadd.f32 %v13331_v42, %v6232_v26  ;;  %8100 = vmatprep.mubr.msk.bf16.mxu1 %vm15290_vm15, %v6265_v48  ;;  %vm15305_vm15 = vmmov %vm15264_vm0 }
0x1398   : > { %v8737_v10 = vpop.eup %8736 }
0x1399   : > { %v6213_v38 = vmul.f32 %v8737_v10, %v13237_v53  ;;  %v6139_v55 = vpop.xlane.xlu1 %6138  ;;  %v6266_v1 = vpack.c.bf16 %v13350_v8, %v13347_v22 }
0x139a   : > { %v8739_v62 = vpop.eup %8738  ;;  %v6169_v23 = vmul.f32 0.03125, %v6139_v55 }
0x139b   : > { %v6214_v43 = vmul.f32 %v8739_v62, %v13240_v37  ;;  %8101 = vmatmul.mubr.msk.bf16.vlgmr.msra.gmra.mrb[160].mxu1 %vm15291_vm1, %v6266_v1  ;;  %v6142_v17 = vpop.xlane.xlu0 %6141  ;;  %v6233_v47 = vmul.f32 %v13323_v4, %v6213_v38  ;;  %vm15306_vm1 = vmmov %vm15264_vm0 }
0x139c   : > { %v8741_v25 = vpop.eup %8740  ;;  %v6185_v49 = vadd.f32 1e-05, %v6169_v23  ;;  %v6170_v53 = vmul.f32 0.03125, %v6142_v17  ;;  %8117 = vmatpush3.bf16.msra.mxu1 %v13317_v58 }
0x139d   : > { %v6215_v18 = vmul.f32 %v8741_v25, %v13245_v61  ;;  %v6145_v33 = vpop.xlane.xlu1 %6144  ;;  %v6234_v32 = vmul.f32 %v13323_v4, %v6214_v43  ;;  %8118 = vmatprep.subr.bf16.mxu1 %v8309_v30  ;;  %v13367_v3 = vadd.f32 %v13331_v42, %v6233_v47 }
0x139e   : > { %v8743_v24 = vpop.eup %8742  ;;  %8744 = vrsqrt.f32 %v6185_v49  ;;  %v6186_v9 = vadd.f32 1e-05, %v6170_v53  ;;  %v6171_v37 = vmul.f32 0.03125, %v6145_v33 }
0x139f   : > { %v6216_v36 = vmul.f32 %v8743_v24, %v13251_v12  ;;  %v6148_v51 = vpop.xlane.xlu0 %6147  ;;  %v13370_v57 = vadd.f32 %v13331_v42, %v6234_v32  ;;  %v6235_v58 = vmul.f32 %v13323_v4, %v6215_v18 }
0x13a0   : > { %8746 = vrsqrt.f32 %v6186_v9  ;;  %v6187_v61 = vadd.f32 1e-05, %v6171_v37  ;;  %v6172_v40 = vmul.f32 0.03125, %v6148_v51  ;;  %8119 = vmatpush3.bf16.msra.mxu1 %v8309_v30 }
0x13a1   : > { %v6267_v16 = vpack.c.bf16 %v13370_v57, %v13367_v3  ;;  %v6236_v41 = vmul.f32 %v13323_v4, %v6216_v36  ;;  %v13378_v31 = vadd.f32 %v13331_v42, %v6235_v58 }
0x13a2   : > { %8748 = vrsqrt.f32 %v6187_v61  ;;  %v6188_v12 = vadd.f32 1e-05, %v6172_v40  ;;  %v8310_v61 = vld [vmem:[%s13801_s1 + $0xf0] sm:$0xff]  }
0x13a3   : > { %8104 = vmatprep.mubr.msk.bf16.mxu1 %vm15292_vm8, %v6267_v16  ;;  %v13381_v46 = vadd.f32 %v13331_v42, %v6236_v41  ;;  %8120 = vmatprep.subr.bf16.mxu1 %v8310_v61  ;;  %vm15307_vm8 = vmmov %vm15264_vm0 }
0x13a4   : > { %8750 = vrsqrt.f32 %v6188_v12  ;;  %v6151_v20 = vpop.xlane.xlu1 %6150  ;;  %8121 = vmatpush3.bf16.msra.mxu1 %v8310_v61 }
0x13a5   : > { %v6173_v54 = vmul.f32 0.03125, %v6151_v20  ;;  %v6268_v50 = vpack.c.bf16 %v13381_v46, %v13378_v31 }
0x13a6   : > { %v6154_v29 = vpop.xlane.xlu0 %6153 }
0x13a7   : > { %v6189_v52 = vadd.f32 1e-05, %v6173_v54  ;;  %v6174_v63 = vmul.f32 0.03125, %v6154_v29  ;;  %8105 = vmatmul.mubr.msk.bf16.gmra.mrb[164].mxu1 %vm15293_vm10, %v6268_v50  ;;  %vm15308_vm10 = vmmov %vm15264_vm0 }
0x13a8   : > { %v8745_v11 = vpop.eup %8744  ;;  %v6157_v5 = vpop.xlane.xlu1 %6156 }
0x13a9   : > { %v6217_v14 = vmul.f32 %v8745_v11, %v13261_v35  ;;  %8752 = vrsqrt.f32 %v6189_v52  ;;  %v6190_v13 = vadd.f32 1e-05, %v6174_v63  ;;  %v6175_v27 = vmul.f32 0.03125, %v6157_v5 }
0x13aa   : > { %v8747_v56 = vpop.eup %8746  ;;  %v6160_v60 = vpop.xlane.xlu0 %6159 }
0x13ab   : > { %v6218_v2 = vmul.f32 %v8747_v56, %v13264_v34  ;;  %8754 = vrsqrt.f32 %v6190_v13  ;;  %v6191_v15 = vadd.f32 1e-05, %v6175_v27  ;;  %v6176_v39 = vmul.f32 0.03125, %v6160_v60 }
0x13ac   : > { %v8749_v45 = vpop.eup %8748  ;;  %v6237_v26 = vmul.f32 %v13323_v4, %v6217_v14 }
0x13ad   : > { %v6219_v48 = vmul.f32 %v8749_v45, %v13269_v7  ;;  %8756 = vrsqrt.f32 %v6191_v15  ;;  %v6192_v10 = vadd.f32 1e-05, %v6176_v39  ;;  %v6238_v38 = vmul.f32 %v13323_v4, %v6218_v2 }
0x13ae   : > { %v8751_v35 = vpop.eup %8750  ;;  %v13392_v55 = vadd.f32 %v13331_v42, %v6237_v26 }
0x13af   : > { %v6220_v1 = vmul.f32 %v8751_v35, %v13275_v6  ;;  %8758 = vrsqrt.f32 %v6192_v10  ;;  %v13396_v34 = vadd.f32 %v13331_v42, %v6238_v38  ;;  %v6239_v30 = vmul.f32 %v13323_v4, %v6219_v48 }
0x13b1   : > { %v6269_v62 = vpack.c.bf16 %v13396_v34, %v13392_v55  ;;  %v6240_v7 = vmul.f32 %v13323_v4, %v6220_v1  ;;  %v13404_v43 = vadd.f32 %v13331_v42, %v6239_v30 }
0x13b3   : > { %v8753_v23 = vpop.eup %8752  ;;  %8108 = vmatprep.mubr.msk.bf16.mxu1 %vm15294_vm4, %v6269_v62  ;;  %v13407_v17 = vadd.f32 %v13331_v42, %v6240_v7  ;;  %vm15309_vm4 = vmmov %vm15264_vm0 }
0x13b4   : > { %v6221_v6 = vmul.f32 %v8753_v23, %v13285_v28 }
0x13b5   : > { %v8755_v47 = vpop.eup %8754  ;;  %v6270_v25 = vpack.c.bf16 %v13407_v17, %v13404_v43 }
0x13b6   : > { %v6222_v49 = vmul.f32 %v8755_v47, %v13288_v0  ;;  %v6241_v53 = vmul.f32 %v13323_v4, %v6221_v6 }
0x13b7   : > { %v8757_v18 = vpop.eup %8756  ;;  %8109 = vmatmul.mubr.msk.bf16.gmra.mrb[168].mxu1 %vm15264_vm0, %v6270_v25 }
0x13b8   : > { %v6223_v33 = vmul.f32 %v8757_v18, %v13293_v59  ;;  %v6242_v32 = vmul.f32 %v13323_v4, %v6222_v49  ;;  %v13419_v28 = vadd.f32 %v13331_v42, %v6241_v53 }
0x13b9   : > { %v8759_v24 = vpop.eup %8758 }
0x13ba   : > { %v6224_v9 = vmul.f32 %v8759_v24, %v13302_v19  ;;  %v13422_v37 = vadd.f32 %v13331_v42, %v6242_v32  ;;  %v6243_v0 = vmul.f32 %v13323_v4, %v6223_v33 }
0x13bc   : > { %v6271_v36 = vpack.c.bf16 %v13422_v37, %v13419_v28  ;;  %v6244_v51 = vmul.f32 %v13323_v4, %v6224_v9  ;;  %v13430_v59 = vadd.f32 %v13331_v42, %v6243_v0  ;;  %v8311_v4 = vld [vmem:[%s13801_s1 + $0xf8] sm:$0xff]  }
0x13bd   : > { %8122 = vmatprep.subr.bf16.mxu1 %v8311_v4 }
0x13be   : > { %8112 = vmatprep.mubr.msk.bf16.mxu1 %vm15295_vm6, %v6271_v36  ;;  %v13433_v19 = vadd.f32 %v13331_v42, %v6244_v51  ;;  %8123 = vmatpush3.bf16.msra.mxu1 %v8311_v4  ;;  %v7190_v42 = vld [vmem:[%s13802_s2 + $0x1] ss:$0 sm:$0xff]  ;;  %vm15310_vm6 = vmmov %vm15264_vm0 }
0x13c0   : > { %v6272_v58 = vpack.c.bf16 %v13433_v19, %v13430_v59 }
0x13c2   : > { %8113 = vmatmul.mubr.msk.bf16.gmra.mrb[172].mxu1 %vm15296_vm7, %v6272_v58  ;;  %vm15311_vm7 = vmmov %vm15264_vm0 }
0x146e   : > { %v8102_v40 = vpop.f32.mrb[160].mxu1 }
0x146f   : > { %v6361_v16 = vadd.f32 %v8102_v40, %v7190_v42  ;;  %v6352_v41 = vpop.f32.mrb[161].mxu1 }
0x1470   : > { %v6353_v12 = vadd.f32 %v7190_v42, %v6352_v41  ;;  %v8103_v20 = vpop.f32.mrb[162].mxu1 }
0x1471   : > { %v6364_v54 = vadd.f32 %v8103_v20, %v7190_v42  ;;  %v6355_v50 = vpop.f32.mrb[163].mxu1  ;;  %v6417_v52 = vmax.f32 %v6361_v16, 0.0 }
0x1472   : > { %v6356_v29 = vadd.f32 %v7190_v42, %v6355_v50  ;;  %v6415_v11 = vmax.f32 %v6353_v12, 0.0 }
0x1473   : > { %v6418_v63 = vmax.f32 %v6364_v54, 0.0 }
0x1474   : > { %v6416_v5 = vmax.f32 %v6356_v29, 0.0 }
0x1475   : > { %v6432_v14 = vpack.c.bf16 %v6418_v63, %v6417_v52  ;;  %v13458_v63 = vld [vmem:[%s13802_s2 + $0x2] ss:$0 sm:$0xff] }
0x1476   : > { %v6431_v13 = vpack.c.bf16 %v6416_v5, %v6415_v11 }
0x1478   : > { %8124 = vmatprep.mubr.msk.bf16.mxu1 %vm15297_vm9, %v6431_v13  ;;  %vm15312_vm9 = vmmov %vm15264_vm0 }
0x1479   : > { %8125 = vmatmul.mubr.msk.bf16.vlgmr.msra.gmra.mrb[176].mxu1 %vm15298_vm11, %v6432_v14  ;;  %vm15313_vm11 = vmmov %vm15264_vm0 }
0x147a   : > { %v8106_v27 = vpop.f32.mrb[164].mxu1 }
0x147b   : > { %v6377_v56 = vadd.f32 %v8106_v27, %v7190_v42  ;;  %v6368_v60 = vpop.f32.mrb[165].mxu1 }
0x147c   : > { %v6369_v2 = vadd.f32 %v7190_v42, %v6368_v60  ;;  %v8107_v15 = vpop.f32.mrb[166].mxu1 }
0x147d   : > { %v6380_v39 = vadd.f32 %v8107_v15, %v7190_v42  ;;  %v6371_v45 = vpop.f32.mrb[167].mxu1  ;;  %v6421_v48 = vmax.f32 %v6377_v56, 0.0 }
0x147e   : > { %v6372_v26 = vadd.f32 %v7190_v42, %v6371_v45  ;;  %v6419_v38 = vmax.f32 %v6369_v2, 0.0 }
0x147f   : > { %v6422_v10 = vmax.f32 %v6380_v39, 0.0 }
0x1480   : > { %v6420_v35 = vmax.f32 %v6372_v26, 0.0 }
0x1481   : > { %v6434_v1 = vpack.c.bf16 %v6422_v10, %v6421_v48 }
0x1482   : > { %v6433_v30 = vpack.c.bf16 %v6420_v35, %v6419_v38 }
0x1484   : > { %8128 = vmatprep.mubr.msk.bf16.mxu1 %vm15299_vm13, %v6433_v30  ;;  %vm15314_vm13 = vmmov %vm15264_vm0 }
0x1485   : > { %8129 = vmatmul.mubr.msk.bf16.gmra.mrb[180].mxu1 %vm15300_vm2, %v6434_v1  ;;  %vm15315_vm2 = vmmov %vm15264_vm0 }
0x148a   : > { %v8110_v62 = vpop.f32.mrb[168].mxu1 }
0x148b   : > { %v6393_v7 = vadd.f32 %v8110_v62, %v7190_v42  ;;  %v6384_v23 = vpop.f32.mrb[169].mxu1 }
0x148c   : > { %v6385_v6 = vadd.f32 %v7190_v42, %v6384_v23  ;;  %v8111_v47 = vpop.f32.mrb[170].mxu1 }
0x148d   : > { %v6396_v25 = vadd.f32 %v8111_v47, %v7190_v42  ;;  %v6387_v49 = vpop.f32.mrb[171].mxu1  ;;  %v6425_v18 = vmax.f32 %v6393_v7, 0.0 }
0x148e   : > { %v6388_v53 = vadd.f32 %v7190_v42, %v6387_v49  ;;  %v6423_v32 = vmax.f32 %v6385_v6, 0.0 }
0x148f   : > { %v6426_v33 = vmax.f32 %v6396_v25, 0.0 }
0x1490   : > { %v6424_v24 = vmax.f32 %v6388_v53, 0.0 }
0x1491   : > { %v6436_v9 = vpack.c.bf16 %v6426_v33, %v6425_v18 }
0x1492   : > { %v6435_v0 = vpack.c.bf16 %v6424_v24, %v6423_v32 }
0x1494   : > { %8132 = vmatprep.mubr.msk.bf16.mxu1 %vm15301_vm14, %v6435_v0  ;;  %vm15316_vm14 = vmmov %vm15264_vm0 }
0x1495   : > { %v8114_v36 = vpop.f32.mrb[172].mxu1  ;;  %8133 = vmatmul.mubr.msk.bf16.gmra.mrb[184].mxu1 %vm15302_vm12, %v6436_v9  ;;  %vm15317_vm12 = vmmov %vm15264_vm0 }
0x1496   : > { %v6409_v51 = vadd.f32 %v8114_v36, %v7190_v42  ;;  %v6400_v58 = vpop.f32.mrb[173].mxu1 }
0x1497   : > { %v6401_v61 = vadd.f32 %v7190_v42, %v6400_v58  ;;  %v8115_v4 = vpop.f32.mrb[174].mxu1 }
0x1498   : > { %v6412_v40 = vadd.f32 %v8115_v4, %v7190_v42  ;;  %v6403_v16 = vpop.f32.mrb[175].mxu1  ;;  %v6429_v12 = vmax.f32 %v6409_v51, 0.0 }
0x1499   : > { %v6404_v41 = vadd.f32 %v7190_v42, %v6403_v16  ;;  %v6427_v54 = vmax.f32 %v6401_v61, 0.0 }
0x149a   : > { %v6430_v20 = vmax.f32 %v6412_v40, 0.0 }
0x149b   : > { %v6428_v50 = vmax.f32 %v6404_v41, 0.0 }
0x149c   : > { %v6438_v29 = vpack.c.bf16 %v6430_v20, %v6429_v12 }
0x149d   : > { %v6437_v52 = vpack.c.bf16 %v6428_v50, %v6427_v54 }
0x149f   : > { %8136 = vmatprep.mubr.msk.bf16.mxu1 %vm15303_vm5, %v6437_v52  ;;  %vm15318_vm5 = vmmov %vm15264_vm0 }
0x14a0   : > { %8137 = vmatmul.mubr.msk.bf16.gmra.mrb[188].mxu1 %vm15304_vm3, %v6438_v29  ;;  %vm15319_vm3 = vmmov %vm15264_vm0 }
0x154c   : > { %v8126_v11 = vpop.f32.mrb[176].mxu1 }
0x154d   : > { %v6543_v5 = vadd.f32 %v8126_v11, %v13458_v63  ;;  %v6534_v14 = vpop.f32.mrb[177].mxu1 }
0x154e   : > { %v6535_v42 = vadd.f32 %v13458_v63, %v6534_v14  ;;  %v8127_v13 = vpop.f32.mrb[178].mxu1 }
0x154f   : > { %v13463_v27 = vadd.f32 %v6543_v5, %v13347_v22  ;;  %v6546_v56 = vadd.f32 %v8127_v13, %v13458_v63  ;;  %v6537_v60 = vpop.f32.mrb[179].mxu1 }
0x1550   : > { %v6538_v2 = vadd.f32 %v13458_v63, %v6537_v60  ;;  %v13468_v15 = vadd.f32 %v6535_v42, %v13338_v21 }
0x1551   : > { %v13471_v39 = vadd.f32 %v6546_v56, %v13350_v8  ;;  %v6621_v45 = vsel %vm15305_vm15, %v13463_v27, 0.0  ;;  %vm15320_vm15 = vmmov %vm15264_vm0 }
0x1552   : > { %6622 = vadd.xlane.f32.xlu1 %v6621_v45  ;;  %v13476_v26 = vadd.f32 %v6538_v2, %v13341_v44  ;;  %v6615_v48 = vsel %vm15307_vm8, %v13468_v15, 0.0  ;;  %vm15322_vm8 = vmmov %vm15264_vm0 }
0x1553   : > { %v6624_v22 = vsel %vm15306_vm1, %v13471_v39, 0.0  ;;  %vm15321_vm1 = vmmov %vm15264_vm0 }
0x1554   : > { %6625 = vadd.xlane.f32.xlu0 %v6624_v22  ;;  %v6618_v21 = vsel %vm15308_vm10, %v13476_v26, 0.0  ;;  %vm15323_vm10 = vmmov %vm15264_vm0 }
0x1556   : > { %6616 = vadd.xlane.f32.xlu1 %v6615_v48 }
0x1558   : > { %v8130_v8 = vpop.f32.mrb[180].mxu1  ;;  %6619 = vadd.xlane.f32.xlu0 %v6618_v21 }
0x1559   : > { %v6559_v10 = vadd.f32 %v8130_v8, %v13458_v63  ;;  %v6550_v38 = vpop.f32.mrb[181].mxu1 }
0x155a   : > { %v6551_v35 = vadd.f32 %v13458_v63, %v6550_v38  ;;  %v8131_v44 = vpop.f32.mrb[182].mxu1 }
0x155b   : > { %v13487_v1 = vadd.f32 %v6559_v10, %v13378_v31  ;;  %v6562_v30 = vadd.f32 %v8131_v44, %v13458_v63  ;;  %v6553_v62 = vpop.f32.mrb[183].mxu1 }
0x155c   : > { %v6554_v7 = vadd.f32 %v13458_v63, %v6553_v62  ;;  %v13492_v23 = vadd.f32 %v6551_v35, %v13367_v3 }
0x155d   : > { %v13495_v6 = vadd.f32 %v6562_v30, %v13381_v46  ;;  %v6633_v47 = vsel %vm15309_vm4, %v13487_v1, 0.0  ;;  %vm15324_vm4 = vmmov %vm15264_vm0 }
0x155e   : > { %6634 = vadd.xlane.f32.xlu1 %v6633_v47  ;;  %v13500_v25 = vadd.f32 %v6554_v7, %v13370_v57  ;;  %v6627_v49 = vsel %vm15310_vm6, %v13492_v23, 0.0  ;;  %vm15325_vm6 = vmmov %vm15264_vm0 }
0x155f   : > { %v6636_v31 = vsel %vm15264_vm0, %v13495_v6, 0.0 }
0x1560   : > { %6637 = vadd.xlane.f32.xlu0 %v6636_v31  ;;  %v6630_v3 = vsel %vm15311_vm7, %v13500_v25, 0.0  ;;  %vm15326_vm7 = vmmov %vm15264_vm0 }
0x1562   : > { %6628 = vadd.xlane.f32.xlu1 %v6627_v49 }
0x1564   : > { %6631 = vadd.xlane.f32.xlu0 %v6630_v3 }
0x1568   : > { %v8134_v46 = vpop.f32.mrb[184].mxu1 }
0x1569   : > { %v6575_v53 = vadd.f32 %v8134_v46, %v13458_v63  ;;  %v6566_v18 = vpop.f32.mrb[185].mxu1 }
0x156a   : > { %v6567_v33 = vadd.f32 %v13458_v63, %v6566_v18  ;;  %v8135_v57 = vpop.f32.mrb[186].mxu1 }
0x156b   : > { %v13511_v32 = vadd.f32 %v6575_v53, %v13404_v43  ;;  %v6578_v24 = vadd.f32 %v8135_v57, %v13458_v63  ;;  %v6569_v9 = vpop.f32.mrb[187].mxu1 }
0x156c   : > { %v6570_v0 = vadd.f32 %v13458_v63, %v6569_v9  ;;  %v13516_v36 = vadd.f32 %v6567_v33, %v13392_v55 }
0x156d   : > { %v13519_v51 = vadd.f32 %v6578_v24, %v13407_v17  ;;  %v6645_v58 = vsel %vm15312_vm9, %v13511_v32, 0.0  ;;  %vm15327_vm9 = vmmov %vm15264_vm0 }
0x156e   : > { %6646 = vadd.xlane.f32.xlu1 %v6645_v58  ;;  %v13524_v61 = vadd.f32 %v6570_v0, %v13396_v34  ;;  %v6639_v4 = vsel %vm15314_vm13, %v13516_v36, 0.0  ;;  %vm15329_vm13 = vmmov %vm15264_vm0 }
0x156f   : > { %v6648_v43 = vsel %vm15313_vm11, %v13519_v51, 0.0  ;;  %vm15328_vm11 = vmmov %vm15264_vm0 }
0x1570   : > { %6649 = vadd.xlane.f32.xlu0 %v6648_v43  ;;  %v6642_v17 = vsel %vm15315_vm2, %v13524_v61, 0.0  ;;  %vm15330_vm2 = vmmov %vm15264_vm0 }
0x1572   : > { %6640 = vadd.xlane.f32.xlu1 %v6639_v4 }
0x1573   : > { %v8138_v55 = vpop.f32.mrb[188].mxu1 }
0x1574   : > { %6643 = vadd.xlane.f32.xlu0 %v6642_v17  ;;  %v6582_v40 = vpop.f32.mrb[189].mxu1  ;;  %v6591_v16 = vadd.f32 %v8138_v55, %v13458_v63 }
0x1575   : > { %v6583_v41 = vadd.f32 %v13458_v63, %v6582_v40  ;;  %v8139_v34 = vpop.f32.mrb[190].mxu1 }
0x1576   : > { %v6585_v12 = vpop.f32.mrb[191].mxu1  ;;  %v6594_v54 = vadd.f32 %v8139_v34, %v13458_v63  ;;  %v13540_v29 = vadd.f32 %v6591_v16, %v13430_v59 }
0x1577   : > { %v13535_v20 = vadd.f32 %v6583_v41, %v13419_v28  ;;  %v6586_v50 = vadd.f32 %v13458_v63, %v6585_v12 }
0x1578   : > { %v13548_v5 = vadd.f32 %v6594_v54, %v13433_v19  ;;  %v6657_v63 = vsel %vm15318_vm5, %v13540_v29, 0.0  ;;  %vm15333_vm5 = vmmov %vm15264_vm0 }
0x1579   : > { %v13543_v52 = vadd.f32 %v6586_v50, %v13422_v37  ;;  %v6651_v11 = vsel %vm15316_vm14, %v13535_v20, 0.0  ;;  %vm15331_vm14 = vmmov %vm15264_vm0 }
0x157a   : > { %6652 = vadd.xlane.f32.xlu1 %v6651_v11  ;;  %v6660_v59 = vsel %vm15319_vm3, %v13548_v5, 0.0  ;;  %vm15334_vm3 = vmmov %vm15264_vm0 }
0x157b   : > { %v6654_v28 = vsel %vm15317_vm12, %v13543_v52, 0.0  ;;  %vm15332_vm12 = vmmov %vm15264_vm0 }
0x157c   : > { %6655 = vadd.xlane.f32.xlu0 %v6654_v28 }
0x157e   : > { %6658 = vadd.xlane.f32.xlu1 %v6657_v63 }
0x1580   : > { %6661 = vadd.xlane.f32.xlu0 %v6660_v59 }
0x15df   : > { %v6623_v37 = vpop.xlane.xlu1 %6622 }
0x15e0   : > { %v6665_v14 = vmul.f32 0.03125, %v6623_v37 }
0x15e1   : > { %v6626_v42 = vpop.xlane.xlu0 %6625 }
0x15e2   : > { %v13557_v13 = vsub.f32 %v13463_v27, %v6665_v14  ;;  %v6666_v19 = vmul.f32 0.03125, %v6626_v42 }
0x15e3   : > { %v6617_v56 = vpop.xlane.xlu1 %6616 }
0x15e4   : > { %v13560_v60 = vsub.f32 %v13471_v39, %v6666_v19  ;;  %v6663_v2 = vmul.f32 0.03125, %v6617_v56  ;;  %v6697_v45 = vmul.f32 %v13557_v13, %v13557_v13 }
0x15e5   : > { %v6620_v22 = vpop.xlane.xlu0 %6619 }
0x15e6   : > { %v13565_v48 = vsub.f32 %v13468_v15, %v6663_v2  ;;  %v6664_v21 = vmul.f32 0.03125, %v6620_v22  ;;  %v6717_v8 = vsel %vm15320_vm15, %v6697_v45, 0.0  ;;  %v6698_v27 = vmul.f32 %v13560_v60, %v13560_v60  ;;  %vm15335_vm15 = vmmov %vm15264_vm0 }
0x15e7   : > { %6718 = vadd.xlane.f32.xlu1 %v6717_v8 }
0x15e8   : > { %v13571_v10 = vsub.f32 %v13476_v26, %v6664_v21  ;;  %v6720_v39 = vsel %vm15321_vm1, %v6698_v27, 0.0  ;;  %v6695_v38 = vmul.f32 %v13565_v48, %v13565_v48  ;;  %vm15336_vm1 = vmmov %vm15264_vm0 }
0x15e9   : > { %6721 = vadd.xlane.f32.xlu0 %v6720_v39 }
0x15ea   : > { %v6711_v35 = vsel %vm15322_vm8, %v6695_v38, 0.0  ;;  %v6696_v15 = vmul.f32 %v13571_v10, %v13571_v10  ;;  %vm15337_vm8 = vmmov %vm15264_vm0 }
0x15eb   : > { %v6635_v44 = vpop.xlane.xlu1 %6634  ;;  %6712 = vadd.xlane.f32.xlu1 %v6711_v35 }
0x15ec   : > { %v6669_v30 = vmul.f32 0.03125, %v6635_v44  ;;  %v6714_v62 = vsel %vm15323_vm10, %v6696_v15, 0.0  ;;  %vm15338_vm10 = vmmov %vm15264_vm0 }
0x15ed   : > { %v6638_v7 = vpop.xlane.xlu0 %6637  ;;  %6715 = vadd.xlane.f32.xlu0 %v6714_v62 }
0x15ee   : > { %v13581_v26 = vsub.f32 %v13487_v1, %v6669_v30  ;;  %v6670_v47 = vmul.f32 0.03125, %v6638_v7 }
0x15ef   : > { %v6629_v31 = vpop.xlane.xlu1 %6628 }
0x15f0   : > { %v13584_v49 = vsub.f32 %v13495_v6, %v6670_v47  ;;  %v6667_v3 = vmul.f32 0.03125, %v6629_v31  ;;  %v6701_v46 = vmul.f32 %v13581_v26, %v13581_v26 }
0x15f1   : > { %v6632_v53 = vpop.xlane.xlu0 %6631 }
0x15f2   : > { %v13589_v18 = vsub.f32 %v13492_v23, %v6667_v3  ;;  %v6668_v33 = vmul.f32 0.03125, %v6632_v53  ;;  %v6729_v57 = vsel %vm15324_vm4, %v6701_v46, 0.0  ;;  %v6702_v1 = vmul.f32 %v13584_v49, %v13584_v49  ;;  %vm15339_vm4 = vmmov %vm15264_vm0 }
0x15f3   : > { %6730 = vadd.xlane.f32.xlu1 %v6729_v57 }
0x15f4   : > { %v13595_v24 = vsub.f32 %v13500_v25, %v6668_v33  ;;  %v6732_v6 = vsel %vm15264_vm0, %v6702_v1, 0.0  ;;  %v6699_v9 = vmul.f32 %v13589_v18, %v13589_v18 }
0x15f5   : > { %6733 = vadd.xlane.f32.xlu0 %v6732_v6 }
0x15f6   : > { %v6723_v0 = vsel %vm15325_vm6, %v6699_v9, 0.0  ;;  %v6700_v23 = vmul.f32 %v13595_v24, %v13595_v24  ;;  %vm15340_vm6 = vmmov %vm15264_vm0 }
0x15f7   : > { %6724 = vadd.xlane.f32.xlu1 %v6723_v0 }
0x15f8   : > { %v6726_v58 = vsel %vm15326_vm7, %v6700_v23, 0.0  ;;  %vm15341_vm7 = vmmov %vm15264_vm0 }
0x15f9   : > { %6727 = vadd.xlane.f32.xlu0 %v6726_v58 }
0x15fb   : > { %v6647_v43 = vpop.xlane.xlu1 %6646 }
0x15fc   : > { %v6673_v4 = vmul.f32 0.03125, %v6647_v43  ;;  %v13656_v43 = vld [vmem:[%s13802_s2 + $0x5] ss:$0 sm:$0xff] }
0x15fd   : > { %v6650_v55 = vpop.xlane.xlu0 %6649 }
0x15fe   : > { %v13605_v25 = vsub.f32 %v13511_v32, %v6673_v4  ;;  %v6674_v17 = vmul.f32 0.03125, %v6650_v55 }
0x15ff   : > { %v6641_v40 = vpop.xlane.xlu1 %6640 }
0x1600   : > { %v13608_v16 = vsub.f32 %v13519_v51, %v6674_v17  ;;  %v6671_v41 = vmul.f32 0.03125, %v6641_v40  ;;  %v6705_v34 = vmul.f32 %v13605_v25, %v13605_v25 }
0x1601   : > { %v6644_v12 = vpop.xlane.xlu0 %6643 }
0x1602   : > { %v13613_v54 = vsub.f32 %v13516_v36, %v6671_v41  ;;  %v6672_v50 = vmul.f32 0.03125, %v6644_v12  ;;  %v6741_v11 = vsel %vm15327_vm9, %v6705_v34, 0.0  ;;  %v6706_v32 = vmul.f32 %v13608_v16, %v13608_v16  ;;  %v13664_v34 = vld [vmem:[%s13802_s2 + $0x6] ss:$0 sm:$0xff]  ;;  %vm15342_vm9 = vmmov %vm15264_vm0 }
0x1603   : > { %6742 = vadd.xlane.f32.xlu1 %v6741_v11 }
0x1604   : > { %v13619_v28 = vsub.f32 %v13524_v61, %v6672_v50  ;;  %v6744_v51 = vsel %vm15328_vm11, %v6706_v32, 0.0  ;;  %v6703_v63 = vmul.f32 %v13613_v54, %v13613_v54  ;;  %vm15343_vm11 = vmmov %vm15264_vm0 }
0x1605   : > { %6745 = vadd.xlane.f32.xlu0 %v6744_v51 }
0x1606   : > { %v6735_v59 = vsel %vm15329_vm13, %v6703_v63, 0.0  ;;  %v6704_v36 = vmul.f32 %v13619_v28, %v13619_v28  ;;  %vm15344_vm13 = vmmov %vm15264_vm0 }
0x1607   : > { %6736 = vadd.xlane.f32.xlu1 %v6735_v59  ;;  %v6653_v37 = vpop.xlane.xlu1 %6652 }
0x1608   : > { %v6675_v14 = vmul.f32 0.03125, %v6653_v37  ;;  %v6738_v42 = vsel %vm15330_vm2, %v6704_v36, 0.0  ;;  %vm15345_vm2 = vmmov %vm15264_vm0 }
0x1609   : > { %6739 = vadd.xlane.f32.xlu0 %v6738_v42  ;;  %v6656_v19 = vpop.xlane.xlu0 %6655 }
0x160a   : > { %v13629_v61 = vsub.f32 %v13535_v20, %v6675_v14  ;;  %v6676_v56 = vmul.f32 0.03125, %v6656_v19 }
0x160b   : > { %v6659_v2 = vpop.xlane.xlu1 %6658 }
0x160c   : > { %v13632_v45 = vsub.f32 %v13543_v52, %v6676_v56  ;;  %v6677_v22 = vmul.f32 0.03125, %v6659_v2  ;;  %v6707_v21 = vmul.f32 %v13629_v61, %v13629_v61 }
0x160d   : > { %v6662_v8 = vpop.xlane.xlu0 %6661 }
0x160e   : > { %v13637_v27 = vsub.f32 %v13540_v29, %v6677_v22  ;;  %v6678_v39 = vmul.f32 0.03125, %v6662_v8  ;;  %v6747_v38 = vsel %vm15331_vm14, %v6707_v21, 0.0  ;;  %v6708_v20 = vmul.f32 %v13632_v45, %v13632_v45  ;;  %vm15346_vm14 = vmmov %vm15264_vm0 }
0x160f   : > { %6748 = vadd.xlane.f32.xlu1 %v6747_v38 }
0x1610   : > { %v13643_v35 = vsub.f32 %v13548_v5, %v6678_v39  ;;  %v6750_v52 = vsel %vm15332_vm12, %v6708_v20, 0.0  ;;  %v6709_v15 = vmul.f32 %v13637_v27, %v13637_v27  ;;  %vm15347_vm12 = vmmov %vm15264_vm0 }
0x1611   : > { %6751 = vadd.xlane.f32.xlu0 %v6750_v52 }
0x1612   : > { %v6753_v44 = vsel %vm15333_vm5, %v6709_v15, 0.0  ;;  %v6710_v29 = vmul.f32 %v13643_v35, %v13643_v35  ;;  %vm15348_vm5 = vmmov %vm15264_vm0 }
0x1613   : > { %6754 = vadd.xlane.f32.xlu1 %v6753_v44 }
0x1614   : > { %v6756_v30 = vsel %vm15334_vm3, %v6710_v29, 0.0  ;;  %vm15349_vm3 = vmmov %vm15264_vm0 }
0x1615   : > { %6757 = vadd.xlane.f32.xlu0 %v6756_v30 }
0x1674   : > { %v6719_v62 = vpop.xlane.xlu1 %6718 }
0x1675   : > { %v6761_v7 = vmul.f32 0.03125, %v6719_v62 }
0x1676   : > { %v6722_v5 = vpop.xlane.xlu0 %6721 }
0x1677   : > { %v6777_v47 = vadd.f32 1e-05, %v6761_v7  ;;  %v6762_v31 = vmul.f32 0.03125, %v6722_v5 }
0x1678   : > { %v6713_v3 = vpop.xlane.xlu1 %6712 }
0x1679   : > { %8760 = vrsqrt.f32 %v6777_v47  ;;  %v6778_v46 = vadd.f32 1e-05, %v6762_v31  ;;  %v6759_v53 = vmul.f32 0.03125, %v6713_v3 }
0x167a   : > { %v6716_v33 = vpop.xlane.xlu0 %6715 }
0x167b   : > { %8762 = vrsqrt.f32 %v6778_v46  ;;  %v6775_v57 = vadd.f32 1e-05, %v6759_v53  ;;  %v6760_v1 = vmul.f32 0.03125, %v6716_v33 }
0x167d   : > { %8764 = vrsqrt.f32 %v6775_v57  ;;  %v6776_v6 = vadd.f32 1e-05, %v6760_v1 }
0x167f   : > { %8766 = vrsqrt.f32 %v6776_v6 }
0x1680   : > { %v6731_v9 = vpop.xlane.xlu1 %6730 }
0x1681   : > { %v6765_v0 = vmul.f32 0.03125, %v6731_v9 }
0x1682   : > { %v6734_v23 = vpop.xlane.xlu0 %6733 }
0x1683   : > { %v8761_v58 = vpop.eup %8760  ;;  %v6781_v4 = vadd.f32 1e-05, %v6765_v0  ;;  %v6766_v55 = vmul.f32 0.03125, %v6734_v23 }
0x1684   : > { %v6809_v17 = vmul.f32 %v8761_v58, %v13557_v13  ;;  %v6725_v40 = vpop.xlane.xlu1 %6724 }
0x1685   : > { %v8763_v41 = vpop.eup %8762  ;;  %8768 = vrsqrt.f32 %v6781_v4  ;;  %v6782_v12 = vadd.f32 1e-05, %v6766_v55  ;;  %v6763_v50 = vmul.f32 0.03125, %v6725_v40 }
0x1686   : > { %v6829_v11 = vmul.f32 %v13656_v43, %v6809_v17  ;;  %v6810_v32 = vmul.f32 %v8763_v41, %v13560_v60  ;;  %v6728_v51 = vpop.xlane.xlu0 %6727 }
0x1687   : > { %v8765_v63 = vpop.eup %8764  ;;  %8770 = vrsqrt.f32 %v6782_v12  ;;  %v6779_v59 = vadd.f32 1e-05, %v6763_v50  ;;  %v6764_v36 = vmul.f32 0.03125, %v6728_v51 }
0x1688   : > { %v6849_v13 = vadd.f32 %v13664_v34, %v6829_v11  ;;  %v6830_v37 = vmul.f32 %v13656_v43, %v6810_v32  ;;  %v6807_v14 = vmul.f32 %v8765_v63, %v13565_v48 }
0x1689   : > { %v8767_v42 = vpop.eup %8766  ;;  %8772 = vrsqrt.f32 %v6779_v59  ;;  %v6780_v19 = vadd.f32 1e-05, %v6764_v36 }
0x168a   : > { %6865 = vst.msk [vmem:[%s13671_s10 + $0x10] sm:$0xff] %vm15335_vm15, %v6849_v13  ;;  %v6850_v60 = vadd.f32 %v13664_v34, %v6830_v37  ;;  %v6827_v56 = vmul.f32 %v13656_v43, %v6807_v14  ;;  %v6808_v2 = vmul.f32 %v8767_v42, %v13571_v10 }
0x168b   : > { %8774 = vrsqrt.f32 %v6780_v19 }
0x168c   : > { %6866 = vst.msk [vmem:[%s13671_s10 + $0x18] sm:$0xff] %vm15336_vm1, %v6850_v60  ;;  %v6847_v48 = vadd.f32 %v13664_v34, %v6827_v56  ;;  %v6828_v22 = vmul.f32 %v13656_v43, %v6808_v2 }
0x168e   : > { %6863 = vst.msk [vmem:[%s13671_s10] sm:$0xff] %vm15337_vm8, %v6847_v48  ;;  %v6848_v21 = vadd.f32 %v13664_v34, %v6828_v22 }
0x168f   : > { %v8769_v8 = vpop.eup %8768 }
0x1690   : > { %6864 = vst.msk [vmem:[%s13671_s10 + $0x8] sm:$0xff] %vm15338_vm10, %v6848_v21  ;;  %v6813_v39 = vmul.f32 %v8769_v8, %v13581_v26  ;;  %v6743_v38 = vpop.xlane.xlu1 %6742 }
0x1691   : > { %v8771_v20 = vpop.eup %8770  ;;  %v6769_v10 = vmul.f32 0.03125, %v6743_v38 }
0x1692   : > { %v6833_v52 = vmul.f32 %v13656_v43, %v6813_v39  ;;  %v6814_v15 = vmul.f32 %v8771_v20, %v13584_v49  ;;  %v6746_v44 = vpop.xlane.xlu0 %6745 }
0x1693   : > { %v8773_v29 = vpop.eup %8772  ;;  %v6785_v30 = vadd.f32 1e-05, %v6769_v10  ;;  %v6770_v62 = vmul.f32 0.03125, %v6746_v44 }
0x1694   : > { %v6853_v7 = vadd.f32 %v13664_v34, %v6833_v52  ;;  %v6834_v5 = vmul.f32 %v13656_v43, %v6814_v15  ;;  %v6811_v47 = vmul.f32 %v8773_v29, %v13589_v18  ;;  %v6737_v26 = vpop.xlane.xlu1 %6736 }
0x1695   : > { %v8775_v31 = vpop.eup %8774  ;;  %8776 = vrsqrt.f32 %v6785_v30  ;;  %v6786_v3 = vadd.f32 1e-05, %v6770_v62  ;;  %v6767_v46 = vmul.f32 0.03125, %v6737_v26 }
0x1696   : > { %6869 = vst.msk [vmem:[%s13671_s10 + $0x30] sm:$0xff] %vm15339_vm4, %v6853_v7  ;;  %v6854_v49 = vadd.f32 %v13664_v34, %v6834_v5  ;;  %v6831_v53 = vmul.f32 %v13656_v43, %v6811_v47  ;;  %v6812_v33 = vmul.f32 %v8775_v31, %v13595_v24  ;;  %v6740_v57 = vpop.xlane.xlu0 %6739 }
0x1697   : > { %8778 = vrsqrt.f32 %v6786_v3  ;;  %v6783_v1 = vadd.f32 1e-05, %v6767_v46  ;;  %v6768_v6 = vmul.f32 0.03125, %v6740_v57 }
0x1698   : > { %6870 = vst.msk [vmem:[%s13671_s10 + $0x38] sm:$0xff] %vm15264_vm0, %v6854_v49  ;;  %v6851_v18 = vadd.f32 %v13664_v34, %v6831_v53  ;;  %v6832_v9 = vmul.f32 %v13656_v43, %v6812_v33 }
0x1699   : > { %8780 = vrsqrt.f32 %v6783_v1  ;;  %v6784_v0 = vadd.f32 1e-05, %v6768_v6 }
0x169a   : > { %6867 = vst.msk [vmem:[%s13671_s10 + $0x20] sm:$0xff] %vm15340_vm6, %v6851_v18  ;;  %v6852_v23 = vadd.f32 %v13664_v34, %v6832_v9 }
0x169b   : > { %8782 = vrsqrt.f32 %v6784_v0 }
0x169c   : > { %6868 = vst.msk [vmem:[%s13671_s10 + $0x28] sm:$0xff] %vm15341_vm7, %v6852_v23  ;;  %v6749_v24 = vpop.xlane.xlu1 %6748 }
0x169d   : > { %v6771_v58 = vmul.f32 0.03125, %v6749_v24 }
0x169e   : > { %v6752_v4 = vpop.xlane.xlu0 %6751 }
0x169f   : > { %v8777_v55 = vpop.eup %8776  ;;  %v6787_v17 = vadd.f32 1e-05, %v6771_v58  ;;  %v6772_v40 = vmul.f32 0.03125, %v6752_v4 }
0x16a0   : > { %v6817_v41 = vmul.f32 %v8777_v55, %v13605_v25  ;;  %v6755_v12 = vpop.xlane.xlu1 %6754 }
0x16a1   : > { %v8779_v50 = vpop.eup %8778  ;;  %8784 = vrsqrt.f32 %v6787_v17  ;;  %v6788_v11 = vadd.f32 1e-05, %v6772_v40  ;;  %v6773_v32 = vmul.f32 0.03125, %v6755_v12 }
0x16a2   : > { %v6837_v51 = vmul.f32 %v13656_v43, %v6817_v41  ;;  %v6818_v63 = vmul.f32 %v8779_v50, %v13608_v16  ;;  %v6758_v59 = vpop.xlane.xlu0 %6757 }
0x16a3   : > { %v8781_v36 = vpop.eup %8780  ;;  %8786 = vrsqrt.f32 %v6788_v11  ;;  %v6789_v13 = vadd.f32 1e-05, %v6773_v32  ;;  %v6774_v37 = vmul.f32 0.03125, %v6758_v59 }
0x16a4   : > { %v6857_v14 = vadd.f32 %v13664_v34, %v6837_v51  ;;  %v6838_v25 = vmul.f32 %v13656_v43, %v6818_v63  ;;  %v6815_v42 = vmul.f32 %v8781_v36, %v13613_v54 }
0x16a5   : > { %v8783_v19 = vpop.eup %8782  ;;  %8788 = vrsqrt.f32 %v6789_v13  ;;  %v6790_v60 = vadd.f32 1e-05, %v6774_v37 }
0x16a6   : > { %6873 = vst.msk [vmem:[%s13671_s10 + $0x50] sm:$0xff] %vm15342_vm9, %v6857_v14  ;;  %v6858_v16 = vadd.f32 %v13664_v34, %v6838_v25  ;;  %v6835_v56 = vmul.f32 %v13656_v43, %v6815_v42  ;;  %v6816_v2 = vmul.f32 %v8783_v19, %v13619_v28 }
0x16a7   : > { %8790 = vrsqrt.f32 %v6790_v60 }
0x16a8   : > { %6874 = vst.msk [vmem:[%s13671_s10 + $0x58] sm:$0xff] %vm15343_vm11, %v6858_v16  ;;  %v6855_v48 = vadd.f32 %v13664_v34, %v6835_v56  ;;  %v6836_v22 = vmul.f32 %v13656_v43, %v6816_v2 }
0x16aa   : > { %6871 = vst.msk [vmem:[%s13671_s10 + $0x40] sm:$0xff] %vm15344_vm13, %v6855_v48  ;;  %v6856_v54 = vadd.f32 %v13664_v34, %v6836_v22 }
0x16ab   : > { %v8785_v21 = vpop.eup %8784 }
0x16ac   : > { %6872 = vst.msk [vmem:[%s13671_s10 + $0x48] sm:$0xff] %vm15345_vm2, %v6856_v54  ;;  %v6819_v28 = vmul.f32 %v8785_v21, %v13629_v61 }
0x16ad   : > { %v8787_v8 = vpop.eup %8786 }
0x16ae   : > { %v6839_v39 = vmul.f32 %v13656_v43, %v6819_v28  ;;  %v6820_v38 = vmul.f32 %v8787_v8, %v13632_v45 }
0x16af   : > { %v8789_v20 = vpop.eup %8788 }
0x16b0   : > { %v6859_v10 = vadd.f32 %v13664_v34, %v6839_v39  ;;  %v6840_v52 = vmul.f32 %v13656_v43, %v6820_v38  ;;  %v6821_v15 = vmul.f32 %v8789_v20, %v13637_v27 }
0x16b1   : > { %v8791_v44 = vpop.eup %8790 }
0x16b2   : > { %6875 = vst.msk [vmem:[%s13671_s10 + $0x60] sm:$0xff] %vm15346_vm14, %v6859_v10  ;;  %v6860_v61 = vadd.f32 %v13664_v34, %v6840_v52  ;;  %v6841_v29 = vmul.f32 %v13656_v43, %v6821_v15  ;;  %v6822_v45 = vmul.f32 %v8791_v44, %v13643_v35 }
0x16b4   : > { %6876 = vst.msk [vmem:[%s13671_s10 + $0x68] sm:$0xff] %vm15347_vm12, %v6860_v61  ;;  %v6861_v30 = vadd.f32 %v13664_v34, %v6841_v29  ;;  %v6842_v62 = vmul.f32 %v13656_v43, %v6822_v45 }
0x16b6   : > { %6877 = vst.msk [vmem:[%s13671_s10 + $0x70] sm:$0xff] %vm15348_vm5, %v6861_v30  ;;  %v6862_v27 = vadd.f32 %v13664_v34, %v6842_v62 }
0x16b8   : > { %6878 = vst.msk [vmem:[%s13671_s10 + $0x78] sm:$0xff] %vm15349_vm3, %v6862_v27 }
0x16b9   : > { %8839 = shalt.err (!%p8836_p4)
}
0x16ba   : > { %s8840_s16 = scalar_lea.hbm %s13747_s20, 2048  ;;  %s8844_s22 = scalar_lea.hbm %s13807_s7, 4096 }
0x16bb   : > { %p8841_p7 = scmp.ne.s32.totalorder %s13747_s20, %s8840_s16  ;;  %p8845_p10 = scmp.lt.u32.totalorder %s13747_s20, %s13807_s7 }
0x16bc   : > { %p8846_p11 = scmp.lt.u32.totalorder %s8844_s22, %s8840_s16  ;;  %p8848_p13 = scmp.lt.u32.totalorder %s8840_s16, %s13747_s20 }
0x16bd   : > { %p8842_p8 = pnand %p8841_p7, %p8989_p5 }
0x16be   : > { %p8847_p12 = por %p8846_p11, %p8845_p10 }
0x16bf   : > { %p8843_p9 = pneg %p8842_p8 }
0x16c0   : > { %p8849_p0 = por %p8848_p13, %p8847_p12 }
0x16c2   : > { %p8850_p1 = pnand %p8849_p0, %p8843_p9 }
0x16c4   : > { %8853 = shalt.err (!%p8850_p1)
}
0x16c5   : > { %s8907_s14 = smov 128  }
0x16c6   : > { %8224 = dma.vmem_to_hbm [thread:$0]  (%p8989_p5), %s13752_s17, 2048, %s13747_s20, %s13758_s0, %s8907_s14, %s8907_s14, %s14120_s25  }
0x16c7 PF: > { %p8230_p2 = scmp.ge.s32.totalorder %s8888_s29, 2  ;;  %s6908_s19 = sand.u32 1, %s8876_s26  }
0x16c8   : > { %s6909_s9 = scalar_lea.sflag [#allocation4], %s6908_s19 }
0x16c9   : > { %p8227_p3 = pnand %p8230_p2, %p8993_p6 }
0x16cb   : > { %8871 = dma.done.wait (!%p8227_p3), %s6909_s9, 2048  }
0x16cc   : > { %8873 = vsyncadd (!%p8227_p3), %s6909_s9, 4294965248  ;;  %p18_p4 = scmp.ge.s32.totalorder %s8976_s8, 4   ;;  %s15350_s26 = smov %s8880_s27 }
0x16cd   : > { %s15351_s27 = smov %s8884_s28  ;;  %s15352_s28 = smov %s8987_s11 }
0x16ce   : > { %s15353_s29 = smov %s8976_s8  ;;  %20 = sbr.rel (!%p18_p4) target bundleno = 5 (0x5), region = 92 }
0x16d5   :  { %6914 = vsyncpa [#allocation4], 1 }
0x16d6   :  { %6916 = vsyncpa [#allocation4 + $0x1], 1 }

</bundles_post_ra>
